<compile_context>
chip_gen: v7x
topology: tpu7x:2x2x1
jax: 0.10.0
libtpu: 0.0.40
codegen_flags: <defaults>
</compile_context>

<pallas_src>
import functools
import math

import jax
import jax.numpy as jnp
from jax import lax
from jax.experimental import pallas as pl
from jax.experimental.pallas import tpu as pltpu


_PAR = pltpu.CompilerParams(dimension_semantics=("parallel",))


# ----------------------------------------------------------------------------
# Small helpers
# ----------------------------------------------------------------------------

def _round_up(x, m):
    return ((x + m - 1) // m) * m


def _row_tiles(M):
    """Row-tile size (multiple of 16) and padded row count for an M-row kernel."""
    Mr = _round_up(M, 16)
    if Mr > 2048:
        TM = 1024
    elif Mr >= 256 and Mr % 32 == 0:
        TM = Mr // 2          # >= 2 parallel grid steps (v7x has 2 TensorCores)
    else:
        TM = Mr
    return TM, _round_up(M, TM)


def _pad_rows(x, Mp):
    M = x.shape[0]
    if Mp > M:
        x = jnp.pad(x, ((0, Mp - M),) + ((0, 0),) * (x.ndim - 1))
    return x


def _b2(b, N):
    if b is None:
        b = jnp.zeros((N,), jnp.float32)
    return jnp.asarray(b, jnp.float32).reshape(1, N)


# In-kernel math helpers (f32).
def _erf(x):
    # Abramowitz & Stegun 7.1.26 polynomial erf (max abs err ~1.5e-7); keeps
    # exact-erf GELU semantics of nn.GELU while lowering cleanly in Mosaic.
    a1, a2, a3, a4, a5 = 0.254829592, -0.284496736, 1.421413741, -1.453152027, 1.061405429
    p = 0.3275911
    z = jnp.abs(x)
    t = 1.0 / (1.0 + p * z)
    poly = ((((a5 * t + a4) * t + a3) * t + a2) * t + a1) * t
    y = 1.0 - poly * jnp.exp(-z * z)
    return jnp.where(x >= 0.0, y, -y)


def _gelu(x):
    return 0.5 * x * (1.0 + _erf(x * (1.0 / math.sqrt(2.0))))


def _ln(x, g, b):
    mu = jnp.mean(x, axis=-1, keepdims=True)
    xc = x - mu
    var = jnp.mean(xc * xc, axis=-1, keepdims=True)
    return xc * lax.rsqrt(var + 1e-5) * g + b


def _softmax_rows(s):
    s = s - jnp.max(s, axis=-1, keepdims=True)
    p = jnp.exp(s)
    return p * pl.reciprocal(jnp.sum(p, axis=-1, keepdims=True), approx=True)


# ----------------------------------------------------------------------------
# Pallas kernels + wrappers
# ----------------------------------------------------------------------------

def _linear_kernel(x_ref, w_ref, b_ref, o_ref, *, activation):
    y = jnp.dot(x_ref[...], w_ref[...], preferred_element_type=jnp.float32) + b_ref[...]
    if activation == "relu":
        y = jnp.maximum(y, 0.0)
    o_ref[...] = y.astype(o_ref.dtype)


def linear(x, w, b=None, activation="none", out_dtype=jnp.float32):
    """Channels-last linear (bf16 x bf16 -> f32 acc), row-tiled."""
    shape = x.shape
    K = shape[-1]
    N = w.shape[1]
    M = int(math.prod(shape[:-1]))
    TM, Mp = _row_tiles(M)
    x2 = _pad_rows(x.reshape(M, K).astype(jnp.bfloat16), Mp)
    out = pl.pallas_call(
        functools.partial(_linear_kernel, activation=activation),
        out_shape=jax.ShapeDtypeStruct((Mp, N), out_dtype),
        grid=(Mp // TM,),
        in_specs=[pl.BlockSpec((TM, K), lambda i: (i, 0)),
                  pl.BlockSpec((K, N), lambda i: (0, 0)),
                  pl.BlockSpec((1, N), lambda i: (0, 0))],
        out_specs=pl.BlockSpec((TM, N), lambda i: (i, 0)),
        compiler_params=_PAR,
    )(x2, w.astype(jnp.bfloat16), _b2(b, N))
    return out[:M].reshape(shape[:-1] + (N,))


def _linear_add_kernel(x_ref, w_ref, b_ref, r_ref, o_ref, *, activation):
    y = jnp.dot(x_ref[...], w_ref[...], preferred_element_type=jnp.float32) + b_ref[...]
    y = y + r_ref[...].astype(jnp.float32)
    if activation == "relu":
        y = jnp.maximum(y, 0.0)
    o_ref[...] = y.astype(o_ref.dtype)


def linear_add(x, w, b, res, activation="none", out_dtype=jnp.float32):
    """Fused Linear(x) + res (+ optional ReLU): used for pos_embedding + features."""
    shape = x.shape
    K = shape[-1]
    N = w.shape[1]
    M = int(math.prod(shape[:-1]))
    TM, Mp = _row_tiles(M)
    x2 = _pad_rows(x.reshape(M, K).astype(jnp.bfloat16), Mp)
    r2 = _pad_rows(res.reshape(M, N).astype(jnp.bfloat16), Mp)
    out = pl.pallas_call(
        functools.partial(_linear_add_kernel, activation=activation),
        out_shape=jax.ShapeDtypeStruct((Mp, N), out_dtype),
        grid=(Mp // TM,),
        in_specs=[pl.BlockSpec((TM, K), lambda i: (i, 0)),
                  pl.BlockSpec((K, N), lambda i: (0, 0)),
                  pl.BlockSpec((1, N), lambda i: (0, 0)),
                  pl.BlockSpec((TM, N), lambda i: (i, 0))],
        out_specs=pl.BlockSpec((TM, N), lambda i: (i, 0)),
        compiler_params=_PAR,
    )(x2, w.astype(jnp.bfloat16), _b2(b, N), r2)
    return out[:M].reshape(shape[:-1] + (N,))


def _lin_ln_gelu_lin_kernel(x_ref, w0_ref, b0_ref, g_ref, bb_ref, w1_ref, b1_ref, o_ref):
    h = jnp.dot(x_ref[...], w0_ref[...], preferred_element_type=jnp.float32) + b0_ref[...]
    h = _gelu(_ln(h, g_ref[...], bb_ref[...]))
    y = jnp.dot(h.astype(jnp.bfloat16), w1_ref[...],
                preferred_element_type=jnp.float32) + b1_ref[...]
    o_ref[...] = y.astype(o_ref.dtype)


def lin_ln_gelu_lin(x, w0, b0, g, bb, w1, b1, out_dtype=jnp.bfloat16):
    """Fused Linear -> LayerNorm -> GELU -> Linear (PointProposer front)."""
    shape = x.shape
    K = shape[-1]
    H = w0.shape[1]
    N = w1.shape[1]
    M = int(math.prod(shape[:-1]))
    TM, Mp = _row_tiles(M)
    x2 = _pad_rows(x.reshape(M, K).astype(jnp.bfloat16), Mp)
    out = pl.pallas_call(
        _lin_ln_gelu_lin_kernel,
        out_shape=jax.ShapeDtypeStruct((Mp, N), out_dtype),
        grid=(Mp // TM,),
        in_specs=[pl.BlockSpec((TM, K), lambda i: (i, 0)),
                  pl.BlockSpec((K, H), lambda i: (0, 0)),
                  pl.BlockSpec((1, H), lambda i: (0, 0)),
                  pl.BlockSpec((1, H), lambda i: (0, 0)),
                  pl.BlockSpec((1, H), lambda i: (0, 0)),
                  pl.BlockSpec((H, N), lambda i: (0, 0)),
                  pl.BlockSpec((1, N), lambda i: (0, 0))],
        out_specs=pl.BlockSpec((TM, N), lambda i: (i, 0)),
        compiler_params=_PAR,
    )(x2, w0.astype(jnp.bfloat16), _b2(b0, H),
      g.reshape(1, H).astype(jnp.float32), bb.reshape(1, H).astype(jnp.float32),
      w1.astype(jnp.bfloat16), _b2(b1, N))
    return out[:M].reshape(shape[:-1] + (N,))


def _ln_ff_kernel(x_ref, g_ref, bb_ref, w1_ref, b1_ref, w2_ref, b2_ref, o_ref, *, residual):
    x = x_ref[...].astype(jnp.float32)
    h = _ln(x, g_ref[...], bb_ref[...])
    h = jnp.dot(h.astype(jnp.bfloat16), w1_ref[...],
                preferred_element_type=jnp.float32) + b1_ref[...]
    h = _gelu(h)
    y = jnp.dot(h.astype(jnp.bfloat16), w2_ref[...],
                preferred_element_type=jnp.float32) + b2_ref[...]
    if residual:
        y = y + x
    o_ref[...] = y.astype(o_ref.dtype)


def ln_ff(x, g, bb, w1, b1, w2, b2, *, residual=False, out_dtype=jnp.float32):
    """Fused LayerNorm -> Linear -> GELU -> Linear (+ optional residual add)."""
    shape = x.shape
    C = shape[-1]
    H = w1.shape[1]
    N = w2.shape[1]
    M = int(math.prod(shape[:-1]))
    TM, Mp = _row_tiles(M)
    x2 = _pad_rows(x.reshape(M, C), Mp)
    out = pl.pallas_call(
        functools.partial(_ln_ff_kernel, residual=residual),
        out_shape=jax.ShapeDtypeStruct((Mp, N), out_dtype),
        grid=(Mp // TM,),
        in_specs=[pl.BlockSpec((TM, C), lambda i: (i, 0)),
                  pl.BlockSpec((1, C), lambda i: (0, 0)),
                  pl.BlockSpec((1, C), lambda i: (0, 0)),
                  pl.BlockSpec((C, H), lambda i: (0, 0)),
                  pl.BlockSpec((1, H), lambda i: (0, 0)),
                  pl.BlockSpec((H, N), lambda i: (0, 0)),
                  pl.BlockSpec((1, N), lambda i: (0, 0))],
        out_specs=pl.BlockSpec((TM, N), lambda i: (i, 0)),
        compiler_params=_PAR,
    )(x2, g.reshape(1, C).astype(jnp.float32), bb.reshape(1, C).astype(jnp.float32),
      w1.astype(jnp.bfloat16), _b2(b1, H), w2.astype(jnp.bfloat16), _b2(b2, N))
    return out[:M].reshape(shape[:-1] + (N,))


def _attn_block_kernel(x_ref, g_ref, bb_ref, wqkv_ref, wo_ref, bo_ref, o_ref,
                       *, heads, dim_head, scale):
    """Fused transformer attention block: LN -> qkv -> per-head attn -> out proj -> +x."""
    x = x_ref[0].astype(jnp.float32)                                   # (Nn, C)
    h = _ln(x, g_ref[...], bb_ref[...])
    qkv = jnp.dot(h.astype(jnp.bfloat16), wqkv_ref[...],
                  preferred_element_type=jnp.float32)                  # (Nn, 3*inner)
    inner = heads * dim_head
    outs = []
    for hh in range(heads):
        q = qkv[:, hh * dim_head:(hh + 1) * dim_head].astype(jnp.bfloat16)
        k = qkv[:, inner + hh * dim_head: inner + (hh + 1) * dim_head].astype(jnp.bfloat16)
        v = qkv[:, 2 * inner + hh * dim_head: 2 * inner + (hh + 1) * dim_head].astype(jnp.bfloat16)
        s = jnp.einsum('nd,md->nm', q, k, preferred_element_type=jnp.float32) * scale
        p = _softmax_rows(s)
        outs.append(jnp.dot(p.astype(jnp.bfloat16), v, preferred_element_type=jnp.float32))
    o = jnp.concatenate(outs, axis=-1)                                 # (Nn, inner)
    y = jnp.dot(o.astype(jnp.bfloat16), wo_ref[...],
                preferred_element_type=jnp.float32) + bo_ref[...]
    o_ref[0] = (x + y).astype(o_ref.dtype)


def attn_block(x, lp, heads, dim_head):
    B, Nn, C = x.shape
    inner = heads * dim_head
    return pl.pallas_call(
        functools.partial(_attn_block_kernel, heads=heads, dim_head=dim_head,
                          scale=dim_head ** (-0.5)),
        out_shape=jax.ShapeDtypeStruct((B, Nn, C), jnp.float32),
        grid=(B,),
        in_specs=[pl.BlockSpec((1, Nn, C), lambda i: (i, 0, 0)),
                  pl.BlockSpec((1, C), lambda i: (0, 0)),
                  pl.BlockSpec((1, C), lambda i: (0, 0)),
                  pl.BlockSpec((C, 3 * inner), lambda i: (0, 0)),
                  pl.BlockSpec((inner, C), lambda i: (0, 0)),
                  pl.BlockSpec((1, C), lambda i: (0, 0))],
        out_specs=pl.BlockSpec((1, Nn, C), lambda i: (i, 0, 0)),
        compiler_params=_PAR,
    )(x.astype(jnp.float32),
      lp["ln1_g"].reshape(1, C).astype(jnp.float32),
      lp["ln1_b"].reshape(1, C).astype(jnp.float32),
      lp["to_qkv_w"].astype(jnp.bfloat16),
      lp["attn_out_w"].astype(jnp.bfloat16),
      _b2(lp["attn_out_b"], C))


def _mhja_kernel(x_ref, q_ref, wkv_ref, wo_ref, bo_ref, o_ref, *, heads, dim_head, scale):
    """Fused MultiHeadJointAttention: kv matmul -> per-head attn (fixed q) -> out proj."""
    x = x_ref[0]                                                       # (N, C) bf16
    kv = jnp.dot(x, wkv_ref[...], preferred_element_type=jnp.float32)  # (N, 2*inner)
    inner = heads * dim_head
    q_all = q_ref[...]                                                 # (J, inner) bf16
    outs = []
    for hh in range(heads):
        q = q_all[:, hh * dim_head:(hh + 1) * dim_head]
        k = kv[:, hh * dim_head:(hh + 1) * dim_head].astype(jnp.bfloat16)
        v = kv[:, inner + hh * dim_head: inner + (hh + 1) * dim_head].astype(jnp.bfloat16)
        s = jnp.einsum('jd,nd->jn', q, k, preferred_element_type=jnp.float32) * scale
        p = _softmax_rows(s)
        outs.append(jnp.dot(p.astype(jnp.bfloat16), v, preferred_element_type=jnp.float32))
    o = jnp.concatenate(outs, axis=-1)                                 # (J, inner)
    y = jnp.dot(o.astype(jnp.bfloat16), wo_ref[...],
                preferred_element_type=jnp.float32) + bo_ref[...]
    o_ref[0] = y.astype(o_ref.dtype)


def multihead_joint_attention(x, p, heads, dim_head):
    BL, N, C = x.shape
    inner = heads * dim_head
    J = p["joint_emb"].shape[1]
    return pl.pallas_call(
        functools.partial(_mhja_kernel, heads=heads, dim_head=dim_head,
                          scale=dim_head ** (-0.5)),
        out_shape=jax.ShapeDtypeStruct((BL, J, C), jnp.bfloat16),
        grid=(BL,),
        in_specs=[pl.BlockSpec((1, N, C), lambda i: (i, 0, 0)),
                  pl.BlockSpec((J, inner), lambda i: (0, 0)),
                  pl.BlockSpec((C, 2 * inner), lambda i: (0, 0)),
                  pl.BlockSpec((inner, C), lambda i: (0, 0)),
                  pl.BlockSpec((1, C), lambda i: (0, 0))],
        out_specs=pl.BlockSpec((1, J, C), lambda i: (i, 0, 0)),
        compiler_params=_PAR,
    )(x.astype(jnp.bfloat16), p["joint_emb"][0].astype(jnp.bfloat16),
      p["to_kv_w"].astype(jnp.bfloat16), p["to_out_w"].astype(jnp.bfloat16),
      _b2(p["to_out_b"], C))


def _mem_attn_kernel(q_ref, m_ref, o_ref, *, scale):
    q = q_ref[...]                                                     # (TM, D) bf16
    m = m_ref[...]                                                     # (Mm, D) bf16
    s = jnp.einsum('nd,md->nm', q, m, preferred_element_type=jnp.float32) * scale
    p = _softmax_rows(s)
    o_ref[...] = jnp.dot(p.astype(jnp.bfloat16), m,
                         preferred_element_type=jnp.float32).astype(o_ref.dtype)


def mem_attention(q2, m, scale):
    """Memory read-out: q2 (M, D) rows vs shared memory keys/values m (Mm, D)."""
    M, D = q2.shape
    Mm = m.shape[0]
    TM, Mp = _row_tiles(M)
    q2 = _pad_rows(q2.astype(jnp.bfloat16), Mp)
    out = pl.pallas_call(
        functools.partial(_mem_attn_kernel, scale=scale),
        out_shape=jax.ShapeDtypeStruct((Mp, D), jnp.float32),
        grid=(Mp // TM,),
        in_specs=[pl.BlockSpec((TM, D), lambda i: (i, 0)),
                  pl.BlockSpec((Mm, D), lambda i: (0, 0))],
        out_specs=pl.BlockSpec((TM, D), lambda i: (i, 0)),
        compiler_params=_PAR,
    )(q2, m.astype(jnp.bfloat16))
    return out[:M]


def _groupconv_kernel(x_ref, w_ref, o_ref, *, ns, d):
    # Single lane-dense matmul against a block-diagonal weight, then the nsamples
    # max-pool via contiguous lane slices of the (TM, ns*d) result.
    y = jnp.dot(x_ref[...], w_ref[...], preferred_element_type=jnp.float32)
    acc = y[:, 0:d]
    for s in range(1, ns):
        acc = jnp.maximum(acc, y[:, s * d:(s + 1) * d])
    o_ref[...] = acc.astype(o_ref.dtype)


def group_conv_maxpool(x, w):
    """P4DConv '+' operator + spatial max pool: x (M, nsamples, K) -> (M, D)."""
    M, ns, K = x.shape
    D = w.shape[1]
    TM, Mp = _row_tiles(M)
    # Block-diagonal weight (ns*K, ns*D): one big matmul instead of ns tiny dots.
    wbd = jnp.kron(jnp.eye(ns, dtype=jnp.float32), w.astype(jnp.float32)).astype(jnp.bfloat16)
    x2 = _pad_rows(x.reshape(M, ns * K).astype(jnp.bfloat16), Mp)
    out = pl.pallas_call(
        functools.partial(_groupconv_kernel, ns=ns, d=D),
        out_shape=jax.ShapeDtypeStruct((Mp, D), jnp.bfloat16),
        grid=(Mp // TM,),
        in_specs=[pl.BlockSpec((TM, ns * K), lambda i: (i, 0)),
                  pl.BlockSpec((ns * K, ns * D), lambda i: (0, 0))],
        out_specs=pl.BlockSpec((TM, D), lambda i: (i, 0)),
        compiler_params=_PAR,
    )(x2, wbd)
    return out[:M]


def _softmax_bmm_kernel(s_ref, x_ref, o_ref):
    B = s_ref.shape[0]
    for b in range(B):                                   # tiny, unrolled; 2D dots only
        s = s_ref[b].astype(jnp.float32)
        s = s - jnp.max(s, axis=-1, keepdims=True)
        e = jnp.exp(s)
        p = e / jnp.sum(e, axis=-1, keepdims=True)       # exact divide: final output precision
        o_ref[b] = jnp.dot(p, x_ref[b], preferred_element_type=jnp.float32)


def softmax_bmm(scores, xyz):
    """Final head: softmax over points then weighted sum of xyz, all batches in one step."""
    B, J, N = scores.shape
    C = xyz.shape[2]
    return pl.pallas_call(
        _softmax_bmm_kernel,
        out_shape=jax.ShapeDtypeStruct((B, J, C), jnp.float32),
        grid=(1,),
        in_specs=[pl.BlockSpec((B, J, N), lambda i: (0, 0, 0)),
                  pl.BlockSpec((B, N, C), lambda i: (0, 0, 0))],
        out_specs=pl.BlockSpec((B, J, C), lambda i: (0, 0, 0)),
        compiler_params=_PAR,
    )(scores.astype(jnp.float32), xyz.astype(jnp.float32))


# ----------------------------------------------------------------------------
# Plain-JAX glue (data-dependent indexing)
# ----------------------------------------------------------------------------
# TODO(synk): FPS / ball-query / 3-NN remain sequential JAX glue; a VMEM-resident
# Pallas FPS kernel would be the next win for realistic point counts.

def farthest_point_sample(xyz, n_samples):
    # xyz: (N, 3) -> (n_samples,) int32, CUDA-style FPS starting at index 0.
    N = xyz.shape[0]

    def body(i, state):
        dists, idxs = state
        last = xyz[idxs[i - 1]]
        d = jnp.sum((xyz - last) ** 2, axis=-1)
        dists = jnp.minimum(dists, d)
        nxt = jnp.argmax(dists).astype(jnp.int32)
        return dists, idxs.at[i].set(nxt)

    dists = jnp.full((N,), 1e10, jnp.float32)
    idxs = jnp.zeros((n_samples,), jnp.int32)
    _, idxs = lax.fori_loop(1, n_samples, body, (dists, idxs))
    return idxs


def ball_query(anchor, neighbor, radius, k):
    # anchor (S,3), neighbor (N,3) -> (S,k) int32: first-k within radius, padded
    # with the first hit, 0 if none (CUDA ball_query semantics).
    N = neighbor.shape[0]
    d2 = jnp.sum((anchor[:, None, :] - neighbor[None, :, :]) ** 2, axis=-1)
    mask = d2 < radius * radius
    key = jnp.where(mask, jnp.arange(N, dtype=jnp.int32)[None, :], N)
    sorted_idx = jnp.sort(key, axis=1)[:, :k]
    first = sorted_idx[:, :1]
    first = jnp.where(first >= N, 0, first)
    idx = jnp.where(sorted_idx >= N, first, sorted_idx)
    return idx.astype(jnp.int32)


# ----------------------------------------------------------------------------
# Module components
# ----------------------------------------------------------------------------

def point_proposer_fwd(x, p, heads, dim_head):
    h = lin_ln_gelu_lin(x, p["lin0_w"], p["lin0_b"], p["ln0_g"], p["ln0_b"],
                        p["lin1_w"], p["lin1_b"], out_dtype=jnp.bfloat16)
    h = multihead_joint_attention(h, p["mhja"], heads, dim_head)
    h = ln_ff(h, p["ln1_g"], p["ln1_b"], p["lin2_w"], p["lin2_b"],
              p["lin3_w"], p["lin3_b"], residual=False, out_dtype=jnp.float32)
    return h


def p4dconv_fwd(xyzs, feats, p, radius, nsamples, spatial_stride,
                temporal_kernel_size, temporal_stride, temporal_padding):
    # xyzs: (B, L, N, 3); feats: (B, L, Cin, N).  Returns (B, L', S, 3), (B, L', D, S).
    B, L, N, _ = xyzs.shape
    S = N // spatial_stride
    t_rad = (temporal_kernel_size - 1) // 2
    D = p["conv_w"].shape[1]

    xyz_frames = [xyzs[:, t] for t in range(L)]
    feat_frames = [feats[:, t] for t in range(L)]
    xyz_frames = [xyz_frames[0]] * temporal_padding[0] + xyz_frames + [xyz_frames[-1]] * temporal_padding[1]
    feat_frames = [feat_frames[0]] * temporal_padding[0] + feat_frames + [feat_frames[-1]] * temporal_padding[1]
    Lp = len(xyz_frames)
    out_ts = list(range(t_rad, Lp - t_rad, temporal_stride))

    anchor_list = []
    group_list = []                       # (num_t * tk) entries of (B, S, ns, 4+Cin)
    for t in out_ts:
        anchor_frame = xyz_frames[t]
        anchor_idx = jax.vmap(lambda x: farthest_point_sample(x, S))(anchor_frame)
        anchor_xyz = jnp.take_along_axis(anchor_frame, anchor_idx[:, :, None], axis=1)
        anchor_list.append(anchor_xyz)
        for i in range(t - t_rad, t + t_rad + 1):
            nb_xyz = xyz_frames[i]
            nb_feat = feat_frames[i]
            idx = jax.vmap(lambda a, n: ball_query(a, n, radius, nsamples))(anchor_xyz, nb_xyz)
            grouped_xyz = jax.vmap(lambda n, ii: n[ii])(nb_xyz, idx)            # (B, S, k, 3)
            disp = grouped_xyz - anchor_xyz[:, :, None, :]
            tdisp = jnp.full((B, S, nsamples, 1), float(i - t), jnp.float32)
            grouped_feat = jax.vmap(lambda f, ii: f[:, ii])(nb_feat, idx)       # (B, Cin, S, k)
            grouped_feat = grouped_feat.transpose(0, 2, 3, 1)                   # (B, S, k, Cin)
            group_list.append(jnp.concatenate([disp, tdisp, grouped_feat], axis=-1))

    num_t = len(out_ts)
    tk = temporal_kernel_size
    stacked = jnp.stack(group_list, axis=0)                 # (num_t*tk, B, S, ns, 4+Cin)
    K = stacked.shape[-1]
    M = num_t * tk * B * S
    y = group_conv_maxpool(stacked.reshape(M, nsamples, K), p["conv_w"])        # (M, D) bf16
    y = y.reshape(num_t, tk, B, S, D)
    y = jnp.max(y, axis=1)                                  # temporal max pool
    y = y.transpose(1, 0, 2, 3)                             # (B, num_t, S, D)
    new_xyzs = jnp.stack(anchor_list, axis=1)               # (B, num_t, S, 3)
    return new_xyzs, y.transpose(0, 1, 3, 2)                # (B, num_t, D, S)


def transformer_fwd(x, layers, heads, dim_head):
    for lp in layers:
        x = attn_block(x, lp, heads, dim_head)              # LN->qkv->attn->out->+x fused
        x = ln_ff(x, lp["ln2_g"], lp["ln2_b"], lp["ff1_w"], lp["ff1_b"],
                  lp["ff2_w"], lp["ff2_b"], residual=True, out_dtype=jnp.float32)
    return x


def forward_mem(x, mem):
    # softmax(m_key @ x / sqrt(D)) over the memory dim, then weighted sum of memory
    # columns == attention with q = x and shared k = v = mem^T.
    B, N, D = x.shape
    m_t = jnp.transpose(mem[0])                             # (mem_size, D)
    out = mem_attention(x.reshape(B * N, D), m_t, 1.0 / math.sqrt(D))
    return out.reshape(B, N, D)


def p4dtransconv_fwd(xyzs, original_xyzs, features, original_features, p):
    # xyzs (B,L,S,3), original_xyzs (B,L,N,3), features (B,L,D,S), original_features (B,L,Cf,N)
    B, L, S, _ = xyzs.shape
    cats = []
    for t in range(L):
        anchors = xyzs[:, t]
        orig = original_xyzs[:, t]
        feat = features[:, t]
        ofeat = original_features[:, t]
        d2 = jnp.sum((orig[:, :, None, :] - anchors[:, None, :, :]) ** 2, axis=-1)  # (B, N, S)
        neg_d2, idx = lax.top_k(-d2, 3)
        dist = jnp.sqrt(jnp.maximum(-neg_d2, 0.0))
        w = 1.0 / (dist + 1e-8)
        w = w / jnp.sum(w, axis=-1, keepdims=True)
        gathered = jax.vmap(lambda f, ii: f[:, ii])(feat, idx)                      # (B, D, N, 3)
        interp = jnp.sum(gathered * w[:, None, :, :], axis=-1)                      # (B, D, N)
        cat = jnp.concatenate([interp, ofeat], axis=1)                              # (B, D+Cf, N)
        cats.append(cat.transpose(0, 2, 1))                                         # (B, N, D+Cf)
    cat_all = jnp.stack(cats, axis=1)                                               # (B, L, N, D+Cf)
    y = linear(cat_all, p["conv_w_folded"], p["conv_b_folded"],
               activation="relu", out_dtype=jnp.bfloat16)                           # conv1d+BN(eval)+ReLU
    return original_xyzs, y.transpose(0, 1, 3, 2)                                   # (B, L, D, N)


def mlp_head_fwd(x, p):
    return ln_ff(x, p["ln_g"], p["ln_b"], p["lin1_w"], p["lin1_b"],
                 p["lin2_w"], p["lin2_b"], residual=False, out_dtype=jnp.float32)


def p4transformer_da5_inference(inp, params, cfg):
    B, L, N, C = inp.shape
    x_flat = inp.reshape(B * L, N, C)
    new_pts = point_proposer_fwd(x_flat, params["proposer"],
                                 cfg["heads_proposal"], cfg["dim_head_proposal"])
    x_cat = jnp.concatenate([x_flat, new_pts], axis=1)
    inp2 = x_cat.reshape(B, L, -1, C)
    xyz_in = inp2[..., :3]
    feat_in = inp2[..., 3:].transpose(0, 1, 3, 2)

    xyzs0, features = p4dconv_fwd(xyz_in, feat_in, params["tube"], cfg["radius"],
                                  cfg["nsamples"], cfg["spatial_stride"],
                                  cfg["temporal_kernel_size"], cfg["temporal_stride"],
                                  cfg["temporal_padding"])
    _, Lp, S, _ = xyzs0.shape
    tvals = (jnp.arange(Lp, dtype=jnp.float32) + 1.0)[None, :, None, None]
    tcol = jnp.broadcast_to(tvals, (B, Lp, S, 1))
    xyzts = jnp.concatenate([xyzs0, tcol], axis=-1).reshape(B, Lp * S, 4)
    feats = features.transpose(0, 1, 3, 2).reshape(B, Lp * S, -1)

    # pos_embedding conv1d (kernel 1) + residual add of features (+ optional ReLU), fused.
    embedding = linear_add(xyzts, params["pos_w"], params["pos_b"], feats,
                           activation=("relu" if cfg["emb_relu"] else "none"),
                           out_dtype=jnp.float32)

    out0 = transformer_fwd(embedding, params["transformer"], cfg["heads"], cfg["dim_head"])
    out = forward_mem(out0, params["mem"])
    # TODO(synk): l_rec = MSE(out, out0) is unused by forward_inference; skipped.

    D = out.shape[-1]
    out = out.reshape(B, L, -1, D).transpose(0, 1, 3, 2)
    xyzs, out = p4dtransconv_fwd(xyzs0, xyz_in, out, feat_in, params["deconv"])

    mid = out.shape[1] // 2
    feat_mid = out[:, mid].transpose(0, 2, 1)
    xyz_mid = xyzs[:, xyzs.shape[1] // 2]
    head = mlp_head_fwd(feat_mid, params["mlp_head"]).transpose(0, 2, 1)
    skel = softmax_bmm(head, xyz_mid)
    return skel[:, None, :, :]


# ----------------------------------------------------------------------------
# Deterministic parameter init (matmul weights pre-cast to bf16)
# ----------------------------------------------------------------------------

def init_params(key, cfg):
    D, Dp, Cf = cfg["dim"], cfg["dim_proposal"], cfg["features"]
    Cin = 3 + Cf
    inner = cfg["heads"] * cfg["dim_head"]
    inner_p = cfg["heads_proposal"] * cfg["dim_head_proposal"]
    ki = iter(jax.random.split(key, 64))
    wf = lambda shape, s=0.05: jax.random.normal(next(ki), shape, jnp.float32) * s
    w = lambda shape, s=0.05: wf(shape, s).astype(jnp.bfloat16)
    zeros = lambda n: jnp.zeros((n,), jnp.float32)
    ones = lambda n: jnp.ones((n,), jnp.float32)

    bn_scale = 1.0 / math.sqrt(1.0 + 1e-5)      # eval-mode BN with default stats/affine, folded
    conv_d = wf((4, D))
    conv_f = wf((Cf, D))

    return {
        "proposer": {
            "lin0_w": w((Cin, Dp)), "lin0_b": zeros(Dp),
            "ln0_g": ones(Dp), "ln0_b": zeros(Dp),
            "lin1_w": w((Dp, Dp)), "lin1_b": zeros(Dp),
            "mhja": {
                "joint_emb": jax.random.normal(next(ki), (1, cfg["num_proposal"], Dp), jnp.float32),
                "to_kv_w": w((Dp, 2 * inner_p)),
                "to_out_w": w((inner_p, Dp)), "to_out_b": zeros(Dp),
            },
            "ln1_g": ones(Dp), "ln1_b": zeros(Dp),
            "lin2_w": w((Dp, Dp)), "lin2_b": zeros(Dp),
            "lin3_w": w((Dp, Cin)), "lin3_b": zeros(Cin),
        },
        # P4DConv '+' operator folded: rows = [disp(4) | feat(Cf)].
        "tube": {"conv_w": jnp.concatenate([conv_d, conv_f], axis=0).astype(jnp.bfloat16)},
        "pos_w": w((4, D)), "pos_b": zeros(D),
        "transformer": [
            {
                "ln1_g": ones(D), "ln1_b": zeros(D),
                "to_qkv_w": w((D, 3 * inner)),
                "attn_out_w": w((inner, D)), "attn_out_b": zeros(D),
                "ln2_g": ones(D), "ln2_b": zeros(D),
                "ff1_w": w((D, cfg["mlp_dim"])), "ff1_b": zeros(cfg["mlp_dim"]),
                "ff2_w": w((cfg["mlp_dim"], D)), "ff2_b": zeros(D),
            }
            for _ in range(cfg["depth"])
        ],
        "mem": jax.random.normal(next(ki), (1, D, cfg["mem_size"]), jnp.float32),
        "deconv": {
            "conv_w_folded": (wf((D + Cf, D)) * bn_scale).astype(jnp.bfloat16),
            "conv_b_folded": zeros(D) * bn_scale,
        },
        "mlp_head": {
            "ln_g": ones(D), "ln_b": zeros(D),
            "lin1_w": w((D, D // 2)), "lin1_b": zeros(D // 2),
            "lin2_w": w((D // 2, cfg["num_joints"])), "lin2_b": zeros(cfg["num_joints"]),
        },
    }


# ----------------------------------------------------------------------------
# Main
# ----------------------------------------------------------------------------

if __name__ == "__main__":
    CFG = dict(radius=1.0, nsamples=8, spatial_stride=2, temporal_kernel_size=3,
               temporal_stride=1, temporal_padding=(1, 1), emb_relu=False,
               dim=32, depth=1, heads=2, dim_head=16,
               dim_proposal=32, heads_proposal=2, dim_head_proposal=16,
               mlp_dim=64, num_joints=13, features=3, num_proposal=16, mem_size=64)

    B, L, N = 2, 4, 16
    key = jax.random.PRNGKey(0)
    k_xyz, k_feat, k_par = jax.random.split(key, 3)
    xyz = jax.random.uniform(k_xyz, (B, L, N, 3), jnp.float32)
    feat = jax.random.normal(k_feat, (B, L, N, CFG["features"]), jnp.float32) * 0.1
    inp = jnp.concatenate([xyz, feat], axis=-1)          # (B, L, N, 3 + features)

    params = init_params(k_par, CFG)

    fn = jax.jit(lambda x, p: p4transformer_da5_inference(x, p, CFG))
    out = fn(inp, params)
    out = jax.block_until_ready(out)

    assert out.shape == (B, 1, CFG["num_joints"], 3), out.shape
    assert bool(jnp.all(jnp.isfinite(out)))
    print("KERNEL_OK")
</pallas_src>

<mosaic_0001>
module attributes {stable_mosaic.version = 11 : i64} {
  func.func @_lin_ln_gelu_lin_kernel(%arg0: i32, %arg1: memref<128x6xbf16, #tpu.memory_space<vmem>>, %arg2: memref<6x32xbf16, #tpu.memory_space<vmem>>, %arg3: memref<1x32xf32, #tpu.memory_space<vmem>>, %arg4: memref<1x32xf32, #tpu.memory_space<vmem>>, %arg5: memref<1x32xf32, #tpu.memory_space<vmem>>, %arg6: memref<32x32xbf16, #tpu.memory_space<vmem>>, %arg7: memref<1x32xf32, #tpu.memory_space<vmem>>, %arg8: memref<128x32xbf16, #tpu.memory_space<vmem>>) attributes {dimension_semantics = [#tpu.dimension_semantics<parallel>], iteration_bounds = array<i64: 1>, scalar_prefetch = 0 : i64, scratch_operands = 0 : i64, tpu.core_type = #tpu.core_type<tc>, window_params = [{transform_indices = @transform_0, window_bounds = array<i64: 128, 6>}, {pipeline_mode = #tpu.pipeline_mode<synchronous>, transform_indices = @transform_1, window_bounds = array<i64: 6, 32>}, {pipeline_mode = #tpu.pipeline_mode<synchronous>, transform_indices = @transform_2, window_bounds = array<i64: 1, 32>}, {pipeline_mode = #tpu.pipeline_mode<synchronous>, transform_indices = @transform_3, window_bounds = array<i64: 1, 32>}, {pipeline_mode = #tpu.pipeline_mode<synchronous>, transform_indices = @transform_4, window_bounds = array<i64: 1, 32>}, {pipeline_mode = #tpu.pipeline_mode<synchronous>, transform_indices = @transform_5, window_bounds = array<i64: 32, 32>}, {pipeline_mode = #tpu.pipeline_mode<synchronous>, transform_indices = @transform_6, window_bounds = array<i64: 1, 32>}, {transform_indices = @transform_7, window_bounds = array<i64: 128, 32>}]} {
    %c0 = arith.constant 0 : index
    %c0_0 = arith.constant 0 : index
    %0 = vector.load %arg1[%c0, %c0_0] : memref<128x6xbf16, #tpu.memory_space<vmem>>, vector<128x6xbf16>
    %c0_1 = arith.constant 0 : index
    %c0_2 = arith.constant 0 : index
    %1 = vector.load %arg2[%c0_1, %c0_2] : memref<6x32xbf16, #tpu.memory_space<vmem>>, vector<6x32xbf16>
    %cst = arith.constant dense<0.000000e+00> : vector<128x32xf32>
    %2 = tpu.matmul %0, %1, %cst {dimension_numbers = #tpu.dot_dimension_numbers<[1], [0], [0], [1], [0, 0, 1, 1], [], []>} : vector<128x6xbf16>, vector<6x32xbf16>, vector<128x32xf32> -> vector<128x32xf32>
    %c0_3 = arith.constant 0 : index
    %c0_4 = arith.constant 0 : index
    %3 = vector.load %arg3[%c0_3, %c0_4] : memref<1x32xf32, #tpu.memory_space<vmem>>, vector<1x32xf32>
    %4 = vector.broadcast %3 : vector<1x32xf32> to vector<128x32xf32>
    %5 = arith.addf %2, %4 : vector<128x32xf32>
    %c0_5 = arith.constant 0 : index
    %c0_6 = arith.constant 0 : index
    %6 = vector.load %arg4[%c0_5, %c0_6] : memref<1x32xf32, #tpu.memory_space<vmem>>, vector<1x32xf32>
    %c0_7 = arith.constant 0 : index
    %c0_8 = arith.constant 0 : index
    %7 = vector.load %arg5[%c0_7, %c0_8] : memref<1x32xf32, #tpu.memory_space<vmem>>, vector<1x32xf32>
    %cst_9 = arith.constant dense<0.000000e+00> : vector<128xf32>
    %8 = vector.multi_reduction <add>, %5, %cst_9 [1] : vector<128x32xf32> to vector<128xf32>
    %9 = vector.shape_cast %8 : vector<128xf32> to vector<128x1xf32>
    %cst_10 = arith.constant 3.200000e+01 : f32
    %10 = vector.broadcast %cst_10 : f32 to vector<128x1xf32>
    %11 = arith.divf %9, %10 : vector<128x1xf32>
    %12 = vector.broadcast %11 : vector<128x1xf32> to vector<128x32xf32>
    %13 = arith.subf %5, %12 : vector<128x32xf32>
    %14 = arith.mulf %13, %13 : vector<128x32xf32>
    %cst_11 = arith.constant dense<0.000000e+00> : vector<128xf32>
    %15 = vector.multi_reduction <add>, %14, %cst_11 [1] : vector<128x32xf32> to vector<128xf32>
    %16 = vector.shape_cast %15 : vector<128xf32> to vector<128x1xf32>
    %cst_12 = arith.constant 3.200000e+01 : f32
    %17 = vector.broadcast %cst_12 : f32 to vector<128x1xf32>
    %18 = arith.divf %16, %17 : vector<128x1xf32>
    %cst_13 = arith.constant 9.99999974E-6 : f32
    %19 = vector.broadcast %cst_13 : f32 to vector<128x1xf32>
    %20 = arith.addf %18, %19 : vector<128x1xf32>
    %21 = math.rsqrt %20 : vector<128x1xf32>
    %22 = vector.broadcast %21 : vector<128x1xf32> to vector<128x32xf32>
    %23 = arith.mulf %13, %22 : vector<128x32xf32>
    %24 = vector.broadcast %6 : vector<1x32xf32> to vector<128x32xf32>
    %25 = arith.mulf %23, %24 : vector<128x32xf32>
    %26 = vector.broadcast %7 : vector<1x32xf32> to vector<128x32xf32>
    %27 = arith.addf %25, %26 : vector<128x32xf32>
    %cst_14 = arith.constant 5.000000e-01 : f32
    %28 = vector.broadcast %cst_14 : f32 to vector<128x32xf32>
    %29 = arith.mulf %28, %27 : vector<128x32xf32>
    %cst_15 = arith.constant 0.707106769 : f32
    %30 = vector.broadcast %cst_15 : f32 to vector<128x32xf32>
    %31 = arith.mulf %27, %30 : vector<128x32xf32>
    %32 = math.absf %31 : vector<128x32xf32>
    %cst_16 = arith.constant 0.327591091 : f32
    %33 = vector.broadcast %cst_16 : f32 to vector<128x32xf32>
    %34 = arith.mulf %33, %32 : vector<128x32xf32>
    %cst_17 = arith.constant 1.000000e+00 : f32
    %35 = vector.broadcast %cst_17 : f32 to vector<128x32xf32>
    %36 = arith.addf %35, %34 : vector<128x32xf32>
    %cst_18 = arith.constant 1.000000e+00 : f32
    %37 = vector.broadcast %cst_18 : f32 to vector<128x32xf32>
    %38 = arith.divf %37, %36 : vector<128x32xf32>
    %cst_19 = arith.constant 1.06140542 : f32
    %39 = vector.broadcast %cst_19 : f32 to vector<128x32xf32>
    %40 = arith.mulf %39, %38 : vector<128x32xf32>
    %cst_20 = arith.constant -1.45315206 : f32
    %41 = vector.broadcast %cst_20 : f32 to vector<128x32xf32>
    %42 = arith.addf %40, %41 : vector<128x32xf32>
    %43 = arith.mulf %42, %38 : vector<128x32xf32>
    %cst_21 = arith.constant 1.42141378 : f32
    %44 = vector.broadcast %cst_21 : f32 to vector<128x32xf32>
    %45 = arith.addf %43, %44 : vector<128x32xf32>
    %46 = arith.mulf %45, %38 : vector<128x32xf32>
    %cst_22 = arith.constant -0.284496725 : f32
    %47 = vector.broadcast %cst_22 : f32 to vector<128x32xf32>
    %48 = arith.addf %46, %47 : vector<128x32xf32>
    %49 = arith.mulf %48, %38 : vector<128x32xf32>
    %cst_23 = arith.constant 0.254829586 : f32
    %50 = vector.broadcast %cst_23 : f32 to vector<128x32xf32>
    %51 = arith.addf %49, %50 : vector<128x32xf32>
    %52 = arith.mulf %51, %38 : vector<128x32xf32>
    %cst_24 = arith.constant 0.000000e+00 : f32
    %53 = vector.broadcast %cst_24 : f32 to vector<128x32xf32>
    %54 = arith.subf %53, %32 : vector<128x32xf32>
    %55 = arith.mulf %54, %32 : vector<128x32xf32>
    %56 = math.exp %55 : vector<128x32xf32>
    %57 = arith.mulf %52, %56 : vector<128x32xf32>
    %cst_25 = arith.constant 1.000000e+00 : f32
    %58 = vector.broadcast %cst_25 : f32 to vector<128x32xf32>
    %59 = arith.subf %58, %57 : vector<128x32xf32>
    %cst_26 = arith.constant 0.000000e+00 : f32
    %60 = vector.broadcast %cst_26 : f32 to vector<128x32xf32>
    %61 = arith.cmpf oge, %31, %60 : vector<128x32xf32>
    %cst_27 = arith.constant 0.000000e+00 : f32
    %62 = vector.broadcast %cst_27 : f32 to vector<128x32xf32>
    %63 = arith.subf %62, %59 : vector<128x32xf32>
    %64 = arith.select %61, %59, %63 : vector<128x32xi1>, vector<128x32xf32>
    %cst_28 = arith.constant 1.000000e+00 : f32
    %65 = vector.broadcast %cst_28 : f32 to vector<128x32xf32>
    %66 = arith.addf %65, %64 : vector<128x32xf32>
    %67 = arith.mulf %29, %66 : vector<128x32xf32>
    %68 = arith.truncf %67 : vector<128x32xf32> to vector<128x32xbf16>
    %c0_29 = arith.constant 0 : index
    %c0_30 = arith.constant 0 : index
    %69 = vector.load %arg6[%c0_29, %c0_30] : memref<32x32xbf16, #tpu.memory_space<vmem>>, vector<32x32xbf16>
    %cst_31 = arith.constant dense<0.000000e+00> : vector<128x32xf32>
    %70 = tpu.matmul %68, %69, %cst_31 {dimension_numbers = #tpu.dot_dimension_numbers<[1], [0], [0], [1], [0, 0, 1, 1], [], []>} : vector<128x32xbf16>, vector<32x32xbf16>, vector<128x32xf32> -> vector<128x32xf32>
    %c0_32 = arith.constant 0 : index
    %c0_33 = arith.constant 0 : index
    %71 = vector.load %arg7[%c0_32, %c0_33] : memref<1x32xf32, #tpu.memory_space<vmem>>, vector<1x32xf32>
    %72 = vector.broadcast %71 : vector<1x32xf32> to vector<128x32xf32>
    %73 = arith.addf %70, %72 : vector<128x32xf32>
    %74 = arith.truncf %73 : vector<128x32xf32> to vector<128x32xbf16>
    %c0_34 = arith.constant 0 : index
    %c0_35 = arith.constant 0 : index
    %75 = vector.load %arg8[%c0_34, %c0_35] : memref<128x32xbf16, #tpu.memory_space<vmem>>, vector<128x32xbf16>
    tpu.vector_store %arg8[%c0_34, %c0_35], %74 {strides = array<i32>} : memref<128x32xbf16, #tpu.memory_space<vmem>>, vector<128x32xbf16>,
    return
  }
  func.func @transform_0(%arg0: i32) -> (i32, i32) {
    %c0_i32 = arith.constant 0 : i32
    %c0_i32_0 = arith.constant 0 : i32
    return %arg0, %c0_i32 : i32, i32
  }
  func.func @transform_1(%arg0: i32) -> (i32, i32) {
    %c0_i32 = arith.constant 0 : i32
    %c0_i32_0 = arith.constant 0 : i32
    %c0_i32_1 = arith.constant 0 : i32
    return %c0_i32, %c0_i32_0 : i32, i32
  }
  func.func @transform_2(%arg0: i32) -> (i32, i32) {
    %c0_i32 = arith.constant 0 : i32
    %c0_i32_0 = arith.constant 0 : i32
    %c0_i32_1 = arith.constant 0 : i32
    return %c0_i32, %c0_i32_0 : i32, i32
  }
  func.func @transform_3(%arg0: i32) -> (i32, i32) {
    %c0_i32 = arith.constant 0 : i32
    %c0_i32_0 = arith.constant 0 : i32
    %c0_i32_1 = arith.constant 0 : i32
    return %c0_i32, %c0_i32_0 : i32, i32
  }
  func.func @transform_4(%arg0: i32) -> (i32, i32) {
    %c0_i32 = arith.constant 0 : i32
    %c0_i32_0 = arith.constant 0 : i32
    %c0_i32_1 = arith.constant 0 : i32
    return %c0_i32, %c0_i32_0 : i32, i32
  }
  func.func @transform_5(%arg0: i32) -> (i32, i32) {
    %c0_i32 = arith.constant 0 : i32
    %c0_i32_0 = arith.constant 0 : i32
    %c0_i32_1 = arith.constant 0 : i32
    return %c0_i32, %c0_i32_0 : i32, i32
  }
  func.func @transform_6(%arg0: i32) -> (i32, i32) {
    %c0_i32 = arith.constant 0 : i32
    %c0_i32_0 = arith.constant 0 : i32
    %c0_i32_1 = arith.constant 0 : i32
    return %c0_i32, %c0_i32_0 : i32, i32
  }
  func.func @transform_7(%arg0: i32) -> (i32, i32) {
    %c0_i32 = arith.constant 0 : i32
    %c0_i32_0 = arith.constant 0 : i32
    return %arg0, %c0_i32 : i32, i32
  }
}

module attributes {stable_mosaic.version = 11 : i64} {
  func.func @_mhja_kernel(%arg0: i32, %arg1: memref<1x16x32xbf16, #tpu.memory_space<vmem>>, %arg2: memref<16x32xbf16, #tpu.memory_space<vmem>>, %arg3: memref<32x64xbf16, #tpu.memory_space<vmem>>, %arg4: memref<32x32xbf16, #tpu.memory_space<vmem>>, %arg5: memref<1x32xf32, #tpu.memory_space<vmem>>, %arg6: memref<1x16x32xbf16, #tpu.memory_space<vmem>>) attributes {dimension_semantics = [#tpu.dimension_semantics<parallel>], iteration_bounds = array<i64: 8>, scalar_prefetch = 0 : i64, scratch_operands = 0 : i64, tpu.core_type = #tpu.core_type<tc>, window_params = [{transform_indices = @transform_0, window_bounds = array<i64: 1, 16, 32>}, {pipeline_mode = #tpu.pipeline_mode<synchronous>, transform_indices = @transform_1, window_bounds = array<i64: 16, 32>}, {pipeline_mode = #tpu.pipeline_mode<synchronous>, transform_indices = @transform_2, window_bounds = array<i64: 32, 64>}, {pipeline_mode = #tpu.pipeline_mode<synchronous>, transform_indices = @transform_3, window_bounds = array<i64: 32, 32>}, {pipeline_mode = #tpu.pipeline_mode<synchronous>, transform_indices = @transform_4, window_bounds = array<i64: 1, 32>}, {transform_indices = @transform_5, window_bounds = array<i64: 1, 16, 32>}]} {
    %c0 = arith.constant 0 : index
    %c0_0 = arith.constant 0 : index
    %c0_1 = arith.constant 0 : index
    %0 = vector.load %arg1[%c0, %c0_0, %c0_1] : memref<1x16x32xbf16, #tpu.memory_space<vmem>>, vector<1x16x32xbf16>
    %1 = vector.shape_cast %0 : vector<1x16x32xbf16> to vector<16x32xbf16>
    %c0_2 = arith.constant 0 : index
    %c0_3 = arith.constant 0 : index
    %2 = vector.load %arg3[%c0_2, %c0_3] : memref<32x64xbf16, #tpu.memory_space<vmem>>, vector<32x64xbf16>
    %cst = arith.constant dense<0.000000e+00> : vector<16x64xf32>
    %3 = tpu.matmul %1, %2, %cst {dimension_numbers = #tpu.dot_dimension_numbers<[1], [0], [0], [1], [0, 0, 1, 1], [], []>} : vector<16x32xbf16>, vector<32x64xbf16>, vector<16x64xf32> -> vector<16x64xf32>
    %c0_4 = arith.constant 0 : index
    %c0_5 = arith.constant 0 : index
    %4 = vector.load %arg2[%c0_4, %c0_5] : memref<16x32xbf16, #tpu.memory_space<vmem>>, vector<16x32xbf16>
    %5 = vector.extract_strided_slice %4 {offsets = [0, 0], sizes = [16, 16], strides = [1, 1]} : vector<16x32xbf16> to vector<16x16xbf16>
    %6 = vector.extract_strided_slice %3 {offsets = [0, 0], sizes = [16, 16], strides = [1, 1]} : vector<16x64xf32> to vector<16x16xf32>
    %7 = arith.truncf %6 : vector<16x16xf32> to vector<16x16xbf16>
    %8 = vector.extract_strided_slice %3 {offsets = [0, 32], sizes = [16, 16], strides = [1, 1]} : vector<16x64xf32> to vector<16x16xf32>
    %9 = arith.truncf %8 : vector<16x16xf32> to vector<16x16xbf16>
    "tpu.trace_start"() <{level = 10 : i32, message = "jd,nd->jn"}> : () -> ()
    %cst_6 = arith.constant dense<0.000000e+00> : vector<16x16xf32>
    %10 = tpu.matmul %5, %7, %cst_6 {dimension_numbers = #tpu.dot_dimension_numbers<[1], [1], [0], [0], [0, 0, 1, 0], [], []>} : vector<16x16xbf16>, vector<16x16xbf16>, vector<16x16xf32> -> vector<16x16xf32>
    "tpu.trace_stop"() : () -> ()
    %cst_7 = arith.constant 2.500000e-01 : f32
    %11 = vector.broadcast %cst_7 : f32 to vector<16x16xf32>
    %12 = arith.mulf %10, %11 : vector<16x16xf32>
    %cst_8 = arith.constant dense<0xFF800000> : vector<16xf32>
    %13 = vector.multi_reduction <maximumf>, %12, %cst_8 [1] : vector<16x16xf32> to vector<16xf32>
    %14 = vector.shape_cast %13 : vector<16xf32> to vector<16x1xf32>
    %15 = vector.broadcast %14 : vector<16x1xf32> to vector<16x16xf32>
    %16 = arith.subf %12, %15 : vector<16x16xf32>
    %17 = math.exp %16 : vector<16x16xf32>
    %cst_9 = arith.constant dense<0.000000e+00> : vector<16xf32>
    %18 = vector.multi_reduction <add>, %17, %cst_9 [1] : vector<16x16xf32> to vector<16xf32>
    %19 = vector.shape_cast %18 : vector<16xf32> to vector<16x1xf32>
    %20 = tpu.reciprocal %19 {approx = true} : vector<16x1xf32> -> vector<16x1xf32>
    %21 = vector.broadcast %20 : vector<16x1xf32> to vector<16x16xf32>
    %22 = arith.mulf %17, %21 : vector<16x16xf32>
    %23 = arith.truncf %22 : vector<16x16xf32> to vector<16x16xbf16>
    %cst_10 = arith.constant dense<0.000000e+00> : vector<16x16xf32>
    %24 = tpu.matmul %23, %9, %cst_10 {dimension_numbers = #tpu.dot_dimension_numbers<[1], [0], [0], [1], [0, 0, 1, 1], [], []>} : vector<16x16xbf16>, vector<16x16xbf16>, vector<16x16xf32> -> vector<16x16xf32>
    %25 = vector.extract_strided_slice %4 {offsets = [0, 16], sizes = [16, 16], strides = [1, 1]} : vector<16x32xbf16> to vector<16x16xbf16>
    %26 = vector.extract_strided_slice %3 {offsets = [0, 16], sizes = [16, 16], strides = [1, 1]} : vector<16x64xf32> to vector<16x16xf32>
    %27 = arith.truncf %26 : vector<16x16xf32> to vector<16x16xbf16>
    %28 = vector.extract_strided_slice %3 {offsets = [0, 48], sizes = [16, 16], strides = [1, 1]} : vector<16x64xf32> to vector<16x16xf32>
    %29 = arith.truncf %28 : vector<16x16xf32> to vector<16x16xbf16>
    "tpu.trace_start"() <{level = 10 : i32, message = "jd,nd->jn"}> : () -> ()
    %cst_11 = arith.constant dense<0.000000e+00> : vector<16x16xf32>
    %30 = tpu.matmul %25, %27, %cst_11 {dimension_numbers = #tpu.dot_dimension_numbers<[1], [1], [0], [0], [0, 0, 1, 0], [], []>} : vector<16x16xbf16>, vector<16x16xbf16>, vector<16x16xf32> -> vector<16x16xf32>
    "tpu.trace_stop"() : () -> ()
    %cst_12 = arith.constant 2.500000e-01 : f32
    %31 = vector.broadcast %cst_12 : f32 to vector<16x16xf32>
    %32 = arith.mulf %30, %31 : vector<16x16xf32>
    %cst_13 = arith.constant dense<0xFF800000> : vector<16xf32>
    %33 = vector.multi_reduction <maximumf>, %32, %cst_13 [1] : vector<16x16xf32> to vector<16xf32>
    %34 = vector.shape_cast %33 : vector<16xf32> to vector<16x1xf32>
    %35 = vector.broadcast %34 : vector<16x1xf32> to vector<16x16xf32>
    %36 = arith.subf %32, %35 : vector<16x16xf32>
    %37 = math.exp %36 : vector<16x16xf32>
    %cst_14 = arith.constant dense<0.000000e+00> : vector<16xf32>
    %38 = vector.multi_reduction <add>, %37, %cst_14 [1] : vector<16x16xf32> to vector<16xf32>
    %39 = vector.shape_cast %38 : vector<16xf32> to vector<16x1xf32>
    %40 = tpu.reciprocal %39 {approx = true} : vector<16x1xf32> -> vector<16x1xf32>
    %41 = vector.broadcast %40 : vector<16x1xf32> to vector<16x16xf32>
    %42 = arith.mulf %37, %41 : vector<16x16xf32>
    %43 = arith.truncf %42 : vector<16x16xf32> to vector<16x16xbf16>
    %cst_15 = arith.constant dense<0.000000e+00> : vector<16x16xf32>
    %44 = tpu.matmul %43, %29, %cst_15 {dimension_numbers = #tpu.dot_dimension_numbers<[1], [0], [0], [1], [0, 0, 1, 1], [], []>} : vector<16x16xbf16>, vector<16x16xbf16>, vector<16x16xf32> -> vector<16x16xf32>
    %45 = tpu.concatenate %24, %44 in 1 : vector<16x16xf32>, vector<16x16xf32> -> vector<16x32xf32>
    %46 = arith.truncf %45 : vector<16x32xf32> to vector<16x32xbf16>
    %c0_16 = arith.constant 0 : index
    %c0_17 = arith.constant 0 : index
    %47 = vector.load %arg4[%c0_16, %c0_17] : memref<32x32xbf16, #tpu.memory_space<vmem>>, vector<32x32xbf16>
    %cst_18 = arith.constant dense<0.000000e+00> : vector<16x32xf32>
    %48 = tpu.matmul %46, %47, %cst_18 {dimension_numbers = #tpu.dot_dimension_numbers<[1], [0], [0], [1], [0, 0, 1, 1], [], []>} : vector<16x32xbf16>, vector<32x32xbf16>, vector<16x32xf32> -> vector<16x32xf32>
    %c0_19 = arith.constant 0 : index
    %c0_20 = arith.constant 0 : index
    %49 = vector.load %arg5[%c0_19, %c0_20] : memref<1x32xf32, #tpu.memory_space<vmem>>, vector<1x32xf32>
    %50 = vector.broadcast %49 : vector<1x32xf32> to vector<16x32xf32>
    %51 = arith.addf %48, %50 : vector<16x32xf32>
    %52 = arith.truncf %51 : vector<16x32xf32> to vector<16x32xbf16>
    %c0_21 = arith.constant 0 : index
    %c0_22 = arith.constant 0 : index
    %c0_23 = arith.constant 0 : index
    %53 = vector.load %arg6[%c0_21, %c0_22, %c0_23] : memref<1x16x32xbf16, #tpu.memory_space<vmem>>, vector<1x16x32xbf16>
    %54 = vector.shape_cast %53 : vector<1x16x32xbf16> to vector<16x32xbf16>
    %55 = vector.shape_cast %52 : vector<16x32xbf16> to vector<1x16x32xbf16>
    tpu.vector_store %arg6[%c0_21, %c0_22, %c0_23], %55 {strides = array<i32>} : memref<1x16x32xbf16, #tpu.memory_space<vmem>>, vector<1x16x32xbf16>,
    return
  }
  func.func @transform_0(%arg0: i32) -> (i32, i32, i32) {
    %c0_i32 = arith.constant 0 : i32
    %c0_i32_0 = arith.constant 0 : i32
    %c0_i32_1 = arith.constant 0 : i32
    return %arg0, %c0_i32, %c0_i32_0 : i32, i32, i32
  }
  func.func @transform_1(%arg0: i32) -> (i32, i32) {
    %c0_i32 = arith.constant 0 : i32
    %c0_i32_0 = arith.constant 0 : i32
    %c0_i32_1 = arith.constant 0 : i32
    return %c0_i32, %c0_i32_0 : i32, i32
  }
  func.func @transform_2(%arg0: i32) -> (i32, i32) {
    %c0_i32 = arith.constant 0 : i32
    %c0_i32_0 = arith.constant 0 : i32
    %c0_i32_1 = arith.constant 0 : i32
    return %c0_i32, %c0_i32_0 : i32, i32
  }
  func.func @transform_3(%arg0: i32) -> (i32, i32) {
    %c0_i32 = arith.constant 0 : i32
    %c0_i32_0 = arith.constant 0 : i32
    %c0_i32_1 = arith.constant 0 : i32
    return %c0_i32, %c0_i32_0 : i32, i32
  }
  func.func @transform_4(%arg0: i32) -> (i32, i32) {
    %c0_i32 = arith.constant 0 : i32
    %c0_i32_0 = arith.constant 0 : i32
    %c0_i32_1 = arith.constant 0 : i32
    return %c0_i32, %c0_i32_0 : i32, i32
  }
  func.func @transform_5(%arg0: i32) -> (i32, i32, i32) {
    %c0_i32 = arith.constant 0 : i32
    %c0_i32_0 = arith.constant 0 : i32
    %c0_i32_1 = arith.constant 0 : i32
    return %arg0, %c0_i32, %c0_i32_0 : i32, i32, i32
  }
}

module attributes {stable_mosaic.version = 11 : i64} {
  func.func @_ln_ff_kernel(%arg0: i32, %arg1: memref<128x32xbf16, #tpu.memory_space<vmem>>, %arg2: memref<1x32xf32, #tpu.memory_space<vmem>>, %arg3: memref<1x32xf32, #tpu.memory_space<vmem>>, %arg4: memref<32x32xbf16, #tpu.memory_space<vmem>>, %arg5: memref<1x32xf32, #tpu.memory_space<vmem>>, %arg6: memref<32x6xbf16, #tpu.memory_space<vmem>>, %arg7: memref<1x6xf32, #tpu.memory_space<vmem>>, %arg8: memref<128x6xf32, #tpu.memory_space<vmem>>) attributes {dimension_semantics = [#tpu.dimension_semantics<parallel>], iteration_bounds = array<i64: 1>, scalar_prefetch = 0 : i64, scratch_operands = 0 : i64, tpu.core_type = #tpu.core_type<tc>, window_params = [{transform_indices = @transform_0, window_bounds = array<i64: 128, 32>}, {pipeline_mode = #tpu.pipeline_mode<synchronous>, transform_indices = @transform_1, window_bounds = array<i64: 1, 32>}, {pipeline_mode = #tpu.pipeline_mode<synchronous>, transform_indices = @transform_2, window_bounds = array<i64: 1, 32>}, {pipeline_mode = #tpu.pipeline_mode<synchronous>, transform_indices = @transform_3, window_bounds = array<i64: 32, 32>}, {pipeline_mode = #tpu.pipeline_mode<synchronous>, transform_indices = @transform_4, window_bounds = array<i64: 1, 32>}, {pipeline_mode = #tpu.pipeline_mode<synchronous>, transform_indices = @transform_5, window_bounds = array<i64: 32, 6>}, {pipeline_mode = #tpu.pipeline_mode<synchronous>, transform_indices = @transform_6, window_bounds = array<i64: 1, 6>}, {transform_indices = @transform_7, window_bounds = array<i64: 128, 6>}]} {
    %c0 = arith.constant 0 : index
    %c0_0 = arith.constant 0 : index
    %0 = vector.load %arg1[%c0, %c0_0] : memref<128x32xbf16, #tpu.memory_space<vmem>>, vector<128x32xbf16>
    %1 = arith.extf %0 : vector<128x32xbf16> to vector<128x32xf32>
    %c0_1 = arith.constant 0 : index
    %c0_2 = arith.constant 0 : index
    %2 = vector.load %arg2[%c0_1, %c0_2] : memref<1x32xf32, #tpu.memory_space<vmem>>, vector<1x32xf32>
    %c0_3 = arith.constant 0 : index
    %c0_4 = arith.constant 0 : index
    %3 = vector.load %arg3[%c0_3, %c0_4] : memref<1x32xf32, #tpu.memory_space<vmem>>, vector<1x32xf32>
    %cst = arith.constant dense<0.000000e+00> : vector<128xf32>
    %4 = vector.multi_reduction <add>, %1, %cst [1] : vector<128x32xf32> to vector<128xf32>
    %5 = vector.shape_cast %4 : vector<128xf32> to vector<128x1xf32>
    %cst_5 = arith.constant 3.200000e+01 : f32
    %6 = vector.broadcast %cst_5 : f32 to vector<128x1xf32>
    %7 = arith.divf %5, %6 : vector<128x1xf32>
    %8 = vector.broadcast %7 : vector<128x1xf32> to vector<128x32xf32>
    %9 = arith.subf %1, %8 : vector<128x32xf32>
    %10 = arith.mulf %9, %9 : vector<128x32xf32>
    %cst_6 = arith.constant dense<0.000000e+00> : vector<128xf32>
    %11 = vector.multi_reduction <add>, %10, %cst_6 [1] : vector<128x32xf32> to vector<128xf32>
    %12 = vector.shape_cast %11 : vector<128xf32> to vector<128x1xf32>
    %cst_7 = arith.constant 3.200000e+01 : f32
    %13 = vector.broadcast %cst_7 : f32 to vector<128x1xf32>
    %14 = arith.divf %12, %13 : vector<128x1xf32>
    %cst_8 = arith.constant 9.99999974E-6 : f32
    %15 = vector.broadcast %cst_8 : f32 to vector<128x1xf32>
    %16 = arith.addf %14, %15 : vector<128x1xf32>
    %17 = math.rsqrt %16 : vector<128x1xf32>
    %18 = vector.broadcast %17 : vector<128x1xf32> to vector<128x32xf32>
    %19 = arith.mulf %9, %18 : vector<128x32xf32>
    %20 = vector.broadcast %2 : vector<1x32xf32> to vector<128x32xf32>
    %21 = arith.mulf %19, %20 : vector<128x32xf32>
    %22 = vector.broadcast %3 : vector<1x32xf32> to vector<128x32xf32>
    %23 = arith.addf %21, %22 : vector<128x32xf32>
    %24 = arith.truncf %23 : vector<128x32xf32> to vector<128x32xbf16>
    %c0_9 = arith.constant 0 : index
    %c0_10 = arith.constant 0 : index
    %25 = vector.load %arg4[%c0_9, %c0_10] : memref<32x32xbf16, #tpu.memory_space<vmem>>, vector<32x32xbf16>
    %cst_11 = arith.constant dense<0.000000e+00> : vector<128x32xf32>
    %26 = tpu.matmul %24, %25, %cst_11 {dimension_numbers = #tpu.dot_dimension_numbers<[1], [0], [0], [1], [0, 0, 1, 1], [], []>} : vector<128x32xbf16>, vector<32x32xbf16>, vector<128x32xf32> -> vector<128x32xf32>
    %c0_12 = arith.constant 0 : index
    %c0_13 = arith.constant 0 : index
    %27 = vector.load %arg5[%c0_12, %c0_13] : memref<1x32xf32, #tpu.memory_space<vmem>>, vector<1x32xf32>
    %28 = vector.broadcast %27 : vector<1x32xf32> to vector<128x32xf32>
    %29 = arith.addf %26, %28 : vector<128x32xf32>
    %cst_14 = arith.constant 5.000000e-01 : f32
    %30 = vector.broadcast %cst_14 : f32 to vector<128x32xf32>
    %31 = arith.mulf %30, %29 : vector<128x32xf32>
    %cst_15 = arith.constant 0.707106769 : f32
    %32 = vector.broadcast %cst_15 : f32 to vector<128x32xf32>
    %33 = arith.mulf %29, %32 : vector<128x32xf32>
    %34 = math.absf %33 : vector<128x32xf32>
    %cst_16 = arith.constant 0.327591091 : f32
    %35 = vector.broadcast %cst_16 : f32 to vector<128x32xf32>
    %36 = arith.mulf %35, %34 : vector<128x32xf32>
    %cst_17 = arith.constant 1.000000e+00 : f32
    %37 = vector.broadcast %cst_17 : f32 to vector<128x32xf32>
    %38 = arith.addf %37, %36 : vector<128x32xf32>
    %cst_18 = arith.constant 1.000000e+00 : f32
    %39 = vector.broadcast %cst_18 : f32 to vector<128x32xf32>
    %40 = arith.divf %39, %38 : vector<128x32xf32>
    %cst_19 = arith.constant 1.06140542 : f32
    %41 = vector.broadcast %cst_19 : f32 to vector<128x32xf32>
    %42 = arith.mulf %41, %40 : vector<128x32xf32>
    %cst_20 = arith.constant -1.45315206 : f32
    %43 = vector.broadcast %cst_20 : f32 to vector<128x32xf32>
    %44 = arith.addf %42, %43 : vector<128x32xf32>
    %45 = arith.mulf %44, %40 : vector<128x32xf32>
    %cst_21 = arith.constant 1.42141378 : f32
    %46 = vector.broadcast %cst_21 : f32 to vector<128x32xf32>
    %47 = arith.addf %45, %46 : vector<128x32xf32>
    %48 = arith.mulf %47, %40 : vector<128x32xf32>
    %cst_22 = arith.constant -0.284496725 : f32
    %49 = vector.broadcast %cst_22 : f32 to vector<128x32xf32>
    %50 = arith.addf %48, %49 : vector<128x32xf32>
    %51 = arith.mulf %50, %40 : vector<128x32xf32>
    %cst_23 = arith.constant 0.254829586 : f32
    %52 = vector.broadcast %cst_23 : f32 to vector<128x32xf32>
    %53 = arith.addf %51, %52 : vector<128x32xf32>
    %54 = arith.mulf %53, %40 : vector<128x32xf32>
    %cst_24 = arith.constant 0.000000e+00 : f32
    %55 = vector.broadcast %cst_24 : f32 to vector<128x32xf32>
    %56 = arith.subf %55, %34 : vector<128x32xf32>
    %57 = arith.mulf %56, %34 : vector<128x32xf32>
    %58 = math.exp %57 : vector<128x32xf32>
    %59 = arith.mulf %54, %58 : vector<128x32xf32>
    %cst_25 = arith.constant 1.000000e+00 : f32
    %60 = vector.broadcast %cst_25 : f32 to vector<128x32xf32>
    %61 = arith.subf %60, %59 : vector<128x32xf32>
    %cst_26 = arith.constant 0.000000e+00 : f32
    %62 = vector.broadcast %cst_26 : f32 to vector<128x32xf32>
    %63 = arith.cmpf oge, %33, %62 : vector<128x32xf32>
    %cst_27 = arith.constant 0.000000e+00 : f32
    %64 = vector.broadcast %cst_27 : f32 to vector<128x32xf32>
    %65 = arith.subf %64, %61 : vector<128x32xf32>
    %66 = arith.select %63, %61, %65 : vector<128x32xi1>, vector<128x32xf32>
    %cst_28 = arith.constant 1.000000e+00 : f32
    %67 = vector.broadcast %cst_28 : f32 to vector<128x32xf32>
    %68 = arith.addf %67, %66 : vector<128x32xf32>
    %69 = arith.mulf %31, %68 : vector<128x32xf32>
    %70 = arith.truncf %69 : vector<128x32xf32> to vector<128x32xbf16>
    %c0_29 = arith.constant 0 : index
    %c0_30 = arith.constant 0 : index
    %71 = vector.load %arg6[%c0_29, %c0_30] : memref<32x6xbf16, #tpu.memory_space<vmem>>, vector<32x6xbf16>
    %cst_31 = arith.constant dense<0.000000e+00> : vector<128x6xf32>
    %72 = tpu.matmul %70, %71, %cst_31 {dimension_numbers = #tpu.dot_dimension_numbers<[1], [0], [0], [1], [0, 0, 1, 1], [], []>} : vector<128x32xbf16>, vector<32x6xbf16>, vector<128x6xf32> -> vector<128x6xf32>
    %c0_32 = arith.constant 0 : index
    %c0_33 = arith.constant 0 : index
    %73 = vector.load %arg7[%c0_32, %c0_33] : memref<1x6xf32, #tpu.memory_space<vmem>>, vector<1x6xf32>
    %74 = vector.broadcast %73 : vector<1x6xf32> to vector<128x6xf32>
    %75 = arith.addf %72, %74 : vector<128x6xf32>
    %c0_34 = arith.constant 0 : index
    %c0_35 = arith.constant 0 : index
    %76 = vector.load %arg8[%c0_34, %c0_35] : memref<128x6xf32, #tpu.memory_space<vmem>>, vector<128x6xf32>
    tpu.vector_store %arg8[%c0_34, %c0_35], %75 {strides = array<i32>} : memref<128x6xf32, #tpu.memory_space<vmem>>, vector<128x6xf32>,
    return
  }
  func.func @transform_0(%arg0: i32) -> (i32, i32) {
    %c0_i32 = arith.constant 0 : i32
    %c0_i32_0 = arith.constant 0 : i32
    return %arg0, %c0_i32 : i32, i32
  }
  func.func @transform_1(%arg0: i32) -> (i32, i32) {
    %c0_i32 = arith.constant 0 : i32
    %c0_i32_0 = arith.constant 0 : i32
    %c0_i32_1 = arith.constant 0 : i32
    return %c0_i32, %c0_i32_0 : i32, i32
  }
  func.func @transform_2(%arg0: i32) -> (i32, i32) {
    %c0_i32 = arith.constant 0 : i32
    %c0_i32_0 = arith.constant 0 : i32
    %c0_i32_1 = arith.constant 0 : i32
    return %c0_i32, %c0_i32_0 : i32, i32
  }
  func.func @transform_3(%arg0: i32) -> (i32, i32) {
    %c0_i32 = arith.constant 0 : i32
    %c0_i32_0 = arith.constant 0 : i32
    %c0_i32_1 = arith.constant 0 : i32
    return %c0_i32, %c0_i32_0 : i32, i32
  }
  func.func @transform_4(%arg0: i32) -> (i32, i32) {
    %c0_i32 = arith.constant 0 : i32
    %c0_i32_0 = arith.constant 0 : i32
    %c0_i32_1 = arith.constant 0 : i32
    return %c0_i32, %c0_i32_0 : i32, i32
  }
  func.func @transform_5(%arg0: i32) -> (i32, i32) {
    %c0_i32 = arith.constant 0 : i32
    %c0_i32_0 = arith.constant 0 : i32
    %c0_i32_1 = arith.constant 0 : i32
    return %c0_i32, %c0_i32_0 : i32, i32
  }
  func.func @transform_6(%arg0: i32) -> (i32, i32) {
    %c0_i32 = arith.constant 0 : i32
    %c0_i32_0 = arith.constant 0 : i32
    %c0_i32_1 = arith.constant 0 : i32
    return %c0_i32, %c0_i32_0 : i32, i32
  }
  func.func @transform_7(%arg0: i32) -> (i32, i32) {
    %c0_i32 = arith.constant 0 : i32
    %c0_i32_0 = arith.constant 0 : i32
    return %arg0, %c0_i32 : i32, i32
  }
}

module attributes {stable_mosaic.version = 11 : i64} {
  func.func @_groupconv_kernel(%arg0: i32, %arg1: memref<192x56xbf16, #tpu.memory_space<vmem>>, %arg2: memref<56x256xbf16, #tpu.memory_space<vmem>>, %arg3: memref<192x32xbf16, #tpu.memory_space<vmem>>) attributes {dimension_semantics = [#tpu.dimension_semantics<parallel>], iteration_bounds = array<i64: 2>, scalar_prefetch = 0 : i64, scratch_operands = 0 : i64, tpu.core_type = #tpu.core_type<tc>, window_params = [{transform_indices = @transform_0, window_bounds = array<i64: 192, 56>}, {pipeline_mode = #tpu.pipeline_mode<synchronous>, transform_indices = @transform_1, window_bounds = array<i64: 56, 256>}, {transform_indices = @transform_2, window_bounds = array<i64: 192, 32>}]} {
    %c0 = arith.constant 0 : index
    %c0_0 = arith.constant 0 : index
    %0 = vector.load %arg1[%c0, %c0_0] : memref<192x56xbf16, #tpu.memory_space<vmem>>, vector<192x56xbf16>
    %c0_1 = arith.constant 0 : index
    %c0_2 = arith.constant 0 : index
    %1 = vector.load %arg2[%c0_1, %c0_2] : memref<56x256xbf16, #tpu.memory_space<vmem>>, vector<56x256xbf16>
    %cst = arith.constant dense<0.000000e+00> : vector<192x256xf32>
    %2 = tpu.matmul %0, %1, %cst {dimension_numbers = #tpu.dot_dimension_numbers<[1], [0], [0], [1], [0, 0, 1, 1], [], []>} : vector<192x56xbf16>, vector<56x256xbf16>, vector<192x256xf32> -> vector<192x256xf32>
    %3 = vector.extract_strided_slice %2 {offsets = [0, 0], sizes = [192, 32], strides = [1, 1]} : vector<192x256xf32> to vector<192x32xf32>
    %4 = vector.extract_strided_slice %2 {offsets = [0, 32], sizes = [192, 32], strides = [1, 1]} : vector<192x256xf32> to vector<192x32xf32>
    %5 = arith.maximumf %3, %4 : vector<192x32xf32>
    %6 = vector.extract_strided_slice %2 {offsets = [0, 64], sizes = [192, 32], strides = [1, 1]} : vector<192x256xf32> to vector<192x32xf32>
    %7 = arith.maximumf %5, %6 : vector<192x32xf32>
    %8 = vector.extract_strided_slice %2 {offsets = [0, 96], sizes = [192, 32], strides = [1, 1]} : vector<192x256xf32> to vector<192x32xf32>
    %9 = arith.maximumf %7, %8 : vector<192x32xf32>
    %10 = vector.extract_strided_slice %2 {offsets = [0, 128], sizes = [192, 32], strides = [1, 1]} : vector<192x256xf32> to vector<192x32xf32>
    %11 = arith.maximumf %9, %10 : vector<192x32xf32>
    %12 = vector.extract_strided_slice %2 {offsets = [0, 160], sizes = [192, 32], strides = [1, 1]} : vector<192x256xf32> to vector<192x32xf32>
    %13 = arith.maximumf %11, %12 : vector<192x32xf32>
    %14 = vector.extract_strided_slice %2 {offsets = [0, 192], sizes = [192, 32], strides = [1, 1]} : vector<192x256xf32> to vector<192x32xf32>
    %15 = arith.maximumf %13, %14 : vector<192x32xf32>
    %16 = vector.extract_strided_slice %2 {offsets = [0, 224], sizes = [192, 32], strides = [1, 1]} : vector<192x256xf32> to vector<192x32xf32>
    %17 = arith.maximumf %15, %16 : vector<192x32xf32>
    %18 = arith.truncf %17 : vector<192x32xf32> to vector<192x32xbf16>
    %c0_3 = arith.constant 0 : index
    %c0_4 = arith.constant 0 : index
    %19 = vector.load %arg3[%c0_3, %c0_4] : memref<192x32xbf16, #tpu.memory_space<vmem>>, vector<192x32xbf16>
    tpu.vector_store %arg3[%c0_3, %c0_4], %18 {strides = array<i32>} : memref<192x32xbf16, #tpu.memory_space<vmem>>, vector<192x32xbf16>,
    return
  }
  func.func @transform_0(%arg0: i32) -> (i32, i32) {
    %c0_i32 = arith.constant 0 : i32
    %c0_i32_0 = arith.constant 0 : i32
    return %arg0, %c0_i32 : i32, i32
  }
  func.func @transform_1(%arg0: i32) -> (i32, i32) {
    %c0_i32 = arith.constant 0 : i32
    %c0_i32_0 = arith.constant 0 : i32
    %c0_i32_1 = arith.constant 0 : i32
    return %c0_i32, %c0_i32_0 : i32, i32
  }
  func.func @transform_2(%arg0: i32) -> (i32, i32) {
    %c0_i32 = arith.constant 0 : i32
    %c0_i32_0 = arith.constant 0 : i32
    return %arg0, %c0_i32 : i32, i32
  }
}

module attributes {stable_mosaic.version = 11 : i64} {
  func.func @_linear_add_kernel(%arg0: i32, %arg1: memref<128x4xbf16, #tpu.memory_space<vmem>>, %arg2: memref<4x32xbf16, #tpu.memory_space<vmem>>, %arg3: memref<1x32xf32, #tpu.memory_space<vmem>>, %arg4: memref<128x32xbf16, #tpu.memory_space<vmem>>, %arg5: memref<128x32xf32, #tpu.memory_space<vmem>>) attributes {dimension_semantics = [#tpu.dimension_semantics<parallel>], iteration_bounds = array<i64: 1>, scalar_prefetch = 0 : i64, scratch_operands = 0 : i64, tpu.core_type = #tpu.core_type<tc>, window_params = [{transform_indices = @transform_0, window_bounds = array<i64: 128, 4>}, {pipeline_mode = #tpu.pipeline_mode<synchronous>, transform_indices = @transform_1, window_bounds = array<i64: 4, 32>}, {pipeline_mode = #tpu.pipeline_mode<synchronous>, transform_indices = @transform_2, window_bounds = array<i64: 1, 32>}, {transform_indices = @transform_3, window_bounds = array<i64: 128, 32>}, {transform_indices = @transform_4, window_bounds = array<i64: 128, 32>}]} {
    %c0 = arith.constant 0 : index
    %c0_0 = arith.constant 0 : index
    %0 = vector.load %arg1[%c0, %c0_0] : memref<128x4xbf16, #tpu.memory_space<vmem>>, vector<128x4xbf16>
    %c0_1 = arith.constant 0 : index
    %c0_2 = arith.constant 0 : index
    %1 = vector.load %arg2[%c0_1, %c0_2] : memref<4x32xbf16, #tpu.memory_space<vmem>>, vector<4x32xbf16>
    %cst = arith.constant dense<0.000000e+00> : vector<128x32xf32>
    %2 = tpu.matmul %0, %1, %cst {dimension_numbers = #tpu.dot_dimension_numbers<[1], [0], [0], [1], [0, 0, 1, 1], [], []>} : vector<128x4xbf16>, vector<4x32xbf16>, vector<128x32xf32> -> vector<128x32xf32>
    %c0_3 = arith.constant 0 : index
    %c0_4 = arith.constant 0 : index
    %3 = vector.load %arg3[%c0_3, %c0_4] : memref<1x32xf32, #tpu.memory_space<vmem>>, vector<1x32xf32>
    %4 = vector.broadcast %3 : vector<1x32xf32> to vector<128x32xf32>
    %5 = arith.addf %2, %4 : vector<128x32xf32>
    %c0_5 = arith.constant 0 : index
    %c0_6 = arith.constant 0 : index
    %6 = vector.load %arg4[%c0_5, %c0_6] : memref<128x32xbf16, #tpu.memory_space<vmem>>, vector<128x32xbf16>
    %7 = arith.extf %6 : vector<128x32xbf16> to vector<128x32xf32>
    %8 = arith.addf %5, %7 : vector<128x32xf32>
    %c0_7 = arith.constant 0 : index
    %c0_8 = arith.constant 0 : index
    %9 = vector.load %arg5[%c0_7, %c0_8] : memref<128x32xf32, #tpu.memory_space<vmem>>, vector<128x32xf32>
    tpu.vector_store %arg5[%c0_7, %c0_8], %8 {strides = array<i32>} : memref<128x32xf32, #tpu.memory_space<vmem>>, vector<128x32xf32>,
    return
  }
  func.func @transform_0(%arg0: i32) -> (i32, i32) {
    %c0_i32 = arith.constant 0 : i32
    %c0_i32_0 = arith.constant 0 : i32
    return %arg0, %c0_i32 : i32, i32
  }
  func.func @transform_1(%arg0: i32) -> (i32, i32) {
    %c0_i32 = arith.constant 0 : i32
    %c0_i32_0 = arith.constant 0 : i32
    %c0_i32_1 = arith.constant 0 : i32
    return %c0_i32, %c0_i32_0 : i32, i32
  }
  func.func @transform_2(%arg0: i32) -> (i32, i32) {
    %c0_i32 = arith.constant 0 : i32
    %c0_i32_0 = arith.constant 0 : i32
    %c0_i32_1 = arith.constant 0 : i32
    return %c0_i32, %c0_i32_0 : i32, i32
  }
  func.func @transform_3(%arg0: i32) -> (i32, i32) {
    %c0_i32 = arith.constant 0 : i32
    %c0_i32_0 = arith.constant 0 : i32
    return %arg0, %c0_i32 : i32, i32
  }
  func.func @transform_4(%arg0: i32) -> (i32, i32) {
    %c0_i32 = arith.constant 0 : i32
    %c0_i32_0 = arith.constant 0 : i32
    return %arg0, %c0_i32 : i32, i32
  }
}

module attributes {stable_mosaic.version = 11 : i64} {
  func.func @_attn_block_kernel(%arg0: i32, %arg1: memref<1x64x32xf32, #tpu.memory_space<vmem>>, %arg2: memref<1x32xf32, #tpu.memory_space<vmem>>, %arg3: memref<1x32xf32, #tpu.memory_space<vmem>>, %arg4: memref<32x96xbf16, #tpu.memory_space<vmem>>, %arg5: memref<32x32xbf16, #tpu.memory_space<vmem>>, %arg6: memref<1x32xf32, #tpu.memory_space<vmem>>, %arg7: memref<1x64x32xf32, #tpu.memory_space<vmem>>) attributes {dimension_semantics = [#tpu.dimension_semantics<parallel>], iteration_bounds = array<i64: 2>, scalar_prefetch = 0 : i64, scratch_operands = 0 : i64, tpu.core_type = #tpu.core_type<tc>, window_params = [{transform_indices = @transform_0, window_bounds = array<i64: 1, 64, 32>}, {pipeline_mode = #tpu.pipeline_mode<synchronous>, transform_indices = @transform_1, window_bounds = array<i64: 1, 32>}, {pipeline_mode = #tpu.pipeline_mode<synchronous>, transform_indices = @transform_2, window_bounds = array<i64: 1, 32>}, {pipeline_mode = #tpu.pipeline_mode<synchronous>, transform_indices = @transform_3, window_bounds = array<i64: 32, 96>}, {pipeline_mode = #tpu.pipeline_mode<synchronous>, transform_indices = @transform_4, window_bounds = array<i64: 32, 32>}, {pipeline_mode = #tpu.pipeline_mode<synchronous>, transform_indices = @transform_5, window_bounds = array<i64: 1, 32>}, {transform_indices = @transform_6, window_bounds = array<i64: 1, 64, 32>}]} {
    %c0 = arith.constant 0 : index
    %c0_0 = arith.constant 0 : index
    %c0_1 = arith.constant 0 : index
    %0 = vector.load %arg1[%c0, %c0_0, %c0_1] : memref<1x64x32xf32, #tpu.memory_space<vmem>>, vector<1x64x32xf32>
    %1 = vector.shape_cast %0 : vector<1x64x32xf32> to vector<64x32xf32>
    %c0_2 = arith.constant 0 : index
    %c0_3 = arith.constant 0 : index
    %2 = vector.load %arg2[%c0_2, %c0_3] : memref<1x32xf32, #tpu.memory_space<vmem>>, vector<1x32xf32>
    %c0_4 = arith.constant 0 : index
    %c0_5 = arith.constant 0 : index
    %3 = vector.load %arg3[%c0_4, %c0_5] : memref<1x32xf32, #tpu.memory_space<vmem>>, vector<1x32xf32>
    %cst = arith.constant dense<0.000000e+00> : vector<64xf32>
    %4 = vector.multi_reduction <add>, %1, %cst [1] : vector<64x32xf32> to vector<64xf32>
    %5 = vector.shape_cast %4 : vector<64xf32> to vector<64x1xf32>
    %cst_6 = arith.constant 3.200000e+01 : f32
    %6 = vector.broadcast %cst_6 : f32 to vector<64x1xf32>
    %7 = arith.divf %5, %6 : vector<64x1xf32>
    %8 = vector.broadcast %7 : vector<64x1xf32> to vector<64x32xf32>
    %9 = arith.subf %1, %8 : vector<64x32xf32>
    %10 = arith.mulf %9, %9 : vector<64x32xf32>
    %cst_7 = arith.constant dense<0.000000e+00> : vector<64xf32>
    %11 = vector.multi_reduction <add>, %10, %cst_7 [1] : vector<64x32xf32> to vector<64xf32>
    %12 = vector.shape_cast %11 : vector<64xf32> to vector<64x1xf32>
    %cst_8 = arith.constant 3.200000e+01 : f32
    %13 = vector.broadcast %cst_8 : f32 to vector<64x1xf32>
    %14 = arith.divf %12, %13 : vector<64x1xf32>
    %cst_9 = arith.constant 9.99999974E-6 : f32
    %15 = vector.broadcast %cst_9 : f32 to vector<64x1xf32>
    %16 = arith.addf %14, %15 : vector<64x1xf32>
    %17 = math.rsqrt %16 : vector<64x1xf32>
    %18 = vector.broadcast %17 : vector<64x1xf32> to vector<64x32xf32>
    %19 = arith.mulf %9, %18 : vector<64x32xf32>
    %20 = vector.broadcast %2 : vector<1x32xf32> to vector<64x32xf32>
    %21 = arith.mulf %19, %20 : vector<64x32xf32>
    %22 = vector.broadcast %3 : vector<1x32xf32> to vector<64x32xf32>
    %23 = arith.addf %21, %22 : vector<64x32xf32>
    %24 = arith.truncf %23 : vector<64x32xf32> to vector<64x32xbf16>
    %c0_10 = arith.constant 0 : index
    %c0_11 = arith.constant 0 : index
    %25 = vector.load %arg4[%c0_10, %c0_11] : memref<32x96xbf16, #tpu.memory_space<vmem>>, vector<32x96xbf16>
    %cst_12 = arith.constant dense<0.000000e+00> : vector<64x96xf32>
    %26 = tpu.matmul %24, %25, %cst_12 {dimension_numbers = #tpu.dot_dimension_numbers<[1], [0], [0], [1], [0, 0, 1, 1], [], []>} : vector<64x32xbf16>, vector<32x96xbf16>, vector<64x96xf32> -> vector<64x96xf32>
    %27 = vector.extract_strided_slice %26 {offsets = [0, 0], sizes = [64, 16], strides = [1, 1]} : vector<64x96xf32> to vector<64x16xf32>
    %28 = arith.truncf %27 : vector<64x16xf32> to vector<64x16xbf16>
    %29 = vector.extract_strided_slice %26 {offsets = [0, 32], sizes = [64, 16], strides = [1, 1]} : vector<64x96xf32> to vector<64x16xf32>
    %30 = arith.truncf %29 : vector<64x16xf32> to vector<64x16xbf16>
    %31 = vector.extract_strided_slice %26 {offsets = [0, 64], sizes = [64, 16], strides = [1, 1]} : vector<64x96xf32> to vector<64x16xf32>
    %32 = arith.truncf %31 : vector<64x16xf32> to vector<64x16xbf16>
    "tpu.trace_start"() <{level = 10 : i32, message = "nd,md->nm"}> : () -> ()
    %cst_13 = arith.constant dense<0.000000e+00> : vector<64x64xf32>
    %33 = tpu.matmul %28, %30, %cst_13 {dimension_numbers = #tpu.dot_dimension_numbers<[1], [1], [0], [0], [0, 0, 1, 0], [], []>} : vector<64x16xbf16>, vector<64x16xbf16>, vector<64x64xf32> -> vector<64x64xf32>
    "tpu.trace_stop"() : () -> ()
    %cst_14 = arith.constant 2.500000e-01 : f32
    %34 = vector.broadcast %cst_14 : f32 to vector<64x64xf32>
    %35 = arith.mulf %33, %34 : vector<64x64xf32>
    %cst_15 = arith.constant dense<0xFF800000> : vector<64xf32>
    %36 = vector.multi_reduction <maximumf>, %35, %cst_15 [1] : vector<64x64xf32> to vector<64xf32>
    %37 = vector.shape_cast %36 : vector<64xf32> to vector<64x1xf32>
    %38 = vector.broadcast %37 : vector<64x1xf32> to vector<64x64xf32>
    %39 = arith.subf %35, %38 : vector<64x64xf32>
    %40 = math.exp %39 : vector<64x64xf32>
    %cst_16 = arith.constant dense<0.000000e+00> : vector<64xf32>
    %41 = vector.multi_reduction <add>, %40, %cst_16 [1] : vector<64x64xf32> to vector<64xf32>
    %42 = vector.shape_cast %41 : vector<64xf32> to vector<64x1xf32>
    %43 = tpu.reciprocal %42 {approx = true} : vector<64x1xf32> -> vector<64x1xf32>
    %44 = vector.broadcast %43 : vector<64x1xf32> to vector<64x64xf32>
    %45 = arith.mulf %40, %44 : vector<64x64xf32>
    %46 = arith.truncf %45 : vector<64x64xf32> to vector<64x64xbf16>
    %cst_17 = arith.constant dense<0.000000e+00> : vector<64x16xf32>
    %47 = tpu.matmul %46, %32, %cst_17 {dimension_numbers = #tpu.dot_dimension_numbers<[1], [0], [0], [1], [0, 0, 1, 1], [], []>} : vector<64x64xbf16>, vector<64x16xbf16>, vector<64x16xf32> -> vector<64x16xf32>
    %48 = vector.extract_strided_slice %26 {offsets = [0, 16], sizes = [64, 16], strides = [1, 1]} : vector<64x96xf32> to vector<64x16xf32>
    %49 = arith.truncf %48 : vector<64x16xf32> to vector<64x16xbf16>
    %50 = vector.extract_strided_slice %26 {offsets = [0, 48], sizes = [64, 16], strides = [1, 1]} : vector<64x96xf32> to vector<64x16xf32>
    %51 = arith.truncf %50 : vector<64x16xf32> to vector<64x16xbf16>
    %52 = vector.extract_strided_slice %26 {offsets = [0, 80], sizes = [64, 16], strides = [1, 1]} : vector<64x96xf32> to vector<64x16xf32>
    %53 = arith.truncf %52 : vector<64x16xf32> to vector<64x16xbf16>
    "tpu.trace_start"() <{level = 10 : i32, message = "nd,md->nm"}> : () -> ()
    %cst_18 = arith.constant dense<0.000000e+00> : vector<64x64xf32>
    %54 = tpu.matmul %49, %51, %cst_18 {dimension_numbers = #tpu.dot_dimension_numbers<[1], [1], [0], [0], [0, 0, 1, 0], [], []>} : vector<64x16xbf16>, vector<64x16xbf16>, vector<64x64xf32> -> vector<64x64xf32>
    "tpu.trace_stop"() : () -> ()
    %cst_19 = arith.constant 2.500000e-01 : f32
    %55 = vector.broadcast %cst_19 : f32 to vector<64x64xf32>
    %56 = arith.mulf %54, %55 : vector<64x64xf32>
    %cst_20 = arith.constant dense<0xFF800000> : vector<64xf32>
    %57 = vector.multi_reduction <maximumf>, %56, %cst_20 [1] : vector<64x64xf32> to vector<64xf32>
    %58 = vector.shape_cast %57 : vector<64xf32> to vector<64x1xf32>
    %59 = vector.broadcast %58 : vector<64x1xf32> to vector<64x64xf32>
    %60 = arith.subf %56, %59 : vector<64x64xf32>
    %61 = math.exp %60 : vector<64x64xf32>
    %cst_21 = arith.constant dense<0.000000e+00> : vector<64xf32>
    %62 = vector.multi_reduction <add>, %61, %cst_21 [1] : vector<64x64xf32> to vector<64xf32>
    %63 = vector.shape_cast %62 : vector<64xf32> to vector<64x1xf32>
    %64 = tpu.reciprocal %63 {approx = true} : vector<64x1xf32> -> vector<64x1xf32>
    %65 = vector.broadcast %64 : vector<64x1xf32> to vector<64x64xf32>
    %66 = arith.mulf %61, %65 : vector<64x64xf32>
    %67 = arith.truncf %66 : vector<64x64xf32> to vector<64x64xbf16>
    %cst_22 = arith.constant dense<0.000000e+00> : vector<64x16xf32>
    %68 = tpu.matmul %67, %53, %cst_22 {dimension_numbers = #tpu.dot_dimension_numbers<[1], [0], [0], [1], [0, 0, 1, 1], [], []>} : vector<64x64xbf16>, vector<64x16xbf16>, vector<64x16xf32> -> vector<64x16xf32>
    %69 = tpu.concatenate %47, %68 in 1 : vector<64x16xf32>, vector<64x16xf32> -> vector<64x32xf32>
    %70 = arith.truncf %69 : vector<64x32xf32> to vector<64x32xbf16>
    %c0_23 = arith.constant 0 : index
    %c0_24 = arith.constant 0 : index
    %71 = vector.load %arg5[%c0_23, %c0_24] : memref<32x32xbf16, #tpu.memory_space<vmem>>, vector<32x32xbf16>
    %cst_25 = arith.constant dense<0.000000e+00> : vector<64x32xf32>
    %72 = tpu.matmul %70, %71, %cst_25 {dimension_numbers = #tpu.dot_dimension_numbers<[1], [0], [0], [1], [0, 0, 1, 1], [], []>} : vector<64x32xbf16>, vector<32x32xbf16>, vector<64x32xf32> -> vector<64x32xf32>
    %c0_26 = arith.constant 0 : index
    %c0_27 = arith.constant 0 : index
    %73 = vector.load %arg6[%c0_26, %c0_27] : memref<1x32xf32, #tpu.memory_space<vmem>>, vector<1x32xf32>
    %74 = vector.broadcast %73 : vector<1x32xf32> to vector<64x32xf32>
    %75 = arith.addf %72, %74 : vector<64x32xf32>
    %76 = arith.addf %1, %75 : vector<64x32xf32>
    %c0_28 = arith.constant 0 : index
    %c0_29 = arith.constant 0 : index
    %c0_30 = arith.constant 0 : index
    %77 = vector.load %arg7[%c0_28, %c0_29, %c0_30] : memref<1x64x32xf32, #tpu.memory_space<vmem>>, vector<1x64x32xf32>
    %78 = vector.shape_cast %77 : vector<1x64x32xf32> to vector<64x32xf32>
    %79 = vector.shape_cast %76 : vector<64x32xf32> to vector<1x64x32xf32>
    tpu.vector_store %arg7[%c0_28, %c0_29, %c0_30], %79 {strides = array<i32>} : memref<1x64x32xf32, #tpu.memory_space<vmem>>, vector<1x64x32xf32>,
    return
  }
  func.func @transform_0(%arg0: i32) -> (i32, i32, i32) {
    %c0_i32 = arith.constant 0 : i32
    %c0_i32_0 = arith.constant 0 : i32
    %c0_i32_1 = arith.constant 0 : i32
    return %arg0, %c0_i32, %c0_i32_0 : i32, i32, i32
  }
  func.func @transform_1(%arg0: i32) -> (i32, i32) {
    %c0_i32 = arith.constant 0 : i32
    %c0_i32_0 = arith.constant 0 : i32
    %c0_i32_1 = arith.constant 0 : i32
    return %c0_i32, %c0_i32_0 : i32, i32
  }
  func.func @transform_2(%arg0: i32) -> (i32, i32) {
    %c0_i32 = arith.constant 0 : i32
    %c0_i32_0 = arith.constant 0 : i32
    %c0_i32_1 = arith.constant 0 : i32
    return %c0_i32, %c0_i32_0 : i32, i32
  }
  func.func @transform_3(%arg0: i32) -> (i32, i32) {
    %c0_i32 = arith.constant 0 : i32
    %c0_i32_0 = arith.constant 0 : i32
    %c0_i32_1 = arith.constant 0 : i32
    return %c0_i32, %c0_i32_0 : i32, i32
  }
  func.func @transform_4(%arg0: i32) -> (i32, i32) {
    %c0_i32 = arith.constant 0 : i32
    %c0_i32_0 = arith.constant 0 : i32
    %c0_i32_1 = arith.constant 0 : i32
    return %c0_i32, %c0_i32_0 : i32, i32
  }
  func.func @transform_5(%arg0: i32) -> (i32, i32) {
    %c0_i32 = arith.constant 0 : i32
    %c0_i32_0 = arith.constant 0 : i32
    %c0_i32_1 = arith.constant 0 : i32
    return %c0_i32, %c0_i32_0 : i32, i32
  }
  func.func @transform_6(%arg0: i32) -> (i32, i32, i32) {
    %c0_i32 = arith.constant 0 : i32
    %c0_i32_0 = arith.constant 0 : i32
    %c0_i32_1 = arith.constant 0 : i32
    return %arg0, %c0_i32, %c0_i32_0 : i32, i32, i32
  }
}

module attributes {stable_mosaic.version = 11 : i64} {
  func.func @_ln_ff_kernel(%arg0: i32, %arg1: memref<128x32xf32, #tpu.memory_space<vmem>>, %arg2: memref<1x32xf32, #tpu.memory_space<vmem>>, %arg3: memref<1x32xf32, #tpu.memory_space<vmem>>, %arg4: memref<32x64xbf16, #tpu.memory_space<vmem>>, %arg5: memref<1x64xf32, #tpu.memory_space<vmem>>, %arg6: memref<64x32xbf16, #tpu.memory_space<vmem>>, %arg7: memref<1x32xf32, #tpu.memory_space<vmem>>, %arg8: memref<128x32xf32, #tpu.memory_space<vmem>>) attributes {dimension_semantics = [#tpu.dimension_semantics<parallel>], iteration_bounds = array<i64: 1>, scalar_prefetch = 0 : i64, scratch_operands = 0 : i64, tpu.core_type = #tpu.core_type<tc>, window_params = [{transform_indices = @transform_0, window_bounds = array<i64: 128, 32>}, {pipeline_mode = #tpu.pipeline_mode<synchronous>, transform_indices = @transform_1, window_bounds = array<i64: 1, 32>}, {pipeline_mode = #tpu.pipeline_mode<synchronous>, transform_indices = @transform_2, window_bounds = array<i64: 1, 32>}, {pipeline_mode = #tpu.pipeline_mode<synchronous>, transform_indices = @transform_3, window_bounds = array<i64: 32, 64>}, {pipeline_mode = #tpu.pipeline_mode<synchronous>, transform_indices = @transform_4, window_bounds = array<i64: 1, 64>}, {pipeline_mode = #tpu.pipeline_mode<synchronous>, transform_indices = @transform_5, window_bounds = array<i64: 64, 32>}, {pipeline_mode = #tpu.pipeline_mode<synchronous>, transform_indices = @transform_6, window_bounds = array<i64: 1, 32>}, {transform_indices = @transform_7, window_bounds = array<i64: 128, 32>}]} {
    %c0 = arith.constant 0 : index
    %c0_0 = arith.constant 0 : index
    %0 = vector.load %arg1[%c0, %c0_0] : memref<128x32xf32, #tpu.memory_space<vmem>>, vector<128x32xf32>
    %c0_1 = arith.constant 0 : index
    %c0_2 = arith.constant 0 : index
    %1 = vector.load %arg2[%c0_1, %c0_2] : memref<1x32xf32, #tpu.memory_space<vmem>>, vector<1x32xf32>
    %c0_3 = arith.constant 0 : index
    %c0_4 = arith.constant 0 : index
    %2 = vector.load %arg3[%c0_3, %c0_4] : memref<1x32xf32, #tpu.memory_space<vmem>>, vector<1x32xf32>
    %cst = arith.constant dense<0.000000e+00> : vector<128xf32>
    %3 = vector.multi_reduction <add>, %0, %cst [1] : vector<128x32xf32> to vector<128xf32>
    %4 = vector.shape_cast %3 : vector<128xf32> to vector<128x1xf32>
    %cst_5 = arith.constant 3.200000e+01 : f32
    %5 = vector.broadcast %cst_5 : f32 to vector<128x1xf32>
    %6 = arith.divf %4, %5 : vector<128x1xf32>
    %7 = vector.broadcast %6 : vector<128x1xf32> to vector<128x32xf32>
    %8 = arith.subf %0, %7 : vector<128x32xf32>
    %9 = arith.mulf %8, %8 : vector<128x32xf32>
    %cst_6 = arith.constant dense<0.000000e+00> : vector<128xf32>
    %10 = vector.multi_reduction <add>, %9, %cst_6 [1] : vector<128x32xf32> to vector<128xf32>
    %11 = vector.shape_cast %10 : vector<128xf32> to vector<128x1xf32>
    %cst_7 = arith.constant 3.200000e+01 : f32
    %12 = vector.broadcast %cst_7 : f32 to vector<128x1xf32>
    %13 = arith.divf %11, %12 : vector<128x1xf32>
    %cst_8 = arith.constant 9.99999974E-6 : f32
    %14 = vector.broadcast %cst_8 : f32 to vector<128x1xf32>
    %15 = arith.addf %13, %14 : vector<128x1xf32>
    %16 = math.rsqrt %15 : vector<128x1xf32>
    %17 = vector.broadcast %16 : vector<128x1xf32> to vector<128x32xf32>
    %18 = arith.mulf %8, %17 : vector<128x32xf32>
    %19 = vector.broadcast %1 : vector<1x32xf32> to vector<128x32xf32>
    %20 = arith.mulf %18, %19 : vector<128x32xf32>
    %21 = vector.broadcast %2 : vector<1x32xf32> to vector<128x32xf32>
    %22 = arith.addf %20, %21 : vector<128x32xf32>
    %23 = arith.truncf %22 : vector<128x32xf32> to vector<128x32xbf16>
    %c0_9 = arith.constant 0 : index
    %c0_10 = arith.constant 0 : index
    %24 = vector.load %arg4[%c0_9, %c0_10] : memref<32x64xbf16, #tpu.memory_space<vmem>>, vector<32x64xbf16>
    %cst_11 = arith.constant dense<0.000000e+00> : vector<128x64xf32>
    %25 = tpu.matmul %23, %24, %cst_11 {dimension_numbers = #tpu.dot_dimension_numbers<[1], [0], [0], [1], [0, 0, 1, 1], [], []>} : vector<128x32xbf16>, vector<32x64xbf16>, vector<128x64xf32> -> vector<128x64xf32>
    %c0_12 = arith.constant 0 : index
    %c0_13 = arith.constant 0 : index
    %26 = vector.load %arg5[%c0_12, %c0_13] : memref<1x64xf32, #tpu.memory_space<vmem>>, vector<1x64xf32>
    %27 = vector.broadcast %26 : vector<1x64xf32> to vector<128x64xf32>
    %28 = arith.addf %25, %27 : vector<128x64xf32>
    %cst_14 = arith.constant 5.000000e-01 : f32
    %29 = vector.broadcast %cst_14 : f32 to vector<128x64xf32>
    %30 = arith.mulf %29, %28 : vector<128x64xf32>
    %cst_15 = arith.constant 0.707106769 : f32
    %31 = vector.broadcast %cst_15 : f32 to vector<128x64xf32>
    %32 = arith.mulf %28, %31 : vector<128x64xf32>
    %33 = math.absf %32 : vector<128x64xf32>
    %cst_16 = arith.constant 0.327591091 : f32
    %34 = vector.broadcast %cst_16 : f32 to vector<128x64xf32>
    %35 = arith.mulf %34, %33 : vector<128x64xf32>
    %cst_17 = arith.constant 1.000000e+00 : f32
    %36 = vector.broadcast %cst_17 : f32 to vector<128x64xf32>
    %37 = arith.addf %36, %35 : vector<128x64xf32>
    %cst_18 = arith.constant 1.000000e+00 : f32
    %38 = vector.broadcast %cst_18 : f32 to vector<128x64xf32>
    %39 = arith.divf %38, %37 : vector<128x64xf32>
    %cst_19 = arith.constant 1.06140542 : f32
    %40 = vector.broadcast %cst_19 : f32 to vector<128x64xf32>
    %41 = arith.mulf %40, %39 : vector<128x64xf32>
    %cst_20 = arith.constant -1.45315206 : f32
    %42 = vector.broadcast %cst_20 : f32 to vector<128x64xf32>
    %43 = arith.addf %41, %42 : vector<128x64xf32>
    %44 = arith.mulf %43, %39 : vector<128x64xf32>
    %cst_21 = arith.constant 1.42141378 : f32
    %45 = vector.broadcast %cst_21 : f32 to vector<128x64xf32>
    %46 = arith.addf %44, %45 : vector<128x64xf32>
    %47 = arith.mulf %46, %39 : vector<128x64xf32>
    %cst_22 = arith.constant -0.284496725 : f32
    %48 = vector.broadcast %cst_22 : f32 to vector<128x64xf32>
    %49 = arith.addf %47, %48 : vector<128x64xf32>
    %50 = arith.mulf %49, %39 : vector<128x64xf32>
    %cst_23 = arith.constant 0.254829586 : f32
    %51 = vector.broadcast %cst_23 : f32 to vector<128x64xf32>
    %52 = arith.addf %50, %51 : vector<128x64xf32>
    %53 = arith.mulf %52, %39 : vector<128x64xf32>
    %cst_24 = arith.constant 0.000000e+00 : f32
    %54 = vector.broadcast %cst_24 : f32 to vector<128x64xf32>
    %55 = arith.subf %54, %33 : vector<128x64xf32>
    %56 = arith.mulf %55, %33 : vector<128x64xf32>
    %57 = math.exp %56 : vector<128x64xf32>
    %58 = arith.mulf %53, %57 : vector<128x64xf32>
    %cst_25 = arith.constant 1.000000e+00 : f32
    %59 = vector.broadcast %cst_25 : f32 to vector<128x64xf32>
    %60 = arith.subf %59, %58 : vector<128x64xf32>
    %cst_26 = arith.constant 0.000000e+00 : f32
    %61 = vector.broadcast %cst_26 : f32 to vector<128x64xf32>
    %62 = arith.cmpf oge, %32, %61 : vector<128x64xf32>
    %cst_27 = arith.constant 0.000000e+00 : f32
    %63 = vector.broadcast %cst_27 : f32 to vector<128x64xf32>
    %64 = arith.subf %63, %60 : vector<128x64xf32>
    %65 = arith.select %62, %60, %64 : vector<128x64xi1>, vector<128x64xf32>
    %cst_28 = arith.constant 1.000000e+00 : f32
    %66 = vector.broadcast %cst_28 : f32 to vector<128x64xf32>
    %67 = arith.addf %66, %65 : vector<128x64xf32>
    %68 = arith.mulf %30, %67 : vector<128x64xf32>
    %69 = arith.truncf %68 : vector<128x64xf32> to vector<128x64xbf16>
    %c0_29 = arith.constant 0 : index
    %c0_30 = arith.constant 0 : index
    %70 = vector.load %arg6[%c0_29, %c0_30] : memref<64x32xbf16, #tpu.memory_space<vmem>>, vector<64x32xbf16>
    %cst_31 = arith.constant dense<0.000000e+00> : vector<128x32xf32>
    %71 = tpu.matmul %69, %70, %cst_31 {dimension_numbers = #tpu.dot_dimension_numbers<[1], [0], [0], [1], [0, 0, 1, 1], [], []>} : vector<128x64xbf16>, vector<64x32xbf16>, vector<128x32xf32> -> vector<128x32xf32>
    %c0_32 = arith.constant 0 : index
    %c0_33 = arith.constant 0 : index
    %72 = vector.load %arg7[%c0_32, %c0_33] : memref<1x32xf32, #tpu.memory_space<vmem>>, vector<1x32xf32>
    %73 = vector.broadcast %72 : vector<1x32xf32> to vector<128x32xf32>
    %74 = arith.addf %71, %73 : vector<128x32xf32>
    %75 = arith.addf %74, %0 : vector<128x32xf32>
    %c0_34 = arith.constant 0 : index
    %c0_35 = arith.constant 0 : index
    %76 = vector.load %arg8[%c0_34, %c0_35] : memref<128x32xf32, #tpu.memory_space<vmem>>, vector<128x32xf32>
    tpu.vector_store %arg8[%c0_34, %c0_35], %75 {strides = array<i32>} : memref<128x32xf32, #tpu.memory_space<vmem>>, vector<128x32xf32>,
    return
  }
  func.func @transform_0(%arg0: i32) -> (i32, i32) {
    %c0_i32 = arith.constant 0 : i32
    %c0_i32_0 = arith.constant 0 : i32
    return %arg0, %c0_i32 : i32, i32
  }
  func.func @transform_1(%arg0: i32) -> (i32, i32) {
    %c0_i32 = arith.constant 0 : i32
    %c0_i32_0 = arith.constant 0 : i32
    %c0_i32_1 = arith.constant 0 : i32
    return %c0_i32, %c0_i32_0 : i32, i32
  }
  func.func @transform_2(%arg0: i32) -> (i32, i32) {
    %c0_i32 = arith.constant 0 : i32
    %c0_i32_0 = arith.constant 0 : i32
    %c0_i32_1 = arith.constant 0 : i32
    return %c0_i32, %c0_i32_0 : i32, i32
  }
  func.func @transform_3(%arg0: i32) -> (i32, i32) {
    %c0_i32 = arith.constant 0 : i32
    %c0_i32_0 = arith.constant 0 : i32
    %c0_i32_1 = arith.constant 0 : i32
    return %c0_i32, %c0_i32_0 : i32, i32
  }
  func.func @transform_4(%arg0: i32) -> (i32, i32) {
    %c0_i32 = arith.constant 0 : i32
    %c0_i32_0 = arith.constant 0 : i32
    %c0_i32_1 = arith.constant 0 : i32
    return %c0_i32, %c0_i32_0 : i32, i32
  }
  func.func @transform_5(%arg0: i32) -> (i32, i32) {
    %c0_i32 = arith.constant 0 : i32
    %c0_i32_0 = arith.constant 0 : i32
    %c0_i32_1 = arith.constant 0 : i32
    return %c0_i32, %c0_i32_0 : i32, i32
  }
  func.func @transform_6(%arg0: i32) -> (i32, i32) {
    %c0_i32 = arith.constant 0 : i32
    %c0_i32_0 = arith.constant 0 : i32
    %c0_i32_1 = arith.constant 0 : i32
    return %c0_i32, %c0_i32_0 : i32, i32
  }
  func.func @transform_7(%arg0: i32) -> (i32, i32) {
    %c0_i32 = arith.constant 0 : i32
    %c0_i32_0 = arith.constant 0 : i32
    return %arg0, %c0_i32 : i32, i32
  }
}

module attributes {stable_mosaic.version = 11 : i64} {
  func.func @_mem_attn_kernel(%arg0: i32, %arg1: memref<128x32xbf16, #tpu.memory_space<vmem>>, %arg2: memref<64x32xbf16, #tpu.memory_space<vmem>>, %arg3: memref<128x32xf32, #tpu.memory_space<vmem>>) attributes {dimension_semantics = [#tpu.dimension_semantics<parallel>], iteration_bounds = array<i64: 1>, scalar_prefetch = 0 : i64, scratch_operands = 0 : i64, tpu.core_type = #tpu.core_type<tc>, window_params = [{transform_indices = @transform_0, window_bounds = array<i64: 128, 32>}, {pipeline_mode = #tpu.pipeline_mode<synchronous>, transform_indices = @transform_1, window_bounds = array<i64: 64, 32>}, {transform_indices = @transform_2, window_bounds = array<i64: 128, 32>}]} {
    %c0 = arith.constant 0 : index
    %c0_0 = arith.constant 0 : index
    %0 = vector.load %arg1[%c0, %c0_0] : memref<128x32xbf16, #tpu.memory_space<vmem>>, vector<128x32xbf16>
    %c0_1 = arith.constant 0 : index
    %c0_2 = arith.constant 0 : index
    %1 = vector.load %arg2[%c0_1, %c0_2] : memref<64x32xbf16, #tpu.memory_space<vmem>>, vector<64x32xbf16>
    "tpu.trace_start"() <{level = 10 : i32, message = "nd,md->nm"}> : () -> ()
    %cst = arith.constant dense<0.000000e+00> : vector<128x64xf32>
    %2 = tpu.matmul %0, %1, %cst {dimension_numbers = #tpu.dot_dimension_numbers<[1], [1], [0], [0], [0, 0, 1, 0], [], []>} : vector<128x32xbf16>, vector<64x32xbf16>, vector<128x64xf32> -> vector<128x64xf32>
    "tpu.trace_stop"() : () -> ()
    %cst_3 = arith.constant 0.176776692 : f32
    %3 = vector.broadcast %cst_3 : f32 to vector<128x64xf32>
    %4 = arith.mulf %2, %3 : vector<128x64xf32>
    %cst_4 = arith.constant dense<0xFF800000> : vector<128xf32>
    %5 = vector.multi_reduction <maximumf>, %4, %cst_4 [1] : vector<128x64xf32> to vector<128xf32>
    %6 = vector.shape_cast %5 : vector<128xf32> to vector<128x1xf32>
    %7 = vector.broadcast %6 : vector<128x1xf32> to vector<128x64xf32>
    %8 = arith.subf %4, %7 : vector<128x64xf32>
    %9 = math.exp %8 : vector<128x64xf32>
    %cst_5 = arith.constant dense<0.000000e+00> : vector<128xf32>
    %10 = vector.multi_reduction <add>, %9, %cst_5 [1] : vector<128x64xf32> to vector<128xf32>
    %11 = vector.shape_cast %10 : vector<128xf32> to vector<128x1xf32>
    %12 = tpu.reciprocal %11 {approx = true} : vector<128x1xf32> -> vector<128x1xf32>
    %13 = vector.broadcast %12 : vector<128x1xf32> to vector<128x64xf32>
    %14 = arith.mulf %9, %13 : vector<128x64xf32>
    %15 = arith.truncf %14 : vector<128x64xf32> to vector<128x64xbf16>
    %cst_6 = arith.constant dense<0.000000e+00> : vector<128x32xf32>
    %16 = tpu.matmul %15, %1, %cst_6 {dimension_numbers = #tpu.dot_dimension_numbers<[1], [0], [0], [1], [0, 0, 1, 1], [], []>} : vector<128x64xbf16>, vector<64x32xbf16>, vector<128x32xf32> -> vector<128x32xf32>
    %c0_7 = arith.constant 0 : index
    %c0_8 = arith.constant 0 : index
    %17 = vector.load %arg3[%c0_7, %c0_8] : memref<128x32xf32, #tpu.memory_space<vmem>>, vector<128x32xf32>
    tpu.vector_store %arg3[%c0_7, %c0_8], %16 {strides = array<i32>} : memref<128x32xf32, #tpu.memory_space<vmem>>, vector<128x32xf32>,
    return
  }
  func.func @transform_0(%arg0: i32) -> (i32, i32) {
    %c0_i32 = arith.constant 0 : i32
    %c0_i32_0 = arith.constant 0 : i32
    return %arg0, %c0_i32 : i32, i32
  }
  func.func @transform_1(%arg0: i32) -> (i32, i32) {
    %c0_i32 = arith.constant 0 : i32
    %c0_i32_0 = arith.constant 0 : i32
    %c0_i32_1 = arith.constant 0 : i32
    return %c0_i32, %c0_i32_0 : i32, i32
  }
  func.func @transform_2(%arg0: i32) -> (i32, i32) {
    %c0_i32 = arith.constant 0 : i32
    %c0_i32_0 = arith.constant 0 : i32
    return %arg0, %c0_i32 : i32, i32
  }
}

module attributes {stable_mosaic.version = 11 : i64} {
  func.func @_linear_kernel(%arg0: i32, %arg1: memref<128x35xbf16, #tpu.memory_space<vmem>>, %arg2: memref<35x32xbf16, #tpu.memory_space<vmem>>, %arg3: memref<1x32xf32, #tpu.memory_space<vmem>>, %arg4: memref<128x32xbf16, #tpu.memory_space<vmem>>) attributes {dimension_semantics = [#tpu.dimension_semantics<parallel>], iteration_bounds = array<i64: 2>, scalar_prefetch = 0 : i64, scratch_operands = 0 : i64, tpu.core_type = #tpu.core_type<tc>, window_params = [{transform_indices = @transform_0, window_bounds = array<i64: 128, 35>}, {pipeline_mode = #tpu.pipeline_mode<synchronous>, transform_indices = @transform_1, window_bounds = array<i64: 35, 32>}, {pipeline_mode = #tpu.pipeline_mode<synchronous>, transform_indices = @transform_2, window_bounds = array<i64: 1, 32>}, {transform_indices = @transform_3, window_bounds = array<i64: 128, 32>}]} {
    %c0 = arith.constant 0 : index
    %c0_0 = arith.constant 0 : index
    %0 = vector.load %arg1[%c0, %c0_0] : memref<128x35xbf16, #tpu.memory_space<vmem>>, vector<128x35xbf16>
    %c0_1 = arith.constant 0 : index
    %c0_2 = arith.constant 0 : index
    %1 = vector.load %arg2[%c0_1, %c0_2] : memref<35x32xbf16, #tpu.memory_space<vmem>>, vector<35x32xbf16>
    %cst = arith.constant dense<0.000000e+00> : vector<128x32xf32>
    %2 = tpu.matmul %0, %1, %cst {dimension_numbers = #tpu.dot_dimension_numbers<[1], [0], [0], [1], [0, 0, 1, 1], [], []>} : vector<128x35xbf16>, vector<35x32xbf16>, vector<128x32xf32> -> vector<128x32xf32>
    %c0_3 = arith.constant 0 : index
    %c0_4 = arith.constant 0 : index
    %3 = vector.load %arg3[%c0_3, %c0_4] : memref<1x32xf32, #tpu.memory_space<vmem>>, vector<1x32xf32>
    %4 = vector.broadcast %3 : vector<1x32xf32> to vector<128x32xf32>
    %5 = arith.addf %2, %4 : vector<128x32xf32>
    %cst_5 = arith.constant 0.000000e+00 : f32
    %6 = vector.broadcast %cst_5 : f32 to vector<128x32xf32>
    %7 = arith.maximumf %5, %6 : vector<128x32xf32>
    %8 = arith.truncf %7 : vector<128x32xf32> to vector<128x32xbf16>
    %c0_6 = arith.constant 0 : index
    %c0_7 = arith.constant 0 : index
    %9 = vector.load %arg4[%c0_6, %c0_7] : memref<128x32xbf16, #tpu.memory_space<vmem>>, vector<128x32xbf16>
    tpu.vector_store %arg4[%c0_6, %c0_7], %8 {strides = array<i32>} : memref<128x32xbf16, #tpu.memory_space<vmem>>, vector<128x32xbf16>,
    return
  }
  func.func @transform_0(%arg0: i32) -> (i32, i32) {
    %c0_i32 = arith.constant 0 : i32
    %c0_i32_0 = arith.constant 0 : i32
    return %arg0, %c0_i32 : i32, i32
  }
  func.func @transform_1(%arg0: i32) -> (i32, i32) {
    %c0_i32 = arith.constant 0 : i32
    %c0_i32_0 = arith.constant 0 : i32
    %c0_i32_1 = arith.constant 0 : i32
    return %c0_i32, %c0_i32_0 : i32, i32
  }
  func.func @transform_2(%arg0: i32) -> (i32, i32) {
    %c0_i32 = arith.constant 0 : i32
    %c0_i32_0 = arith.constant 0 : i32
    %c0_i32_1 = arith.constant 0 : i32
    return %c0_i32, %c0_i32_0 : i32, i32
  }
  func.func @transform_3(%arg0: i32) -> (i32, i32) {
    %c0_i32 = arith.constant 0 : i32
    %c0_i32_0 = arith.constant 0 : i32
    return %arg0, %c0_i32 : i32, i32
  }
}

module attributes {stable_mosaic.version = 11 : i64} {
  func.func @_ln_ff_kernel(%arg0: i32, %arg1: memref<64x32xbf16, #tpu.memory_space<vmem>>, %arg2: memref<1x32xf32, #tpu.memory_space<vmem>>, %arg3: memref<1x32xf32, #tpu.memory_space<vmem>>, %arg4: memref<32x16xbf16, #tpu.memory_space<vmem>>, %arg5: memref<1x16xf32, #tpu.memory_space<vmem>>, %arg6: memref<16x13xbf16, #tpu.memory_space<vmem>>, %arg7: memref<1x13xf32, #tpu.memory_space<vmem>>, %arg8: memref<64x13xf32, #tpu.memory_space<vmem>>) attributes {dimension_semantics = [#tpu.dimension_semantics<parallel>], iteration_bounds = array<i64: 1>, scalar_prefetch = 0 : i64, scratch_operands = 0 : i64, tpu.core_type = #tpu.core_type<tc>, window_params = [{transform_indices = @transform_0, window_bounds = array<i64: 64, 32>}, {pipeline_mode = #tpu.pipeline_mode<synchronous>, transform_indices = @transform_1, window_bounds = array<i64: 1, 32>}, {pipeline_mode = #tpu.pipeline_mode<synchronous>, transform_indices = @transform_2, window_bounds = array<i64: 1, 32>}, {pipeline_mode = #tpu.pipeline_mode<synchronous>, transform_indices = @transform_3, window_bounds = array<i64: 32, 16>}, {pipeline_mode = #tpu.pipeline_mode<synchronous>, transform_indices = @transform_4, window_bounds = array<i64: 1, 16>}, {pipeline_mode = #tpu.pipeline_mode<synchronous>, transform_indices = @transform_5, window_bounds = array<i64: 16, 13>}, {pipeline_mode = #tpu.pipeline_mode<synchronous>, transform_indices = @transform_6, window_bounds = array<i64: 1, 13>}, {transform_indices = @transform_7, window_bounds = array<i64: 64, 13>}]} {
    %c0 = arith.constant 0 : index
    %c0_0 = arith.constant 0 : index
    %0 = vector.load %arg1[%c0, %c0_0] : memref<64x32xbf16, #tpu.memory_space<vmem>>, vector<64x32xbf16>
    %1 = arith.extf %0 : vector<64x32xbf16> to vector<64x32xf32>
    %c0_1 = arith.constant 0 : index
    %c0_2 = arith.constant 0 : index
    %2 = vector.load %arg2[%c0_1, %c0_2] : memref<1x32xf32, #tpu.memory_space<vmem>>, vector<1x32xf32>
    %c0_3 = arith.constant 0 : index
    %c0_4 = arith.constant 0 : index
    %3 = vector.load %arg3[%c0_3, %c0_4] : memref<1x32xf32, #tpu.memory_space<vmem>>, vector<1x32xf32>
    %cst = arith.constant dense<0.000000e+00> : vector<64xf32>
    %4 = vector.multi_reduction <add>, %1, %cst [1] : vector<64x32xf32> to vector<64xf32>
    %5 = vector.shape_cast %4 : vector<64xf32> to vector<64x1xf32>
    %cst_5 = arith.constant 3.200000e+01 : f32
    %6 = vector.broadcast %cst_5 : f32 to vector<64x1xf32>
    %7 = arith.divf %5, %6 : vector<64x1xf32>
    %8 = vector.broadcast %7 : vector<64x1xf32> to vector<64x32xf32>
    %9 = arith.subf %1, %8 : vector<64x32xf32>
    %10 = arith.mulf %9, %9 : vector<64x32xf32>
    %cst_6 = arith.constant dense<0.000000e+00> : vector<64xf32>
    %11 = vector.multi_reduction <add>, %10, %cst_6 [1] : vector<64x32xf32> to vector<64xf32>
    %12 = vector.shape_cast %11 : vector<64xf32> to vector<64x1xf32>
    %cst_7 = arith.constant 3.200000e+01 : f32
    %13 = vector.broadcast %cst_7 : f32 to vector<64x1xf32>
    %14 = arith.divf %12, %13 : vector<64x1xf32>
    %cst_8 = arith.constant 9.99999974E-6 : f32
    %15 = vector.broadcast %cst_8 : f32 to vector<64x1xf32>
    %16 = arith.addf %14, %15 : vector<64x1xf32>
    %17 = math.rsqrt %16 : vector<64x1xf32>
    %18 = vector.broadcast %17 : vector<64x1xf32> to vector<64x32xf32>
    %19 = arith.mulf %9, %18 : vector<64x32xf32>
    %20 = vector.broadcast %2 : vector<1x32xf32> to vector<64x32xf32>
    %21 = arith.mulf %19, %20 : vector<64x32xf32>
    %22 = vector.broadcast %3 : vector<1x32xf32> to vector<64x32xf32>
    %23 = arith.addf %21, %22 : vector<64x32xf32>
    %24 = arith.truncf %23 : vector<64x32xf32> to vector<64x32xbf16>
    %c0_9 = arith.constant 0 : index
    %c0_10 = arith.constant 0 : index
    %25 = vector.load %arg4[%c0_9, %c0_10] : memref<32x16xbf16, #tpu.memory_space<vmem>>, vector<32x16xbf16>
    %cst_11 = arith.constant dense<0.000000e+00> : vector<64x16xf32>
    %26 = tpu.matmul %24, %25, %cst_11 {dimension_numbers = #tpu.dot_dimension_numbers<[1], [0], [0], [1], [0, 0, 1, 1], [], []>} : vector<64x32xbf16>, vector<32x16xbf16>, vector<64x16xf32> -> vector<64x16xf32>
    %c0_12 = arith.constant 0 : index
    %c0_13 = arith.constant 0 : index
    %27 = vector.load %arg5[%c0_12, %c0_13] : memref<1x16xf32, #tpu.memory_space<vmem>>, vector<1x16xf32>
    %28 = vector.broadcast %27 : vector<1x16xf32> to vector<64x16xf32>
    %29 = arith.addf %26, %28 : vector<64x16xf32>
    %cst_14 = arith.constant 5.000000e-01 : f32
    %30 = vector.broadcast %cst_14 : f32 to vector<64x16xf32>
    %31 = arith.mulf %30, %29 : vector<64x16xf32>
    %cst_15 = arith.constant 0.707106769 : f32
    %32 = vector.broadcast %cst_15 : f32 to vector<64x16xf32>
    %33 = arith.mulf %29, %32 : vector<64x16xf32>
    %34 = math.absf %33 : vector<64x16xf32>
    %cst_16 = arith.constant 0.327591091 : f32
    %35 = vector.broadcast %cst_16 : f32 to vector<64x16xf32>
    %36 = arith.mulf %35, %34 : vector<64x16xf32>
    %cst_17 = arith.constant 1.000000e+00 : f32
    %37 = vector.broadcast %cst_17 : f32 to vector<64x16xf32>
    %38 = arith.addf %37, %36 : vector<64x16xf32>
    %cst_18 = arith.constant 1.000000e+00 : f32
    %39 = vector.broadcast %cst_18 : f32 to vector<64x16xf32>
    %40 = arith.divf %39, %38 : vector<64x16xf32>
    %cst_19 = arith.constant 1.06140542 : f32
    %41 = vector.broadcast %cst_19 : f32 to vector<64x16xf32>
    %42 = arith.mulf %41, %40 : vector<64x16xf32>
    %cst_20 = arith.constant -1.45315206 : f32
    %43 = vector.broadcast %cst_20 : f32 to vector<64x16xf32>
    %44 = arith.addf %42, %43 : vector<64x16xf32>
    %45 = arith.mulf %44, %40 : vector<64x16xf32>
    %cst_21 = arith.constant 1.42141378 : f32
    %46 = vector.broadcast %cst_21 : f32 to vector<64x16xf32>
    %47 = arith.addf %45, %46 : vector<64x16xf32>
    %48 = arith.mulf %47, %40 : vector<64x16xf32>
    %cst_22 = arith.constant -0.284496725 : f32
    %49 = vector.broadcast %cst_22 : f32 to vector<64x16xf32>
    %50 = arith.addf %48, %49 : vector<64x16xf32>
    %51 = arith.mulf %50, %40 : vector<64x16xf32>
    %cst_23 = arith.constant 0.254829586 : f32
    %52 = vector.broadcast %cst_23 : f32 to vector<64x16xf32>
    %53 = arith.addf %51, %52 : vector<64x16xf32>
    %54 = arith.mulf %53, %40 : vector<64x16xf32>
    %cst_24 = arith.constant 0.000000e+00 : f32
    %55 = vector.broadcast %cst_24 : f32 to vector<64x16xf32>
    %56 = arith.subf %55, %34 : vector<64x16xf32>
    %57 = arith.mulf %56, %34 : vector<64x16xf32>
    %58 = math.exp %57 : vector<64x16xf32>
    %59 = arith.mulf %54, %58 : vector<64x16xf32>
    %cst_25 = arith.constant 1.000000e+00 : f32
    %60 = vector.broadcast %cst_25 : f32 to vector<64x16xf32>
    %61 = arith.subf %60, %59 : vector<64x16xf32>
    %cst_26 = arith.constant 0.000000e+00 : f32
    %62 = vector.broadcast %cst_26 : f32 to vector<64x16xf32>
    %63 = arith.cmpf oge, %33, %62 : vector<64x16xf32>
    %cst_27 = arith.constant 0.000000e+00 : f32
    %64 = vector.broadcast %cst_27 : f32 to vector<64x16xf32>
    %65 = arith.subf %64, %61 : vector<64x16xf32>
    %66 = arith.select %63, %61, %65 : vector<64x16xi1>, vector<64x16xf32>
    %cst_28 = arith.constant 1.000000e+00 : f32
    %67 = vector.broadcast %cst_28 : f32 to vector<64x16xf32>
    %68 = arith.addf %67, %66 : vector<64x16xf32>
    %69 = arith.mulf %31, %68 : vector<64x16xf32>
    %70 = arith.truncf %69 : vector<64x16xf32> to vector<64x16xbf16>
    %c0_29 = arith.constant 0 : index
    %c0_30 = arith.constant 0 : index
    %71 = vector.load %arg6[%c0_29, %c0_30] : memref<16x13xbf16, #tpu.memory_space<vmem>>, vector<16x13xbf16>
    %cst_31 = arith.constant dense<0.000000e+00> : vector<64x13xf32>
    %72 = tpu.matmul %70, %71, %cst_31 {dimension_numbers = #tpu.dot_dimension_numbers<[1], [0], [0], [1], [0, 0, 1, 1], [], []>} : vector<64x16xbf16>, vector<16x13xbf16>, vector<64x13xf32> -> vector<64x13xf32>
    %c0_32 = arith.constant 0 : index
    %c0_33 = arith.constant 0 : index
    %73 = vector.load %arg7[%c0_32, %c0_33] : memref<1x13xf32, #tpu.memory_space<vmem>>, vector<1x13xf32>
    %74 = vector.broadcast %73 : vector<1x13xf32> to vector<64x13xf32>
    %75 = arith.addf %72, %74 : vector<64x13xf32>
    %c0_34 = arith.constant 0 : index
    %c0_35 = arith.constant 0 : index
    %76 = vector.load %arg8[%c0_34, %c0_35] : memref<64x13xf32, #tpu.memory_space<vmem>>, vector<64x13xf32>
    tpu.vector_store %arg8[%c0_34, %c0_35], %75 {strides = array<i32>} : memref<64x13xf32, #tpu.memory_space<vmem>>, vector<64x13xf32>,
    return
  }
  func.func @transform_0(%arg0: i32) -> (i32, i32) {
    %c0_i32 = arith.constant 0 : i32
    %c0_i32_0 = arith.constant 0 : i32
    return %arg0, %c0_i32 : i32, i32
  }
  func.func @transform_1(%arg0: i32) -> (i32, i32) {
    %c0_i32 = arith.constant 0 : i32
    %c0_i32_0 = arith.constant 0 : i32
    %c0_i32_1 = arith.constant 0 : i32
    return %c0_i32, %c0_i32_0 : i32, i32
  }
  func.func @transform_2(%arg0: i32) -> (i32, i32) {
    %c0_i32 = arith.constant 0 : i32
    %c0_i32_0 = arith.constant 0 : i32
    %c0_i32_1 = arith.constant 0 : i32
    return %c0_i32, %c0_i32_0 : i32, i32
  }
  func.func @transform_3(%arg0: i32) -> (i32, i32) {
    %c0_i32 = arith.constant 0 : i32
    %c0_i32_0 = arith.constant 0 : i32
    %c0_i32_1 = arith.constant 0 : i32
    return %c0_i32, %c0_i32_0 : i32, i32
  }
  func.func @transform_4(%arg0: i32) -> (i32, i32) {
    %c0_i32 = arith.constant 0 : i32
    %c0_i32_0 = arith.constant 0 : i32
    %c0_i32_1 = arith.constant 0 : i32
    return %c0_i32, %c0_i32_0 : i32, i32
  }
  func.func @transform_5(%arg0: i32) -> (i32, i32) {
    %c0_i32 = arith.constant 0 : i32
    %c0_i32_0 = arith.constant 0 : i32
    %c0_i32_1 = arith.constant 0 : i32
    return %c0_i32, %c0_i32_0 : i32, i32
  }
  func.func @transform_6(%arg0: i32) -> (i32, i32) {
    %c0_i32 = arith.constant 0 : i32
    %c0_i32_0 = arith.constant 0 : i32
    %c0_i32_1 = arith.constant 0 : i32
    return %c0_i32, %c0_i32_0 : i32, i32
  }
  func.func @transform_7(%arg0: i32) -> (i32, i32) {
    %c0_i32 = arith.constant 0 : i32
    %c0_i32_0 = arith.constant 0 : i32
    return %arg0, %c0_i32 : i32, i32
  }
}

module attributes {stable_mosaic.version = 11 : i64} {
  func.func @_softmax_bmm_kernel(%arg0: i32, %arg1: memref<2x13x32xf32, #tpu.memory_space<vmem>>, %arg2: memref<2x32x3xf32, #tpu.memory_space<vmem>>, %arg3: memref<2x13x3xf32, #tpu.memory_space<vmem>>) attributes {dimension_semantics = [#tpu.dimension_semantics<parallel>], iteration_bounds = array<i64: 1>, scalar_prefetch = 0 : i64, scratch_operands = 0 : i64, tpu.core_type = #tpu.core_type<tc>, window_params = [{pipeline_mode = #tpu.pipeline_mode<synchronous>, transform_indices = @transform_0, window_bounds = array<i64: 2, 13, 32>}, {pipeline_mode = #tpu.pipeline_mode<synchronous>, transform_indices = @transform_1, window_bounds = array<i64: 2, 32, 3>}, {pipeline_mode = #tpu.pipeline_mode<synchronous>, transform_indices = @transform_2, window_bounds = array<i64: 2, 13, 3>}]} {
    %c0 = arith.constant 0 : index
    %c0_0 = arith.constant 0 : index
    %c0_1 = arith.constant 0 : index
    %0 = vector.load %arg1[%c0, %c0_0, %c0_1] : memref<2x13x32xf32, #tpu.memory_space<vmem>>, vector<1x13x32xf32>
    %1 = vector.shape_cast %0 : vector<1x13x32xf32> to vector<13x32xf32>
    %cst = arith.constant dense<0xFF800000> : vector<13xf32>
    %2 = vector.multi_reduction <maximumf>, %1, %cst [1] : vector<13x32xf32> to vector<13xf32>
    %3 = vector.shape_cast %2 : vector<13xf32> to vector<13x1xf32>
    %4 = vector.broadcast %3 : vector<13x1xf32> to vector<13x32xf32>
    %5 = arith.subf %1, %4 : vector<13x32xf32>
    %6 = math.exp %5 : vector<13x32xf32>
    %cst_2 = arith.constant dense<0.000000e+00> : vector<13xf32>
    %7 = vector.multi_reduction <add>, %6, %cst_2 [1] : vector<13x32xf32> to vector<13xf32>
    %8 = vector.shape_cast %7 : vector<13xf32> to vector<13x1xf32>
    %9 = vector.broadcast %8 : vector<13x1xf32> to vector<13x32xf32>
    %10 = arith.divf %6, %9 : vector<13x32xf32>
    %c0_3 = arith.constant 0 : index
    %c0_4 = arith.constant 0 : index
    %c0_5 = arith.constant 0 : index
    %11 = vector.load %arg2[%c0_3, %c0_4, %c0_5] : memref<2x32x3xf32, #tpu.memory_space<vmem>>, vector<1x32x3xf32>
    %12 = vector.shape_cast %11 : vector<1x32x3xf32> to vector<32x3xf32>
    %cst_6 = arith.constant dense<0.000000e+00> : vector<13x3xf32>
    %13 = tpu.matmul %10, %12, %cst_6 {dimension_numbers = #tpu.dot_dimension_numbers<[1], [0], [0], [1], [0, 0, 1, 1], [], []>} : vector<13x32xf32>, vector<32x3xf32>, vector<13x3xf32> -> vector<13x3xf32>
    %c0_7 = arith.constant 0 : index
    %c0_8 = arith.constant 0 : index
    %c0_9 = arith.constant 0 : index
    %14 = vector.load %arg3[%c0_7, %c0_8, %c0_9] : memref<2x13x3xf32, #tpu.memory_space<vmem>>, vector<1x13x3xf32>
    %15 = vector.shape_cast %14 : vector<1x13x3xf32> to vector<13x3xf32>
    %16 = vector.shape_cast %13 : vector<13x3xf32> to vector<1x13x3xf32>
    tpu.vector_store %arg3[%c0_7, %c0_8, %c0_9], %16 {strides = array<i32>} : memref<2x13x3xf32, #tpu.memory_space<vmem>>, vector<1x13x3xf32>,
    %c1 = arith.constant 1 : index
    %c0_10 = arith.constant 0 : index
    %c0_11 = arith.constant 0 : index
    %17 = vector.load %arg1[%c1, %c0_10, %c0_11] : memref<2x13x32xf32, #tpu.memory_space<vmem>>, vector<1x13x32xf32>
    %18 = vector.shape_cast %17 : vector<1x13x32xf32> to vector<13x32xf32>
    %cst_12 = arith.constant dense<0xFF800000> : vector<13xf32>
    %19 = vector.multi_reduction <maximumf>, %18, %cst_12 [1] : vector<13x32xf32> to vector<13xf32>
    %20 = vector.shape_cast %19 : vector<13xf32> to vector<13x1xf32>
    %21 = vector.broadcast %20 : vector<13x1xf32> to vector<13x32xf32>
    %22 = arith.subf %18, %21 : vector<13x32xf32>
    %23 = math.exp %22 : vector<13x32xf32>
    %cst_13 = arith.constant dense<0.000000e+00> : vector<13xf32>
    %24 = vector.multi_reduction <add>, %23, %cst_13 [1] : vector<13x32xf32> to vector<13xf32>
    %25 = vector.shape_cast %24 : vector<13xf32> to vector<13x1xf32>
    %26 = vector.broadcast %25 : vector<13x1xf32> to vector<13x32xf32>
    %27 = arith.divf %23, %26 : vector<13x32xf32>
    %c1_14 = arith.constant 1 : index
    %c0_15 = arith.constant 0 : index
    %c0_16 = arith.constant 0 : index
    %28 = vector.load %arg2[%c1_14, %c0_15, %c0_16] : memref<2x32x3xf32, #tpu.memory_space<vmem>>, vector<1x32x3xf32>
    %29 = vector.shape_cast %28 : vector<1x32x3xf32> to vector<32x3xf32>
    %cst_17 = arith.constant dense<0.000000e+00> : vector<13x3xf32>
    %30 = tpu.matmul %27, %29, %cst_17 {dimension_numbers = #tpu.dot_dimension_numbers<[1], [0], [0], [1], [0, 0, 1, 1], [], []>} : vector<13x32xf32>, vector<32x3xf32>, vector<13x3xf32> -> vector<13x3xf32>
    %c1_18 = arith.constant 1 : index
    %c0_19 = arith.constant 0 : index
    %c0_20 = arith.constant 0 : index
    %31 = vector.load %arg3[%c1_18, %c0_19, %c0_20] : memref<2x13x3xf32, #tpu.memory_space<vmem>>, vector<1x13x3xf32>
    %32 = vector.shape_cast %31 : vector<1x13x3xf32> to vector<13x3xf32>
    %33 = vector.shape_cast %30 : vector<13x3xf32> to vector<1x13x3xf32>
    tpu.vector_store %arg3[%c1_18, %c0_19, %c0_20], %33 {strides = array<i32>} : memref<2x13x3xf32, #tpu.memory_space<vmem>>, vector<1x13x3xf32>,
    return
  }
  func.func @transform_0(%arg0: i32) -> (i32, i32, i32) {
    %c0_i32 = arith.constant 0 : i32
    %c0_i32_0 = arith.constant 0 : i32
    %c0_i32_1 = arith.constant 0 : i32
    %c0_i32_2 = arith.constant 0 : i32
    return %c0_i32, %c0_i32_0, %c0_i32_1 : i32, i32, i32
  }
  func.func @transform_1(%arg0: i32) -> (i32, i32, i32) {
    %c0_i32 = arith.constant 0 : i32
    %c0_i32_0 = arith.constant 0 : i32
    %c0_i32_1 = arith.constant 0 : i32
    %c0_i32_2 = arith.constant 0 : i32
    return %c0_i32, %c0_i32_0, %c0_i32_1 : i32, i32, i32
  }
  func.func @transform_2(%arg0: i32) -> (i32, i32, i32) {
    %c0_i32 = arith.constant 0 : i32
    %c0_i32_0 = arith.constant 0 : i32
    %c0_i32_1 = arith.constant 0 : i32
    %c0_i32_2 = arith.constant 0 : i32
    return %c0_i32, %c0_i32_0, %c0_i32_1 : i32, i32, i32
  }
}

</mosaic_0001>

<bundles_post_ra>
// kernel: custom-call.66
= control target key start
LH: loop header
LB: loop body
LE: loop exit
PB: predicated region body
PF: predicated region fallthrough
CT: control target
= control target key end

     0   :  { %s6_s0 = inlined_call_operand.vmem [shape: f32[2,32], index: 0, kind: output, shape index: {}]  }

// kernel: _lambda_.12
= control target key start
LH: loop header
LB: loop body
LE: loop exit
PB: predicated region body
PF: predicated region fallthrough
CT: control target
= control target key end

     0   :  { %s859_s18 = smov 0   ;;  %s945_s0 = inlined_call_operand.vmem [shape: bf16[8,16,32], index: 0, kind: input, shape index: {}]   ;;  %s946_s1 = inlined_call_operand.vmem [shape: bf16[16,32], index: 1, kind: input, shape index: {}]   ;;  %s947_s2 = inlined_call_operand.vmem [shape: bf16[32,64], index: 2, kind: input, shape index: {}]   ;;  %s948_s3 = inlined_call_operand.vmem [shape: bf16[32,32], index: 3, kind: input, shape index: {}]   ;;  %s949_s4 = inlined_call_operand.vmem [shape: f32[1,32], index: 4, kind: input, shape index: {}]   ;;  %s950_s5 = inlined_call_operand.vmem [shape: bf16[8,16,32], index: 5, kind: output, shape index: {}]  }
   0x1 LB: > { %s690_s19 = sadd.s32 4294967295, %s821_s18   ;;  %p694_p0 = scmp.ge.s32.totalorder %s821_s18, 1  ;;  %s821_s18 = sphi %s859_s18, %s15_s18  }
   0x2   : > { %p187_p1 = scmp.lt.s32.totalorder %s821_s18, 9 }
   0x4   : > { %p188_p2 = pnand %p694_p0, %p187_p1 }
   0x5   : > { %v793_v0 = vld [vmem:[%s947_s2] sm:$0xff] (!%p188_p2)   ;;  %v823_v1 = vmov (!%p188_p2), 0.0   ;;  %v794_v2 = vld [vmem:[%s947_s2 + $0x8] sm:$0xff] (!%p188_p2)   ;;  %vm824_vm0 = vmmov (!%p188_p2), 0   ;;  %p215_p3 = scmp.lt.s32.totalorder (!%p188_p2), %s690_s19, 7  ;;  %vm249_vm1 = vcmask (!%p188_p2), 261120  }
   0x6   : > { %191 = sbr.rel (%p188_p2) target bundleno = 1445 (0x5a5), region = 40  ;;  %734 = vmatprep.subr.bf16.mxu0 (!%p188_p2), %v823_v1  ;;  %742 = vmatprep.subr.bf16.mxu1 (!%p188_p2), %v823_v1  ;;  %vm302_vm2 = vcmask (!%p188_p2), 130048   ;;  %s825_s28 = smov (!%p188_p2), 112   ;;  %v796_v10 = vld [vmem:[%s946_s1] sm:$0xff] (!%p188_p2)   ;;  %vm632_vm3 = vcmask (!%p188_p2), 257024  }
   0x7   : > { %735 = vmatpush3.bf16.msra.mxu0 (!%p188_p2), %v793_v0  ;;  %738 = vmatprep.mubr.msk.bf16.mxu0 (!%p188_p2), %vm824_vm0, %v823_v1  ;;  %s826_s6 = smov (!%p188_p2), 80   ;;  %s827_s7 = smov (!%p188_p2), 96  }
   0x8   : > { %736 = vmatprep.subr.bf16.mxu0 (!%p188_p2), %v823_v1  ;;  %744 = vmatprep.mubr.msk.bf16.mxu1 (!%p188_p2), %vm824_vm0, %v823_v1  ;;  %s828_s12 = smov (!%p188_p2), 16  }
   0xb   : > { %737 = vmatpush3.bf16.msra.mxu0 (!%p188_p2), %v794_v2 }
   0xc   : > { %748 = vmatprep.subr.bf16.mxu0 (!%p188_p2), %v823_v1 }
   0xd   : > { %s952_s19 = smov (!%p215_p3, %s690_s19), 7 }
   0xe   : > { %s716_s24 = sshll.u32 %s952_s19, 3 }
   0xf   : > { %s219_s27 = scalar_lea.vmem %s945_s0, %s716_s24  ;;  %s224_s17 = scalar_lea.vmem %s950_s5, %s716_s24 }
  0x10   : > { %v795_v3 = vld [vmem:[%s219_s27] sm:$0xff]  }
  0x11   : > { %739 = vmatmul.mubr.msk.bf16.vlgmr.msra.gmra.mrb[0].mxu0 %vm249_vm1, %v795_v3  ;;  %v797_v3 = vld [vmem:[%s948_s3] sm:$0xff]  }
  0x12   : > { %750 = vmatprep.mubr.msk.bf16.mxu0 %vm824_vm0, %v823_v1 }
  0xe4   : > { %v287_v4 = vpop.f32.mrb[0].mxu0 }
  0xe5   : > { %v740_v5 = vpop.f32.mrb[1].mxu0 }
  0xe6   : > { %v290_v6 = vpop.f32.mrb[2].mxu0  ;;  %v798_v5 = vld [vmem:[%s948_s3 + $0x8] sm:$0xff]  }
  0xe7   : > { %v892_v7 = vpack.c.bf16 %v290_v6, %v287_v4  ;;  %v741_v8 = vpop.f32.mrb[3].mxu0 }
  0xe9   : > { %425 = vrot.lane.b32.xlu0 %v892_v7, %s825_s28  ;;  %v307_v9 = vsel %vm302_vm2, %v892_v7, 0 }
  0xea   : > { %743 = vmatpush3.bf16.xpose.msra.mxu1 %v307_v9 }
  0xeb   : > { %754 = vmatprep.subr.bf16.mxu1 %v823_v1 }
  0xed   : > { %423 = vrot.lane.b32.xlu0 %v796_v10, %s825_s28 }
  0xf1   : > { %745 = vmatmul.mubr.msk.bf16.vlgmr.msra.gmra.mrb[0].mxu1 %vm302_vm2, %v796_v10 }
  0xf2   : > { %756 = vmatprep.mubr.msk.bf16.mxu1 %vm824_vm0, %v823_v1 }
 0x15b   : > { %v426_v11 = vpop.permute.xlu0 %425 }
 0x15c   : > { %v431_v12 = vsel %vm302_vm2, %v426_v11, 0 }
 0x15d   : > { %755 = vmatpush3.bf16.xpose.msra.mxu1 %v431_v12 }
 0x15e   : > { %766 = vmatprep.subr.bf16.mxu1 %v823_v1 }
 0x15f   : > { %v424_v13 = vpop.permute.xlu0 %423 }
 0x164   : > { %757 = vmatmul.mubr.msk.bf16.vlgmr.msra.gmra.mrb[4].mxu1 %vm302_vm2, %v424_v13 }
 0x165   : > { %770 = vmatprep.mubr.msk.bf16.mxu1 %vm824_vm0, %v823_v1  ;;  %767 = vmatpush3.bf16.msra.mxu1 %v797_v3 }
 0x166   : > { %768 = vmatprep.subr.bf16.mxu1 %v823_v1 }
 0x169   : > { %769 = vmatpush3.bf16.msra.mxu1 %v798_v5 }
 0x1c4   : > { %v343_v14 = vpop.f32.mrb[0].mxu1 }
 0x1c5   : > { %v350_v15 = vmul.f32 0.25, %v343_v14  ;;  %v746_v16 = vpop.f32.mrb[1].mxu1 }
 0x1c6   : > { %v346_v17 = vpop.f32.mrb[2].mxu1 }
 0x1c7   : > { %v352_v18 = vsel %vm302_vm2, %v350_v15, -inf  ;;  %v351_v19 = vmul.f32 0.25, %v346_v17  ;;  %v747_v20 = vpop.f32.mrb[3].mxu1 }
 0x1c8   : > { %353 = vmax.xlane.f32.xlu1 %v352_v18 }
 0x1c9   : > { %v355_v21 = vsel %vm302_vm2, %v351_v19, -inf }
 0x1cc   : > { %356 = vmax.xlane.f32.xlu1 %v355_v21 }
 0x237   : > { %v467_v22 = vpop.f32.mrb[4].mxu1 }
 0x238   : > { %v474_v23 = vmul.f32 0.25, %v467_v22  ;;  %v758_v24 = vpop.f32.mrb[5].mxu1 }
 0x239   : > { %v470_v25 = vpop.f32.mrb[6].mxu1 }
 0x23a   : > { %v475_v26 = vmul.f32 0.25, %v470_v25  ;;  %v759_v27 = vpop.f32.mrb[7].mxu1  ;;  %v476_v28 = vsel %vm302_vm2, %v474_v23, -inf }
 0x23b   : > { %477 = vmax.xlane.f32.xlu0 %v476_v28 }
 0x23c   : > { %v479_v29 = vsel %vm302_vm2, %v475_v26, -inf }
 0x23d   : > { %480 = vmax.xlane.f32.xlu1 %v479_v29 }
 0x251   : > { %499 = vrot.lane.b32.xlu0 %v892_v7, %s826_s6 }
 0x255   : > { %v354_v30 = vpop.xlane.xlu1 %353 }
 0x256   : > { %v358_v31 = vsub.f32 %v350_v15, %v354_v30 }
 0x258   : > { %v360_v32 = vmul.f32 1.442695, %v358_v31 }
 0x259   : > { %v357_v33 = vpop.xlane.xlu1 %356 }
 0x25a   : > { %799 = vpow2.f32 %v360_v32  ;;  %v359_v34 = vsub.f32 %v351_v19, %v357_v33  ;;  %v708_v19 = vld [vmem:[%s949_s4] ss:$0 sm:$0xff] }
 0x25c   : > { %v362_v35 = vmul.f32 1.442695, %v359_v34 }
 0x25e   : > { %801 = vpow2.f32 %v362_v35 }
 0x264   : > { %v800_v36 = vpop.eup %799 }
 0x265   : > { %v364_v37 = vsel %vm302_vm2, %v800_v36, 0.0 }
 0x266   : > { %365 = vadd.xlane.f32.xlu1 %v364_v37 }
 0x268   : > { %v802_v38 = vpop.eup %801 }
 0x269   : > { %v367_v39 = vsel %vm302_vm2, %v802_v38, 0.0 }
 0x26a   : > { %368 = vadd.xlane.f32.xlu1 %v367_v39 }
 0x2c8   : > { %v478_v40 = vpop.xlane.xlu0 %477 }
 0x2c9   : > { %v482_v41 = vsub.f32 %v474_v23, %v478_v40 }
 0x2ca   : > { %v481_v42 = vpop.xlane.xlu1 %480 }
 0x2cb   : > { %v484_v43 = vmul.f32 1.442695, %v482_v41  ;;  %v483_v44 = vsub.f32 %v475_v26, %v481_v42 }
 0x2cc   : > { %v500_v60 = vpop.permute.xlu0 %499 }
 0x2cd   : > { %803 = vpow2.f32 %v484_v43  ;;  %v486_v45 = vmul.f32 1.442695, %v483_v44 }
 0x2cf   : > { %805 = vpow2.f32 %v486_v45 }
 0x2d7   : > { %v804_v46 = vpop.eup %803 }
 0x2d8   : > { %v488_v47 = vsel %vm302_vm2, %v804_v46, 0.0 }
 0x2d9   : > { %v806_v48 = vpop.eup %805  ;;  %489 = vadd.xlane.f32.xlu1 %v488_v47 }
 0x2da   : > { %v491_v49 = vsel %vm302_vm2, %v806_v48, 0.0 }
 0x2dd   : > { %492 = vadd.xlane.f32.xlu1 %v491_v49 }
 0x2ee   : > { %376 = vrot.lane.b32.xlu1 %v892_v7, %s827_s7 }
 0x2f3   : > { %v366_v50 = vpop.xlane.xlu1 %365 }
 0x2f7   : > { %v369_v51 = vpop.xlane.xlu1 %368 }
 0x2f8   : > { %807 = vrcp.f32 %v369_v51 }
 0x2f9   : > { %809 = vrcp.f32 %v366_v50 }
 0x302   : > { %v808_v53 = vpop.eup %807 }
 0x303   : > { %v810_v55 = vpop.eup %809  ;;  %v373_v56 = vmul.f32 %v808_v53, %v802_v38 }
 0x304   : > { %v372_v57 = vmul.f32 %v810_v55, %v800_v36 }
 0x306   : > { %v374_v59 = vpack.c.bf16 %v373_v56, %v372_v57 }
 0x366   : > { %v490_v52 = vpop.xlane.xlu1 %489 }
 0x367   : > { %811 = vrcp.f32 %v490_v52 }
 0x36a   : > { %v493_v54 = vpop.xlane.xlu1 %492 }
 0x36b   : > { %813 = vrcp.f32 %v493_v54 }
 0x36e   : > { %v377_v58 = vpop.permute.xlu1 %376 }
 0x36f   : > { %749 = vmatpush3.bf16.msra.mxu0 %v377_v58 }
 0x370   : > { %760 = vmatprep.subr.bf16.mxu0 %v823_v1 }
 0x371   : > { %v812_v61 = vpop.eup %811 }
 0x372   : > { %751 = vmatmul.mubr.msk.bf16.vlgmr.msra.gmra.mrb[4].mxu0 %vm302_vm2, %v374_v59  ;;  %v496_v63 = vmul.f32 %v812_v61, %v804_v46 }
 0x373   : > { %761 = vmatpush3.bf16.msra.mxu0 %v500_v60  ;;  %762 = vmatprep.mubr.msk.bf16.mxu0 %vm824_vm0, %v823_v1 }
 0x375   : > { %v814_v62 = vpop.eup %813 }
 0x376   : > { %v497_v0 = vmul.f32 %v814_v62, %v806_v48 }
 0x378   : > { %v498_v2 = vpack.c.bf16 %v497_v0, %v496_v63 }
 0x37a   : > { %763 = vmatmul.mubr.msk.bf16.vlgmr.msra.gmra.mrb[8].mxu0 %vm302_vm2, %v498_v2 }
 0x445   : > { %v416_v4 = vpop.f32.mrb[4].mxu0 }
 0x446   : > { %v752_v6 = vpop.f32.mrb[5].mxu0 }
 0x447   : > { %v419_v7 = vpop.f32.mrb[6].mxu0 }
 0x448   : > { %v753_v8 = vpop.f32.mrb[7].mxu0 }
 0x44d   : > { %v539_v9 = vpop.f32.mrb[8].mxu0 }
 0x44e   : > { %v764_v10 = vpop.f32.mrb[9].mxu0 }
 0x44f   : > { %v542_v11 = vpop.f32.mrb[10].mxu0 }
 0x450   : > { %v788_v12 = vpack.i.bf16 %v542_v11, %v539_v9  ;;  %v765_v13 = vpop.f32.mrb[11].mxu0 }
 0x452   : > { %789 = vrot.lane.b32.xlu1 %v788_v12, %s828_s12 }
 0x4c4   : > { %v790_v14 = vpop.permute.xlu1 %789 }
 0x4c5   : > { %v792_v15 = vunpack.i.h.bf16 %v790_v14  ;;  %v791_v1 = vunpack.i.l.bf16 %v790_v14 }
 0x4c7   : > { %v555_v16 = vsel %vm302_vm2, %v419_v7, %v792_v15  ;;  %v554_v17 = vsel %vm302_vm2, %v416_v4, %v791_v1 }
 0x4c8   : > { %v556_v18 = vpack.c.bf16 %v555_v16, %v554_v17 }
 0x4ca   : > { %771 = vmatmul.mubr.msk.bf16.vlgmr.msra.gmra.mrb[8].mxu1 %vm249_vm1, %v556_v18 }
 0x59d   : > { %v617_v20 = vpop.f32.mrb[8].mxu1 }
 0x59e   : > { %v618_v21 = vadd.f32 %v708_v19, %v617_v20  ;;  %v772_v22 = vpop.f32.mrb[9].mxu1 }
 0x59f   : > { %v620_v23 = vpop.f32.mrb[10].mxu1 }
 0x5a0   : > { %v718_v24 = vpack.c.bf16 %v618_v21, %v618_v21  ;;  %v621_v25 = vadd.f32 %v708_v19, %v620_v23  ;;  %v773_v26 = vpop.f32.mrb[11].mxu1 }
 0x5a2   : > { %633 = vst.msk [vmem:[%s224_s17] sm:$0xf] %vm632_vm3, %v718_v24  ;;  %v719_v27 = vpack.c.bf16 %v621_v25, %v621_v25 }
 0x5a4   : > { %634 = vst.msk [vmem:[%s224_s17 + $0x4] sm:$0xf] %vm632_vm3, %v719_v27 }
 0x5a5 PF: > { %s15_s18 = sadd.s32 1, %s821_s18  }
 0x5a6   : > { %p12_p4 = scmp.ge.s32.totalorder %s15_s18, 10  }
 0x5a8   :  { %14 = sbr.rel (!%p12_p4) target bundleno = 1 (0x1), region = 70 }

// kernel: _lambda_.11
= control target key start
LH: loop header
LB: loop body
LE: loop exit
PB: predicated region body
PF: predicated region fallthrough
CT: control target
= control target key end

     0   :  { %vm116_vm0 = vcmask 1042432   ;;  %vm91_vm1 = vcmask 48128   ;;  %vm219_vm2 = vcmask 261120   ;;  %s2018_s1 = inlined_call_operand.vmem [shape: bf16[6,32], index: 1, kind: input, shape index: {}]   ;;  %s2019_s0 = inlined_call_operand.vmem [shape: bf16[128,6], index: 0, kind: input, shape index: {}]   ;;  %s2020_s2 = inlined_call_operand.vmem [shape: f32[1,32], index: 2, kind: input, shape index: {}]   ;;  %s2021_s5 = inlined_call_operand.vmem [shape: bf16[32,32], index: 5, kind: input, shape index: {}]   ;;  %s2022_s3 = inlined_call_operand.vmem [shape: f32[1,32], index: 3, kind: input, shape index: {}]   ;;  %s2023_s4 = inlined_call_operand.vmem [shape: f32[1,32], index: 4, kind: input, shape index: {}]   ;;  %s2024_s6 = inlined_call_operand.vmem [shape: f32[1,32], index: 6, kind: input, shape index: {}]   ;;  %s2025_s7 = inlined_call_operand.vmem [shape: bf16[128,32], index: 7, kind: output, shape index: {}]  }
   0x1   :  { %v43_v0 = vld [vmem:[%s2018_s1] sm:$0x7]  ;;  %v1263_v3 = vld [vmem:[%s2019_s0 + $0x8] sm:$0xff]   ;;  %v1264_v4 = vld [vmem:[%s2019_s0 + $0x10] sm:$0xff]  }
   0x2   :  { %1261 = vmatprep.subr.msk.bf16.mxu0 %vm116_vm0, %v43_v0  ;;  %v118_v1 = vsel %vm116_vm0, %v43_v0, 0  ;;  %v1262_v2 = vld [vmem:[%s2019_s0] sm:$0xff]   ;;  %v1265_v5 = vld [vmem:[%s2019_s0 + $0x18] sm:$0xff]   ;;  %v1267_v7 = vld [vmem:[%s2019_s0 + $0x28] sm:$0xff]  }
   0x3   :  { %1224 = vmatpush3.bf16.msra.mxu0 %v118_v1  ;;  %1225 = vmatprep.mubr.msk.bf16.mxu0 %vm91_vm1, %v1262_v2  ;;  %v1266_v6 = vld [vmem:[%s2019_s0 + $0x20] sm:$0xff]   ;;  %v1268_v8 = vld [vmem:[%s2019_s0 + $0x30] sm:$0xff]   ;;  %v1269_v9 = vld [vmem:[%s2019_s0 + $0x38] sm:$0xff]  }
   0x4   :  { %v1142_v10 = vld [vmem:[%s2020_s2] ss:$0 sm:$0xff] }
   0x6   :  { %1226 = vmatmul.mubr.msk.bf16.vlgmr.msra.gmra.mrb[0].mxu0 %vm91_vm1, %v1263_v3 }
   0x7   :  { %1229 = vmatprep.mubr.msk.bf16.mxu0 %vm91_vm1, %v1264_v4 }
   0xe   :  { %1230 = vmatmul.mubr.msk.bf16.gmra.mrb[4].mxu0 %vm91_vm1, %v1265_v5 }
   0xf   :  { %1233 = vmatprep.mubr.msk.bf16.mxu0 %vm91_vm1, %v1266_v6 }
  0x16   :  { %1234 = vmatmul.mubr.msk.bf16.gmra.mrb[8].mxu0 %vm91_vm1, %v1267_v7 }
  0x17   :  { %1237 = vmatprep.mubr.msk.bf16.mxu0 %vm91_vm1, %v1268_v8 }
  0x1e   :  { %1238 = vmatmul.mubr.msk.bf16.gmra.mrb[12].mxu0 %vm91_vm1, %v1269_v9 }
  0xd9   :  { %v1227_v11 = vpop.f32.mrb[0].mxu0 }
  0xda   :  { %v1446_v12 = vadd.f32 %v1227_v11, %v1142_v10  ;;  %v154_v13 = vpop.f32.mrb[1].mxu0 }
  0xdb   :  { %v1448_v14 = vadd.f32 %v1142_v10, %v154_v13  ;;  %v1228_v15 = vpop.f32.mrb[2].mxu0 }
  0xdc   :  { %v1450_v16 = vadd.f32 %v1228_v15, %v1142_v10  ;;  %v157_v17 = vpop.f32.mrb[3].mxu0  ;;  %v226_v18 = vsel %vm219_vm2, %v1446_v12, 0.0 }
  0xdd   :  { %v1454_v19 = vadd.f32 %v1142_v10, %v157_v17  ;;  %227 = vadd.xlane.f32.xlu1 %v226_v18  ;;  %v220_v20 = vsel %vm219_vm2, %v1448_v14, 0.0 }
  0xde   :  { %221 = vadd.xlane.f32.xlu0 %v220_v20  ;;  %v229_v21 = vsel %vm219_vm2, %v1450_v16, 0.0 }
  0xdf   :  { %v223_v23 = vsel %vm219_vm2, %v1454_v19, 0.0 }
  0xe1   :  { %230 = vadd.xlane.f32.xlu1 %v229_v21  ;;  %v1231_v22 = vpop.f32.mrb[4].mxu0 }
  0xe2   :  { %v170_v24 = vpop.f32.mrb[5].mxu0  ;;  %224 = vadd.xlane.f32.xlu0 %v223_v23  ;;  %v1464_v28 = vadd.f32 %v1231_v22, %v1142_v10 }
  0xe3   :  { %v1462_v25 = vadd.f32 %v1142_v10, %v170_v24  ;;  %v1232_v26 = vpop.f32.mrb[6].mxu0 }
  0xe4   :  { %v173_v27 = vpop.f32.mrb[7].mxu0  ;;  %v1470_v31 = vadd.f32 %v1232_v26, %v1142_v10  ;;  %v238_v34 = vsel %vm219_vm2, %v1464_v28, 0.0 }
  0xe5   :  { %v1466_v29 = vadd.f32 %v1142_v10, %v173_v27  ;;  %v232_v30 = vsel %vm219_vm2, %v1462_v25, 0.0 }
  0xe6   :  { %233 = vadd.xlane.f32.xlu0 %v232_v30  ;;  %v241_v38 = vsel %vm219_vm2, %v1470_v31, 0.0 }
  0xe7   :  { %v235_v32 = vsel %vm219_vm2, %v1466_v29, 0.0 }
  0xe8   :  { %236 = vadd.xlane.f32.xlu1 %v235_v32 }
  0xe9   :  { %v1235_v33 = vpop.f32.mrb[8].mxu0 }
  0xea   :  { %v186_v35 = vpop.f32.mrb[9].mxu0  ;;  %239 = vadd.xlane.f32.xlu0 %v238_v34  ;;  %v1480_v40 = vadd.f32 %v1235_v33, %v1142_v10 }
  0xeb   :  { %v1476_v36 = vadd.f32 %v1142_v10, %v186_v35  ;;  %v1236_v37 = vpop.f32.mrb[10].mxu0 }
  0xec   :  { %v189_v39 = vpop.f32.mrb[11].mxu0  ;;  %242 = vadd.xlane.f32.xlu1 %v241_v38  ;;  %v1486_v43 = vadd.f32 %v1236_v37, %v1142_v10  ;;  %v250_v46 = vsel %vm219_vm2, %v1480_v40, 0.0 }
  0xed   :  { %v1482_v41 = vadd.f32 %v1142_v10, %v189_v39  ;;  %v244_v42 = vsel %vm219_vm2, %v1476_v36, 0.0 }
  0xee   :  { %245 = vadd.xlane.f32.xlu0 %v244_v42  ;;  %v253_v50 = vsel %vm219_vm2, %v1486_v43, 0.0 }
  0xef   :  { %v247_v44 = vsel %vm219_vm2, %v1482_v41, 0.0 }
  0xf0   :  { %248 = vadd.xlane.f32.xlu1 %v247_v44 }
  0xf1   :  { %v1239_v45 = vpop.f32.mrb[12].mxu0 }
  0xf2   :  { %v202_v47 = vpop.f32.mrb[13].mxu0  ;;  %251 = vadd.xlane.f32.xlu0 %v250_v46  ;;  %v1496_v52 = vadd.f32 %v1239_v45, %v1142_v10 }
  0xf3   :  { %v1492_v48 = vadd.f32 %v1142_v10, %v202_v47  ;;  %v1240_v49 = vpop.f32.mrb[14].mxu0 }
  0xf4   :  { %v205_v51 = vpop.f32.mrb[15].mxu0  ;;  %254 = vadd.xlane.f32.xlu1 %v253_v50  ;;  %v1502_v55 = vadd.f32 %v1240_v49, %v1142_v10  ;;  %v262_v57 = vsel %vm219_vm2, %v1496_v52, 0.0 }
  0xf5   :  { %v1498_v53 = vadd.f32 %v1142_v10, %v205_v51  ;;  %v256_v54 = vsel %vm219_vm2, %v1492_v48, 0.0 }
  0xf6   :  { %257 = vadd.xlane.f32.xlu0 %v256_v54  ;;  %v265_v58 = vsel %vm219_vm2, %v1502_v55, 0.0 }
  0xf7   :  { %v259_v56 = vsel %vm219_vm2, %v1498_v53, 0.0 }
  0xf8   :  { %260 = vadd.xlane.f32.xlu1 %v259_v56 }
  0xfa   :  { %263 = vadd.xlane.f32.xlu0 %v262_v57 }
  0xfc   :  { %266 = vadd.xlane.f32.xlu1 %v265_v58 }
 0x16a   :  { %v228_v59 = vpop.xlane.xlu1 %227 }
 0x16b   :  { %v271_v60 = vmul.f32 0.03125, %v228_v59  ;;  %v222_v61 = vpop.xlane.xlu0 %221 }
 0x16c   :  { %v269_v62 = vmul.f32 0.03125, %v222_v61 }
 0x16d   :  { %v1511_v63 = vsub.f32 %v1446_v12, %v271_v60 }
 0x16e   :  { %v1514_v0 = vsub.f32 %v1448_v14, %v269_v62  ;;  %v231_v1 = vpop.xlane.xlu1 %230 }
 0x16f   :  { %v272_v2 = vmul.f32 0.03125, %v231_v1  ;;  %v225_v3 = vpop.xlane.xlu0 %224  ;;  %v303_v9 = vmul.f32 %v1511_v63, %v1511_v63 }
 0x170   :  { %v270_v4 = vmul.f32 0.03125, %v225_v3  ;;  %v301_v5 = vmul.f32 %v1514_v0, %v1514_v0 }
 0x171   :  { %v1519_v6 = vsub.f32 %v1450_v16, %v272_v2  ;;  %v323_v17 = vsel %vm219_vm2, %v303_v9, 0.0 }
 0x172   :  { %v1522_v7 = vsub.f32 %v1454_v19, %v270_v4  ;;  %v317_v8 = vsel %vm219_vm2, %v301_v5, 0.0 }
 0x173   :  { %318 = vadd.xlane.f32.xlu0 %v317_v8  ;;  %v234_v10 = vpop.xlane.xlu0 %233  ;;  %v304_v14 = vmul.f32 %v1519_v6, %v1519_v6 }
 0x174   :  { %v273_v11 = vmul.f32 0.03125, %v234_v10  ;;  %v302_v12 = vmul.f32 %v1522_v7, %v1522_v7 }
 0x175   :  { %v237_v13 = vpop.xlane.xlu1 %236  ;;  %v326_v24 = vsel %vm219_vm2, %v304_v14, 0.0 }
 0x176   :  { %v1532_v15 = vsub.f32 %v1462_v25, %v273_v11  ;;  %v274_v16 = vmul.f32 0.03125, %v237_v13  ;;  %v320_v18 = vsel %vm219_vm2, %v302_v12, 0.0 }
 0x177   :  { %324 = vadd.xlane.f32.xlu0 %v323_v17  ;;  %321 = vadd.xlane.f32.xlu1 %v320_v18  ;;  %v240_v19 = vpop.xlane.xlu0 %239  ;;  %v1271_v17 = vld [vmem:[%s2021_s5 + $0x8] sm:$0xff]  }
 0x178   :  { %v1537_v20 = vsub.f32 %v1466_v29, %v274_v16  ;;  %v275_v21 = vmul.f32 0.03125, %v240_v19  ;;  %v305_v22 = vmul.f32 %v1532_v15, %v1532_v15 }
 0x179   :  { %v243_v23 = vpop.xlane.xlu1 %242 }
 0x17a   :  { %v1543_v25 = vsub.f32 %v1464_v28, %v275_v21  ;;  %v276_v26 = vmul.f32 0.03125, %v243_v23  ;;  %v329_v27 = vsel %vm219_vm2, %v305_v22, 0.0  ;;  %v306_v30 = vmul.f32 %v1537_v20, %v1537_v20 }
 0x17b   :  { %327 = vadd.xlane.f32.xlu1 %v326_v24  ;;  %330 = vadd.xlane.f32.xlu0 %v329_v27  ;;  %v246_v29 = vpop.xlane.xlu0 %245 }
 0x17c   :  { %v1549_v32 = vsub.f32 %v1470_v31, %v276_v26  ;;  %v277_v33 = vmul.f32 0.03125, %v246_v29  ;;  %v307_v34 = vmul.f32 %v1543_v25, %v1543_v25  ;;  %v332_v28 = vsel %vm219_vm2, %v306_v30, 0.0 }
 0x17d   :  { %v249_v35 = vpop.xlane.xlu1 %248 }
 0x17e   :  { %v1555_v37 = vsub.f32 %v1476_v36, %v277_v33  ;;  %v278_v38 = vmul.f32 0.03125, %v249_v35  ;;  %v335_v39 = vsel %vm219_vm2, %v307_v34, 0.0  ;;  %v308_v42 = vmul.f32 %v1549_v32, %v1549_v32 }
 0x17f   :  { %333 = vadd.xlane.f32.xlu1 %v332_v28  ;;  %336 = vadd.xlane.f32.xlu0 %v335_v39  ;;  %v252_v31 = vpop.xlane.xlu0 %251 }
 0x180   :  { %v1561_v44 = vsub.f32 %v1482_v41, %v278_v38  ;;  %v279_v45 = vmul.f32 0.03125, %v252_v31  ;;  %v309_v46 = vmul.f32 %v1555_v37, %v1555_v37  ;;  %v338_v36 = vsel %vm219_vm2, %v308_v42, 0.0 }
 0x181   :  { %v255_v47 = vpop.xlane.xlu1 %254 }
 0x182   :  { %v1567_v49 = vsub.f32 %v1480_v40, %v279_v45  ;;  %v280_v50 = vmul.f32 0.03125, %v255_v47  ;;  %v341_v51 = vsel %vm219_vm2, %v309_v46, 0.0  ;;  %v310_v54 = vmul.f32 %v1561_v44, %v1561_v44  ;;  %v1615_v47 = vld [vmem:[%s2022_s3] ss:$0 sm:$0xff] }
 0x183   :  { %339 = vadd.xlane.f32.xlu1 %v338_v36  ;;  %342 = vadd.xlane.f32.xlu0 %v341_v51  ;;  %v258_v41 = vpop.xlane.xlu0 %257 }
 0x184   :  { %v1573_v56 = vsub.f32 %v1486_v43, %v280_v50  ;;  %v281_v57 = vmul.f32 0.03125, %v258_v41  ;;  %v311_v58 = vmul.f32 %v1567_v49, %v1567_v49  ;;  %v344_v40 = vsel %vm219_vm2, %v310_v54, 0.0 }
 0x185   :  { %v261_v59 = vpop.xlane.xlu1 %260 }
 0x186   :  { %v1579_v60 = vsub.f32 %v1492_v48, %v281_v57  ;;  %v282_v61 = vmul.f32 0.03125, %v261_v59  ;;  %v347_v62 = vsel %vm219_vm2, %v311_v58, 0.0  ;;  %v312_v1 = vmul.f32 %v1573_v56, %v1573_v56  ;;  %v1621_v59 = vld [vmem:[%s2023_s4] ss:$0 sm:$0xff] }
 0x187   :  { %345 = vadd.xlane.f32.xlu1 %v344_v40  ;;  %348 = vadd.xlane.f32.xlu0 %v347_v62  ;;  %v264_v43 = vpop.xlane.xlu0 %263 }
 0x188   :  { %v1585_v2 = vsub.f32 %v1498_v53, %v282_v61  ;;  %v283_v3 = vmul.f32 0.03125, %v264_v43  ;;  %v313_v4 = vmul.f32 %v1579_v60, %v1579_v60  ;;  %v350_v48 = vsel %vm219_vm2, %v312_v1, 0.0 }
 0x189   :  { %v267_v5 = vpop.xlane.xlu1 %266 }
 0x18a   :  { %v1591_v8 = vsub.f32 %v1496_v52, %v283_v3  ;;  %v284_v9 = vmul.f32 0.03125, %v267_v5  ;;  %v353_v10 = vsel %vm219_vm2, %v313_v4, 0.0  ;;  %v314_v11 = vmul.f32 %v1585_v2, %v1585_v2 }
 0x18b   :  { %351 = vadd.xlane.f32.xlu1 %v350_v48  ;;  %354 = vadd.xlane.f32.xlu0 %v353_v10 }
 0x18c   :  { %v1597_v53 = vsub.f32 %v1502_v55, %v284_v9  ;;  %v315_v12 = vmul.f32 %v1591_v8, %v1591_v8  ;;  %v356_v13 = vsel %vm219_vm2, %v314_v11, 0.0  ;;  %v1270_v55 = vld [vmem:[%s2021_s5] sm:$0xff]  }
 0x18d   :  { %1241 = vmatprep.subr.bf16.mxu1 %v1270_v55 }
 0x18e   :  { %v359_v14 = vsel %vm219_vm2, %v315_v12, 0.0  ;;  %v316_v52 = vmul.f32 %v1597_v53, %v1597_v53  ;;  %1242 = vmatpush3.bf16.msra.mxu1 %v1270_v55 }
 0x18f   :  { %357 = vadd.xlane.f32.xlu1 %v356_v13  ;;  %360 = vadd.xlane.f32.xlu0 %v359_v14 }
 0x190   :  { %v362_v16 = vsel %vm219_vm2, %v316_v52, 0.0  ;;  %1243 = vmatprep.subr.bf16.mxu1 %v1271_v17 }
 0x192   :  { %1244 = vmatpush3.bf16.msra.mxu1 %v1271_v17 }
 0x193   :  { %363 = vadd.xlane.f32.xlu1 %v362_v16 }
 0x200   :  { %v319_v18 = vpop.xlane.xlu0 %318 }
 0x201   :  { %v365_v19 = vmul.f32 0.03125, %v319_v18 }
 0x203   :  { %v381_v21 = vadd.f32 1e-05, %v365_v19 }
 0x204   :  { %v322_v22 = vpop.xlane.xlu1 %321  ;;  %v325_v23 = vpop.xlane.xlu0 %324 }
 0x205   :  { %1272 = vrsqrt.f32 %v381_v21  ;;  %v366_v24 = vmul.f32 0.03125, %v322_v22  ;;  %v367_v26 = vmul.f32 0.03125, %v325_v23 }
 0x207   :  { %v382_v27 = vadd.f32 1e-05, %v366_v24  ;;  %v383_v30 = vadd.f32 1e-05, %v367_v26 }
 0x208   :  { %v328_v29 = vpop.xlane.xlu1 %327  ;;  %v331_v33 = vpop.xlane.xlu0 %330 }
 0x209   :  { %1274 = vrsqrt.f32 %v382_v27  ;;  %v368_v34 = vmul.f32 0.03125, %v328_v29  ;;  %v369_v35 = vmul.f32 0.03125, %v331_v33 }
 0x20a   :  { %1276 = vrsqrt.f32 %v383_v30 }
 0x20b   :  { %v384_v28 = vadd.f32 1e-05, %v368_v34  ;;  %v385_v45 = vadd.f32 1e-05, %v369_v35 }
 0x20c   :  { %v334_v38 = vpop.xlane.xlu1 %333  ;;  %v337_v39 = vpop.xlane.xlu0 %336 }
 0x20d   :  { %v370_v42 = vmul.f32 0.03125, %v334_v38  ;;  %v371_v31 = vmul.f32 0.03125, %v337_v39  ;;  %1278 = vrsqrt.f32 %v384_v28 }
 0x20e   :  { %1280 = vrsqrt.f32 %v385_v45 }
 0x20f   :  { %v1273_v46 = vpop.eup %1272  ;;  %v386_v36 = vadd.f32 1e-05, %v370_v42  ;;  %v387_v41 = vadd.f32 1e-05, %v371_v31 }
 0x210   :  { %v340_v50 = vpop.xlane.xlu1 %339  ;;  %v343_v51 = vpop.xlane.xlu0 %342  ;;  %v413_v54 = vmul.f32 %v1273_v46, %v1514_v0 }
 0x211   :  { %v372_v57 = vmul.f32 0.03125, %v340_v50  ;;  %v373_v58 = vmul.f32 0.03125, %v343_v51  ;;  %1282 = vrsqrt.f32 %v386_v36 }
 0x212   :  { %v435_v40 = vmul.f32 %v1615_v47, %v413_v54  ;;  %1284 = vrsqrt.f32 %v387_v41 }
 0x213   :  { %v1275_v61 = vpop.eup %1274  ;;  %v388_v62 = vadd.f32 1e-05, %v372_v57  ;;  %v389_v1 = vadd.f32 1e-05, %v373_v58 }
 0x214   :  { %v346_v43 = vpop.xlane.xlu1 %345  ;;  %v349_v3 = vpop.xlane.xlu0 %348  ;;  %v414_v4 = vmul.f32 %v1275_v61, %v1522_v7  ;;  %v457_v0 = vadd.f32 %v1621_v59, %v435_v40 }
 0x215   :  { %v374_v5 = vmul.f32 0.03125, %v346_v43  ;;  %v375_v48 = vmul.f32 0.03125, %v349_v3  ;;  %v1277_v9 = vpop.eup %1276  ;;  %1286 = vrsqrt.f32 %v388_v62 }
 0x216   :  { %v436_v10 = vmul.f32 %v1615_v47, %v414_v4  ;;  %v1627_v11 = vmul.f32 0.70710677, %v457_v0  ;;  %1288 = vrsqrt.f32 %v389_v1  ;;  %v415_v55 = vmul.f32 %v1277_v9, %v1511_v63 }
 0x217   :  { %v1279_v12 = vpop.eup %1278  ;;  %v390_v13 = vadd.f32 1e-05, %v374_v5  ;;  %v391_v17 = vadd.f32 1e-05, %v375_v48 }
 0x218   :  { %v352_v14 = vpop.xlane.xlu1 %351  ;;  %v355_v52 = vpop.xlane.xlu0 %354  ;;  %v458_v16 = vadd.f32 %v1621_v59, %v436_v10  ;;  %v505_v7 = vand.u32 2147483647, %v1627_v11  ;;  %v416_v22 = vmul.f32 %v1279_v12, %v1519_v6  ;;  %v437_v29 = vmul.f32 %v1615_v47, %v415_v55 }
 0x219   :  { %v376_v18 = vmul.f32 0.03125, %v352_v14  ;;  %v377_v19 = vmul.f32 0.03125, %v355_v52  ;;  %v1281_v24 = vpop.eup %1280  ;;  %1290 = vrsqrt.f32 %v390_v13  ;;  %vm825_vm3 = vcmp.ge.f32.partialorder %v1627_v11, 0.0 }
 0x21a   :  { %v1632_v21 = vmul.f32 0.70710677, %v458_v16  ;;  %v521_v23 = vmul.f32 0.3275911, %v505_v7  ;;  %1292 = vrsqrt.f32 %v391_v17  ;;  %v729_v38 = vsub.f32 0.0, %v505_v7 }
 0x21b   :  { %v1283_v30 = vpop.eup %1282  ;;  %v392_v33 = vadd.f32 1e-05, %v376_v18  ;;  %v393_v34 = vadd.f32 1e-05, %v377_v19  ;;  %v438_v42 = vmul.f32 %v1615_v47, %v416_v22  ;;  %v417_v6 = vmul.f32 %v1281_v24, %v1532_v15 }
 0x21c   :  { %v358_v26 = vpop.xlane.xlu1 %357  ;;  %v506_v27 = vand.u32 2147483647, %v1632_v21  ;;  %v361_v63 = vpop.xlane.xlu0 %360  ;;  %v537_v28 = vadd.f32 1.0, %v521_v23  ;;  %v418_v45 = vmul.f32 %v1283_v30, %v1537_v20  ;;  %v745_v58 = vmul.f32 %v729_v38, %v505_v7 }
 0x21d   :  { %v1285_v39 = vpop.eup %1284  ;;  %v378_v31 = vmul.f32 0.03125, %v358_v26  ;;  %v379_v54 = vmul.f32 0.03125, %v361_v63  ;;  %v459_v40 = vadd.f32 %v1621_v59, %v437_v29  ;;  %v439_v61 = vmul.f32 %v1615_v47, %v417_v6 }
 0x21e   :  { %v522_v35 = vmul.f32 0.3275911, %v506_v27  ;;  %1294 = vrcp.f32 %v537_v28  ;;  %v730_v50 = vsub.f32 0.0, %v506_v27  ;;  %v419_v57 = vmul.f32 %v1285_v39, %v1543_v25 }
 0x21f   :  { %v1287_v51 = vpop.eup %1286  ;;  %1296 = vrsqrt.f32 %v392_v33  ;;  %v394_v15 = vadd.f32 1e-05, %v378_v31  ;;  %v440_v20 = vmul.f32 %v1615_v47, %v418_v45  ;;  %v460_v3 = vadd.f32 %v1621_v59, %v438_v42 }
 0x220   :  { %v364_v46 = vpop.xlane.xlu1 %363  ;;  %v538_v36 = vadd.f32 1.0, %v522_v35  ;;  %v1289_v41 = vpop.eup %1288  ;;  %1298 = vrsqrt.f32 %v393_v34  ;;  %v420_v1 = vmul.f32 %v1287_v51, %v1549_v32  ;;  %v746_v43 = vmul.f32 %v730_v50, %v506_v27 }
 0x221   :  { %v380_v62 = vmul.f32 0.03125, %v364_v46  ;;  %v421_v4 = vmul.f32 %v1289_v41, %v1555_v37  ;;  %v395_v5 = vadd.f32 1e-05, %v379_v54  ;;  %v1647_v25 = vmul.f32 0.5, %v457_v0 }
 0x222   :  { %1300 = vrcp.f32 %v538_v36  ;;  %v1649_v48 = vmul.f32 0.70710677, %v459_v40  ;;  %v1652_v10 = vmul.f32 %v1615_v47, %v419_v57  ;;  %v1654_v12 = vmul.f32 0.5, %v458_v16 }
 0x223   :  { %v1291_v9 = vpop.eup %1290  ;;  %v761_v13 = vmul.f32 1.442695, %v745_v58  ;;  %v1656_v14 = vmul.f32 0.70710677, %v460_v3  ;;  %1302 = vrsqrt.f32 %v394_v15  ;;  %v396_v52 = vadd.f32 1e-05, %v380_v62 }
 0x224   :  { %v1293_v32 = vpop.eup %1292  ;;  %v507_v7 = vand.u32 2147483647, %v1649_v48  ;;  %v461_v37 = vadd.f32 %v1621_v59, %v439_v61  ;;  %v1661_v0 = vmul.f32 %v1615_v47, %v420_v1  ;;  %v763_v55 = vmul.f32 1.442695, %v746_v43 }
 0x225   :  { %v508_v17 = vand.u32 2147483647, %v1656_v14  ;;  %v462_v18 = vadd.f32 %v1621_v59, %v440_v20  ;;  %v1666_v16 = vmul.f32 %v1615_v47, %v421_v4  ;;  %v422_v19 = vmul.f32 %v1291_v9, %v1561_v44 }
 0x226   :  { %1304 = vrsqrt.f32 %v395_v5  ;;  %v523_v22 = vmul.f32 0.3275911, %v507_v7  ;;  %v423_v24 = vmul.f32 %v1293_v32, %v1567_v49  ;;  %v1672_v26 = vmul.f32 0.5, %v459_v40 }
 0x227   :  { %1306 = vpow2.f32 %v761_v13  ;;  %v524_v27 = vmul.f32 0.3275911, %v508_v17  ;;  %v1675_v34 = vmul.f32 0.70710677, %v461_v37  ;;  %v731_v35 = vsub.f32 0.0, %v507_v7 }
 0x228   :  { %v1669_v23 = vpop.eup %1294  ;;  %1308 = vrsqrt.f32 %v396_v52  ;;  %v539_v33 = vadd.f32 1.0, %v523_v22  ;;  %v1677_v28 = vmul.f32 0.70710677, %v462_v18  ;;  %v1682_v49 = vmul.f32 %v1615_v47, %v422_v19 }
 0x229   :  { %v1297_v30 = vpop.eup %1296  ;;  %v585_v29 = vmul.f32 1.0614054, %v1669_v23  ;;  %1310 = vpow2.f32 %v763_v55  ;;  %v540_v44 = vadd.f32 1.0, %v524_v27  ;;  %v732_v42 = vsub.f32 0.0, %v508_v17 }
 0x22a   :  { %v1299_v63 = vpop.eup %1298  ;;  %1312 = vrcp.f32 %v539_v33  ;;  %v1685_v6 = vmul.f32 %v1615_v47, %v423_v24  ;;  %v1688_v45 = vmul.f32 0.5, %v460_v3  ;;  %v424_v46 = vmul.f32 %v1297_v30, %v1573_v56 }
 0x22b   :  { %v601_v39 = vadd.f32 -1.4531521, %v585_v29  ;;  %1314 = vrcp.f32 %v540_v44  ;;  %v1692_v50 = vmul.f32 0.5, %v461_v37  ;;  %v509_v51 = vand.u32 2147483647, %v1675_v34 }
 0x22c   :  { %v1679_v38 = vpop.eup %1300  ;;  %v425_v54 = vmul.f32 %v1299_v63, %v1579_v60  ;;  %v747_v57 = vmul.f32 %v731_v35, %v507_v7  ;;  %v510_v58 = vand.u32 2147483647, %v1677_v28  ;;  %v748_v15 = vmul.f32 %v732_v42, %v508_v17 }
 0x22d   :  { %v586_v31 = vmul.f32 1.0614054, %v1679_v38  ;;  %v617_v36 = vmul.f32 %v1669_v23, %v601_v39  ;;  %v1303_v40 = vpop.eup %1302  ;;  %v525_v62 = vmul.f32 0.3275911, %v509_v51  ;;  %v733_v20 = vsub.f32 0.0, %v509_v51 }
 0x22e   :  { %v1698_v56 = vmul.f32 0.5, %v462_v18  ;;  %v526_v43 = vmul.f32 0.3275911, %v510_v58  ;;  %v734_v3 = vsub.f32 0.0, %v510_v58  ;;  %v1703_v5 = vmul.f32 %v1615_v47, %v424_v46 }
 0x22f   :  { %v602_v41 = vadd.f32 -1.4531521, %v586_v31  ;;  %v633_v61 = vadd.f32 1.4214138, %v617_v36  ;;  %v541_v9 = vadd.f32 1.0, %v525_v62  ;;  %v749_v13 = vmul.f32 %v733_v20, %v509_v51 }
 0x230   :  { %v1700_v4 = vpop.eup %1304  ;;  %v765_v7 = vmul.f32 1.442695, %v747_v57  ;;  %v542_v37 = vadd.f32 1.0, %v526_v43  ;;  %v1708_v55 = vadd.f32 %v1621_v59, %v1652_v10  ;;  %v767_v19 = vmul.f32 1.442695, %v748_v15 }
 0x231   :  { %v618_v1 = vmul.f32 %v1679_v38, %v602_v41  ;;  %v649_v60 = vmul.f32 %v1669_v23, %v633_v61  ;;  %v1307_v32 = vpop.eup %1306  ;;  %1316 = vrcp.f32 %v541_v9  ;;  %v1714_v22 = vadd.f32 %v1621_v59, %v1661_v0 }
 0x232   :  { %v1710_v17 = vpop.eup %1308  ;;  %v1717_v27 = vmul.f32 %v1615_v47, %v425_v54  ;;  %1318 = vrcp.f32 %v542_v37  ;;  %v750_v29 = vmul.f32 %v734_v3, %v510_v58  ;;  %v1723_v10 = vmul.f32 %v1303_v40, %v1585_v2 }
 0x233   :  { %v634_v52 = vadd.f32 1.4214138, %v618_v1  ;;  %v665_v18 = vadd.f32 -0.28449672, %v649_v60  ;;  %v1311_v24 = vpop.eup %1310  ;;  %v769_v44 = vmul.f32 1.442695, %v749_v13  ;;  %1320 = vpow2.f32 %v765_v7 }
 0x234   :  { %v1720_v33 = vpop.eup %1312  ;;  %v1727_v35 = vmul.f32 0.70710677, %v1708_v55  ;;  %v1733_v31 = vmul.f32 0.70710677, %v1714_v22  ;;  %1322 = vpow2.f32 %v767_v19  ;;  %v771_v41 = vmul.f32 1.442695, %v750_v29 }
 0x235   :  { %v650_v30 = vmul.f32 %v1679_v38, %v634_v52  ;;  %v681_v63 = vmul.f32 %v1669_v23, %v665_v18  ;;  %v1729_v0 = vpop.eup %1314  ;;  %v587_v42 = vmul.f32 1.0614054, %v1720_v33  ;;  %vm826_vm4 = vcmp.ge.f32.partialorder %v1632_v21, 0.0 }
 0x236   :  { %v588_v36 = vmul.f32 1.0614054, %v1729_v0  ;;  %v511_v2 = vand.u32 2147483647, %v1727_v35  ;;  %v512_v57 = vand.u32 2147483647, %v1733_v31  ;;  %1324 = vpow2.f32 %v769_v44 }
 0x237   :  { %v666_v39 = vadd.f32 -0.28449672, %v650_v30  ;;  %v697_v46 = vadd.f32 0.2548296, %v681_v63  ;;  %v603_v54 = vadd.f32 -1.4531521, %v587_v42 }
 0x238   :  { %v604_v40 = vadd.f32 -1.4531521, %v588_v36  ;;  %v527_v61 = vmul.f32 0.3275911, %v511_v2  ;;  %v735_v15 = vsub.f32 0.0, %v511_v2  ;;  %v736_v43 = vsub.f32 0.0, %v512_v57 }
 0x239   :  { %v682_v51 = vmul.f32 %v1679_v38, %v666_v39  ;;  %v713_v58 = vmul.f32 %v1669_v23, %v697_v46  ;;  %v619_v20 = vmul.f32 %v1720_v33, %v603_v54  ;;  %v528_v1 = vmul.f32 0.3275911, %v512_v57 }
 0x23a   :  { %v620_v60 = vmul.f32 %v1729_v0, %v604_v40  ;;  %v543_v9 = vadd.f32 1.0, %v527_v61  ;;  %v751_v13 = vmul.f32 %v735_v15, %v511_v2  ;;  %v752_v30 = vmul.f32 %v736_v43, %v512_v57 }
 0x23b   :  { %v698_v62 = vadd.f32 0.2548296, %v682_v51  ;;  %v793_v3 = vmul.f32 %v1307_v32, %v713_v58  ;;  %v635_v7 = vadd.f32 1.4214138, %v619_v20  ;;  %v544_v23 = vadd.f32 1.0, %v528_v1  ;;  %v1745_v37 = vpop.eup %1316 }
 0x23c   :  { %v636_v19 = vadd.f32 1.4214138, %v620_v60  ;;  %1326 = vrcp.f32 %v543_v9  ;;  %v1747_v29 = vpop.eup %1318  ;;  %v589_v39 = vmul.f32 1.0614054, %v1745_v37  ;;  %v773_v46 = vmul.f32 1.442695, %v751_v13 }
 0x23d   :  { %v714_v52 = vmul.f32 %v1679_v38, %v698_v62  ;;  %v809_v18 = vsub.f32 1.0, %v793_v3  ;;  %v651_v63 = vmul.f32 %v1720_v33, %v635_v7  ;;  %1328 = vrcp.f32 %v544_v23  ;;  %v1321_v36 = vpop.eup %1320 }
 0x23e   :  { %v652_v38 = vmul.f32 %v1729_v0, %v636_v19  ;;  %v590_v44 = vmul.f32 1.0614054, %v1747_v29  ;;  %v605_v54 = vadd.f32 -1.4531521, %v589_v39  ;;  %v1755_v57 = vadd.f32 %v1621_v59, %v1666_v16 }
 0x23f   :  { %v794_v32 = vmul.f32 %v1311_v24, %v714_v52  ;;  %v841_v42 = vsub.f32 0.0, %v809_v18  ;;  %v667_v51 = vadd.f32 -0.28449672, %v651_v63  ;;  %v1323_v24 = vpop.eup %1322  ;;  %v775_v15 = vmul.f32 1.442695, %v752_v30 }
 0x240   :  { %v668_v40 = vadd.f32 -0.28449672, %v652_v38  ;;  %v606_v61 = vadd.f32 -1.4531521, %v590_v44  ;;  %v621_v43 = vmul.f32 %v1745_v37, %v605_v54  ;;  %1330 = vpow2.f32 %v771_v41 }
 0x241   :  { %v810_v2 = vsub.f32 1.0, %v794_v32  ;;  %v857_v58 = vsel %vm825_vm3, %v809_v18, %v841_v42  ;;  %v683_v1 = vmul.f32 %v1720_v33, %v667_v51  ;;  %v1765_v16 = vadd.f32 %v1621_v59, %v1682_v49  ;;  %v1325_v18 = vpop.eup %1324 }
 0x242   :  { %v873_v20 = vadd.f32 1.0, %v857_v58  ;;  %v684_v3 = vmul.f32 %v1729_v0, %v668_v40  ;;  %v622_v60 = vmul.f32 %v1747_v29, %v606_v61  ;;  %v637_v13 = vadd.f32 1.4214138, %v621_v43 }
 0x243   :  { %v842_v62 = vsub.f32 0.0, %v810_v2  ;;  %v699_v9 = vadd.f32 0.2548296, %v683_v1  ;;  %1332 = vpow2.f32 %v773_v46  ;;  %vm827_vm5 = vcmp.ge.f32.partialorder %v1649_v48, 0.0 }
 0x244   :  { %v700_v7 = vadd.f32 0.2548296, %v684_v3  ;;  %v638_v23 = vadd.f32 1.4214138, %v622_v60  ;;  %1334 = vpow2.f32 %v775_v15  ;;  %v889_v19 = vmul.f32 %v873_v20, %v1647_v25 }
 0x245   :  { %v858_v11 = vsel %vm826_vm4, %v810_v2, %v842_v62  ;;  %v715_v41 = vmul.f32 %v1720_v33, %v699_v9  ;;  %vm828_vm6 = vcmp.ge.f32.partialorder %v1656_v14, 0.0  ;;  %v653_v49 = vmul.f32 %v1745_v37, %v637_v13 }
 0x246   :  { %v874_v52 = vadd.f32 1.0, %v858_v11  ;;  %v1775_v21 = vmul.f32 0.70710677, %v1755_v57  ;;  %v1777_v30 = vpop.eup %1326  ;;  %v716_v63 = vmul.f32 %v1729_v0, %v700_v7  ;;  %v654_v39 = vmul.f32 %v1747_v29, %v638_v23 }
 0x247   :  { %v1783_v42 = vmul.f32 0.70710677, %v1765_v16  ;;  %v1785_v25 = vpop.eup %1328  ;;  %v795_v33 = vmul.f32 %v1321_v36, %v715_v41  ;;  %v669_v38 = vadd.f32 -0.28449672, %v653_v49  ;;  %v591_v44 = vmul.f32 1.0614054, %v1777_v30 }
 0x248   :  { %v890_v32 = vmul.f32 %v874_v52, %v1654_v12  ;;  %v513_v46 = vand.u32 2147483647, %v1775_v21  ;;  %v796_v51 = vmul.f32 %v1323_v24, %v716_v63  ;;  %v670_v54 = vadd.f32 -0.28449672, %v654_v39 }
 0x249   :  { %v592_v12 = vmul.f32 1.0614054, %v1785_v25  ;;  %v811_v58 = vsub.f32 1.0, %v795_v33  ;;  %v685_v0 = vmul.f32 %v1745_v37, %v669_v38  ;;  %v607_v40 = vadd.f32 -1.4531521, %v591_v44 }
 0x24a   :  { %v905_v2 = vpack.c.bf16 %v890_v32, %v889_v19  ;;  %v514_v61 = vand.u32 2147483647, %v1783_v42  ;;  %v812_v15 = vsub.f32 1.0, %v796_v51  ;;  %v686_v36 = vmul.f32 %v1747_v29, %v670_v54  ;;  %v1331_v60 = vpop.eup %1330 }
 0x24b   :  { %v608_v62 = vadd.f32 -1.4531521, %v592_v12  ;;  %v529_v20 = vmul.f32 0.3275911, %v513_v46  ;;  %v843_v1 = vsub.f32 0.0, %v811_v58  ;;  %v623_v24 = vmul.f32 %v1777_v30, %v607_v40 }
 0x24c   :  { %1245 = vmatprep.mubr.msk.bf16.mxu1 %vm219_vm2, %v905_v2  ;;  %v701_v43 = vadd.f32 0.2548296, %v685_v0  ;;  %v530_v3 = vmul.f32 0.3275911, %v514_v61  ;;  %v844_v11 = vsub.f32 0.0, %v812_v15  ;;  %v737_v0 = vsub.f32 0.0, %v513_v46 }
 0x24d   :  { %v702_v9 = vadd.f32 0.2548296, %v686_v36  ;;  %v624_v13 = vmul.f32 %v1785_v25, %v608_v62  ;;  %v545_v52 = vadd.f32 1.0, %v529_v20  ;;  %v1333_v7 = vpop.eup %1332  ;;  %v859_v23 = vsel %vm827_vm5, %v811_v58, %v843_v1 }
 0x24e   :  { %v717_v19 = vmul.f32 %v1745_v37, %v701_v43  ;;  %v639_v41 = vadd.f32 1.4214138, %v623_v24  ;;  %v546_v49 = vadd.f32 1.0, %v530_v3  ;;  %v1335_v32 = vpop.eup %1334  ;;  %v860_v63 = vsel %vm828_vm6, %v812_v15, %v844_v11 }
 0x24f   :  { %v875_v39 = vadd.f32 1.0, %v859_v23  ;;  %v718_v33 = vmul.f32 %v1747_v29, %v702_v9  ;;  %v640_v38 = vadd.f32 1.4214138, %v624_v13  ;;  %v876_v44 = vadd.f32 1.0, %v860_v63 }
 0x250   :  { %v797_v2 = vmul.f32 %v1325_v18, %v717_v19  ;;  %v655_v51 = vmul.f32 %v1777_v30, %v639_v41  ;;  %1336 = vrcp.f32 %v545_v52  ;;  %v1808_v29 = vmul.f32 %v1700_v4, %v1591_v8 }
 0x251   :  { %v891_v48 = vmul.f32 %v875_v39, %v1672_v26  ;;  %v798_v54 = vmul.f32 %v1331_v60, %v718_v33  ;;  %v656_v37 = vmul.f32 %v1785_v25, %v640_v38  ;;  %1338 = vrcp.f32 %v546_v49 }
 0x252   :  { %v892_v12 = vmul.f32 %v876_v44, %v1688_v45  ;;  %v813_v58 = vsub.f32 1.0, %v797_v2  ;;  %v671_v14 = vadd.f32 -0.28449672, %v655_v51  ;;  %v738_v15 = vsub.f32 0.0, %v514_v61 }
 0x253   :  { %v814_v40 = vsub.f32 1.0, %v798_v54  ;;  %v672_v18 = vadd.f32 -0.28449672, %v656_v37  ;;  %v1812_v36 = vmul.f32 %v1615_v47, %v1723_v10  ;;  %vm829_vm7 = vcmp.ge.f32.partialorder %v1675_v34, 0.0 }
 0x254   :  { %v906_v26 = vpack.c.bf16 %v892_v12, %v891_v48  ;;  %v845_v62 = vsub.f32 0.0, %v813_v58  ;;  %v687_v20 = vmul.f32 %v1777_v30, %v671_v14  ;;  %v753_v43 = vmul.f32 %v737_v0, %v513_v46 }
 0x255   :  { %v846_v45 = vsub.f32 0.0, %v814_v40  ;;  %v688_v1 = vmul.f32 %v1785_v25, %v672_v18  ;;  %vm830_vm8 = vcmp.ge.f32.partialorder %v1677_v28, 0.0  ;;  %v1821_v10 = vadd.f32 %v1621_v59, %v1685_v6 }
 0x256   :  { %1246 = vmatmul.mubr.msk.bf16.vlgmr.msra.gmra.mrb[0].mxu1 %vm219_vm2, %v906_v26  ;;  %v861_v8 = vsel %vm829_vm7, %v813_v58, %v845_v62  ;;  %v703_v4 = vadd.f32 0.2548296, %v687_v20  ;;  %v754_v11 = vmul.f32 %v738_v15, %v514_v61  ;;  %v428_v34 = vmul.f32 %v1710_v17, %v1597_v53 }
 0x257   :  { %v862_v24 = vsel %vm830_vm8, %v814_v40, %v846_v45  ;;  %v877_v3 = vadd.f32 1.0, %v861_v8  ;;  %v704_v60 = vadd.f32 0.2548296, %v688_v1  ;;  %v1828_v13 = vadd.f32 %v1621_v59, %v1703_v5 }
 0x258   :  { %v878_v9 = vadd.f32 1.0, %v862_v24  ;;  %v719_v46 = vmul.f32 %v1777_v30, %v703_v4  ;;  %v479_v28 = vmul.f32 0.5, %v1708_v55  ;;  %v480_v52 = vmul.f32 0.5, %v1714_v22 }
 0x259   :  { %v720_v6 = vmul.f32 %v1785_v25, %v704_v60  ;;  %v777_v23 = vmul.f32 1.442695, %v753_v43  ;;  %v893_v61 = vmul.f32 %v877_v3, %v1692_v50  ;;  %v1838_v30 = vmul.f32 0.70710677, %v1821_v10 }
 0x25a   :  { %v1833_v19 = vpop.eup %1336  ;;  %v894_v53 = vmul.f32 %v878_v9, %v1698_v56  ;;  %v799_v17 = vmul.f32 %v1333_v7, %v719_v46  ;;  %v779_v49 = vmul.f32 1.442695, %v754_v11  ;;  %v1844_v22 = vmul.f32 0.70710677, %v1828_v13 }
 0x25b   :  { %v1840_v41 = vpop.eup %1338  ;;  %v800_v5 = vmul.f32 %v1335_v32, %v720_v6  ;;  %v593_v55 = vmul.f32 1.0614054, %v1833_v19  ;;  %v515_v50 = vand.u32 2147483647, %v1838_v30  ;;  %vm831_vm9 = vcmp.ge.f32.partialorder %v1727_v35, 0.0 }
 0x25c   :  { %v907_v25 = vpack.c.bf16 %v894_v53, %v893_v61  ;;  %v815_v63 = vsub.f32 1.0, %v799_v17  ;;  %v594_v39 = vmul.f32 1.0614054, %v1840_v41  ;;  %v516_v33 = vand.u32 2147483647, %v1844_v22 }
 0x25d   :  { %v816_v56 = vsub.f32 1.0, %v800_v5  ;;  %v609_v7 = vadd.f32 -1.4531521, %v593_v55  ;;  %vm832_vm10 = vcmp.ge.f32.partialorder %v1733_v31, 0.0  ;;  %v531_v44 = vmul.f32 0.3275911, %v515_v50 }
 0x25e   :  { %1249 = vmatprep.mubr.msk.bf16.mxu1 %vm219_vm2, %v907_v25  ;;  %v847_v32 = vsub.f32 0.0, %v815_v63  ;;  %v610_v38 = vadd.f32 -1.4531521, %v594_v39  ;;  %1340 = vpow2.f32 %v777_v23  ;;  %v532_v48 = vmul.f32 0.3275911, %v516_v33 }
 0x25f   :  { %v848_v2 = vsub.f32 0.0, %v816_v56  ;;  %v625_v51 = vmul.f32 %v1833_v19, %v609_v7  ;;  %1342 = vpow2.f32 %v779_v49  ;;  %v547_v35 = vadd.f32 1.0, %v531_v44 }
 0x260   :  { %v863_v54 = vsel %vm831_vm9, %v815_v63, %v847_v32  ;;  %v626_v37 = vmul.f32 %v1840_v41, %v610_v38  ;;  %v548_v0 = vadd.f32 1.0, %v532_v48  ;;  %v1856_v31 = vadd.f32 %v1621_v59, %v1717_v27 }
 0x261   :  { %v864_v12 = vsel %vm832_vm10, %v816_v56, %v848_v2  ;;  %v879_v58 = vadd.f32 1.0, %v863_v54  ;;  %v641_v14 = vadd.f32 1.4214138, %v625_v51  ;;  %1344 = vrcp.f32 %v547_v35 }
 0x262   :  { %v880_v40 = vadd.f32 1.0, %v864_v12  ;;  %v642_v18 = vadd.f32 1.4214138, %v626_v37  ;;  %v449_v15 = vmul.f32 %v1615_v47, %v1808_v29  ;;  %1346 = vrcp.f32 %v548_v0 }
 0x263   :  { %v657_v26 = vmul.f32 %v1833_v19, %v641_v14  ;;  %v895_v62 = vmul.f32 %v879_v58, %v479_v28  ;;  %v739_v1 = vsub.f32 0.0, %v515_v50  ;;  %v450_v43 = vmul.f32 %v1615_v47, %v428_v34 }
 0x264   :  { %v896_v20 = vmul.f32 %v880_v40, %v480_v52  ;;  %v658_v45 = vmul.f32 %v1840_v41, %v642_v18  ;;  %v1865_v4 = vadd.f32 %v1621_v59, %v1812_v36  ;;  %v1868_v3 = vmul.f32 0.70710677, %v1856_v31 }
 0x265   :  { %v673_v8 = vadd.f32 -0.28449672, %v657_v26  ;;  %v740_v60 = vsub.f32 0.0, %v516_v33  ;;  %v755_v34 = vmul.f32 %v739_v1, %v515_v50  ;;  %v1878_v36 = vadd.f32 %v1621_v59, %v449_v15 }
 0x266   :  { %v908_v27 = vpack.c.bf16 %v896_v20, %v895_v62  ;;  %v674_v24 = vadd.f32 -0.28449672, %v658_v45  ;;  %v1872_v11 = vmul.f32 0.70710677, %v1865_v4  ;;  %v517_v9 = vand.u32 2147483647, %v1868_v3 }
 0x267   :  { %v689_v29 = vmul.f32 %v1833_v19, %v673_v8  ;;  %v1882_v6 = vadd.f32 %v1621_v59, %v450_v43  ;;  %v481_v61 = vmul.f32 0.5, %v1755_v57  ;;  %v482_v5 = vmul.f32 0.5, %v1765_v16 }
 0x268   :  { %1250 = vmatmul.mubr.msk.bf16.gmra.mrb[4].mxu1 %vm219_vm2, %v908_v27  ;;  %v690_v47 = vmul.f32 %v1840_v41, %v674_v24  ;;  %v1341_v46 = vpop.eup %1340  ;;  %v518_v52 = vand.u32 2147483647, %v1872_v11  ;;  %v533_v17 = vmul.f32 0.3275911, %v517_v9  ;;  %v756_v49 = vmul.f32 %v740_v60, %v516_v33 }
 0x269   :  { %v705_v28 = vadd.f32 0.2548296, %v689_v29  ;;  %v1343_v23 = vpop.eup %1342  ;;  %v781_v50 = vmul.f32 1.442695, %v755_v34  ;;  %v1891_v59 = vmul.f32 0.70710677, %v1878_v36 }
 0x26a   :  { %v706_v53 = vadd.f32 0.2548296, %v690_v47  ;;  %v534_v25 = vmul.f32 0.3275911, %v518_v52  ;;  %v549_v56 = vadd.f32 1.0, %v533_v17  ;;  %vm833_vm11 = vcmp.ge.f32.partialorder %v1775_v21, 0.0 }
 0x26b   :  { %v721_v55 = vmul.f32 %v1833_v19, %v705_v28  ;;  %v1887_v63 = vpop.eup %1344  ;;  %v1897_v16 = vmul.f32 0.70710677, %v1882_v6  ;;  %v783_v2 = vmul.f32 1.442695, %v756_v49  ;;  %vm834_vm12 = vcmp.ge.f32.partialorder %v1783_v42, 0.0 }
 0x26c   :  { %v722_v39 = vmul.f32 %v1840_v41, %v706_v53  ;;  %v1893_v7 = vpop.eup %1346  ;;  %v595_v32 = vmul.f32 1.0614054, %v1887_v63  ;;  %v550_v38 = vadd.f32 1.0, %v534_v25  ;;  %1348 = vrcp.f32 %v549_v56 }
 0x26d   :  { %v801_v57 = vmul.f32 %v1341_v46, %v721_v55  ;;  %v596_v33 = vmul.f32 1.0614054, %v1893_v7  ;;  %v519_v54 = vand.u32 2147483647, %v1891_v59  ;;  %v520_v12 = vand.u32 2147483647, %v1897_v16 }
 0x26e   :  { %v802_v19 = vmul.f32 %v1343_v23, %v722_v39  ;;  %v611_v44 = vadd.f32 -1.4531521, %v595_v32  ;;  %1350 = vrcp.f32 %v550_v38  ;;  %v741_v0 = vsub.f32 0.0, %v517_v9 }
 0x26f   :  { %v817_v41 = vsub.f32 1.0, %v801_v57  ;;  %v612_v48 = vadd.f32 -1.4531521, %v596_v33  ;;  %1352 = vpow2.f32 %v781_v50  ;;  %v535_v40 = vmul.f32 0.3275911, %v519_v54 }
 0x270   :  { %v818_v51 = vsub.f32 1.0, %v802_v19  ;;  %v627_v35 = vmul.f32 %v1887_v63, %v611_v44  ;;  %v742_v26 = vsub.f32 0.0, %v518_v52  ;;  %v536_v42 = vmul.f32 0.3275911, %v520_v12 }
 0x271   :  { %v849_v37 = vsub.f32 0.0, %v817_v41  ;;  %v628_v14 = vmul.f32 %v1893_v7, %v612_v48  ;;  %v551_v1 = vadd.f32 1.0, %v535_v40  ;;  %1354 = vpow2.f32 %v783_v2 }
 0x272   :  { %v850_v58 = vsub.f32 0.0, %v818_v51  ;;  %v643_v15 = vadd.f32 1.4214138, %v627_v35  ;;  %v552_v27 = vadd.f32 1.0, %v536_v42  ;;  %v757_v29 = vmul.f32 %v741_v0, %v517_v9 }
 0x273   :  { %v865_v18 = vsel %vm833_vm11, %v817_v41, %v849_v37  ;;  %v644_v45 = vadd.f32 1.4214138, %v628_v14  ;;  %1356 = vrcp.f32 %v551_v1  ;;  %v758_v28 = vmul.f32 %v742_v26, %v518_v52 }
 0x274   :  { %v866_v62 = vsel %vm834_vm12, %v818_v51, %v850_v58  ;;  %v881_v20 = vadd.f32 1.0, %v865_v18  ;;  %v659_v8 = vmul.f32 %v1887_v63, %v643_v15  ;;  %1358 = vrcp.f32 %v552_v27 }
 0x275   :  { %v882_v43 = vadd.f32 1.0, %v866_v62  ;;  %v660_v24 = vmul.f32 %v1893_v7, %v644_v45  ;;  %v743_v49 = vsub.f32 0.0, %v519_v54  ;;  %v785_v56 = vmul.f32 1.442695, %v757_v29 }
 0x276   :  { %v897_v60 = vmul.f32 %v881_v20, %v481_v61  ;;  %v675_v21 = vadd.f32 -0.28449672, %v659_v8  ;;  %v1910_v34 = vpop.eup %1348  ;;  %v744_v61 = vsub.f32 0.0, %v520_v12  ;;  %v787_v32 = vmul.f32 1.442695, %v758_v28 }
 0x277   :  { %v898_v47 = vmul.f32 %v882_v43, %v482_v5  ;;  %v676_v46 = vadd.f32 -0.28449672, %v660_v24  ;;  %v597_v55 = vmul.f32 1.0614054, %v1910_v34  ;;  %v759_v33 = vmul.f32 %v743_v49, %v519_v54 }
 0x278   :  { %v1912_v23 = vpop.eup %1350  ;;  %v691_v17 = vmul.f32 %v1887_v63, %v675_v21  ;;  %v760_v2 = vmul.f32 %v744_v61, %v520_v12  ;;  %1360 = vpow2.f32 %v785_v56  ;;  %v483_v58 = vmul.f32 0.5, %v1821_v10 }
 0x279   :  { %v909_v53 = vpack.c.bf16 %v898_v47, %v897_v60  ;;  %v692_v25 = vmul.f32 %v1893_v7, %v676_v46  ;;  %v598_v9 = vmul.f32 1.0614054, %v1912_v23  ;;  %v1353_v5 = vpop.eup %1352  ;;  %v613_v50 = vadd.f32 -1.4531521, %v597_v55 }
 0x27a   :  { %v707_v39 = vadd.f32 0.2548296, %v691_v17  ;;  %1362 = vpow2.f32 %v787_v32  ;;  %v789_v18 = vmul.f32 1.442695, %v759_v33  ;;  %v791_v42 = vmul.f32 1.442695, %v760_v2 }
 0x27b   :  { %1253 = vmatprep.mubr.msk.bf16.mxu1 %vm219_vm2, %v909_v53  ;;  %v708_v52 = vadd.f32 0.2548296, %v692_v25  ;;  %v614_v57 = vadd.f32 -1.4531521, %v598_v9  ;;  %v629_v19 = vmul.f32 %v1910_v34, %v613_v50  ;;  %v1355_v51 = vpop.eup %1354  ;;  %v484_v62 = vmul.f32 0.5, %v1828_v13 }
 0x27c   :  { %v723_v38 = vmul.f32 %v1887_v63, %v707_v39  ;;  %vm835_vm13 = vcmp.ge.f32.partialorder %v1838_v30, 0.0  ;;  %vm836_vm14 = vcmp.ge.f32.partialorder %v1844_v22, 0.0  ;;  %1364 = vpow2.f32 %v789_v18 }
 0x27d   :  { %v724_v41 = vmul.f32 %v1893_v7, %v708_v52  ;;  %v630_v44 = vmul.f32 %v1912_v23, %v614_v57  ;;  %v645_v37 = vadd.f32 1.4214138, %v629_v19  ;;  %v1923_v35 = vpop.eup %1356  ;;  %1366 = vpow2.f32 %v791_v42 }
 0x27e   :  { %v803_v48 = vmul.f32 %v1353_v5, %v723_v38  ;;  %v1359_v63 = vpop.eup %1358  ;;  %v599_v7 = vmul.f32 1.0614054, %v1923_v35  ;;  %vm837_vm15 = vcmp.ge.f32.partialorder %v1868_v3, 0.0  ;;  %vm838_vm0 = vcmp.ge.f32.partialorder %v1872_v11, 0.0 }
 0x27f   :  { %v804_v14 = vmul.f32 %v1355_v51, %v724_v41  ;;  %v646_v0 = vadd.f32 1.4214138, %v630_v44  ;;  %v661_v54 = vmul.f32 %v1910_v34, %v645_v37  ;;  %v600_v26 = vmul.f32 1.0614054, %v1359_v63 }
 0x280   :  { %v819_v40 = vsub.f32 1.0, %v803_v48  ;;  %v615_v10 = vadd.f32 -1.4531521, %v599_v7  ;;  %v486_v7 = vmul.f32 0.5, %v1865_v4  ;;  %vm839_vm1 = vcmp.ge.f32.partialorder %v1891_v59, 0.0 }
 0x281   :  { %v820_v15 = vsub.f32 1.0, %v804_v14  ;;  %v662_v12 = vmul.f32 %v1912_v23, %v646_v0  ;;  %v677_v45 = vadd.f32 -0.28449672, %v661_v54  ;;  %v616_v8 = vadd.f32 -1.4531521, %v600_v26 }
 0x282   :  { %v851_v20 = vsub.f32 0.0, %v819_v40  ;;  %v631_v29 = vmul.f32 %v1923_v35, %v615_v10  ;;  %v1361_v55 = vpop.eup %1360  ;;  %v485_v54 = vmul.f32 0.5, %v1856_v31  ;;  %vm840_vm3 = vcmp.ge.f32.partialorder %v1897_v16, 0.0  ;;  %v1161_v59 = vld [vmem:[%s2024_s6] ss:$0 sm:$0xff] }
 0x283   :  { %v852_v1 = vsub.f32 0.0, %v820_v15  ;;  %v678_v43 = vadd.f32 -0.28449672, %v662_v12  ;;  %v693_v24 = vmul.f32 %v1910_v34, %v677_v45  ;;  %v632_v13 = vmul.f32 %v1359_v63, %v616_v8 }
 0x284   :  { %v867_v27 = vsel %vm835_vm13, %v819_v40, %v851_v20  ;;  %v647_v53 = vadd.f32 1.4214138, %v631_v29  ;;  %v1363_v61 = vpop.eup %1362  ;;  %v487_v4 = vmul.f32 0.5, %v1878_v36  ;;  %v488_v10 = vmul.f32 0.5, %v1882_v6 }
 0x285   :  { %v868_v60 = vsel %vm836_vm14, %v820_v15, %v852_v1  ;;  %v883_v47 = vadd.f32 1.0, %v867_v27  ;;  %v694_v21 = vmul.f32 %v1912_v23, %v678_v43  ;;  %v709_v28 = vadd.f32 0.2548296, %v693_v24 }
 0x286   :  { %v884_v46 = vadd.f32 1.0, %v868_v60  ;;  %v648_v17 = vadd.f32 1.4214138, %v632_v13  ;;  %v663_v9 = vmul.f32 %v1923_v35, %v647_v53  ;;  %vm1121_vm4 = vcmask 257024  }
 0x287   :  { %v710_v30 = vadd.f32 0.2548296, %v694_v21  ;;  %v899_v49 = vmul.f32 %v883_v47, %v483_v58  ;;  %v725_v25 = vmul.f32 %v1910_v34, %v709_v28 }
 0x288   :  { %v900_v22 = vmul.f32 %v884_v46, %v484_v62  ;;  %v664_v39 = vmul.f32 %v1359_v63, %v648_v17  ;;  %v679_v52 = vadd.f32 -0.28449672, %v663_v9 }
 0x289   :  { %v726_v5 = vmul.f32 %v1912_v23, %v710_v30  ;;  %v805_v56 = vmul.f32 %v1361_v55, %v725_v25  ;;  %v1365_v23 = vpop.eup %1364 }
 0x28a   :  { %v910_v50 = vpack.c.bf16 %v900_v22, %v899_v49  ;;  %v680_v32 = vadd.f32 -0.28449672, %v664_v39  ;;  %v695_v19 = vmul.f32 %v1923_v35, %v679_v52  ;;  %v1367_v58 = vpop.eup %1366 }
 0x28b   :  { %v806_v57 = vmul.f32 %v1363_v61, %v726_v5  ;;  %v821_v38 = vsub.f32 1.0, %v805_v56 }
 0x28c   :  { %1254 = vmatmul.mubr.msk.bf16.gmra.mrb[8].mxu1 %vm219_vm2, %v910_v50  ;;  %v696_v41 = vmul.f32 %v1359_v63, %v680_v32  ;;  %v711_v34 = vadd.f32 0.2548296, %v695_v19 }
 0x28d   :  { %v822_v33 = vsub.f32 1.0, %v806_v57  ;;  %v853_v44 = vsub.f32 0.0, %v821_v38 }
 0x28e   :  { %v712_v51 = vadd.f32 0.2548296, %v696_v41  ;;  %v727_v37 = vmul.f32 %v1923_v35, %v711_v34 }
 0x28f   :  { %v854_v2 = vsub.f32 0.0, %v822_v33  ;;  %v869_v48 = vsel %vm837_vm15, %v821_v38, %v853_v44 }
 0x290   :  { %v885_v0 = vadd.f32 1.0, %v869_v48  ;;  %v728_v40 = vmul.f32 %v1359_v63, %v712_v51  ;;  %v807_v15 = vmul.f32 %v1365_v23, %v727_v37 }
 0x291   :  { %v870_v14 = vsel %vm838_vm0, %v822_v33, %v854_v2 }
 0x292   :  { %v886_v18 = vadd.f32 1.0, %v870_v14  ;;  %v808_v12 = vmul.f32 %v1367_v58, %v728_v40  ;;  %v901_v3 = vmul.f32 %v885_v0, %v485_v54  ;;  %v823_v42 = vsub.f32 1.0, %v807_v15 }
 0x294   :  { %v902_v26 = vmul.f32 %v886_v18, %v486_v7  ;;  %v824_v62 = vsub.f32 1.0, %v808_v12  ;;  %v855_v11 = vsub.f32 0.0, %v823_v42 }
 0x296   :  { %v911_v20 = vpack.c.bf16 %v902_v26, %v901_v3  ;;  %v856_v35 = vsub.f32 0.0, %v824_v62  ;;  %v871_v63 = vsel %vm839_vm1, %v823_v42, %v855_v11 }
 0x297   :  { %v887_v45 = vadd.f32 1.0, %v871_v63 }
 0x298   :  { %1257 = vmatprep.mubr.msk.bf16.mxu1 %vm219_vm2, %v911_v20  ;;  %v872_v31 = vsel %vm840_vm3, %v824_v62, %v856_v35 }
 0x299   :  { %v888_v1 = vadd.f32 1.0, %v872_v31  ;;  %v903_v43 = vmul.f32 %v887_v45, %v487_v4 }
 0x29b   :  { %v904_v8 = vmul.f32 %v888_v1, %v488_v10 }
 0x29d   :  { %v912_v27 = vpack.c.bf16 %v904_v8, %v903_v43 }
 0x29f   :  { %1258 = vmatmul.mubr.msk.bf16.gmra.mrb[12].mxu1 %vm219_vm2, %v912_v27 }
 0x329   :  { %v1247_v24 = vpop.f32.mrb[0].mxu1 }
 0x32a   :  { %v1003_v29 = vadd.f32 %v1247_v24, %v1161_v59  ;;  %v994_v16 = vpop.f32.mrb[1].mxu1 }
 0x32b   :  { %v995_v60 = vadd.f32 %v1161_v59, %v994_v16  ;;  %v1248_v47 = vpop.f32.mrb[2].mxu1 }
 0x32c   :  { %v1190_v21 = vpack.c.bf16 %v1003_v29, %v1003_v29  ;;  %v1006_v36 = vadd.f32 %v1248_v47, %v1161_v59  ;;  %v997_v13 = vpop.f32.mrb[3].mxu1 }
 0x32d   :  { %v1188_v6 = vpack.c.bf16 %v995_v60, %v995_v60  ;;  %v998_v46 = vadd.f32 %v1161_v59, %v997_v13 }
 0x32e   :  { %1124 = vst.msk [vmem:[%s2025_s7 + $0x8] sm:$0xf] %vm1121_vm4, %v1190_v21  ;;  %v1191_v28 = vpack.c.bf16 %v1006_v36, %v1006_v36 }
 0x32f   :  { %1122 = vst.msk [vmem:[%s2025_s7] sm:$0xf] %vm1121_vm4, %v1188_v6  ;;  %v1189_v53 = vpack.c.bf16 %v998_v46, %v998_v46 }
 0x330   :  { %1125 = vst.msk [vmem:[%s2025_s7 + $0xc] sm:$0xf] %vm1121_vm4, %v1191_v28 }
 0x331   :  { %1123 = vst.msk [vmem:[%s2025_s7 + $0x4] sm:$0xf] %vm1121_vm4, %v1189_v53 }
 0x33b   :  { %v1251_v30 = vpop.f32.mrb[4].mxu1 }
 0x33c   :  { %v1019_v17 = vadd.f32 %v1251_v30, %v1161_v59  ;;  %v1010_v55 = vpop.f32.mrb[5].mxu1 }
 0x33d   :  { %v1011_v49 = vadd.f32 %v1161_v59, %v1010_v55  ;;  %v1252_v22 = vpop.f32.mrb[6].mxu1 }
 0x33e   :  { %v1194_v25 = vpack.c.bf16 %v1019_v17, %v1019_v17  ;;  %v1022_v9 = vadd.f32 %v1252_v22, %v1161_v59  ;;  %v1013_v61 = vpop.f32.mrb[7].mxu1 }
 0x33f   :  { %v1192_v5 = vpack.c.bf16 %v1011_v49, %v1011_v49  ;;  %v1014_v39 = vadd.f32 %v1161_v59, %v1013_v61 }
 0x340   :  { %1128 = vst.msk [vmem:[%s2025_s7 + $0x18] sm:$0xf] %vm1121_vm4, %v1194_v25  ;;  %v1195_v50 = vpack.c.bf16 %v1022_v9, %v1022_v9 }
 0x341   :  { %1126 = vst.msk [vmem:[%s2025_s7 + $0x10] sm:$0xf] %vm1121_vm4, %v1192_v5  ;;  %v1193_v56 = vpack.c.bf16 %v1014_v39, %v1014_v39 }
 0x342   :  { %1129 = vst.msk [vmem:[%s2025_s7 + $0x1c] sm:$0xf] %vm1121_vm4, %v1195_v50 }
 0x343   :  { %1127 = vst.msk [vmem:[%s2025_s7 + $0x14] sm:$0xf] %vm1121_vm4, %v1193_v56 }
 0x35f   :  { %v1255_v52 = vpop.f32.mrb[8].mxu1 }
 0x360   :  { %v1035_v57 = vadd.f32 %v1255_v52, %v1161_v59  ;;  %v1026_v32 = vpop.f32.mrb[9].mxu1 }
 0x361   :  { %v1027_v38 = vadd.f32 %v1161_v59, %v1026_v32  ;;  %v1256_v19 = vpop.f32.mrb[10].mxu1 }
 0x362   :  { %v1198_v33 = vpack.c.bf16 %v1035_v57, %v1035_v57  ;;  %v1038_v41 = vadd.f32 %v1256_v19, %v1161_v59  ;;  %v1029_v44 = vpop.f32.mrb[11].mxu1 }
 0x363   :  { %v1196_v34 = vpack.c.bf16 %v1027_v38, %v1027_v38  ;;  %v1030_v2 = vadd.f32 %v1161_v59, %v1029_v44 }
 0x364   :  { %1132 = vst.msk [vmem:[%s2025_s7 + $0x28] sm:$0xf] %vm1121_vm4, %v1198_v33  ;;  %v1199_v51 = vpack.c.bf16 %v1038_v41, %v1038_v41 }
 0x365   :  { %1130 = vst.msk [vmem:[%s2025_s7 + $0x20] sm:$0xf] %vm1121_vm4, %v1196_v34  ;;  %v1197_v23 = vpack.c.bf16 %v1030_v2, %v1030_v2 }
 0x366   :  { %1133 = vst.msk [vmem:[%s2025_s7 + $0x2c] sm:$0xf] %vm1121_vm4, %v1199_v51 }
 0x367   :  { %1131 = vst.msk [vmem:[%s2025_s7 + $0x24] sm:$0xf] %vm1121_vm4, %v1197_v23 }
 0x372   :  { %v1259_v48 = vpop.f32.mrb[12].mxu1 }
 0x373   :  { %v1051_v37 = vadd.f32 %v1259_v48, %v1161_v59  ;;  %v1042_v58 = vpop.f32.mrb[13].mxu1 }
 0x374   :  { %v1043_v14 = vadd.f32 %v1161_v59, %v1042_v58  ;;  %v1260_v0 = vpop.f32.mrb[14].mxu1 }
 0x375   :  { %v1202_v40 = vpack.c.bf16 %v1051_v37, %v1051_v37  ;;  %v1054_v54 = vadd.f32 %v1260_v0, %v1161_v59  ;;  %v1045_v7 = vpop.f32.mrb[15].mxu1 }
 0x376   :  { %v1200_v18 = vpack.c.bf16 %v1043_v14, %v1043_v14  ;;  %v1046_v15 = vadd.f32 %v1161_v59, %v1045_v7 }
 0x377   :  { %1136 = vst.msk [vmem:[%s2025_s7 + $0x38] sm:$0xf] %vm1121_vm4, %v1202_v40  ;;  %v1203_v12 = vpack.c.bf16 %v1054_v54, %v1054_v54 }
 0x378   :  { %1134 = vst.msk [vmem:[%s2025_s7 + $0x30] sm:$0xf] %vm1121_vm4, %v1200_v18  ;;  %v1201_v3 = vpack.c.bf16 %v1046_v15, %v1046_v15 }
 0x379   :  { %1137 = vst.msk [vmem:[%s2025_s7 + $0x3c] sm:$0xf] %vm1121_vm4, %v1203_v12 }
 0x37a   :  { %1135 = vst.msk [vmem:[%s2025_s7 + $0x34] sm:$0xf] %vm1121_vm4, %v1201_v3 }

// kernel: _lambda_.13
= control target key start
LH: loop header
LB: loop body
LE: loop exit
PB: predicated region body
PF: predicated region fallthrough
CT: control target
= control target key end

     0   :  { %vm61_vm0 = vcmask 261120   ;;  %s2086_s0 = inlined_call_operand.vmem [shape: bf16[128,32], index: 0, kind: input, shape index: {}]   ;;  %s2087_s3 = inlined_call_operand.vmem [shape: bf16[32,32], index: 3, kind: input, shape index: {}]   ;;  %s2088_s1 = inlined_call_operand.vmem [shape: f32[1,32], index: 1, kind: input, shape index: {}]   ;;  %s2089_s2 = inlined_call_operand.vmem [shape: f32[1,32], index: 2, kind: input, shape index: {}]   ;;  %s2090_s5 = inlined_call_operand.vmem [shape: bf16[32,6], index: 5, kind: input, shape index: {}]   ;;  %s2091_s4 = inlined_call_operand.vmem [shape: f32[1,32], index: 4, kind: input, shape index: {}]   ;;  %s2092_s6 = inlined_call_operand.vmem [shape: f32[1,6], index: 6, kind: input, shape index: {}]   ;;  %s2093_s7 = inlined_call_operand.vmem [shape: f32[128,6], index: 7, kind: output, shape index: {}]  }
   0x1   :  { %v1338_v0 = vld [vmem:[%s2086_s0] sm:$0xff]   ;;  %v1343_v1 = vld [vmem:[%s2086_s0 + $0x8] sm:$0xff]   ;;  %v1352_v6 = vld [vmem:[%s2086_s0 + $0x10] sm:$0xff]  }
   0x2   :  { %v1098_v2 = vunpack.c.l.bf16 %v1338_v0  ;;  %v1102_v3 = vunpack.c.l.bf16 %v1343_v1  ;;  %v1099_v4 = vunpack.c.h.bf16 %v1338_v0  ;;  %v1103_v5 = vunpack.c.h.bf16 %v1343_v1  ;;  %v1367_v13 = vld [vmem:[%s2086_s0 + $0x18] sm:$0xff]   ;;  %v1380_v18 = vld [vmem:[%s2086_s0 + $0x20] sm:$0xff]   ;;  %v1393_v23 = vld [vmem:[%s2086_s0 + $0x28] sm:$0xff]  }
   0x3   :  { %v1106_v11 = vunpack.c.l.bf16 %v1352_v6  ;;  %v1107_v12 = vunpack.c.h.bf16 %v1352_v6  ;;  %v1110_v16 = vunpack.c.l.bf16 %v1367_v13  ;;  %v1111_v17 = vunpack.c.h.bf16 %v1367_v13  ;;  %v1406_v28 = vld [vmem:[%s2086_s0 + $0x30] sm:$0xff]   ;;  %v1419_v33 = vld [vmem:[%s2086_s0 + $0x38] sm:$0xff]  }
   0x4   :  { %v62_v7 = vsel %vm61_vm0, %v1098_v2, 0.0  ;;  %v68_v8 = vsel %vm61_vm0, %v1102_v3, 0.0  ;;  %v65_v9 = vsel %vm61_vm0, %v1099_v4, 0.0  ;;  %v71_v10 = vsel %vm61_vm0, %v1103_v5, 0.0 }
   0x5   :  { %63 = vadd.xlane.f32.xlu0 %v62_v7  ;;  %69 = vadd.xlane.f32.xlu1 %v68_v8  ;;  %v74_v14 = vsel %vm61_vm0, %v1106_v11, 0.0  ;;  %v77_v15 = vsel %vm61_vm0, %v1107_v12, 0.0  ;;  %v80_v19 = vsel %vm61_vm0, %v1110_v16, 0.0  ;;  %v83_v20 = vsel %vm61_vm0, %v1111_v17, 0.0 }
   0x6   :  { %v1114_v21 = vunpack.c.l.bf16 %v1380_v18  ;;  %v1115_v22 = vunpack.c.h.bf16 %v1380_v18  ;;  %v1118_v26 = vunpack.c.l.bf16 %v1393_v23  ;;  %v1119_v27 = vunpack.c.h.bf16 %v1393_v23 }
   0x7   :  { %v1122_v31 = vunpack.c.l.bf16 %v1406_v28  ;;  %v1123_v32 = vunpack.c.h.bf16 %v1406_v28  ;;  %v1126_v36 = vunpack.c.l.bf16 %v1419_v33  ;;  %v1127_v37 = vunpack.c.h.bf16 %v1419_v33 }
   0x8   :  { %v86_v24 = vsel %vm61_vm0, %v1114_v21, 0.0  ;;  %v89_v25 = vsel %vm61_vm0, %v1115_v22, 0.0  ;;  %v92_v29 = vsel %vm61_vm0, %v1118_v26, 0.0  ;;  %v95_v30 = vsel %vm61_vm0, %v1119_v27, 0.0 }
   0x9   :  { %66 = vadd.xlane.f32.xlu0 %v65_v9  ;;  %72 = vadd.xlane.f32.xlu1 %v71_v10  ;;  %v98_v34 = vsel %vm61_vm0, %v1122_v31, 0.0  ;;  %v101_v35 = vsel %vm61_vm0, %v1123_v32, 0.0  ;;  %v104_v38 = vsel %vm61_vm0, %v1126_v36, 0.0  ;;  %v107_v39 = vsel %vm61_vm0, %v1127_v37, 0.0 }
   0xd   :  { %75 = vadd.xlane.f32.xlu0 %v74_v14  ;;  %78 = vadd.xlane.f32.xlu1 %v77_v15 }
  0x11   :  { %81 = vadd.xlane.f32.xlu0 %v80_v19  ;;  %84 = vadd.xlane.f32.xlu1 %v83_v20 }
  0x15   :  { %87 = vadd.xlane.f32.xlu0 %v86_v24  ;;  %90 = vadd.xlane.f32.xlu1 %v89_v25 }
  0x19   :  { %93 = vadd.xlane.f32.xlu0 %v92_v29  ;;  %96 = vadd.xlane.f32.xlu1 %v95_v30 }
  0x1d   :  { %99 = vadd.xlane.f32.xlu0 %v98_v34  ;;  %102 = vadd.xlane.f32.xlu1 %v101_v35 }
  0x21   :  { %105 = vadd.xlane.f32.xlu0 %v104_v38  ;;  %108 = vadd.xlane.f32.xlu1 %v107_v39 }
  0x92   :  { %v64_v40 = vpop.xlane.xlu0 %63  ;;  %v70_v41 = vpop.xlane.xlu1 %69 }
  0x93   :  { %v111_v42 = vmul.f32 0.03125, %v64_v40  ;;  %v113_v43 = vmul.f32 0.03125, %v70_v41 }
  0x95   :  { %v1435_v44 = vsub.f32 %v1098_v2, %v111_v42  ;;  %v1437_v45 = vsub.f32 %v1102_v3, %v113_v43 }
  0x96   :  { %v67_v46 = vpop.xlane.xlu0 %66  ;;  %v73_v47 = vpop.xlane.xlu1 %72 }
  0x97   :  { %v112_v48 = vmul.f32 0.03125, %v67_v46  ;;  %v114_v49 = vmul.f32 0.03125, %v73_v47  ;;  %v143_v50 = vmul.f32 %v1435_v44, %v1435_v44  ;;  %v145_v51 = vmul.f32 %v1437_v45, %v1437_v45 }
  0x99   :  { %v1445_v52 = vsub.f32 %v1099_v4, %v112_v48  ;;  %v1449_v53 = vsub.f32 %v1103_v5, %v114_v49  ;;  %v159_v54 = vsel %vm61_vm0, %v143_v50, 0.0  ;;  %v165_v57 = vsel %vm61_vm0, %v145_v51, 0.0 }
  0x9a   :  { %160 = vadd.xlane.f32.xlu0 %v159_v54  ;;  %v76_v55 = vpop.xlane.xlu0 %75  ;;  %v79_v56 = vpop.xlane.xlu1 %78 }
  0x9b   :  { %v115_v58 = vmul.f32 0.03125, %v76_v55  ;;  %v116_v59 = vmul.f32 0.03125, %v79_v56  ;;  %v144_v60 = vmul.f32 %v1445_v52, %v1445_v52  ;;  %v146_v61 = vmul.f32 %v1449_v53, %v1449_v53 }
  0x9d   :  { %v1459_v62 = vsub.f32 %v1106_v11, %v115_v58  ;;  %v1463_v63 = vsub.f32 %v1107_v12, %v116_v59  ;;  %v162_v0 = vsel %vm61_vm0, %v144_v60, 0.0  ;;  %v168_v3 = vsel %vm61_vm0, %v146_v61, 0.0 }
  0x9e   :  { %166 = vadd.xlane.f32.xlu0 %v165_v57  ;;  %163 = vadd.xlane.f32.xlu1 %v162_v0  ;;  %v82_v1 = vpop.xlane.xlu0 %81  ;;  %v85_v2 = vpop.xlane.xlu1 %84 }
  0x9f   :  { %v117_v4 = vmul.f32 0.03125, %v82_v1  ;;  %v118_v5 = vmul.f32 0.03125, %v85_v2  ;;  %v147_v7 = vmul.f32 %v1459_v62, %v1459_v62  ;;  %v148_v8 = vmul.f32 %v1463_v63, %v1463_v63 }
  0xa1   :  { %v1473_v6 = vsub.f32 %v1110_v16, %v117_v4  ;;  %v1477_v9 = vsub.f32 %v1111_v17, %v118_v5  ;;  %v171_v10 = vsel %vm61_vm0, %v147_v7, 0.0  ;;  %v174_v14 = vsel %vm61_vm0, %v148_v8, 0.0 }
  0xa2   :  { %169 = vadd.xlane.f32.xlu1 %v168_v3  ;;  %172 = vadd.xlane.f32.xlu0 %v171_v10  ;;  %v88_v11 = vpop.xlane.xlu0 %87  ;;  %v91_v12 = vpop.xlane.xlu1 %90 }
  0xa3   :  { %v119_v15 = vmul.f32 0.03125, %v88_v11  ;;  %v120_v19 = vmul.f32 0.03125, %v91_v12  ;;  %v149_v20 = vmul.f32 %v1473_v6, %v1473_v6  ;;  %v150_v16 = vmul.f32 %v1477_v9, %v1477_v9 }
  0xa5   :  { %v1487_v13 = vsub.f32 %v1114_v21, %v119_v15  ;;  %v1491_v17 = vsub.f32 %v1115_v22, %v120_v19  ;;  %v177_v24 = vsel %vm61_vm0, %v149_v20, 0.0  ;;  %v180_v30 = vsel %vm61_vm0, %v150_v16, 0.0 }
  0xa6   :  { %175 = vadd.xlane.f32.xlu1 %v174_v14  ;;  %178 = vadd.xlane.f32.xlu0 %v177_v24  ;;  %v94_v25 = vpop.xlane.xlu0 %93  ;;  %v97_v29 = vpop.xlane.xlu1 %96 }
  0xa7   :  { %v121_v34 = vmul.f32 0.03125, %v94_v25  ;;  %v122_v35 = vmul.f32 0.03125, %v97_v29  ;;  %v151_v38 = vmul.f32 %v1487_v13, %v1487_v13  ;;  %v152_v21 = vmul.f32 %v1491_v17, %v1491_v17 }
  0xa9   :  { %v1501_v18 = vsub.f32 %v1118_v26, %v121_v34  ;;  %v1505_v22 = vsub.f32 %v1119_v27, %v122_v35  ;;  %v183_v39 = vsel %vm61_vm0, %v151_v38, 0.0  ;;  %v186_v42 = vsel %vm61_vm0, %v152_v21, 0.0 }
  0xaa   :  { %181 = vadd.xlane.f32.xlu1 %v180_v30  ;;  %184 = vadd.xlane.f32.xlu0 %v183_v39  ;;  %v100_v40 = vpop.xlane.xlu0 %99  ;;  %v103_v41 = vpop.xlane.xlu1 %102 }
  0xab   :  { %v123_v43 = vmul.f32 0.03125, %v100_v40  ;;  %v124_v46 = vmul.f32 0.03125, %v103_v41  ;;  %v153_v47 = vmul.f32 %v1501_v18, %v1501_v18  ;;  %v154_v26 = vmul.f32 %v1505_v22, %v1505_v22 }
  0xad   :  { %v1515_v23 = vsub.f32 %v1122_v31, %v123_v43  ;;  %v1519_v27 = vsub.f32 %v1123_v32, %v124_v46  ;;  %v189_v48 = vsel %vm61_vm0, %v153_v47, 0.0  ;;  %v192_v51 = vsel %vm61_vm0, %v154_v26, 0.0 }
  0xae   :  { %187 = vadd.xlane.f32.xlu1 %v186_v42  ;;  %190 = vadd.xlane.f32.xlu0 %v189_v48  ;;  %v106_v49 = vpop.xlane.xlu0 %105  ;;  %v109_v50 = vpop.xlane.xlu1 %108  ;;  %v1553_v42 = vld [vmem:[%s2088_s1] ss:$0 sm:$0xff] }
  0xaf   :  { %v125_v54 = vmul.f32 0.03125, %v106_v49  ;;  %v126_v55 = vmul.f32 0.03125, %v109_v50  ;;  %v155_v56 = vmul.f32 %v1515_v23, %v1515_v23  ;;  %v156_v31 = vmul.f32 %v1519_v27, %v1519_v27 }
  0xb1   :  { %v1529_v28 = vsub.f32 %v1126_v36, %v125_v54  ;;  %v1533_v32 = vsub.f32 %v1127_v37, %v126_v55  ;;  %v195_v57 = vsel %vm61_vm0, %v155_v56, 0.0  ;;  %v198_v58 = vsel %vm61_vm0, %v156_v31, 0.0  ;;  %v1195_v36 = vld [vmem:[%s2087_s3] sm:$0xff]   ;;  %v1196_v37 = vld [vmem:[%s2087_s3 + $0x8] sm:$0xff]  }
  0xb2   :  { %193 = vadd.xlane.f32.xlu1 %v192_v51  ;;  %196 = vadd.xlane.f32.xlu0 %v195_v57  ;;  %v1561_v56 = vld [vmem:[%s2089_s2] ss:$0 sm:$0xff] }
  0xb3   :  { %v157_v59 = vmul.f32 %v1529_v28, %v1529_v28  ;;  %v158_v60 = vmul.f32 %v1533_v32, %v1533_v32  ;;  %1155 = vmatprep.subr.bf16.mxu0 %v1195_v36 }
  0xb4   :  { %1156 = vmatpush3.bf16.msra.mxu0 %v1195_v36 }
  0xb5   :  { %v201_v61 = vsel %vm61_vm0, %v157_v59, 0.0  ;;  %v204_v33 = vsel %vm61_vm0, %v158_v60, 0.0  ;;  %1157 = vmatprep.subr.bf16.mxu0 %v1196_v37 }
  0xb6   :  { %199 = vadd.xlane.f32.xlu1 %v198_v58  ;;  %202 = vadd.xlane.f32.xlu0 %v201_v61 }
  0xb8   :  { %1158 = vmatpush3.bf16.msra.mxu0 %v1196_v37 }
  0xba   :  { %205 = vadd.xlane.f32.xlu1 %v204_v33 }
 0x127   :  { %v161_v0 = vpop.xlane.xlu0 %160 }
 0x128   :  { %v207_v1 = vmul.f32 0.03125, %v161_v0 }
 0x12a   :  { %v223_v2 = vadd.f32 1e-05, %v207_v1 }
 0x12b   :  { %v164_v3 = vpop.xlane.xlu1 %163  ;;  %v167_v4 = vpop.xlane.xlu0 %166 }
 0x12c   :  { %1199 = vrsqrt.f32 %v223_v2  ;;  %v208_v5 = vmul.f32 0.03125, %v164_v3  ;;  %v209_v7 = vmul.f32 0.03125, %v167_v4 }
 0x12e   :  { %v224_v8 = vadd.f32 1e-05, %v208_v5  ;;  %v225_v10 = vadd.f32 1e-05, %v209_v7 }
 0x12f   :  { %v170_v11 = vpop.xlane.xlu1 %169  ;;  %v173_v12 = vpop.xlane.xlu0 %172 }
 0x130   :  { %1201 = vrsqrt.f32 %v224_v8  ;;  %v210_v14 = vmul.f32 0.03125, %v170_v11  ;;  %v211_v15 = vmul.f32 0.03125, %v173_v12 }
 0x131   :  { %1203 = vrsqrt.f32 %v225_v10 }
 0x132   :  { %v226_v19 = vadd.f32 1e-05, %v210_v14  ;;  %v227_v20 = vadd.f32 1e-05, %v211_v15 }
 0x133   :  { %v176_v16 = vpop.xlane.xlu1 %175  ;;  %v179_v24 = vpop.xlane.xlu0 %178 }
 0x134   :  { %1205 = vrsqrt.f32 %v226_v19  ;;  %v212_v25 = vmul.f32 0.03125, %v176_v16  ;;  %v213_v29 = vmul.f32 0.03125, %v179_v24 }
 0x135   :  { %1207 = vrsqrt.f32 %v227_v20 }
 0x136   :  { %v1200_v30 = vpop.eup %1199  ;;  %v228_v34 = vadd.f32 1e-05, %v212_v25  ;;  %v229_v35 = vadd.f32 1e-05, %v213_v29 }
 0x137   :  { %v182_v38 = vpop.xlane.xlu1 %181  ;;  %v185_v21 = vpop.xlane.xlu0 %184  ;;  %v255_v39 = vmul.f32 %v1200_v30, %v1435_v44 }
 0x138   :  { %1209 = vrsqrt.f32 %v228_v34  ;;  %v214_v40 = vmul.f32 0.03125, %v182_v38  ;;  %v215_v41 = vmul.f32 0.03125, %v185_v21 }
 0x139   :  { %1211 = vrsqrt.f32 %v229_v35  ;;  %v277_v51 = vmul.f32 %v1553_v42, %v255_v39 }
 0x13a   :  { %v1202_v43 = vpop.eup %1201  ;;  %v230_v46 = vadd.f32 1e-05, %v214_v40  ;;  %v231_v47 = vadd.f32 1e-05, %v215_v41 }
 0x13b   :  { %v1204_v26 = vpop.eup %1203  ;;  %v188_v48 = vpop.xlane.xlu1 %187  ;;  %v256_v50 = vmul.f32 %v1202_v43, %v1445_v52 }
 0x13c   :  { %v191_v49 = vpop.xlane.xlu0 %190  ;;  %v257_v44 = vmul.f32 %v1204_v26, %v1437_v45  ;;  %1213 = vrsqrt.f32 %v230_v46  ;;  %v216_v54 = vmul.f32 0.03125, %v188_v48  ;;  %v299_v45 = vadd.f32 %v1561_v56, %v277_v51 }
 0x13d   :  { %v217_v55 = vmul.f32 0.03125, %v191_v49  ;;  %1215 = vrsqrt.f32 %v231_v47  ;;  %v278_v31 = vmul.f32 %v1553_v42, %v256_v50 }
 0x13e   :  { %v1206_v57 = vpop.eup %1205  ;;  %v232_v58 = vadd.f32 1e-05, %v216_v54  ;;  %v279_v37 = vmul.f32 %v1553_v42, %v257_v44 }
 0x13f   :  { %v233_v59 = vadd.f32 1e-05, %v217_v55  ;;  %v1208_v60 = vpop.eup %1207  ;;  %v258_v52 = vmul.f32 %v1206_v57, %v1449_v53  ;;  %v194_v61 = vpop.xlane.xlu1 %193  ;;  %v300_v36 = vadd.f32 %v1561_v56, %v278_v31 }
 0x140   :  { %v197_v33 = vpop.xlane.xlu0 %196  ;;  %v259_v0 = vmul.f32 %v1208_v60, %v1459_v62  ;;  %1217 = vrsqrt.f32 %v232_v58  ;;  %v218_v1 = vmul.f32 0.03125, %v194_v61  ;;  %v301_v14 = vadd.f32 %v1561_v56, %v279_v37 }
 0x141   :  { %v219_v2 = vmul.f32 0.03125, %v197_v33  ;;  %1219 = vrsqrt.f32 %v233_v59  ;;  %v315_v3 = vpack.c.bf16 %v300_v36, %v299_v45  ;;  %v280_v4 = vmul.f32 %v1553_v42, %v258_v52 }
 0x142   :  { %v1210_v5 = vpop.eup %1209  ;;  %v234_v7 = vadd.f32 1e-05, %v218_v1  ;;  %v281_v15 = vmul.f32 %v1553_v42, %v259_v0 }
 0x143   :  { %v235_v53 = vadd.f32 1e-05, %v219_v2  ;;  %v1212_v8 = vpop.eup %1211  ;;  %v260_v10 = vmul.f32 %v1210_v5, %v1463_v63  ;;  %v200_v11 = vpop.xlane.xlu1 %199  ;;  %1159 = vmatprep.mubr.msk.bf16.mxu0 %vm61_vm0, %v315_v3  ;;  %v302_v62 = vadd.f32 %v1561_v56, %v280_v4 }
 0x144   :  { %v203_v12 = vpop.xlane.xlu0 %202  ;;  %v261_v19 = vmul.f32 %v1212_v8, %v1473_v6  ;;  %1221 = vrsqrt.f32 %v234_v7  ;;  %v220_v20 = vmul.f32 0.03125, %v200_v11  ;;  %v303_v21 = vadd.f32 %v1561_v56, %v281_v15  ;;  %v1198_v11 = vld [vmem:[%s2090_s5 + $0x8] sm:$0xff]  }
 0x145   :  { %v221_v16 = vmul.f32 0.03125, %v203_v12  ;;  %1223 = vrsqrt.f32 %v235_v53  ;;  %v316_v24 = vpack.c.bf16 %v302_v62, %v301_v14  ;;  %v282_v25 = vmul.f32 %v1553_v42, %v260_v10 }
 0x146   :  { %v1214_v63 = vpop.eup %1213  ;;  %v236_v29 = vadd.f32 1e-05, %v220_v20  ;;  %v283_v39 = vmul.f32 %v1553_v42, %v261_v19 }
 0x147   :  { %v237_v30 = vadd.f32 1e-05, %v221_v16  ;;  %v1216_v34 = vpop.eup %1215  ;;  %v262_v35 = vmul.f32 %v1214_v63, %v1477_v9  ;;  %v206_v38 = vpop.xlane.xlu1 %205  ;;  %1160 = vmatmul.mubr.msk.bf16.vlgmr.msra.gmra.mrb[0].mxu0 %vm61_vm0, %v316_v24  ;;  %v304_v6 = vadd.f32 %v1561_v56, %v282_v25 }
 0x148   :  { %v263_v40 = vmul.f32 %v1216_v34, %v1487_v13  ;;  %1225 = vrsqrt.f32 %v236_v29  ;;  %v222_v41 = vmul.f32 0.03125, %v206_v38  ;;  %v305_v49 = vadd.f32 %v1561_v56, %v283_v39 }
 0x149   :  { %1227 = vrsqrt.f32 %v237_v30  ;;  %v317_v43 = vpack.c.bf16 %v304_v6, %v303_v21  ;;  %v284_v46 = vmul.f32 %v1553_v42, %v262_v35 }
 0x14a   :  { %v1218_v47 = vpop.eup %1217  ;;  %v238_v26 = vadd.f32 1e-05, %v222_v41  ;;  %v285_v51 = vmul.f32 %v1553_v42, %v263_v40 }
 0x14b   :  { %v1220_v9 = vpop.eup %1219  ;;  %v264_v48 = vmul.f32 %v1218_v47, %v1491_v17  ;;  %1163 = vmatprep.mubr.msk.bf16.mxu0 %vm61_vm0, %v317_v43  ;;  %v306_v50 = vadd.f32 %v1561_v56, %v284_v46 }
 0x14c   :  { %v265_v13 = vmul.f32 %v1220_v9, %v1501_v18  ;;  %1229 = vrsqrt.f32 %v238_v26  ;;  %v307_v17 = vadd.f32 %v1561_v56, %v285_v51 }
 0x14d   :  { %v318_v44 = vpack.c.bf16 %v306_v50, %v305_v49  ;;  %v286_v54 = vmul.f32 %v1553_v42, %v264_v48 }
 0x14e   :  { %v1222_v55 = vpop.eup %1221  ;;  %v287_v59 = vmul.f32 %v1553_v42, %v265_v13 }
 0x14f   :  { %v1224_v31 = vpop.eup %1223  ;;  %v266_v57 = vmul.f32 %v1222_v55, %v1505_v22  ;;  %1164 = vmatmul.mubr.msk.bf16.gmra.mrb[4].mxu0 %vm61_vm0, %v318_v44  ;;  %v308_v58 = vadd.f32 %v1561_v56, %v286_v54 }
 0x150   :  { %v267_v60 = vmul.f32 %v1224_v31, %v1515_v23  ;;  %v309_v22 = vadd.f32 %v1561_v56, %v287_v59 }
 0x151   :  { %v319_v52 = vpack.c.bf16 %v308_v58, %v307_v17  ;;  %v288_v18 = vmul.f32 %v1553_v42, %v266_v57 }
 0x152   :  { %v1226_v61 = vpop.eup %1225  ;;  %v289_v37 = vmul.f32 %v1553_v42, %v267_v60 }
 0x153   :  { %v1228_v33 = vpop.eup %1227  ;;  %v268_v45 = vmul.f32 %v1226_v61, %v1519_v27  ;;  %1167 = vmatprep.mubr.msk.bf16.mxu0 %vm61_vm0, %v319_v52  ;;  %v310_v36 = vadd.f32 %v1561_v56, %v288_v18 }
 0x154   :  { %v269_v0 = vmul.f32 %v1228_v33, %v1529_v28  ;;  %v311_v27 = vadd.f32 %v1561_v56, %v289_v37 }
 0x155   :  { %v320_v1 = vpack.c.bf16 %v310_v36, %v309_v22  ;;  %v290_v23 = vmul.f32 %v1553_v42, %v268_v45 }
 0x156   :  { %v1230_v2 = vpop.eup %1229  ;;  %v291_v5 = vmul.f32 %v1553_v42, %v269_v0 }
 0x157   :  { %v270_v3 = vmul.f32 %v1230_v2, %v1533_v32  ;;  %1168 = vmatmul.mubr.msk.bf16.gmra.mrb[8].mxu0 %vm61_vm0, %v320_v1  ;;  %v312_v4 = vadd.f32 %v1561_v56, %v290_v23  ;;  %v1197_v32 = vld [vmem:[%s2090_s5] sm:$0xff]  }
 0x158   :  { %v313_v28 = vadd.f32 %v1561_v56, %v291_v5  ;;  %1175 = vmatprep.subr.bf16.mxu1 %v1197_v32 }
 0x159   :  { %v321_v7 = vpack.c.bf16 %v312_v4, %v311_v27  ;;  %v292_v53 = vmul.f32 %v1553_v42, %v270_v3  ;;  %1176 = vmatpush3.bf16.msra.mxu1 %v1197_v32  ;;  %v1624_v42 = vld [vmem:[%s2091_s4] ss:$0 sm:$0xff] }
 0x15a   :  { %1177 = vmatprep.subr.bf16.mxu1 %v1198_v11 }
 0x15b   :  { %1171 = vmatprep.mubr.msk.bf16.mxu0 %vm61_vm0, %v321_v7  ;;  %v314_v8 = vadd.f32 %v1561_v56, %v292_v53 }
 0x15d   :  { %v322_v10 = vpack.c.bf16 %v314_v8, %v313_v28  ;;  %1178 = vmatpush3.bf16.msra.mxu1 %v1198_v11 }
 0x15f   :  { %1172 = vmatmul.mubr.msk.bf16.gmra.mrb[12].mxu0 %vm61_vm0, %v322_v10 }
 0x21a   :  { %v1161_v56 = vpop.f32.mrb[0].mxu0 }
 0x21b   :  { %v413_v12 = vadd.f32 %v1161_v56, %v1624_v42  ;;  %v404_v14 = vpop.f32.mrb[1].mxu0 }
 0x21c   :  { %v1628_v62 = vadd.f32 %v1624_v42, %v404_v14  ;;  %v1162_v15 = vpop.f32.mrb[2].mxu0 }
 0x21d   :  { %v1630_v19 = vmul.f32 0.70710677, %v413_v12  ;;  %v416_v20 = vadd.f32 %v1162_v15, %v1624_v42  ;;  %v407_v16 = vpop.f32.mrb[3].mxu0  ;;  %v1654_v49 = vmul.f32 0.5, %v413_v12 }
 0x21e   :  { %v1637_v63 = vadd.f32 %v1624_v42, %v407_v16  ;;  %v1640_v29 = vmul.f32 0.70710677, %v1628_v62 }
 0x21f   :  { %v501_v24 = vand.u32 2147483647, %v1630_v19  ;;  %v1634_v25 = vmul.f32 0.70710677, %v416_v20  ;;  %v1656_v51 = vmul.f32 0.5, %v416_v20  ;;  %vm821_vm1 = vcmp.ge.f32.partialorder %v1630_v19, 0.0 }
 0x220   :  { %v1644_v21 = vmul.f32 0.70710677, %v1637_v63  ;;  %v499_v39 = vand.u32 2147483647, %v1640_v29  ;;  %vm819_vm11 = vcmp.ge.f32.partialorder %v1640_v29, 0.0 }
 0x221   :  { %v517_v30 = vmul.f32 0.3275911, %v501_v24  ;;  %v502_v34 = vand.u32 2147483647, %v1634_v25  ;;  %v725_v41 = vsub.f32 0.0, %v501_v24  ;;  %vm822_vm2 = vcmp.ge.f32.partialorder %v1634_v25, 0.0 }
 0x222   :  { %v1165_v6 = vpop.f32.mrb[4].mxu0  ;;  %v1648_v26 = vand.u32 2147483647, %v1644_v21  ;;  %v515_v50 = vmul.f32 0.3275911, %v499_v39  ;;  %v723_v31 = vsub.f32 0.0, %v499_v39 }
 0x223   :  { %v533_v35 = vadd.f32 1.0, %v517_v30  ;;  %v518_v38 = vmul.f32 0.3275911, %v502_v34  ;;  %v420_v40 = vpop.f32.mrb[5].mxu0  ;;  %v429_v9 = vadd.f32 %v1165_v6, %v1624_v42  ;;  %v741_v44 = vmul.f32 %v725_v41, %v501_v24 }
 0x224   :  { %v1166_v46 = vpop.f32.mrb[6].mxu0  ;;  %v1652_v48 = vadd.f32 %v1624_v42, %v420_v40  ;;  %v726_v59 = vsub.f32 0.0, %v502_v34  ;;  %v516_v60 = vmul.f32 0.3275911, %v1648_v26  ;;  %v531_v61 = vadd.f32 1.0, %v515_v50 }
 0x225   :  { %1231 = vrcp.f32 %v533_v35  ;;  %v534_v43 = vadd.f32 1.0, %v518_v38  ;;  %v423_v47 = vpop.f32.mrb[7].mxu0  ;;  %v1659_v13 = vadd.f32 %v1166_v46, %v1624_v42  ;;  %v1661_v54 = vmul.f32 0.70710677, %v429_v9 }
 0x226   :  { %v1664_v55 = vadd.f32 %v1624_v42, %v423_v47  ;;  %v1667_v57 = vmul.f32 0.70710677, %v1652_v48  ;;  %v759_v36 = vmul.f32 1.442695, %v741_v44  ;;  %v1681_v1 = vmul.f32 %v723_v31, %v499_v39 }
 0x227   :  { %1233 = vrcp.f32 %v534_v43  ;;  %v1670_v17 = vmul.f32 0.70710677, %v1659_v13  ;;  %v505_v52 = vand.u32 2147483647, %v1661_v54  ;;  %v742_v10 = vmul.f32 %v726_v59, %v502_v34 }
 0x228   :  { %v503_v33 = vand.u32 2147483647, %v1667_v57  ;;  %v1679_v0 = vmul.f32 0.70710677, %v1664_v55  ;;  %1235 = vrcp.f32 %v531_v61  ;;  %v1690_v15 = vadd.f32 1.0, %v516_v60 }
 0x229   :  { %v506_v45 = vand.u32 2147483647, %v1670_v17  ;;  %v521_v37 = vmul.f32 0.3275911, %v505_v52  ;;  %v729_v23 = vsub.f32 0.0, %v505_v52  ;;  %v1703_v43 = vmul.f32 0.5, %v429_v9 }
 0x22a   :  { %v1169_v58 = vpop.f32.mrb[8].mxu0  ;;  %v519_v2 = vmul.f32 0.3275911, %v503_v33  ;;  %v727_v7 = vsub.f32 0.0, %v503_v33  ;;  %v504_v53 = vand.u32 2147483647, %v1679_v0 }
 0x22b   :  { %v436_v18 = vpop.f32.mrb[9].mxu0  ;;  %v522_v3 = vmul.f32 0.3275911, %v506_v45  ;;  %v537_v5 = vadd.f32 1.0, %v521_v37  ;;  %v730_v56 = vsub.f32 0.0, %v506_v45  ;;  %v745_v20 = vmul.f32 %v729_v23, %v505_v52 }
 0x22c   :  { %v1676_v22 = vpop.f32.mrb[10].mxu0  ;;  %v535_v32 = vadd.f32 1.0, %v519_v2  ;;  %v520_v12 = vmul.f32 0.3275911, %v504_v53  ;;  %v743_v30 = vmul.f32 %v727_v7, %v503_v33  ;;  %v728_v38 = vsub.f32 0.0, %v504_v53 }
 0x22d   :  { %v1687_v28 = vpop.f32.mrb[11].mxu0  ;;  %1237 = vrcp.f32 %v537_v5  ;;  %v538_v11 = vadd.f32 1.0, %v522_v3  ;;  %v1697_v6 = vadd.f32 %v1169_v58, %v1624_v42  ;;  %v761_v41 = vmul.f32 1.442695, %v742_v10 }
 0x22e   :  { %1239 = vrcp.f32 %v535_v32  ;;  %v536_v35 = vadd.f32 1.0, %v520_v12  ;;  %v746_v47 = vmul.f32 %v730_v56, %v506_v45  ;;  %v1711_v44 = vadd.f32 %v1624_v42, %v436_v18 }
 0x22f   :  { %v1683_v27 = vpop.eup %1231  ;;  %1241 = vrcp.f32 %v538_v11  ;;  %v1708_v50 = vmul.f32 0.70710677, %v1697_v6  ;;  %v767_v60 = vmul.f32 1.442695, %v745_v20  ;;  %v763_v52 = vmul.f32 1.442695, %v743_v30 }
 0x230   :  { %v581_v8 = vmul.f32 1.0614054, %v1683_v27  ;;  %1243 = vpow2.f32 %v759_v36  ;;  %v744_v9 = vmul.f32 %v728_v38, %v504_v53  ;;  %v1719_v37 = vmul.f32 0.5, %v1652_v48 }
 0x231   :  { %v1694_v24 = vpop.eup %1233  ;;  %1245 = vrcp.f32 %v536_v35  ;;  %v509_v61 = vand.u32 2147483647, %v1708_v50  ;;  %v1722_v18 = vmul.f32 0.70710677, %v1711_v44  ;;  %v769_v23 = vmul.f32 1.442695, %v746_v47 }
 0x232   :  { %v597_v14 = vadd.f32 -1.4531521, %v581_v8  ;;  %v1692_v16 = vpop.f32.mrb[12].mxu0  ;;  %v582_v40 = vmul.f32 1.0614054, %v1694_v24  ;;  %1247 = vpow2.f32 %v761_v41  ;;  %v1724_v3 = vpop.eup %1235  ;;  %v1732_v48 = vmul.f32 0.5, %v1659_v13 }
 0x233   :  { %v1699_v34 = vpop.f32.mrb[13].mxu0  ;;  %v525_v36 = vmul.f32 0.3275911, %v509_v61  ;;  %v733_v2 = vsub.f32 0.0, %v509_v61  ;;  %1249 = vpow2.f32 %v767_v60  ;;  %v1727_v53 = vand.u32 2147483647, %v1722_v18 }
 0x234   :  { %v613_v39 = vmul.f32 %v1683_v27, %v597_v14  ;;  %v1705_v46 = vpop.f32.mrb[14].mxu0  ;;  %v598_v59 = vadd.f32 -1.4531521, %v582_v40  ;;  %1251 = vpow2.f32 %v763_v52  ;;  %v765_v10 = vmul.f32 1.442695, %v744_v9 }
 0x235   :  { %v1713_v31 = vpop.f32.mrb[15].mxu0  ;;  %v541_v32 = vadd.f32 1.0, %v525_v36  ;;  %v523_v20 = vmul.f32 0.3275911, %v1727_v53  ;;  %v749_v35 = vmul.f32 %v733_v2, %v509_v61  ;;  %v1743_v13 = vadd.f32 %v1676_v22, %v1624_v42 }
 0x236   :  { %v629_v58 = vadd.f32 1.4214138, %v613_v39  ;;  %v614_v45 = vmul.f32 %v1694_v24, %v598_v59  ;;  %vm825_vm3 = vcmp.ge.f32.partialorder %v1661_v54, 0.0  ;;  %vm823_vm4 = vcmp.ge.f32.partialorder %v1667_v57, 0.0 }
 0x237   :  { %v1729_v8 = vpop.eup %1237  ;;  %1253 = vrcp.f32 %v541_v32  ;;  %v539_v59 = vadd.f32 1.0, %v523_v20  ;;  %vm826_vm5 = vcmp.ge.f32.partialorder %v1670_v17, 0.0  ;;  %vm824_vm6 = vcmp.ge.f32.partialorder %v1679_v0, 0.0 }
 0x238   :  { %v645_v33 = vmul.f32 %v1683_v27, %v629_v58  ;;  %v630_v7 = vadd.f32 1.4214138, %v614_v45  ;;  %v1734_v11 = vpop.eup %1239  ;;  %v585_v14 = vmul.f32 1.0614054, %v1729_v8  ;;  %1255 = vpow2.f32 %v769_v23 }
 0x239   :  { %v583_v30 = vmul.f32 1.0614054, %v1734_v11  ;;  %v1745_v41 = vpop.eup %1241  ;;  %v1749_v58 = vmul.f32 0.5, %v1664_v55  ;;  %1257 = vpow2.f32 %v765_v10  ;;  %v775_v23 = vmul.f32 1.442695, %v749_v35 }
 0x23a   :  { %v661_v5 = vadd.f32 -0.28449672, %v645_v33  ;;  %v646_v12 = vmul.f32 %v1694_v24, %v630_v7  ;;  %v601_v40 = vadd.f32 -1.4531521, %v585_v14  ;;  %v1244_v60 = vpop.eup %1243  ;;  %v586_v61 = vmul.f32 1.0614054, %v1745_v41 }
 0x23b   :  { %v599_v47 = vadd.f32 -1.4531521, %v583_v30  ;;  %v1755_v33 = vpop.eup %1245  ;;  %1259 = vrcp.f32 %v539_v59  ;;  %v1759_v55 = vmul.f32 0.70710677, %v1743_v13  ;;  %v731_v59 = vsub.f32 0.0, %v1727_v53 }
 0x23c   :  { %v677_v56 = vmul.f32 %v1683_v27, %v661_v5  ;;  %v662_v39 = vadd.f32 -0.28449672, %v646_v12  ;;  %v617_v9 = vmul.f32 %v1729_v8, %v601_v40  ;;  %v602_v7 = vadd.f32 -1.4531521, %v586_v61 }
 0x23d   :  { %v615_v45 = vmul.f32 %v1734_v11, %v599_v47  ;;  %v584_v32 = vmul.f32 1.0614054, %v1755_v33  ;;  %v1768_v12 = vadd.f32 %v1624_v42, %v1687_v28  ;;  %1261 = vpow2.f32 %v775_v23 }
 0x23e   :  { %v693_v38 = vadd.f32 0.2548296, %v677_v56  ;;  %v678_v22 = vmul.f32 %v1694_v24, %v662_v39  ;;  %v633_v5 = vadd.f32 1.4214138, %v617_v9  ;;  %v1764_v56 = vand.u32 2147483647, %v1759_v55 }
 0x23f   :  { %v631_v10 = vadd.f32 1.4214138, %v615_v45  ;;  %v600_v47 = vadd.f32 -1.4531521, %v584_v32  ;;  %vm829_vm7 = vcmp.ge.f32.partialorder %v1708_v50, 0.0  ;;  %vm830_vm8 = vcmp.ge.f32.partialorder %v1759_v55, 0.0 }
 0x240   :  { %v709_v52 = vmul.f32 %v1683_v27, %v693_v38  ;;  %v694_v2 = vadd.f32 0.2548296, %v678_v22  ;;  %v1248_v27 = vpop.eup %1247  ;;  %v649_v35 = vmul.f32 %v1729_v8, %v633_v5  ;;  %v618_v38 = vmul.f32 %v1745_v41, %v602_v7 }
 0x241   :  { %v1250_v14 = vpop.eup %1249  ;;  %v647_v40 = vmul.f32 %v1734_v11, %v631_v10  ;;  %vm827_vm9 = vcmp.ge.f32.partialorder %v1722_v18, 0.0  ;;  %vm820_vm12 = vcmp.ge.f32.partialorder %v1644_v21, 0.0 }
 0x242   :  { %v789_v36 = vmul.f32 %v1244_v60, %v709_v52  ;;  %v710_v30 = vmul.f32 %v1694_v24, %v694_v2  ;;  %v1252_v39 = vpop.eup %1251  ;;  %v526_v60 = vmul.f32 0.3275911, %v1764_v56  ;;  %v665_v28 = vadd.f32 -0.28449672, %v649_v35 }
 0x243   :  { %v634_v9 = vadd.f32 1.4214138, %v618_v38  ;;  %v1776_v61 = vpop.eup %1253  ;;  %v663_v45 = vadd.f32 -0.28449672, %v647_v40  ;;  %v616_v24 = vmul.f32 %v1755_v33, %v600_v47 }
 0x244   :  { %v805_v20 = vsub.f32 1.0, %v789_v36  ;;  %v790_v22 = vmul.f32 %v1248_v27, %v710_v30  ;;  %v542_v36 = vadd.f32 1.0, %v526_v60  ;;  %v1256_v2 = vpop.eup %1255  ;;  %v681_v10 = vmul.f32 %v1729_v8, %v665_v28 }
 0x245   :  { %v650_v32 = vmul.f32 %v1745_v41, %v634_v9  ;;  %v1258_v4 = vpop.eup %1257  ;;  %v679_v30 = vmul.f32 %v1734_v11, %v663_v45  ;;  %v632_v35 = vadd.f32 1.4214138, %v616_v24  ;;  %v589_v38 = vmul.f32 1.0614054, %v1776_v61 }
 0x246   :  { %v837_v52 = vsub.f32 0.0, %v805_v20  ;;  %v806_v7 = vsub.f32 1.0, %v790_v22  ;;  %v697_v47 = vadd.f32 0.2548296, %v681_v10  ;;  %1263 = vrcp.f32 %v542_v36  ;;  %v1785_v60 = vpop.eup %1259 }
 0x247   :  { %v666_v23 = vadd.f32 -0.28449672, %v650_v32  ;;  %v695_v19 = vadd.f32 0.2548296, %v679_v30  ;;  %v734_v22 = vsub.f32 0.0, %v1764_v56 }
 0x248   :  { %v853_v5 = vsel %vm821_vm1, %v805_v20, %v837_v52  ;;  %v838_v40 = vsub.f32 0.0, %v806_v7  ;;  %v648_v20 = vmul.f32 %v1755_v33, %v632_v35  ;;  %v605_v52 = vadd.f32 -1.4531521, %v589_v38 }
 0x249   :  { %v869_v27 = vadd.f32 1.0, %v853_v5  ;;  %v713_v9 = vmul.f32 %v1729_v8, %v697_v47  ;;  %v682_v45 = vmul.f32 %v1745_v41, %v666_v23  ;;  %v587_v24 = vmul.f32 1.0614054, %v1785_v60 }
 0x24a   :  { %v854_v28 = vsel %vm822_vm2, %v806_v7, %v838_v40  ;;  %v711_v5 = vmul.f32 %v1734_v11, %v695_v19  ;;  %v664_v10 = vadd.f32 -0.28449672, %v648_v20  ;;  %v621_v32 = vmul.f32 %v1776_v61, %v605_v52 }
 0x24b   :  { %v870_v36 = vadd.f32 1.0, %v854_v28  ;;  %v1798_v30 = vmul.f32 %v869_v27, %v1654_v49  ;;  %v793_v35 = vmul.f32 %v1250_v14, %v713_v9  ;;  %v698_v25 = vadd.f32 0.2548296, %v682_v45  ;;  %v1262_v27 = vpop.eup %1261 }
 0x24c   :  { %v603_v7 = vadd.f32 -1.4531521, %v587_v24  ;;  %v791_v38 = vmul.f32 %v1252_v39, %v711_v5  ;;  %v680_v40 = vmul.f32 %v1755_v33, %v664_v10  ;;  %v637_v11 = vadd.f32 1.4214138, %v621_v32 }
 0x24d   :  { %v1802_v8 = vmul.f32 %v870_v36, %v1656_v51  ;;  %v809_v47 = vsub.f32 1.0, %v793_v35  ;;  %v714_v23 = vmul.f32 %v1745_v41, %v698_v25  ;;  %v747_v14 = vmul.f32 %v731_v59, %v1727_v53 }
 0x24e   :  { %v619_v49 = vmul.f32 %v1785_v60, %v603_v7  ;;  %v807_v20 = vsub.f32 1.0, %v791_v38  ;;  %v696_v51 = vadd.f32 0.2548296, %v680_v40  ;;  %v653_v39 = vmul.f32 %v1776_v61, %v637_v11 }
 0x24f   :  { %v900_v19 = vpack.c.bf16 %v1802_v8, %v1798_v30  ;;  %v841_v52 = vsub.f32 0.0, %v809_v47  ;;  %v794_v28 = vmul.f32 %v1256_v2, %v714_v23  ;;  %v750_v36 = vmul.f32 %v734_v22, %v1764_v56 }
 0x250   :  { %v635_v9 = vadd.f32 1.4214138, %v619_v49  ;;  %v839_v45 = vsub.f32 0.0, %v807_v20  ;;  %v712_v41 = vmul.f32 %v1755_v33, %v696_v51  ;;  %v669_v24 = vadd.f32 -0.28449672, %v653_v39  ;;  %v1815_v53 = vpop.eup %1263 }
 0x251   :  { %v857_v59 = vsel %vm825_vm3, %v809_v47, %v841_v52  ;;  %v810_v5 = vsub.f32 1.0, %v794_v28  ;;  %v1821_v32 = vmul.f32 0.70710677, %v1768_v12  ;;  %v771_v25 = vmul.f32 1.442695, %v747_v14 }
 0x252   :  { %v651_v10 = vmul.f32 %v1785_v60, %v635_v9  ;;  %v792_v2 = vmul.f32 %v1258_v4, %v712_v41  ;;  %v685_v35 = vmul.f32 %v1776_v61, %v669_v24  ;;  %v1826_v33 = vadd.f32 %v1692_v16, %v1624_v42 }
 0x253   :  { %v873_v56 = vadd.f32 1.0, %v857_v59  ;;  %v842_v22 = vsub.f32 0.0, %v810_v5  ;;  %v590_v54 = vmul.f32 1.0614054, %v1815_v53  ;;  %v855_v38 = vsel %vm823_vm4, %v807_v20, %v839_v45 }
 0x254   :  { %v667_v7 = vadd.f32 -0.28449672, %v651_v10  ;;  %v808_v40 = vsub.f32 1.0, %v792_v2  ;;  %v701_v11 = vadd.f32 0.2548296, %v685_v35  ;;  %v1836_v16 = vadd.f32 %v1624_v42, %v1699_v34 }
 0x255   :  { %v508_v47 = vand.u32 2147483647, %v1821_v32  ;;  %v858_v4 = vsel %vm826_vm5, %v810_v5, %v842_v22  ;;  %v606_v23 = vadd.f32 -1.4531521, %v590_v54  ;;  %v777_v49 = vmul.f32 1.442695, %v750_v36 }
 0x256   :  { %v874_v14 = vadd.f32 1.0, %v858_v4  ;;  %v840_v51 = vsub.f32 0.0, %v808_v40  ;;  %v717_v39 = vmul.f32 %v1776_v61, %v701_v11  ;;  %v1840_v57 = vmul.f32 %v873_v56, %v1703_v43 }
 0x257   :  { %v524_v52 = vmul.f32 0.3275911, %v508_v47  ;;  %v871_v20 = vadd.f32 1.0, %v855_v38  ;;  %1265 = vpow2.f32 %v771_v25  ;;  %v622_v28 = vmul.f32 %v1815_v53, %v606_v23 }
 0x258   :  { %v1844_v17 = vmul.f32 %v874_v14, %v1732_v48  ;;  %v856_v9 = vsel %vm824_vm6, %v808_v40, %v840_v51  ;;  %v683_v34 = vmul.f32 %v1785_v60, %v667_v7  ;;  %v797_v24 = vmul.f32 %v1262_v27, %v717_v39 }
 0x259   :  { %v540_v45 = vadd.f32 1.0, %v524_v52  ;;  %v872_v41 = vadd.f32 1.0, %v856_v9  ;;  %v638_v61 = vadd.f32 1.4214138, %v622_v28  ;;  %1267 = vpow2.f32 %v777_v49 }
 0x25a   :  { %v755_v43 = vmul.f32 1.442695, %v1681_v1  ;;  %v902_v36 = vpack.c.bf16 %v1844_v17, %v1840_v57  ;;  %v2094_v48 = vsub.f32 0.0, %v1648_v26  ;;  %v1856_v0 = vmul.f32 %v871_v20, %v1719_v37 }
 0x25b   :  { %1269 = vrcp.f32 %v540_v45  ;;  %v1859_v5 = vmul.f32 %v872_v41, %v1749_v58  ;;  %v654_v27 = vmul.f32 %v1815_v53, %v638_v61  ;;  %v699_v10 = vadd.f32 0.2548296, %v683_v34 }
 0x25c   :  { %v740_v59 = vmul.f32 %v2094_v48, %v1648_v26  ;;  %v1863_v2 = vmul.f32 0.70710677, %v1826_v33  ;;  %v1866_v1 = vmul.f32 0.70710677, %v1836_v16  ;;  %1271 = vrcp.f32 %v1690_v15 }
 0x25d   :  { %v901_v26 = vpack.c.bf16 %v1859_v5, %v1856_v0  ;;  %v813_v35 = vsub.f32 1.0, %v797_v24  ;;  %v670_v37 = vadd.f32 -0.28449672, %v654_v27  ;;  %v732_v25 = vsub.f32 0.0, %v508_v47 }
 0x25e   :  { %v513_v58 = vand.u32 2147483647, %v1863_v2  ;;  %v1873_v56 = vand.u32 2147483647, %v1866_v1  ;;  %v757_v22 = vmul.f32 1.442695, %v740_v59  ;;  %v715_v54 = vmul.f32 %v1785_v60, %v699_v10 }
 0x25f   :  { %v686_v7 = vmul.f32 %v1815_v53, %v670_v37  ;;  %v845_v11 = vsub.f32 0.0, %v813_v35  ;;  %v1880_v23 = vadd.f32 %v1705_v46, %v1624_v42  ;;  %1273 = vpow2.f32 %v755_v43 }
 0x260   :  { %v529_v38 = vmul.f32 0.3275911, %v513_v58  ;;  %v527_v40 = vmul.f32 0.3275911, %v1873_v56  ;;  %v748_v49 = vmul.f32 %v732_v25, %v508_v47  ;;  %1275 = vpow2.f32 %v757_v22 }
 0x261   :  { %v1266_v15 = vpop.eup %1265  ;;  %v702_v4 = vadd.f32 0.2548296, %v686_v7  ;;  %v477_v52 = vmul.f32 0.5, %v1697_v6  ;;  %v1885_v20 = vmul.f32 0.70710677, %v1880_v23  ;;  %v1894_v46 = vadd.f32 %v1624_v42, %v1713_v31 }
 0x262   :  { %v545_v14 = vadd.f32 1.0, %v529_v38  ;;  %v543_v51 = vadd.f32 1.0, %v527_v40  ;;  %v1890_v9 = vmul.f32 %v1266_v15, %v715_v54  ;;  %v861_v47 = vsel %vm829_vm7, %v813_v35, %v845_v11 }
 0x263   :  { %v1268_v39 = vpop.eup %1267  ;;  %v718_v60 = vmul.f32 %v1815_v53, %v702_v4  ;;  %v1898_v53 = vmul.f32 0.5, %v1711_v44  ;;  %v478_v45 = vmul.f32 0.5, %v1743_v13  ;;  %v773_v41 = vmul.f32 1.442695, %v748_v49 }
 0x264   :  { %1277 = vrcp.f32 %v545_v14  ;;  %v514_v50 = vand.u32 2147483647, %v1885_v20  ;;  %v1906_v31 = vmul.f32 0.70710677, %v1894_v46  ;;  %v877_v43 = vadd.f32 1.0, %v861_v47 }
 0x265   :  { %v1887_v28 = vpop.eup %1269  ;;  %v798_v34 = vmul.f32 %v1268_v39, %v718_v60  ;;  %1279 = vrcp.f32 %v543_v51  ;;  %v811_v48 = vsub.f32 1.0, %v1890_v9  ;;  %v579_v44 = vmul.f32 1.0614054, %v1724_v3 }
 0x266   :  { %v588_v6 = vmul.f32 1.0614054, %v1887_v28  ;;  %v1902_v24 = vpop.eup %1271  ;;  %v530_v59 = vmul.f32 0.3275911, %v514_v50  ;;  %v737_v10 = vsub.f32 0.0, %v513_v58  ;;  %v735_v37 = vsub.f32 0.0, %v1873_v56 }
 0x267   :  { %v814_v61 = vsub.f32 1.0, %v798_v34  ;;  %v1912_v35 = vand.u32 2147483647, %v1906_v31  ;;  %v580_v25 = vmul.f32 1.0614054, %v1902_v24  ;;  %1281 = vpow2.f32 %v773_v41 }
 0x268   :  { %v604_v42 = vadd.f32 -1.4531521, %v588_v6  ;;  %v546_v55 = vadd.f32 1.0, %v530_v59  ;;  %v595_v22 = vadd.f32 -1.4531521, %v579_v44  ;;  %v843_v15 = vsub.f32 0.0, %v811_v48 }
 0x269   :  { %v846_v27 = vsub.f32 0.0, %v814_v61  ;;  %v528_v38 = vmul.f32 0.3275911, %v1912_v35  ;;  %v1917_v40 = vpop.eup %1273  ;;  %v596_v4 = vadd.f32 -1.4531521, %v580_v25  ;;  %v753_v51 = vmul.f32 %v737_v10, %v513_v58 }
 0x26a   :  { %v620_v13 = vmul.f32 %v1887_v28, %v604_v42  ;;  %1283 = vrcp.f32 %v546_v55  ;;  %v1919_v49 = vpop.eup %1275  ;;  %v611_v60 = vmul.f32 %v1724_v3, %v595_v22  ;;  %v1925_v47 = vmul.f32 %v877_v43, %v477_v52 }
 0x26b   :  { %v862_v7 = vsel %vm830_vm8, %v814_v61, %v846_v27  ;;  %v544_v39 = vadd.f32 1.0, %v528_v38  ;;  %v751_v6 = vmul.f32 %v735_v37, %v1873_v56  ;;  %v612_v41 = vmul.f32 %v1902_v24, %v596_v4 }
 0x26c   :  { %v636_v54 = vadd.f32 1.4214138, %v620_v13  ;;  %v878_v11 = vadd.f32 1.0, %v862_v7  ;;  %v738_v44 = vsub.f32 0.0, %v514_v50  ;;  %v627_v52 = vadd.f32 1.4214138, %v611_v60 }
 0x26d   :  { %1285 = vrcp.f32 %v544_v39  ;;  %v628_v43 = vadd.f32 1.4214138, %v612_v41  ;;  %v783_v13 = vmul.f32 1.442695, %v753_v51  ;;  %v779_v37 = vmul.f32 1.442695, %v751_v6 }
 0x26e   :  { %v652_v14 = vmul.f32 %v1887_v28, %v636_v54  ;;  %v1923_v9 = vpop.eup %1277  ;;  %v1927_v34 = vmul.f32 %v878_v11, %v478_v45  ;;  %v643_v55 = vmul.f32 %v1724_v3, %v627_v52  ;;  %v476_v22 = vmul.f32 0.5, %v1768_v12 }
 0x26f   :  { %v1931_v61 = vpop.eup %1279  ;;  %v593_v59 = vmul.f32 1.0614054, %v1923_v9  ;;  %v644_v25 = vmul.f32 %v1902_v24, %v628_v43  ;;  %v754_v38 = vmul.f32 %v738_v44, %v514_v50  ;;  %v859_v11 = vsel %vm827_vm9, %v811_v48, %v843_v15 }
 0x270   :  { %v668_v42 = vadd.f32 -0.28449672, %v652_v14  ;;  %v904_v58 = vpack.c.bf16 %v1927_v34, %v1925_v47  ;;  %v591_v27 = vmul.f32 1.0614054, %v1931_v61  ;;  %vm828_vm10 = vcmp.ge.f32.partialorder %v1821_v32, 0.0 }
 0x271   :  { %v609_v45 = vadd.f32 -1.4531521, %v593_v59  ;;  %v659_v4 = vadd.f32 -0.28449672, %v643_v55  ;;  %v660_v14 = vadd.f32 -0.28449672, %v644_v25  ;;  %v1282_v51 = vpop.eup %1281  ;;  %1287 = vpow2.f32 %v783_v13 }
 0x272   :  { %v684_v56 = vmul.f32 %v1887_v28, %v668_v42  ;;  %v607_v10 = vadd.f32 -1.4531521, %v591_v27  ;;  %v736_v6 = vsub.f32 0.0, %v1912_v35  ;;  %1289 = vpow2.f32 %v779_v37 }
 0x273   :  { %v625_v54 = vmul.f32 %v1923_v9, %v609_v45  ;;  %v675_v50 = vmul.f32 %v1724_v3, %v659_v4  ;;  %v676_v48 = vmul.f32 %v1902_v24, %v660_v14  ;;  %v785_v44 = vmul.f32 1.442695, %v754_v38 }
 0x274   :  { %v700_v7 = vadd.f32 0.2548296, %v684_v56  ;;  %v623_v18 = vmul.f32 %v1931_v61, %v607_v10  ;;  %v1947_v41 = vpop.eup %1283  ;;  %v875_v27 = vadd.f32 1.0, %v859_v11  ;;  %v752_v37 = vmul.f32 %v736_v6, %v1912_v35 }
 0x275   :  { %v641_v60 = vadd.f32 1.4214138, %v625_v54  ;;  %v594_v59 = vmul.f32 1.0614054, %v1947_v41  ;;  %v691_v52 = vadd.f32 0.2548296, %v675_v50  ;;  %1291 = vpow2.f32 %v785_v44 }
 0x276   :  { %v716_v39 = vmul.f32 %v1887_v28, %v700_v7  ;;  %v639_v12 = vadd.f32 1.4214138, %v623_v18  ;;  %v692_v43 = vadd.f32 0.2548296, %v676_v48  ;;  %v781_v6 = vmul.f32 1.442695, %v752_v37 }
 0x277   :  { %v657_v42 = vmul.f32 %v1923_v9, %v641_v60  ;;  %v1954_v56 = vpop.eup %1285  ;;  %v610_v10 = vadd.f32 -1.4531521, %v594_v59  ;;  %v707_v7 = vmul.f32 %v1724_v3, %v691_v52  ;;  %vm833_vm13 = vcmp.ge.f32.partialorder %v1863_v2, 0.0 }
 0x278   :  { %v796_v15 = vmul.f32 %v1282_v51, %v716_v39  ;;  %v655_v28 = vmul.f32 %v1931_v61, %v639_v12  ;;  %v592_v25 = vmul.f32 1.0614054, %v1954_v56  ;;  %v708_v54 = vmul.f32 %v1902_v24, %v692_v43 }
 0x279   :  { %v673_v13 = vadd.f32 -0.28449672, %v657_v42  ;;  %v626_v18 = vmul.f32 %v1947_v41, %v610_v10  ;;  %v787_v35 = vmul.f32 %v1917_v40, %v707_v7  ;;  %v1971_v42 = vmul.f32 %v875_v27, %v1898_v53 }
 0x27a   :  { %v812_v45 = vsub.f32 1.0, %v796_v15  ;;  %v671_v55 = vadd.f32 -0.28449672, %v655_v28  ;;  %v608_v14 = vadd.f32 -1.4531521, %v592_v25  ;;  %v788_v51 = vmul.f32 %v1919_v49, %v708_v54 }
 0x27b   :  { %v689_v11 = vmul.f32 %v1923_v9, %v673_v13  ;;  %v642_v3 = vadd.f32 1.4214138, %v626_v18  ;;  %v803_v48 = vsub.f32 1.0, %v787_v35  ;;  %v1288_v15 = vpop.eup %1287  ;;  %1293 = vpow2.f32 %v781_v6 }
 0x27c   :  { %v844_v38 = vsub.f32 0.0, %v812_v45  ;;  %v687_v4 = vmul.f32 %v1931_v61, %v671_v55  ;;  %v624_v50 = vmul.f32 %v1954_v56, %v608_v14  ;;  %v804_v49 = vsub.f32 1.0, %v788_v51  ;;  %v1290_v44 = vpop.eup %1289 }
 0x27d   :  { %v705_v60 = vadd.f32 0.2548296, %v689_v11  ;;  %v658_v40 = vmul.f32 %v1947_v41, %v642_v3  ;;  %v835_v43 = vsub.f32 0.0, %v803_v48  ;;  %v467_v7 = vmul.f32 0.5, %v1628_v62 }
 0x27e   :  { %v860_v39 = vsel %vm828_vm10, %v812_v45, %v844_v38  ;;  %v703_v12 = vadd.f32 0.2548296, %v687_v4  ;;  %v640_v52 = vadd.f32 1.4214138, %v624_v50  ;;  %v836_v10 = vsub.f32 0.0, %v804_v49 }
 0x27f   :  { %v876_v24 = vadd.f32 1.0, %v860_v39  ;;  %v721_v59 = vmul.f32 %v1923_v9, %v705_v60  ;;  %v674_v13 = vadd.f32 -0.28449672, %v658_v40  ;;  %v851_v37 = vsel %vm819_vm11, %v803_v48, %v835_v43  ;;  %v1292_v18 = vpop.eup %1291 }
 0x280   :  { %v719_v28 = vmul.f32 %v1931_v61, %v703_v12  ;;  %v656_v9 = vmul.f32 %v1954_v56, %v640_v52  ;;  %v852_v61 = vsel %vm820_vm12, %v804_v49, %v836_v10  ;;  %v867_v25 = vadd.f32 1.0, %v851_v37 }
 0x281   :  { %v1975_v32 = vmul.f32 %v876_v24, %v476_v22  ;;  %v801_v45 = vmul.f32 %v1288_v15, %v721_v59  ;;  %v690_v22 = vmul.f32 %v1947_v41, %v674_v13  ;;  %v468_v54 = vmul.f32 0.5, %v1637_v63 }
 0x282   :  { %v799_v27 = vmul.f32 %v1290_v44, %v719_v28  ;;  %v672_v38 = vadd.f32 -0.28449672, %v656_v9  ;;  %v868_v11 = vadd.f32 1.0, %v852_v61  ;;  %v883_v29 = vmul.f32 %v867_v25, %v467_v7 }
 0x283   :  { %v903_v53 = vpack.c.bf16 %v1975_v32, %v1971_v42  ;;  %v817_v55 = vsub.f32 1.0, %v801_v45  ;;  %v706_v4 = vadd.f32 0.2548296, %v690_v22  ;;  %vm831_vm14 = vcmp.ge.f32.partialorder %v1866_v1, 0.0 }
 0x284   :  { %v815_v14 = vsub.f32 1.0, %v799_v27  ;;  %v688_v35 = vmul.f32 %v1954_v56, %v672_v38  ;;  %v884_v51 = vmul.f32 %v868_v11, %v468_v54  ;;  %vm834_vm15 = vcmp.ge.f32.partialorder %v1885_v20, 0.0 }
 0x285   :  { %v849_v39 = vsub.f32 0.0, %v817_v55  ;;  %v722_v60 = vmul.f32 %v1947_v41, %v706_v4  ;;  %v1294_v24 = vpop.eup %1293  ;;  %v481_v59 = vmul.f32 0.5, %v1826_v33  ;;  %v482_v30 = vmul.f32 0.5, %v1880_v23 }
 0x286   :  { %v704_v3 = vadd.f32 0.2548296, %v688_v35  ;;  %v899_v21 = vpack.c.bf16 %v884_v51, %v883_v29  ;;  %v847_v62 = vsub.f32 0.0, %v815_v14  ;;  %vm832_vm1 = vcmp.ge.f32.partialorder %v1906_v31, 0.0 }
 0x287   :  { %v802_v6 = vmul.f32 %v1292_v18, %v722_v60  ;;  %v865_v12 = vsel %vm833_vm13, %v817_v55, %v849_v39  ;;  %v479_v1 = vmul.f32 0.5, %v1836_v16  ;;  %v480_v49 = vmul.f32 0.5, %v1894_v46  ;;  %v1085_v16 = vld [vmem:[%s2092_s6] ss:$0 sm:$0xff] }
 0x288   :  { %v720_v63 = vmul.f32 %v1954_v56, %v704_v3  ;;  %1179 = vmatprep.mubr.msk.bf16.mxu1 %vm61_vm0, %v899_v21  ;;  %v881_v41 = vadd.f32 1.0, %v865_v12  ;;  %v863_v56 = vsel %vm831_vm14, %v815_v14, %v847_v62  ;;  %vm1051_vm2 = vcmask 48128  }
 0x289   :  { %v818_v50 = vsub.f32 1.0, %v802_v6  ;;  %1180 = vmatmul.mubr.msk.bf16.vlgmr.msra.gmra.mrb[0].mxu1 %vm61_vm0, %v900_v19  ;;  %v879_v40 = vadd.f32 1.0, %v863_v56 }
 0x28a   :  { %v800_v48 = vmul.f32 %v1294_v24, %v720_v63  ;;  %1183 = vmatprep.mubr.msk.bf16.mxu1 %vm61_vm0, %v901_v26  ;;  %v897_v0 = vmul.f32 %v881_v41, %v481_v59 }
 0x28b   :  { %v850_v2 = vsub.f32 0.0, %v818_v50  ;;  %v895_v23 = vmul.f32 %v879_v40, %v479_v1 }
 0x28c   :  { %v816_v15 = vsub.f32 1.0, %v800_v48 }
 0x28d   :  { %v866_v42 = vsel %vm834_vm15, %v818_v50, %v850_v2 }
 0x28e   :  { %v882_v8 = vadd.f32 1.0, %v866_v42  ;;  %v848_v19 = vsub.f32 0.0, %v816_v15 }
 0x290   :  { %v898_v5 = vmul.f32 %v882_v8, %v482_v30  ;;  %v864_v26 = vsel %vm832_vm1, %v816_v15, %v848_v19 }
 0x291   :  { %v880_v44 = vadd.f32 1.0, %v864_v26  ;;  %1184 = vmatmul.mubr.msk.bf16.gmra.mrb[4].mxu1 %vm61_vm0, %v902_v36 }
 0x292   :  { %v906_v33 = vpack.c.bf16 %v898_v5, %v897_v0  ;;  %1187 = vmatprep.mubr.msk.bf16.mxu1 %vm61_vm0, %v903_v53 }
 0x293   :  { %v896_v20 = vmul.f32 %v880_v44, %v480_v49 }
 0x295   :  { %v905_v32 = vpack.c.bf16 %v896_v20, %v895_v23 }
 0x299   :  { %1188 = vmatmul.mubr.msk.bf16.gmra.mrb[8].mxu1 %vm61_vm0, %v904_v58 }
 0x29a   :  { %1191 = vmatprep.mubr.msk.bf16.mxu1 %vm61_vm0, %v905_v32 }
 0x2a1   :  { %1192 = vmatmul.mubr.msk.bf16.gmra.mrb[12].mxu1 %vm61_vm0, %v906_v33 }
 0x35c   :  { %v1181_v57 = vpop.f32.mrb[0].mxu1 }
 0x35d   :  { %v997_v17 = vadd.f32 %v1181_v57, %v1085_v16  ;;  %v988_v36 = vpop.f32.mrb[1].mxu1 }
 0x35e   :  { %v989_v46 = vadd.f32 %v1085_v16, %v988_v36  ;;  %v1182_v31 = vpop.f32.mrb[2].mxu1 }
 0x35f   :  { %1054 = vst.msk [vmem:[%s2093_s7 + $0x10] sm:$0xff] %vm1051_vm2, %v997_v17  ;;  %v1000_v47 = vadd.f32 %v1182_v31, %v1085_v16  ;;  %v991_v34 = vpop.f32.mrb[3].mxu1 }
 0x360   :  { %1052 = vst.msk [vmem:[%s2093_s7] sm:$0xff] %vm1051_vm2, %v989_v46  ;;  %v992_v58 = vadd.f32 %v1085_v16, %v991_v34 }
 0x361   :  { %1055 = vst.msk [vmem:[%s2093_s7 + $0x18] sm:$0xff] %vm1051_vm2, %v1000_v47 }
 0x362   :  { %1053 = vst.msk [vmem:[%s2093_s7 + $0x8] sm:$0xff] %vm1051_vm2, %v992_v58 }
 0x364   :  { %v1185_v28 = vpop.f32.mrb[4].mxu1 }
 0x365   :  { %v1013_v52 = vadd.f32 %v1185_v28, %v1085_v16  ;;  %v1004_v43 = vpop.f32.mrb[5].mxu1 }
 0x366   :  { %v1005_v45 = vadd.f32 %v1085_v16, %v1004_v43  ;;  %v1186_v13 = vpop.f32.mrb[6].mxu1 }
 0x367   :  { %1058 = vst.msk [vmem:[%s2093_s7 + $0x30] sm:$0xff] %vm1051_vm2, %v1013_v52  ;;  %v1016_v10 = vadd.f32 %v1186_v13, %v1085_v16  ;;  %v1007_v53 = vpop.f32.mrb[7].mxu1 }
 0x368   :  { %1056 = vst.msk [vmem:[%s2093_s7 + $0x20] sm:$0xff] %vm1051_vm2, %v1005_v45  ;;  %v1008_v27 = vadd.f32 %v1085_v16, %v1007_v53 }
 0x369   :  { %1059 = vst.msk [vmem:[%s2093_s7 + $0x38] sm:$0xff] %vm1051_vm2, %v1016_v10 }
 0x36a   :  { %1057 = vst.msk [vmem:[%s2093_s7 + $0x28] sm:$0xff] %vm1051_vm2, %v1008_v27 }
 0x36c   :  { %v1189_v9 = vpop.f32.mrb[8].mxu1 }
 0x36d   :  { %v1029_v37 = vadd.f32 %v1189_v9, %v1085_v16  ;;  %v1020_v55 = vpop.f32.mrb[9].mxu1 }
 0x36e   :  { %v1021_v22 = vadd.f32 %v1085_v16, %v1020_v55  ;;  %v1190_v61 = vpop.f32.mrb[10].mxu1 }
 0x36f   :  { %1062 = vst.msk [vmem:[%s2093_s7 + $0x50] sm:$0xff] %vm1051_vm2, %v1029_v37  ;;  %v1032_v25 = vadd.f32 %v1190_v61, %v1085_v16  ;;  %v1023_v7 = vpop.f32.mrb[11].mxu1 }
 0x370   :  { %1060 = vst.msk [vmem:[%s2093_s7 + $0x40] sm:$0xff] %vm1051_vm2, %v1021_v22  ;;  %v1024_v54 = vadd.f32 %v1085_v16, %v1023_v7 }
 0x371   :  { %1063 = vst.msk [vmem:[%s2093_s7 + $0x58] sm:$0xff] %vm1051_vm2, %v1032_v25 }
 0x372   :  { %1061 = vst.msk [vmem:[%s2093_s7 + $0x48] sm:$0xff] %vm1051_vm2, %v1024_v54 }
 0x374   :  { %v1193_v38 = vpop.f32.mrb[12].mxu1 }
 0x375   :  { %v1045_v11 = vadd.f32 %v1193_v38, %v1085_v16  ;;  %v1036_v18 = vpop.f32.mrb[13].mxu1 }
 0x376   :  { %v1037_v4 = vadd.f32 %v1085_v16, %v1036_v18  ;;  %v1194_v14 = vpop.f32.mrb[14].mxu1 }
 0x377   :  { %1066 = vst.msk [vmem:[%s2093_s7 + $0x70] sm:$0xff] %vm1051_vm2, %v1045_v11  ;;  %v1048_v35 = vadd.f32 %v1194_v14, %v1085_v16  ;;  %v1039_v29 = vpop.f32.mrb[15].mxu1 }
 0x378   :  { %1064 = vst.msk [vmem:[%s2093_s7 + $0x60] sm:$0xff] %vm1051_vm2, %v1037_v4  ;;  %v1040_v51 = vadd.f32 %v1085_v16, %v1039_v29 }
 0x379   :  { %1067 = vst.msk [vmem:[%s2093_s7 + $0x78] sm:$0xff] %vm1051_vm2, %v1048_v35 }
 0x37a   :  { %1065 = vst.msk [vmem:[%s2093_s7 + $0x68] sm:$0xff] %vm1051_vm2, %v1040_v51 }

// kernel: _lambda_.14
= control target key start
LH: loop header
LB: loop body
LE: loop exit
PB: predicated region body
PF: predicated region fallthrough
CT: control target
= control target key end

     0   :  { %s1816_s9 = smov 0   ;;  %s2286_s0 = inlined_call_operand.vmem [shape: bf16[384,56], index: 0, kind: input, shape index: {}]   ;;  %s2287_s1 = inlined_call_operand.vmem [shape: bf16[56,256], index: 1, kind: input, shape index: {}]   ;;  %s2288_s2 = inlined_call_operand.vmem [shape: bf16[384,32], index: 2, kind: output, shape index: {}]  }
   0x1 LB: > { %s1296_s10 = sadd.s32 4294967295, %s1795_s9   ;;  %p1300_p0 = scmp.ge.s32.totalorder %s1795_s9, 1  ;;  %s1795_s9 = sphi %s1816_s9, %s12_s9  }
   0x2   : > { %p113_p1 = scmp.lt.s32.totalorder %s1795_s9, 3 }
   0x4   : > { %p114_p2 = pnand %p1300_p0, %p113_p1 }
   0x6   : > { %117 = sbr.rel (%p114_p2) target bundleno = 517 (0x205), region = 28 }
   0xd   : > { %v1766_v0 = vld [vmem:[%s2287_s1 + $0x4] ss:$8 sps:$4 sm:$0xff]   ;;  %v1768_v1 = vld [vmem:[%s2287_s1] ss:$8 sps:$4 sm:$0xff]   ;;  %v1797_v2 = vmov 0   ;;  %s135_s15 = smul.u32 24, %s1296_s10 }
   0xe   : > { %350 = vmatprep.mubr.bf16.mxu0 %v1797_v2  ;;  %410 = vmatprep.mubr.bf16.mxu1 %v1797_v2  ;;  %v1769_v3 = vld [vmem:[%s2287_s1 + $0x14] ss:$8 sps:$4 sm:$0xff]   ;;  %v1771_v4 = vld [vmem:[%s2287_s1 + $0x10] ss:$8 sps:$4 sm:$0xff]   ;;  %v1772_v5 = vld [vmem:[%s2287_s1 + $0x24] ss:$8 sps:$4 sm:$0xff]  }
   0xf   : > { %318 = vmatprep.subr.bf16.mxu0 %v1766_v0  ;;  %1386 = vmatprep.subr.bf16.mxu1 %v1766_v0  ;;  %p136_p3 = scmp.lt.s32.totalorder %s135_s15, 47  ;;  %v178_v6 = vld [vmem:[%s2287_s1 + $0x30] sm:$0xff]  ;;  %v1774_v7 = vld [vmem:[%s2287_s1 + $0x20] ss:$8 sps:$4 sm:$0xff]   ;;  %vm311_vm0 = vcmask 1043456   ;;  %vm274_vm1 = vcmask 457728  }
  0x10   : > { %319 = vmatpush1.bf16.msra.mxu0 %v1768_v1  ;;  %1390 = vmatpush1.bf16.msra.mxu1 %v1768_v1  ;;  %v1322_v8 = vcombine.high %v178_v6, %v178_v6  ;;  %v1321_v9 = vcombine.low %v178_v6, %v178_v6  ;;  %s1798_s30 = smov 96   ;;  %s1799_s3 = smov 64   ;;  %vm1215_vm2 = vcmask 257024  }
  0x11   : > { %320 = vmatprep.subr.bf16.mxu0 %v1769_v3  ;;  %1387 = vmatprep.subr.bf16.mxu1 %v1769_v3  ;;  %s2320_s15 = smov (!%p136_p3, %s135_s15), 47  ;;  %s1800_s4 = smov 32  }
  0x12   : > { %s1301_s26 = sshll.u32 %s2320_s15, 2  ;;  %v313_v10 = vsel %vm311_vm0, %v1321_v9, 0 }
  0x13   : > { %s1853_s29 = scalar_lea.vmem %s2286_s0, %s1301_s26  ;;  %s2185_s7 = scalar_lea.vmem %s2288_s2, %s1301_s26 }
  0x14   : > { %321 = vmatpush1.bf16.msra.mxu0 %v1771_v4  ;;  %1391 = vmatpush1.bf16.msra.mxu1 %v1771_v4  ;;  %v1777_v11 = vld [vmem:[%s1853_s29] sm:$0xff]   ;;  %v1778_v12 = vld [vmem:[%s1853_s29 + $0x30] sm:$0xff]   ;;  %v1779_v13 = vld [vmem:[%s1853_s29 + $0x38] sm:$0xff]  }
  0x15   : > { %322 = vmatprep.subr.bf16.mxu0 %v1772_v5  ;;  %1388 = vmatprep.subr.bf16.mxu1 %v1772_v5  ;;  %v1780_v14 = vld [vmem:[%s1853_s29 + $0x8] sm:$0xff]   ;;  %v1781_v15 = vld [vmem:[%s1853_s29 + $0x10] sm:$0xff]   ;;  %v1782_v16 = vld [vmem:[%s1853_s29 + $0x40] sm:$0xff]  }
  0x16   : > { %v1783_v17 = vld [vmem:[%s1853_s29 + $0x18] sm:$0xff]   ;;  %v1784_v18 = vld [vmem:[%s1853_s29 + $0x48] sm:$0xff]   ;;  %v1785_v19 = vld [vmem:[%s1853_s29 + $0x20] sm:$0xff]  }
  0x17   : > { %v1786_v20 = vld [vmem:[%s1853_s29 + $0x50] sm:$0xff]   ;;  %v1787_v21 = vld [vmem:[%s1853_s29 + $0x28] sm:$0xff]   ;;  %v1788_v22 = vld [vmem:[%s1853_s29 + $0x58] sm:$0xff]  }
  0x18   : > { %323 = vmatpush1.bf16.msra.mxu0 %v1774_v7  ;;  %1392 = vmatpush1.bf16.msra.mxu1 %v1774_v7 }
  0x19   : > { %1323 = vmatprep.subr.msk.bf16.mxu0 %vm311_vm0, %v1322_v8  ;;  %1389 = vmatprep.subr.msk.bf16.mxu1 %vm311_vm0, %v1322_v8 }
  0x1c   : > { %325 = vmatpush1.bf16.msra.mxu0 %v313_v10  ;;  %1393 = vmatpush1.bf16.msra.mxu1 %v313_v10 }
  0x1f   : > { %1324 = vmatmul.mubr.msk.bf16.vlgmr.msra.gmra.mrb[0].mxu0 %vm274_vm1, %v1777_v11  ;;  %1330 = vmatmul.mubr.msk.bf16.vlgmr.msra.gmra.mrb[0].mxu1 %vm274_vm1, %v1778_v12 }
  0x20   : > { %420 = vmatprep.mubr.bf16.mxu1 %v1797_v2  ;;  %360 = vmatprep.mubr.bf16.mxu0 %v1797_v2 }
  0x27   : > { %1331 = vmatmul.mubr.msk.bf16.gmra.mrb[4].mxu1 %vm274_vm1, %v1779_v13  ;;  %1325 = vmatmul.mubr.msk.bf16.gmra.mrb[4].mxu0 %vm274_vm1, %v1780_v14 }
  0x28   : > { %370 = vmatprep.mubr.bf16.mxu0 %v1797_v2  ;;  %430 = vmatprep.mubr.bf16.mxu1 %v1797_v2 }
  0x2f   : > { %1326 = vmatmul.mubr.msk.bf16.gmra.mrb[8].mxu0 %vm274_vm1, %v1781_v15  ;;  %1332 = vmatmul.mubr.msk.bf16.gmra.mrb[8].mxu1 %vm274_vm1, %v1782_v16 }
  0x30   : > { %380 = vmatprep.mubr.bf16.mxu0 %v1797_v2  ;;  %440 = vmatprep.mubr.bf16.mxu1 %v1797_v2 }
  0x37   : > { %1327 = vmatmul.mubr.msk.bf16.gmra.mrb[12].mxu0 %vm274_vm1, %v1783_v17  ;;  %1333 = vmatmul.mubr.msk.bf16.gmra.mrb[12].mxu1 %vm274_vm1, %v1784_v18 }
  0x38   : > { %390 = vmatprep.mubr.bf16.mxu0 %v1797_v2  ;;  %450 = vmatprep.mubr.bf16.mxu1 %v1797_v2 }
  0x3f   : > { %1328 = vmatmul.mubr.msk.bf16.gmra.mrb[16].mxu0 %vm274_vm1, %v1785_v19  ;;  %1334 = vmatmul.mubr.msk.bf16.gmra.mrb[16].mxu1 %vm274_vm1, %v1786_v20 }
  0x40   : > { %400 = vmatprep.mubr.bf16.mxu0 %v1797_v2  ;;  %460 = vmatprep.mubr.bf16.mxu1 %v1797_v2 }
  0x47   : > { %1329 = vmatmul.mubr.msk.bf16.gmra.mrb[20].mxu0 %vm274_vm1, %v1787_v21  ;;  %1335 = vmatmul.mubr.msk.bf16.gmra.mrb[20].mxu1 %vm274_vm1, %v1788_v22 }
  0xf2   : > { %v1879_v23 = vpop.f32.mrb[0].mxu0  ;;  %v1881_v24 = vpop.f32.mrb[0].mxu1 }
  0xf3   : > { %v1883_v25 = vpop.f32.mrb[1].mxu0  ;;  %v1885_v26 = vpop.f32.mrb[1].mxu1 }
  0xf4   : > { %v1887_v27 = vpop.f32.mrb[2].mxu0  ;;  %v1889_v28 = vpop.f32.mrb[2].mxu1 }
  0xf5   : > { %v1891_v29 = vpop.f32.mrb[3].mxu1  ;;  %v1893_v30 = vpop.f32.mrb[3].mxu0  ;;  %v1406_v31 = vpack.i.bf16 %v1887_v27, %v1879_v23  ;;  %v1411_v32 = vpack.i.bf16 %v1889_v28, %v1881_v24 }
  0xf6   : > { %v1901_v33 = vpack.i.bf16 %v1893_v30, %v1883_v25  ;;  %v1905_v34 = vpack.i.bf16 %v1891_v29, %v1885_v26 }
  0xf7   : > { %1407 = vrot.lane.b32.xlu0 %v1406_v31, %s1798_s30 }
  0xfa   : > { %v1908_v35 = vpop.f32.mrb[4].mxu1  ;;  %v1910_v36 = vpop.f32.mrb[4].mxu0 }
  0xfb   : > { %v1912_v37 = vpop.f32.mrb[5].mxu1  ;;  %1412 = vrot.lane.b32.xlu0 %v1411_v32, %s1798_s30  ;;  %v1915_v38 = vpop.f32.mrb[5].mxu0 }
  0xfc   : > { %v1917_v39 = vpop.f32.mrb[6].mxu1  ;;  %v1919_v40 = vpop.f32.mrb[6].mxu0 }
  0xfd   : > { %v1921_v41 = vpop.f32.mrb[7].mxu1  ;;  %v1923_v42 = vpop.f32.mrb[7].mxu0  ;;  %v1471_v43 = vpack.i.bf16 %v1917_v39, %v1908_v35  ;;  %v1929_v44 = vpack.i.bf16 %v1919_v40, %v1910_v36 }
  0xfe   : > { %v1933_v45 = vpack.i.bf16 %v1923_v42, %v1915_v38  ;;  %v1937_v46 = vpack.i.bf16 %v1921_v41, %v1912_v37 }
  0xff   : > { %1472 = vrot.lane.b32.xlu1 %v1471_v43, %s1798_s30  ;;  %1417 = vrot.lane.b32.xlu0 %v1406_v31, %s1799_s3 }
 0x102   : > { %v1941_v47 = vpop.f32.mrb[8].mxu0  ;;  %v1943_v48 = vpop.f32.mrb[8].mxu1 }
 0x103   : > { %1422 = vrot.lane.b32.xlu0 %v1411_v32, %s1799_s3  ;;  %1477 = vrot.lane.b32.xlu1 %v1929_v44, %s1799_s3  ;;  %v1948_v49 = vpop.f32.mrb[9].mxu0  ;;  %v1950_v50 = vpop.f32.mrb[9].mxu1 }
 0x104   : > { %v1952_v51 = vpop.f32.mrb[10].mxu0  ;;  %v1954_v52 = vpop.f32.mrb[10].mxu1 }
 0x105   : > { %v1956_v53 = vpop.f32.mrb[11].mxu0  ;;  %v1958_v54 = vpop.f32.mrb[11].mxu1  ;;  %v1962_v55 = vpack.i.bf16 %v1954_v52, %v1943_v48  ;;  %v1966_v56 = vpack.i.bf16 %v1952_v51, %v1941_v47 }
 0x106   : > { %v1970_v57 = vpack.i.bf16 %v1956_v53, %v1948_v49  ;;  %v1974_v58 = vpack.i.bf16 %v1958_v54, %v1950_v50 }
 0x107   : > { %1427 = vrot.lane.b32.xlu0 %v1406_v31, %s1800_s4  ;;  %1482 = vrot.lane.b32.xlu1 %v1471_v43, %s1799_s3 }
 0x10a   : > { %v1978_v59 = vpop.f32.mrb[12].mxu0  ;;  %v1980_v60 = vpop.f32.mrb[12].mxu1 }
 0x10b   : > { %1432 = vrot.lane.b32.xlu0 %v1411_v32, %s1800_s4  ;;  %1487 = vrot.lane.b32.xlu1 %v1929_v44, %s1800_s4  ;;  %v1985_v61 = vpop.f32.mrb[13].mxu0  ;;  %v1987_v62 = vpop.f32.mrb[13].mxu1 }
 0x10c   : > { %v1989_v63 = vpop.f32.mrb[14].mxu0  ;;  %v1991_v0 = vpop.f32.mrb[14].mxu1 }
 0x10d   : > { %v1993_v1 = vpop.f32.mrb[15].mxu0  ;;  %v1995_v2 = vpop.f32.mrb[15].mxu1  ;;  %v1586_v3 = vpack.i.bf16 %v1989_v63, %v1978_v59  ;;  %v1591_v4 = vpack.i.bf16 %v1991_v0, %v1980_v60 }
 0x10e   : > { %v1616_v5 = vpack.i.bf16 %v1993_v1, %v1985_v61  ;;  %v1621_v6 = vpack.i.bf16 %v1995_v2, %v1987_v62 }
 0x10f   : > { %1437 = vrot.lane.b32.xlu0 %v1901_v33, %s1798_s30  ;;  %1492 = vrot.lane.b32.xlu1 %v1471_v43, %s1800_s4 }
 0x112   : > { %v2008_v7 = vpop.f32.mrb[16].mxu0  ;;  %v2010_v8 = vpop.f32.mrb[16].mxu1 }
 0x113   : > { %2299 = vst [vmem:[#allocation2_spill] sm:$0xff] %v2010_v8  ;;  %1442 = vrot.lane.b32.xlu0 %v1905_v34, %s1798_s30  ;;  %1497 = vrot.lane.b32.xlu1 %v1933_v45, %s1798_s30  ;;  %v2016_v9 = vpop.f32.mrb[17].mxu0  ;;  %v2018_v10 = vpop.f32.mrb[17].mxu1 }
 0x114   : > { %2300 = vst [vmem:[#allocation3_spill] sm:$0xff] %v2016_v9  ;;  %2301 = vst [vmem:[#allocation4_spill] sm:$0xff] %v2018_v10  ;;  %v2020_v11 = vpop.f32.mrb[18].mxu0  ;;  %v2022_v12 = vpop.f32.mrb[18].mxu1 }
 0x115   : > { %v2024_v13 = vpop.f32.mrb[19].mxu0  ;;  %v2026_v14 = vpop.f32.mrb[19].mxu1  ;;  %v1646_v15 = vpack.i.bf16 %v2020_v11, %v2008_v7  ;;  %v1651_v16 = vpack.i.bf16 %v2022_v12, %v2010_v8 }
 0x116   : > { %2302 = vst [vmem:[#allocation5_spill] sm:$0xff] %v2024_v13  ;;  %2303 = vst [vmem:[#allocation6_spill] sm:$0xff] %v2026_v14  ;;  %v2034_v17 = vpack.i.bf16 %v2024_v13, %v2016_v9  ;;  %v2038_v18 = vpack.i.bf16 %v2026_v14, %v2018_v10 }
 0x117   : > { %1447 = vrot.lane.b32.xlu0 %v1901_v33, %s1799_s3  ;;  %1502 = vrot.lane.b32.xlu1 %v1937_v46, %s1798_s30 }
 0x11a   : > { %v2044_v19 = vpop.f32.mrb[20].mxu0  ;;  %v2046_v20 = vpop.f32.mrb[20].mxu1 }
 0x11b   : > { %2304 = vst [vmem:[#allocation7_spill] sm:$0xff] %v2046_v20  ;;  %1452 = vrot.lane.b32.xlu0 %v1905_v34, %s1799_s3  ;;  %1507 = vrot.lane.b32.xlu1 %v1933_v45, %s1799_s3  ;;  %v2052_v21 = vpop.f32.mrb[21].mxu0  ;;  %v2054_v22 = vpop.f32.mrb[21].mxu1 }
 0x11c   : > { %2305 = vst [vmem:[#allocation8_spill] sm:$0xff] %v2052_v21  ;;  %2306 = vst [vmem:[#allocation9_spill] sm:$0xff] %v2054_v22  ;;  %v2056_v31 = vpop.f32.mrb[22].mxu0  ;;  %v2058_v32 = vpop.f32.mrb[22].mxu1 }
 0x11d   : > { %v2060_v43 = vpop.f32.mrb[23].mxu0  ;;  %v2062_v14 = vpop.f32.mrb[23].mxu1  ;;  %v1701_v10 = vpack.i.bf16 %v2056_v31, %v2044_v19  ;;  %v1706_v13 = vpack.i.bf16 %v2058_v32, %v2046_v20 }
 0x11e   : > { %2307 = vst [vmem:[#allocation10_spill] sm:$0xff] %v2060_v43  ;;  %2308 = vst [vmem:[#allocation11_spill] sm:$0xff] %v2062_v14  ;;  %v2070_v9 = vpack.i.bf16 %v2060_v43, %v2052_v21  ;;  %v2074_v8 = vpack.i.bf16 %v2062_v14, %v2054_v22 }
 0x11f   : > { %1457 = vrot.lane.b32.xlu0 %v1901_v33, %s1800_s4  ;;  %1512 = vrot.lane.b32.xlu1 %v1937_v46, %s1799_s3 }
 0x123   : > { %1462 = vrot.lane.b32.xlu0 %v1905_v34, %s1800_s4  ;;  %1517 = vrot.lane.b32.xlu1 %v1933_v45, %s1800_s4 }
 0x127   : > { %1467 = vrot.lane.b32.xlu0 %v1929_v44, %s1798_s30  ;;  %1522 = vrot.lane.b32.xlu1 %v1937_v46, %s1800_s4 }
 0x12b   : > { %1532 = vrot.lane.b32.xlu0 %v1962_v55, %s1798_s30  ;;  %1527 = vrot.lane.b32.xlu1 %v1966_v56, %s1798_s30 }
 0x12f   : > { %1537 = vrot.lane.b32.xlu0 %v1966_v56, %s1799_s3  ;;  %1587 = vrot.lane.b32.xlu1 %v1586_v3, %s1798_s30 }
 0x133   : > { %1542 = vrot.lane.b32.xlu0 %v1962_v55, %s1799_s3  ;;  %1592 = vrot.lane.b32.xlu1 %v1591_v4, %s1798_s30 }
 0x137   : > { %1547 = vrot.lane.b32.xlu0 %v1966_v56, %s1800_s4  ;;  %1597 = vrot.lane.b32.xlu1 %v1586_v3, %s1799_s3 }
 0x13b   : > { %1552 = vrot.lane.b32.xlu0 %v1962_v55, %s1800_s4  ;;  %1602 = vrot.lane.b32.xlu1 %v1591_v4, %s1799_s3 }
 0x13f   : > { %1557 = vrot.lane.b32.xlu0 %v1970_v57, %s1798_s30  ;;  %1607 = vrot.lane.b32.xlu1 %v1586_v3, %s1800_s4 }
 0x143   : > { %1562 = vrot.lane.b32.xlu0 %v1974_v58, %s1798_s30  ;;  %1612 = vrot.lane.b32.xlu1 %v1591_v4, %s1800_s4 }
 0x147   : > { %1567 = vrot.lane.b32.xlu0 %v1970_v57, %s1799_s3  ;;  %1617 = vrot.lane.b32.xlu1 %v1616_v5, %s1798_s30 }
 0x14b   : > { %1572 = vrot.lane.b32.xlu0 %v1974_v58, %s1799_s3  ;;  %1622 = vrot.lane.b32.xlu1 %v1621_v6, %s1798_s30 }
 0x14f   : > { %1577 = vrot.lane.b32.xlu0 %v1970_v57, %s1800_s4  ;;  %1627 = vrot.lane.b32.xlu1 %v1616_v5, %s1799_s3 }
 0x153   : > { %1582 = vrot.lane.b32.xlu0 %v1974_v58, %s1800_s4  ;;  %1632 = vrot.lane.b32.xlu1 %v1621_v6, %s1799_s3 }
 0x157   : > { %1637 = vrot.lane.b32.xlu1 %v1616_v5, %s1800_s4  ;;  %1647 = vrot.lane.b32.xlu0 %v1646_v15, %s1798_s30 }
 0x15b   : > { %1642 = vrot.lane.b32.xlu1 %v1621_v6, %s1800_s4  ;;  %1652 = vrot.lane.b32.xlu0 %v1651_v16, %s1798_s30 }
 0x15f   : > { %1657 = vrot.lane.b32.xlu0 %v1646_v15, %s1799_s3  ;;  %1702 = vrot.lane.b32.xlu1 %v1701_v10, %s1798_s30 }
 0x163   : > { %1662 = vrot.lane.b32.xlu0 %v1651_v16, %s1799_s3  ;;  %1707 = vrot.lane.b32.xlu1 %v1706_v13, %s1798_s30 }
 0x167   : > { %1667 = vrot.lane.b32.xlu0 %v1646_v15, %s1800_s4  ;;  %1712 = vrot.lane.b32.xlu1 %v1701_v10, %s1799_s3 }
 0x169   : > { %v1408_v33 = vpop.permute.xlu0 %1407 }
 0x16a   : > { %v1410_v46 = vunpack.i.h.bf16 %v1408_v33  ;;  %v1409_v55 = vunpack.i.l.bf16 %v1408_v33 }
 0x16b   : > { %1672 = vrot.lane.b32.xlu0 %v1651_v16, %s1800_s4  ;;  %1717 = vrot.lane.b32.xlu1 %v1706_v13, %s1799_s3 }
 0x16c   : > { %v568_v6 = vmax.f32 %v1887_v27, %v1410_v46 }
 0x16d   : > { %v1413_v34 = vpop.permute.xlu0 %1412 }
 0x16e   : > { %v1415_v4 = vunpack.i.h.bf16 %v1413_v34  ;;  %v1414_v5 = vunpack.i.l.bf16 %v1413_v34 }
 0x16f   : > { %1677 = vrot.lane.b32.xlu0 %v2034_v17, %s1798_s30  ;;  %1722 = vrot.lane.b32.xlu1 %v1701_v10, %s1800_s4  ;;  %v567_v10 = vmax.f32 %v1879_v23, %v1409_v55 }
 0x170   : > { %v580_v34 = vmax.f32 %v1889_v28, %v1415_v4  ;;  %v579_v21 = vmax.f32 %v1881_v24, %v1414_v5 }
 0x171   : > { %v1473_v44 = vpop.permute.xlu1 %1472  ;;  %v1418_v45 = vpop.permute.xlu0 %1417 }
 0x172   : > { %v1420_v58 = vunpack.i.h.bf16 %v1418_v45  ;;  %v1419_v3 = vunpack.i.l.bf16 %v1418_v45  ;;  %v1475_v27 = vunpack.i.h.bf16 %v1473_v44  ;;  %v1474_v23 = vunpack.i.l.bf16 %v1473_v44 }
 0x173   : > { %1682 = vrot.lane.b32.xlu0 %v2038_v18, %s1798_s30  ;;  %1727 = vrot.lane.b32.xlu1 %v1706_v13, %s1800_s4 }
 0x174   : > { %v663_v14 = vmax.f32 %v567_v10, %v1419_v3  ;;  %v664_v22 = vmax.f32 %v568_v6, %v1420_v58 }
 0x175   : > { %v1423_v56 = vpop.permute.xlu0 %1422  ;;  %v2140_v57 = vpop.permute.xlu1 %1477 }
 0x176   : > { %v1425_v13 = vunpack.i.h.bf16 %v1423_v56  ;;  %v1424_v15 = vunpack.i.l.bf16 %v1423_v56 }
 0x177   : > { %1687 = vrot.lane.b32.xlu0 %v2034_v17, %s1799_s3  ;;  %1732 = vrot.lane.b32.xlu1 %v2070_v9, %s1798_s30 }
 0x178   : > { %v675_v56 = vmax.f32 %v579_v21, %v1424_v15  ;;  %v676_v20 = vmax.f32 %v580_v34, %v1425_v13  ;;  %v582_v21 = vmax.f32 %v1917_v39, %v1475_v27 }
 0x179   : > { %v1428_v16 = vpop.permute.xlu0 %1427  ;;  %v1483_v33 = vpop.permute.xlu1 %1482 }
 0x17a   : > { %v1430_v43 = vunpack.i.h.bf16 %v1428_v16  ;;  %v1429_v45 = vunpack.i.l.bf16 %v1428_v16  ;;  %v1485_v6 = vunpack.i.h.bf16 %v1483_v33  ;;  %v1484_v10 = vunpack.i.l.bf16 %v1483_v33 }
 0x17b   : > { %1692 = vrot.lane.b32.xlu0 %v2038_v18, %s1799_s3  ;;  %1737 = vrot.lane.b32.xlu1 %v2074_v8, %s1798_s30 }
 0x17c   : > { %v759_v46 = vmax.f32 %v663_v14, %v1429_v45  ;;  %v760_v55 = vmax.f32 %v664_v22, %v1430_v43  ;;  %v581_v22 = vmax.f32 %v1908_v35, %v1474_v23  ;;  %v678_v15 = vmax.f32 %v582_v21, %v1485_v6 }
 0x17d   : > { %v1433_v3 = vpop.permute.xlu0 %1432  ;;  %v2154_v58 = vpop.permute.xlu1 %1487 }
 0x17e   : > { %v1435_v28 = vunpack.i.h.bf16 %v1433_v3  ;;  %v1434_v4 = vunpack.i.l.bf16 %v1433_v3  ;;  %v783_v24 = vmax.f32 %v759_v46, %v1883_v25  ;;  %v784_v14 = vmax.f32 %v760_v55, %v1893_v30 }
 0x17f   : > { %1697 = vrot.lane.b32.xlu0 %v2034_v17, %s1800_s4  ;;  %1742 = vrot.lane.b32.xlu1 %v2070_v9, %s1799_s3  ;;  %v677_v16 = vmax.f32 %v581_v22, %v1484_v10 }
 0x180   : > { %v771_v43 = vmax.f32 %v675_v56, %v1434_v4  ;;  %v772_v44 = vmax.f32 %v676_v20, %v1435_v28 }
 0x181   : > { %v1438_v5 = vpop.permute.xlu0 %1437  ;;  %v1493_v13 = vpop.permute.xlu1 %1492 }
 0x182   : > { %v1495_v33 = vunpack.i.h.bf16 %v1493_v13  ;;  %v1494_v45 = vunpack.i.l.bf16 %v1493_v13  ;;  %v795_v25 = vmax.f32 %v771_v43, %v1885_v26  ;;  %v796_v30 = vmax.f32 %v772_v44, %v1891_v29 }
 0x183   : > { %1757 = vrot.lane.b32.xlu0 %v2038_v18, %s1800_s4  ;;  %1747 = vrot.lane.b32.xlu1 %v2074_v8, %s1799_s3  ;;  %v1440_v26 = vunpack.i.h.bf16 %v1438_v5  ;;  %v1439_v46 = vunpack.i.l.bf16 %v1438_v5 }
 0x184   : > { %v773_v39 = vmax.f32 %v677_v16, %v1494_v45  ;;  %v774_v35 = vmax.f32 %v678_v15, %v1495_v33 }
 0x185   : > { %v1443_v17 = vpop.permute.xlu0 %1442  ;;  %v2170_v20 = vpop.permute.xlu1 %1497  ;;  %v903_v28 = vmax.f32 %v783_v24, %v1439_v46 }
 0x186   : > { %v797_v34 = vmax.f32 %v773_v39, %v1912_v37  ;;  %v798_v27 = vmax.f32 %v774_v35, %v1921_v41  ;;  %v1445_v6 = vunpack.i.h.bf16 %v1443_v17  ;;  %v1444_v10 = vunpack.i.l.bf16 %v1443_v17 }
 0x187   : > { %1752 = vrot.lane.b32.xlu1 %v2070_v9, %s1800_s4  ;;  %v904_v9 = vmax.f32 %v784_v14, %v1440_v26 }
 0x188   : > { %v916_v13 = vmax.f32 %v796_v30, %v1445_v6  ;;  %v915_v5 = vmax.f32 %v795_v25, %v1444_v10 }
 0x189   : > { %v1448_v18 = vpop.permute.xlu0 %1447  ;;  %v1503_v23 = vpop.permute.xlu1 %1502 }
 0x18a   : > { %v1450_v56 = vunpack.i.h.bf16 %v1448_v18  ;;  %v1449_v3 = vunpack.i.l.bf16 %v1448_v18  ;;  %v1505_v33 = vunpack.i.h.bf16 %v1503_v23  ;;  %v1504_v45 = vunpack.i.l.bf16 %v1503_v23 }
 0x18b   : > { %1762 = vrot.lane.b32.xlu1 %v2074_v8, %s1800_s4 }
 0x18c   : > { %v999_v22 = vmax.f32 %v903_v28, %v1449_v3  ;;  %v1000_v43 = vmax.f32 %v904_v9, %v1450_v56  ;;  %v918_v56 = vmax.f32 %v798_v27, %v1505_v33  ;;  %v917_v3 = vmax.f32 %v797_v34, %v1504_v45 }
 0x18d   : > { %v1453_v29 = vpop.permute.xlu0 %1452  ;;  %v2178_v55 = vpop.permute.xlu1 %1507  ;;  %v1490_v33 = vunpack.i.h.bf16 %v2154_v58  ;;  %v1489_v45 = vunpack.i.l.bf16 %v2154_v58 }
 0x18e   : > { %v1455_v4 = vunpack.i.h.bf16 %v1453_v29  ;;  %v1454_v37 = vunpack.i.l.bf16 %v1453_v29 }
 0x190   : > { %v1011_v39 = vmax.f32 %v915_v5, %v1454_v37  ;;  %v1012_v35 = vmax.f32 %v916_v13, %v1455_v4 }
 0x191   : > { %v1458_v41 = vpop.permute.xlu0 %1457  ;;  %v1513_v21 = vpop.permute.xlu1 %1512 }
 0x192   : > { %v1460_v44 = vunpack.i.h.bf16 %v1458_v41  ;;  %v1459_v8 = vunpack.i.l.bf16 %v1458_v41  ;;  %v1515_v26 = vunpack.i.h.bf16 %v1513_v21  ;;  %v1514_v46 = vunpack.i.l.bf16 %v1513_v21 }
 0x194   : > { %v1095_v15 = vmax.f32 %v999_v22, %v1459_v8  ;;  %v1096_v16 = vmax.f32 %v1000_v43, %v1460_v44  ;;  %v1013_v41 = vmax.f32 %v917_v3, %v1514_v46  ;;  %v1014_v22 = vmax.f32 %v918_v56, %v1515_v26 }
 0x195   : > { %v1463_v24 = vpop.permute.xlu0 %1462  ;;  %v2187_v14 = vpop.permute.xlu1 %1517  ;;  %v1480_v44 = vunpack.i.h.bf16 %v2140_v57  ;;  %v1479_v8 = vunpack.i.l.bf16 %v2140_v57  ;;  %v1509_v56 = vunpack.i.l.bf16 %v2178_v55 }
 0x196   : > { %v1362_v30 = vpack.c.bf16 %v1095_v15, %v1095_v15  ;;  %v1363_v25 = vpack.c.bf16 %v1096_v16, %v1096_v16  ;;  %v1465_v17 = vunpack.i.h.bf16 %v1463_v24  ;;  %v1464_v18 = vunpack.i.l.bf16 %v1463_v24 }
 0x198   : > { %1216 = vst.msk [vmem:[%s2185_s7] sm:$0xf] %vm1215_vm2, %v1362_v30  ;;  %1217 = vst.msk [vmem:[%s2185_s7 + $0x4] sm:$0xf] %vm1215_vm2, %v1363_v25  ;;  %v1107_v23 = vmax.f32 %v1011_v39, %v1464_v18  ;;  %v1108_v29 = vmax.f32 %v1012_v35, %v1465_v17  ;;  %v1500_v17 = vunpack.i.h.bf16 %v2170_v20  ;;  %v1499_v18 = vunpack.i.l.bf16 %v2170_v20 }
 0x199   : > { %v1468_v6 = vpop.permute.xlu0 %1467  ;;  %v1523_v10 = vpop.permute.xlu1 %1522  ;;  %v1519_v20 = vunpack.i.l.bf16 %v2187_v14 }
 0x19a   : > { %v1374_v28 = vpack.c.bf16 %v1107_v23, %v1107_v23  ;;  %v1375_v9 = vpack.c.bf16 %v1108_v29, %v1108_v29  ;;  %v1470_v4 = vunpack.i.h.bf16 %v1468_v6  ;;  %v1469_v37 = vunpack.i.l.bf16 %v1468_v6 }
 0x19b   : > { %v1525_v43 = vunpack.i.h.bf16 %v1523_v10  ;;  %v1524_v21 = vunpack.i.l.bf16 %v1523_v10  ;;  %v1510_v29 = vunpack.i.h.bf16 %v2178_v55 }
 0x19c   : > { %1228 = vst.msk [vmem:[%s2185_s7 + $0x30] sm:$0xf] %vm1215_vm2, %v1374_v28  ;;  %1229 = vst.msk [vmem:[%s2185_s7 + $0x34] sm:$0xf] %vm1215_vm2, %v1375_v9  ;;  %v570_v34 = vmax.f32 %v1919_v40, %v1470_v4  ;;  %v569_v27 = vmax.f32 %v1910_v36, %v1469_v37  ;;  %v1520_v37 = vunpack.i.h.bf16 %v2187_v14 }
 0x19d   : > { %v1109_v13 = vmax.f32 %v1013_v41, %v1524_v21  ;;  %v1110_v5 = vmax.f32 %v1014_v22, %v1525_v43  ;;  %v1533_v15 = vpop.permute.xlu0 %1532  ;;  %v1528_v16 = vpop.permute.xlu1 %1527 }
 0x19e   : > { %v666_v39 = vmax.f32 %v570_v34, %v1480_v44  ;;  %v665_v57 = vmax.f32 %v569_v27, %v1479_v8  ;;  %v1530_v46 = vunpack.i.h.bf16 %v1528_v16  ;;  %v1529_v23 = vunpack.i.l.bf16 %v1528_v16 }
 0x19f   : > { %v1376_v35 = vpack.c.bf16 %v1109_v13, %v1109_v13  ;;  %v1377_v24 = vpack.c.bf16 %v1110_v5, %v1110_v5  ;;  %v1535_v55 = vunpack.i.h.bf16 %v1533_v15  ;;  %v1534_v44 = vunpack.i.l.bf16 %v1533_v15 }
 0x1a0   : > { %v762_v30 = vmax.f32 %v666_v39, %v1490_v33  ;;  %v761_v25 = vmax.f32 %v665_v57, %v1489_v45  ;;  %v571_v22 = vmax.f32 %v1941_v47, %v1529_v23 }
 0x1a1   : > { %1230 = vst.msk [vmem:[%s2185_s7 + $0x38] sm:$0xf] %vm1215_vm2, %v1376_v35  ;;  %1231 = vst.msk [vmem:[%s2185_s7 + $0x3c] sm:$0xf] %vm1215_vm2, %v1377_v24  ;;  %v1538_v40 = vpop.permute.xlu0 %1537  ;;  %v1588_v36 = vpop.permute.xlu1 %1587  ;;  %v584_v47 = vmax.f32 %v1954_v52, %v1535_v55  ;;  %v583_v15 = vmax.f32 %v1943_v48, %v1534_v44 }
 0x1a2   : > { %v785_v26 = vmax.f32 %v761_v25, %v1915_v38  ;;  %v786_v58 = vmax.f32 %v762_v30, %v1923_v42  ;;  %v1540_v10 = vunpack.i.h.bf16 %v1538_v40  ;;  %v1539_v28 = vunpack.i.l.bf16 %v1538_v40 }
 0x1a3   : > { %v572_v42 = vmax.f32 %v1952_v51, %v1530_v46  ;;  %v1590_v57 = vunpack.i.h.bf16 %v1588_v36  ;;  %v1589_v51 = vunpack.i.l.bf16 %v1588_v36 }
 0x1a4   : > { %v905_v3 = vmax.f32 %v785_v26, %v1499_v18  ;;  %v906_v6 = vmax.f32 %v786_v58, %v1500_v17  ;;  %v667_v8 = vmax.f32 %v571_v22, %v1539_v28 }
 0x1a5   : > { %v1543_v9 = vpop.permute.xlu0 %1542  ;;  %v1593_v4 = vpop.permute.xlu1 %1592  ;;  %v668_v34 = vmax.f32 %v572_v42, %v1540_v10  ;;  %v574_v36 = vmax.f32 %v1989_v63, %v1590_v57  ;;  %v573_v23 = vmax.f32 %v1978_v59, %v1589_v51 }
 0x1a6   : > { %v1001_v41 = vmax.f32 %v905_v3, %v1509_v56  ;;  %v1002_v38 = vmax.f32 %v906_v6, %v1510_v29  ;;  %v1545_v27 = vunpack.i.h.bf16 %v1543_v9  ;;  %v1544_v13 = vunpack.i.l.bf16 %v1543_v9 }
 0x1a7   : > { %v1595_v56 = vunpack.i.h.bf16 %v1593_v4  ;;  %v1594_v48 = vunpack.i.l.bf16 %v1593_v4 }
 0x1a8   : > { %v1097_v43 = vmax.f32 %v1001_v41, %v1519_v20  ;;  %v1098_v21 = vmax.f32 %v1002_v38, %v1520_v37  ;;  %v680_v18 = vmax.f32 %v584_v47, %v1545_v27  ;;  %v679_v26 = vmax.f32 %v583_v15, %v1544_v13 }
 0x1a9   : > { %v1548_v5 = vpop.permute.xlu0 %1547  ;;  %v1598_v16 = vpop.permute.xlu1 %1597 }
 0x1aa   : > { %v1364_v33 = vpack.c.bf16 %v1097_v43, %v1097_v43  ;;  %v1365_v14 = vpack.c.bf16 %v1098_v21, %v1098_v21  ;;  %v1550_v45 = vunpack.i.h.bf16 %v1548_v5  ;;  %v1549_v39 = vunpack.i.l.bf16 %v1548_v5 }
 0x1ab   : > { %v1600_v30 = vunpack.i.h.bf16 %v1598_v16  ;;  %v1599_v25 = vunpack.i.l.bf16 %v1598_v16 }
 0x1ac   : > { %1218 = vst.msk [vmem:[%s2185_s7 + $0x8] sm:$0xf] %vm1215_vm2, %v1364_v33  ;;  %1219 = vst.msk [vmem:[%s2185_s7 + $0xc] sm:$0xf] %vm1215_vm2, %v1365_v14  ;;  %v763_v35 = vmax.f32 %v667_v8, %v1549_v39  ;;  %v764_v24 = vmax.f32 %v668_v34, %v1550_v45 }
 0x1ad   : > { %v1553_v40 = vpop.permute.xlu0 %1552  ;;  %v1603_v17 = vpop.permute.xlu1 %1602  ;;  %v669_v10 = vmax.f32 %v573_v23, %v1599_v25  ;;  %v670_v28 = vmax.f32 %v574_v36, %v1600_v30 }
 0x1ae   : > { %v1555_v58 = vunpack.i.h.bf16 %v1553_v40  ;;  %v1554_v46 = vunpack.i.l.bf16 %v1553_v40  ;;  %v787_v29 = vmax.f32 %v763_v35, %v1948_v49  ;;  %v788_v52 = vmax.f32 %v764_v24, %v1956_v53 }
 0x1af   : > { %v1605_v20 = vunpack.i.h.bf16 %v1603_v17  ;;  %v1604_v41 = vunpack.i.l.bf16 %v1603_v17  ;;  %v586_v49 = vmax.f32 %v1991_v0, %v1595_v56  ;;  %v585_v53 = vmax.f32 %v1980_v60, %v1594_v48 }
 0x1b0   : > { %v775_v3 = vmax.f32 %v679_v26, %v1554_v46  ;;  %v776_v6 = vmax.f32 %v680_v18, %v1555_v58 }
 0x1b1   : > { %v1558_v9 = vpop.permute.xlu0 %1557  ;;  %v1608_v37 = vpop.permute.xlu1 %1607  ;;  %v681_v55 = vmax.f32 %v585_v53, %v1604_v41  ;;  %v682_v44 = vmax.f32 %v586_v49, %v1605_v20 }
 0x1b2   : > { %v1610_v38 = vunpack.i.h.bf16 %v1608_v37  ;;  %v1609_v42 = vunpack.i.l.bf16 %v1608_v37  ;;  %v799_v63 = vmax.f32 %v775_v3, %v1950_v50  ;;  %v800_v59 = vmax.f32 %v776_v6, %v1958_v54 }
 0x1b3   : > { %v1560_v33 = vunpack.i.h.bf16 %v1558_v9  ;;  %v1559_v14 = vunpack.i.l.bf16 %v1558_v9 }
 0x1b4   : > { %v765_v22 = vmax.f32 %v669_v10, %v1609_v42  ;;  %v766_v4 = vmax.f32 %v670_v28, %v1610_v38 }
 0x1b5   : > { %v1563_v43 = vpop.permute.xlu0 %1562  ;;  %v1613_v21 = vpop.permute.xlu1 %1612  ;;  %v907_v35 = vmax.f32 %v787_v29, %v1559_v14 }
 0x1b6   : > { %v1615_v8 = vunpack.i.h.bf16 %v1613_v21  ;;  %v1614_v34 = vunpack.i.l.bf16 %v1613_v21  ;;  %v789_v27 = vmax.f32 %v765_v22, %v1985_v61  ;;  %v790_v13 = vmax.f32 %v766_v4, %v1993_v1 }
 0x1b7   : > { %v1565_v47 = vunpack.i.h.bf16 %v1563_v43  ;;  %v1564_v15 = vunpack.i.l.bf16 %v1563_v43  ;;  %v908_v61 = vmax.f32 %v788_v52, %v1560_v33 }
 0x1b8   : > { %v777_v5 = vmax.f32 %v681_v55, %v1614_v34  ;;  %v778_v50 = vmax.f32 %v682_v44, %v1615_v8 }
 0x1b9   : > { %v1568_v16 = vpop.permute.xlu0 %1567  ;;  %v1618_v54 = vpop.permute.xlu1 %1617  ;;  %v920_v26 = vmax.f32 %v800_v59, %v1565_v47 }
 0x1ba   : > { %v801_v0 = vmax.f32 %v777_v5, %v1987_v62  ;;  %v802_v60 = vmax.f32 %v778_v50, %v1995_v2  ;;  %v1570_v57 = vunpack.i.h.bf16 %v1568_v16  ;;  %v1569_v51 = vunpack.i.l.bf16 %v1568_v16 }
 0x1bb   : > { %v919_v2 = vmax.f32 %v799_v63, %v1564_v15  ;;  %v1620_v58 = vunpack.i.h.bf16 %v1618_v54  ;;  %v1619_v46 = vunpack.i.l.bf16 %v1618_v54 }
 0x1bc   : > { %v1003_v40 = vmax.f32 %v907_v35, %v1569_v51  ;;  %v1004_v17 = vmax.f32 %v908_v61, %v1570_v57 }
 0x1bd   : > { %v1573_v45 = vpop.permute.xlu0 %1572  ;;  %v1623_v39 = vpop.permute.xlu1 %1622  ;;  %v909_v20 = vmax.f32 %v789_v27, %v1619_v46  ;;  %v910_v41 = vmax.f32 %v790_v13, %v1620_v58 }
 0x1be   : > { %v1575_v24 = vunpack.i.h.bf16 %v1573_v45  ;;  %v1574_v1 = vunpack.i.l.bf16 %v1573_v45  ;;  %v1625_v38 = vunpack.i.h.bf16 %v1623_v39  ;;  %v1624_v42 = vunpack.i.l.bf16 %v1623_v39 }
 0x1c0   : > { %v1015_v56 = vmax.f32 %v919_v2, %v1574_v1  ;;  %v1016_v48 = vmax.f32 %v920_v26, %v1575_v24  ;;  %v922_v27 = vmax.f32 %v802_v60, %v1625_v38  ;;  %v921_v13 = vmax.f32 %v801_v0, %v1624_v42 }
 0x1c1   : > { %v1578_v30 = vpop.permute.xlu0 %1577  ;;  %v1628_v25 = vpop.permute.xlu1 %1627 }
 0x1c2   : > { %v1580_v18 = vunpack.i.h.bf16 %v1578_v30  ;;  %v1579_v62 = vunpack.i.l.bf16 %v1578_v30  ;;  %v1630_v29 = vunpack.i.h.bf16 %v1628_v25  ;;  %v1629_v52 = vunpack.i.l.bf16 %v1628_v25 }
 0x1c4   : > { %v1099_v36 = vmax.f32 %v1003_v40, %v1579_v62  ;;  %v1100_v23 = vmax.f32 %v1004_v17, %v1580_v18  ;;  %v1005_v49 = vmax.f32 %v909_v20, %v1629_v52  ;;  %v1006_v53 = vmax.f32 %v910_v41, %v1630_v29 }
 0x1c5   : > { %v1583_v3 = vpop.permute.xlu0 %1582  ;;  %v1633_v6 = vpop.permute.xlu1 %1632 }
 0x1c6   : > { %v1366_v10 = vpack.c.bf16 %v1099_v36, %v1099_v36  ;;  %v1367_v28 = vpack.c.bf16 %v1100_v23, %v1100_v23  ;;  %v1585_v9 = vunpack.i.h.bf16 %v1583_v3  ;;  %v1584_v37 = vunpack.i.l.bf16 %v1583_v3 }
 0x1c7   : > { %v1635_v22 = vunpack.i.h.bf16 %v1633_v6  ;;  %v1634_v4 = vunpack.i.l.bf16 %v1633_v6 }
 0x1c8   : > { %1220 = vst.msk [vmem:[%s2185_s7 + $0x10] sm:$0xf] %vm1215_vm2, %v1366_v10  ;;  %1221 = vst.msk [vmem:[%s2185_s7 + $0x14] sm:$0xf] %vm1215_vm2, %v1367_v28  ;;  %v1111_v63 = vmax.f32 %v1015_v56, %v1584_v37  ;;  %v1112_v59 = vmax.f32 %v1016_v48, %v1585_v9  ;;  %v2309_v28 = vld [vmem:[#allocation2_spill] sm:$0xff] }
 0x1c9   : > { %v1638_v43 = vpop.permute.xlu1 %1637  ;;  %v1648_v21 = vpop.permute.xlu0 %1647  ;;  %v1017_v16 = vmax.f32 %v921_v13, %v1634_v4  ;;  %v1018_v54 = vmax.f32 %v922_v27, %v1635_v22  ;;  %v2310_v4 = vld [vmem:[#allocation3_spill] sm:$0xff] }
 0x1ca   : > { %v1378_v55 = vpack.c.bf16 %v1111_v63, %v1111_v63  ;;  %v1379_v44 = vpack.c.bf16 %v1112_v59, %v1112_v59  ;;  %v1640_v8 = vunpack.i.h.bf16 %v1638_v43  ;;  %v1639_v34 = vunpack.i.l.bf16 %v1638_v43 }
 0x1cb   : > { %v1650_v24 = vunpack.i.h.bf16 %v1648_v21  ;;  %v1649_v1 = vunpack.i.l.bf16 %v1648_v21  ;;  %v2311_v21 = vld [vmem:[#allocation5_spill] sm:$0xff] }
 0x1cc   : > { %1232 = vst.msk [vmem:[%s2185_s7 + $0x40] sm:$0xf] %vm1215_vm2, %v1378_v55  ;;  %1233 = vst.msk [vmem:[%s2185_s7 + $0x44] sm:$0xf] %vm1215_vm2, %v1379_v44  ;;  %v1101_v5 = vmax.f32 %v1005_v49, %v1639_v34  ;;  %v1102_v50 = vmax.f32 %v1006_v53, %v1640_v8 }
 0x1cd   : > { %v1643_v33 = vpop.permute.xlu1 %1642  ;;  %v1653_v14 = vpop.permute.xlu0 %1652  ;;  %v576_v18 = vmax.f32 %v2020_v11, %v1650_v24  ;;  %v575_v62 = vmax.f32 %v2008_v7, %v1649_v1 }
 0x1ce   : > { %v1368_v45 = vpack.c.bf16 %v1101_v5, %v1101_v5  ;;  %v1369_v39 = vpack.c.bf16 %v1102_v50, %v1102_v50  ;;  %v1645_v57 = vunpack.i.h.bf16 %v1643_v33  ;;  %v1644_v51 = vunpack.i.l.bf16 %v1643_v33 }
 0x1cf   : > { %v1655_v26 = vunpack.i.h.bf16 %v1653_v14  ;;  %v1654_v2 = vunpack.i.l.bf16 %v1653_v14 }
 0x1d0   : > { %1222 = vst.msk [vmem:[%s2185_s7 + $0x18] sm:$0xf] %vm1215_vm2, %v1368_v45  ;;  %1223 = vst.msk [vmem:[%s2185_s7 + $0x1c] sm:$0xf] %vm1215_vm2, %v1369_v39  ;;  %v1113_v0 = vmax.f32 %v1017_v16, %v1644_v51  ;;  %v1114_v60 = vmax.f32 %v1018_v54, %v1645_v57  ;;  %v2312_v45 = vld [vmem:[#allocation4_spill] sm:$0xff]  ;;  %v2313_v39 = vld [vmem:[#allocation6_spill] sm:$0xff] }
 0x1d1   : > { %v1658_v47 = vpop.permute.xlu0 %1657  ;;  %v1703_v15 = vpop.permute.xlu1 %1702  ;;  %v588_v10 = vmax.f32 %v2022_v12, %v1655_v26  ;;  %v587_v9 = vmax.f32 %v2309_v28, %v1654_v2  ;;  %v2314_v51 = vld [vmem:[#allocation7_spill] sm:$0xff] }
 0x1d2   : > { %v1380_v35 = vpack.c.bf16 %v1113_v0, %v1113_v0  ;;  %v1381_v61 = vpack.c.bf16 %v1114_v60, %v1114_v60  ;;  %v1660_v30 = vunpack.i.h.bf16 %v1658_v47  ;;  %v1659_v25 = vunpack.i.l.bf16 %v1658_v47 }
 0x1d3   : > { %v1705_v3 = vunpack.i.h.bf16 %v1703_v15  ;;  %v1704_v6 = vunpack.i.l.bf16 %v1703_v15 }
 0x1d4   : > { %1234 = vst.msk [vmem:[%s2185_s7 + $0x48] sm:$0xf] %vm1215_vm2, %v1380_v35  ;;  %1235 = vst.msk [vmem:[%s2185_s7 + $0x4c] sm:$0xf] %vm1215_vm2, %v1381_v61  ;;  %v671_v58 = vmax.f32 %v575_v62, %v1659_v25  ;;  %v672_v46 = vmax.f32 %v576_v18, %v1660_v30  ;;  %v2315_v25 = vld [vmem:[#allocation8_spill] sm:$0xff] }
 0x1d5   : > { %v1663_v40 = vpop.permute.xlu0 %1662  ;;  %v1708_v17 = vpop.permute.xlu1 %1707  ;;  %v578_v53 = vmax.f32 %v2056_v31, %v1705_v3  ;;  %v577_v22 = vmax.f32 %v2044_v19, %v1704_v6 }
 0x1d6   : > { %v1665_v56 = vunpack.i.h.bf16 %v1663_v40  ;;  %v1664_v48 = vunpack.i.l.bf16 %v1663_v40  ;;  %v1710_v55 = vunpack.i.h.bf16 %v1708_v17  ;;  %v1709_v44 = vunpack.i.l.bf16 %v1708_v17  ;;  %v2316_v17 = vld [vmem:[#allocation10_spill] sm:$0xff] }
 0x1d8   : > { %v683_v42 = vmax.f32 %v587_v9, %v1664_v48  ;;  %v684_v63 = vmax.f32 %v588_v10, %v1665_v56  ;;  %v590_v57 = vmax.f32 %v2058_v32, %v1710_v55  ;;  %v589_v0 = vmax.f32 %v2314_v51, %v1709_v44 }
 0x1d9   : > { %v1668_v36 = vpop.permute.xlu0 %1667  ;;  %v1713_v23 = vpop.permute.xlu1 %1712 }
 0x1da   : > { %v1670_v29 = vunpack.i.h.bf16 %v1668_v36  ;;  %v1669_v52 = vunpack.i.l.bf16 %v1668_v36  ;;  %v1715_v20 = vunpack.i.h.bf16 %v1713_v23  ;;  %v1714_v7 = vunpack.i.l.bf16 %v1713_v23  ;;  %v2318_v36 = vld [vmem:[#allocation11_spill] sm:$0xff] }
 0x1dc   : > { %v767_v37 = vmax.f32 %v671_v58, %v1669_v52  ;;  %v768_v11 = vmax.f32 %v672_v46, %v1670_v29  ;;  %v673_v27 = vmax.f32 %v577_v22, %v1714_v7  ;;  %v674_v13 = vmax.f32 %v578_v53, %v1715_v20  ;;  %v2317_v46 = vld [vmem:[#allocation9_spill] sm:$0xff] }
 0x1dd   : > { %v1673_v41 = vpop.permute.xlu0 %1672  ;;  %v1718_v38 = vpop.permute.xlu1 %1717 }
 0x1de   : > { %v1675_v59 = vunpack.i.h.bf16 %v1673_v41  ;;  %v1674_v49 = vunpack.i.l.bf16 %v1673_v41  ;;  %v791_v43 = vmax.f32 %v767_v37, %v2310_v4  ;;  %v792_v12 = vmax.f32 %v768_v11, %v2311_v21 }
 0x1df   : > { %v1720_v16 = vunpack.i.h.bf16 %v1718_v38  ;;  %v1719_v54 = vunpack.i.l.bf16 %v1718_v38 }
 0x1e0   : > { %v779_v8 = vmax.f32 %v683_v42, %v1674_v49  ;;  %v780_v34 = vmax.f32 %v684_v63, %v1675_v59 }
 0x1e1   : > { %v1678_v5 = vpop.permute.xlu0 %1677  ;;  %v1723_v50 = vpop.permute.xlu1 %1722  ;;  %v685_v61 = vmax.f32 %v589_v0, %v1719_v54  ;;  %v686_v24 = vmax.f32 %v590_v57, %v1720_v16 }
 0x1e2   : > { %v1725_v33 = vunpack.i.h.bf16 %v1723_v50  ;;  %v1724_v14 = vunpack.i.l.bf16 %v1723_v50  ;;  %v803_v31 = vmax.f32 %v779_v8, %v2312_v45  ;;  %v804_v19 = vmax.f32 %v780_v34, %v2313_v39 }
 0x1e3   : > { %v1680_v56 = vunpack.i.h.bf16 %v1678_v5  ;;  %v1679_v48 = vunpack.i.l.bf16 %v1678_v5 }
 0x1e4   : > { %v769_v60 = vmax.f32 %v673_v27, %v1724_v14  ;;  %v770_v47 = vmax.f32 %v674_v13, %v1725_v33 }
 0x1e5   : > { %v1683_v15 = vpop.permute.xlu0 %1682  ;;  %v1728_v35 = vpop.permute.xlu1 %1727  ;;  %v911_v9 = vmax.f32 %v791_v43, %v1679_v48  ;;  %v912_v37 = vmax.f32 %v792_v12, %v1680_v56 }
 0x1e6   : > { %v1730_v1 = vunpack.i.h.bf16 %v1728_v35  ;;  %v1729_v30 = vunpack.i.l.bf16 %v1728_v35  ;;  %v793_v40 = vmax.f32 %v769_v60, %v2315_v25  ;;  %v794_v18 = vmax.f32 %v770_v47, %v2316_v17 }
 0x1e7   : > { %v1685_v10 = vunpack.i.h.bf16 %v1683_v15  ;;  %v1684_v28 = vunpack.i.l.bf16 %v1683_v15 }
 0x1e8   : > { %v781_v62 = vmax.f32 %v685_v61, %v1729_v30  ;;  %v782_v26 = vmax.f32 %v686_v24, %v1730_v1 }
 0x1e9   : > { %v1688_v2 = vpop.permute.xlu0 %1687  ;;  %v1733_v58 = vpop.permute.xlu1 %1732  ;;  %v924_v49 = vmax.f32 %v804_v19, %v1685_v10  ;;  %v923_v53 = vmax.f32 %v803_v31, %v1684_v28 }
 0x1ea   : > { %v805_v32 = vmax.f32 %v781_v62, %v2317_v46  ;;  %v806_v23 = vmax.f32 %v782_v26, %v2318_v36  ;;  %v1690_v3 = vunpack.i.h.bf16 %v1688_v2  ;;  %v1689_v6 = vunpack.i.l.bf16 %v1688_v2 }
 0x1eb   : > { %v1735_v22 = vunpack.i.h.bf16 %v1733_v58  ;;  %v1734_v4 = vunpack.i.l.bf16 %v1733_v58 }
 0x1ec   : > { %v1007_v38 = vmax.f32 %v911_v9, %v1689_v6  ;;  %v1008_v42 = vmax.f32 %v912_v37, %v1690_v3 }
 0x1ed   : > { %v1693_v29 = vpop.permute.xlu0 %1692  ;;  %v1738_v52 = vpop.permute.xlu1 %1737  ;;  %v913_v54 = vmax.f32 %v793_v40, %v1734_v4  ;;  %v914_v33 = vmax.f32 %v794_v18, %v1735_v22 }
 0x1ee   : > { %v1695_v11 = vunpack.i.h.bf16 %v1693_v29  ;;  %v1694_v20 = vunpack.i.l.bf16 %v1693_v29  ;;  %v1740_v14 = vunpack.i.h.bf16 %v1738_v52  ;;  %v1739_v45 = vunpack.i.l.bf16 %v1738_v52 }
 0x1f0   : > { %v1019_v44 = vmax.f32 %v923_v53, %v1694_v20  ;;  %v1020_v8 = vmax.f32 %v924_v49, %v1695_v11  ;;  %v926_v24 = vmax.f32 %v806_v23, %v1740_v14  ;;  %v925_v1 = vmax.f32 %v805_v32, %v1739_v45 }
 0x1f1   : > { %v1698_v7 = vpop.permute.xlu0 %1697  ;;  %v1743_v41 = vpop.permute.xlu1 %1742 }
 0x1f2   : > { %v1700_v63 = vunpack.i.h.bf16 %v1698_v7  ;;  %v1699_v59 = vunpack.i.l.bf16 %v1698_v7  ;;  %v1745_v43 = vunpack.i.h.bf16 %v1743_v41  ;;  %v1744_v12 = vunpack.i.l.bf16 %v1743_v41 }
 0x1f4   : > { %v1103_v21 = vmax.f32 %v1007_v38, %v1699_v59  ;;  %v1104_v55 = vmax.f32 %v1008_v42, %v1700_v63  ;;  %v1009_v19 = vmax.f32 %v913_v54, %v1744_v12  ;;  %v1010_v57 = vmax.f32 %v914_v33, %v1745_v43 }
 0x1f5   : > { %v1758_v34 = vpop.permute.xlu0 %1757  ;;  %v1748_v27 = vpop.permute.xlu1 %1747 }
 0x1f6   : > { %v1370_v13 = vpack.c.bf16 %v1103_v21, %v1103_v21  ;;  %v1371_v5 = vpack.c.bf16 %v1104_v55, %v1104_v55  ;;  %v1760_v50 = vunpack.i.h.bf16 %v1758_v34  ;;  %v1759_v16 = vunpack.i.l.bf16 %v1758_v34 }
 0x1f7   : > { %v1750_v51 = vunpack.i.h.bf16 %v1748_v27  ;;  %v1749_v0 = vunpack.i.l.bf16 %v1748_v27 }
 0x1f8   : > { %1224 = vst.msk [vmem:[%s2185_s7 + $0x20] sm:$0xf] %vm1215_vm2, %v1370_v13  ;;  %1225 = vst.msk [vmem:[%s2185_s7 + $0x24] sm:$0xf] %vm1215_vm2, %v1371_v5  ;;  %v1115_v31 = vmax.f32 %v1019_v44, %v1759_v16  ;;  %v1116_v39 = vmax.f32 %v1020_v8, %v1760_v50 }
 0x1f9   : > { %v1753_v60 = vpop.permute.xlu1 %1752  ;;  %v1021_v40 = vmax.f32 %v925_v1, %v1749_v0  ;;  %v1022_v17 = vmax.f32 %v926_v24, %v1750_v51 }
 0x1fa   : > { %v1382_v47 = vpack.c.bf16 %v1115_v31, %v1115_v31  ;;  %v1383_v15 = vpack.c.bf16 %v1116_v39, %v1116_v39  ;;  %v1755_v35 = vunpack.i.h.bf16 %v1753_v60  ;;  %v1754_v61 = vunpack.i.l.bf16 %v1753_v60 }
 0x1fc   : > { %1236 = vst.msk [vmem:[%s2185_s7 + $0x50] sm:$0xf] %vm1215_vm2, %v1382_v47  ;;  %1237 = vst.msk [vmem:[%s2185_s7 + $0x54] sm:$0xf] %vm1215_vm2, %v1383_v15  ;;  %v1105_v30 = vmax.f32 %v1009_v19, %v1754_v61  ;;  %v1106_v25 = vmax.f32 %v1010_v57, %v1755_v35 }
 0x1fd   : > { %v1763_v18 = vpop.permute.xlu1 %1762 }
 0x1fe   : > { %v1372_v62 = vpack.c.bf16 %v1105_v30, %v1105_v30  ;;  %v1373_v26 = vpack.c.bf16 %v1106_v25, %v1106_v25  ;;  %v1765_v2 = vunpack.i.h.bf16 %v1763_v18  ;;  %v1764_v58 = vunpack.i.l.bf16 %v1763_v18 }
 0x200   : > { %1226 = vst.msk [vmem:[%s2185_s7 + $0x28] sm:$0xf] %vm1215_vm2, %v1372_v62  ;;  %1227 = vst.msk [vmem:[%s2185_s7 + $0x2c] sm:$0xf] %vm1215_vm2, %v1373_v26  ;;  %v1117_v46 = vmax.f32 %v1021_v40, %v1764_v58  ;;  %v1118_v32 = vmax.f32 %v1022_v17, %v1765_v2 }
 0x202   : > { %v1384_v36 = vpack.c.bf16 %v1117_v46, %v1117_v46  ;;  %v1385_v23 = vpack.c.bf16 %v1118_v32, %v1118_v32 }
 0x204   : > { %1238 = vst.msk [vmem:[%s2185_s7 + $0x58] sm:$0xf] %vm1215_vm2, %v1384_v36  ;;  %1239 = vst.msk [vmem:[%s2185_s7 + $0x5c] sm:$0xf] %vm1215_vm2, %v1385_v23 }
 0x205 PF: > { %s12_s9 = sadd.s32 1, %s1795_s9  }
 0x206   : > { %p9_p4 = scmp.ge.s32.totalorder %s12_s9, 4  }
 0x208   :  { %11 = sbr.rel (!%p9_p4) target bundleno = 1 (0x1), region = 58 }

// kernel: _lambda_.15
= control target key start
LH: loop header
LB: loop body
LE: loop exit
PB: predicated region body
PF: predicated region fallthrough
CT: control target
= control target key end

     0   :  { %vm107_vm0 = vcmask 1041408   ;;  %vm82_vm1 = vcmask 31744   ;;  %vm256_vm2 = vcmask 261120   ;;  %s541_s1 = inlined_call_operand.vmem [shape: bf16[4,32], index: 1, kind: input, shape index: {}]   ;;  %s542_s0 = inlined_call_operand.vmem [shape: bf16[128,4], index: 0, kind: input, shape index: {}]   ;;  %s543_s3 = inlined_call_operand.vmem [shape: bf16[128,32], index: 3, kind: input, shape index: {}]   ;;  %s544_s2 = inlined_call_operand.vmem [shape: f32[1,32], index: 2, kind: input, shape index: {}]   ;;  %s545_s4 = inlined_call_operand.vmem [shape: f32[128,32], index: 4, kind: output, shape index: {}]  }
   0x1   :  { %v34_v0 = vld [vmem:[%s541_s1] sm:$0x3]  ;;  %v366_v4 = vld [vmem:[%s542_s0 + $0x8] sm:$0xff]   ;;  %v368_v6 = vld [vmem:[%s542_s0 + $0x10] sm:$0xff]  }
   0x2   :  { %362 = vmatprep.subr.msk.bf16.mxu0 %vm107_vm0, %v34_v0  ;;  %363 = vmatprep.subr.msk.bf16.mxu1 %vm107_vm0, %v34_v0  ;;  %v109_v1 = vsel %vm107_vm0, %v34_v0, 0  ;;  %v364_v2 = vld [vmem:[%s542_s0] sm:$0xff]   ;;  %v367_v5 = vld [vmem:[%s542_s0 + $0x28] sm:$0xff]   ;;  %v369_v7 = vld [vmem:[%s542_s0 + $0x30] sm:$0xff]  }
   0x3   :  { %343 = vmatpush3.bf16.msra.mxu0 %v109_v1  ;;  %361 = vmatpush3.bf16.msra.mxu1 %v109_v1  ;;  %v365_v3 = vld [vmem:[%s542_s0 + $0x20] sm:$0xff]   ;;  %v370_v8 = vld [vmem:[%s542_s0 + $0x18] sm:$0xff]   ;;  %v326_v10 = vld [vmem:[%s543_s3 + $0x8] sm:$0xff]  }
   0x4   :  { %344 = vmatprep.mubr.msk.bf16.mxu0 %vm82_vm1, %v364_v2  ;;  %352 = vmatprep.mubr.msk.bf16.mxu1 %vm82_vm1, %v365_v3  ;;  %v371_v9 = vld [vmem:[%s542_s0 + $0x38] sm:$0xff]   ;;  %v330_v11 = vld [vmem:[%s543_s3 + $0x28] sm:$0xff]   ;;  %v295_v12 = vld [vmem:[%s543_s3] sm:$0xff]   ;;  %v300_v15 = vunpack.c.l.bf16 %v326_v10  ;;  %v301_v23 = vunpack.c.h.bf16 %v326_v10 }
   0x5   :  { %v444_v13 = vld [vmem:[%s544_s2] ss:$0 sm:$0xff]  ;;  %v316_v17 = vunpack.c.l.bf16 %v330_v11  ;;  %v296_v18 = vunpack.c.l.bf16 %v295_v12  ;;  %v317_v28 = vunpack.c.h.bf16 %v330_v11  ;;  %v297_v29 = vunpack.c.h.bf16 %v295_v12  ;;  %v328_v41 = vld [vmem:[%s543_s3 + $0x18] sm:$0xff]   ;;  %v327_v46 = vld [vmem:[%s543_s3 + $0x10] sm:$0xff]  }
   0x6   :  { %345 = vmatmul.mubr.msk.bf16.vlgmr.msra.gmra.mrb[0].mxu0 %vm82_vm1, %v366_v4  ;;  %353 = vmatmul.mubr.msk.bf16.vlgmr.msra.gmra.mrb[0].mxu1 %vm82_vm1, %v367_v5  ;;  %v329_v14 = vld [vmem:[%s543_s3 + $0x20] sm:$0xff]   ;;  %v332_v45 = vld [vmem:[%s543_s3 + $0x38] sm:$0xff]   ;;  %v331_v49 = vld [vmem:[%s543_s3 + $0x30] sm:$0xff]   ;;  %v308_v51 = vunpack.c.l.bf16 %v328_v41  ;;  %v304_v54 = vunpack.c.l.bf16 %v327_v46  ;;  %v309_v59 = vunpack.c.h.bf16 %v328_v41  ;;  %v305_v1 = vunpack.c.h.bf16 %v327_v46 }
   0x7   :  { %348 = vmatprep.mubr.msk.bf16.mxu0 %vm82_vm1, %v368_v6  ;;  %356 = vmatprep.mubr.msk.bf16.mxu1 %vm82_vm1, %v369_v7  ;;  %v312_v22 = vunpack.c.l.bf16 %v329_v14  ;;  %v313_v35 = vunpack.c.h.bf16 %v329_v14  ;;  %v324_v53 = vunpack.c.l.bf16 %v332_v45  ;;  %v320_v58 = vunpack.c.l.bf16 %v331_v49 }
   0x8   :  { %v325_v0 = vunpack.c.h.bf16 %v332_v45  ;;  %v321_v7 = vunpack.c.h.bf16 %v331_v49 }
   0xe   :  { %349 = vmatmul.mubr.msk.bf16.gmra.mrb[4].mxu0 %vm82_vm1, %v370_v8  ;;  %357 = vmatmul.mubr.msk.bf16.gmra.mrb[4].mxu1 %vm82_vm1, %v371_v9 }
  0xd9   :  { %v346_v16 = vpop.f32.mrb[0].mxu0  ;;  %v354_v20 = vpop.f32.mrb[0].mxu1 }
  0xda   :  { %v154_v19 = vadd.f32 %v346_v16, %v444_v13  ;;  %v145_v21 = vpop.f32.mrb[1].mxu0  ;;  %v186_v24 = vadd.f32 %v354_v20, %v444_v13  ;;  %v177_v26 = vpop.f32.mrb[1].mxu1 }
  0xdb   :  { %v146_v25 = vadd.f32 %v444_v13, %v145_v21  ;;  %v347_v27 = vpop.f32.mrb[2].mxu0  ;;  %v178_v31 = vadd.f32 %v444_v13, %v177_v26  ;;  %v355_v33 = vpop.f32.mrb[2].mxu1 }
  0xdc   :  { %v242_v30 = vadd.f32 %v300_v15, %v154_v19  ;;  %v157_v32 = vadd.f32 %v347_v27, %v444_v13  ;;  %v148_v34 = vpop.f32.mrb[3].mxu0  ;;  %v250_v36 = vadd.f32 %v316_v17, %v186_v24  ;;  %v189_v38 = vadd.f32 %v355_v33, %v444_v13  ;;  %v180_v40 = vpop.f32.mrb[3].mxu1 }
  0xdd   :  { %v240_v37 = vadd.f32 %v296_v18, %v146_v25  ;;  %v149_v39 = vadd.f32 %v444_v13, %v148_v34  ;;  %v248_v42 = vadd.f32 %v312_v22, %v178_v31  ;;  %v181_v44 = vadd.f32 %v444_v13, %v180_v40 }
  0xde   :  { %259 = vst.msk [vmem:[%s545_s4 + $0x10] sm:$0xff] %vm256_vm2, %v242_v30  ;;  %v243_v43 = vadd.f32 %v301_v23, %v157_v32  ;;  %267 = vst.msk [vmem:[%s545_s4 + $0x50] sm:$0xff] %vm256_vm2, %v250_v36  ;;  %v251_v47 = vadd.f32 %v317_v28, %v189_v38 }
  0xdf   :  { %257 = vst.msk [vmem:[%s545_s4] sm:$0xff] %vm256_vm2, %v240_v37  ;;  %v241_v48 = vadd.f32 %v297_v29, %v149_v39  ;;  %265 = vst.msk [vmem:[%s545_s4 + $0x40] sm:$0xff] %vm256_vm2, %v248_v42  ;;  %v249_v50 = vadd.f32 %v313_v35, %v181_v44 }
  0xe0   :  { %260 = vst.msk [vmem:[%s545_s4 + $0x18] sm:$0xff] %vm256_vm2, %v243_v43  ;;  %268 = vst.msk [vmem:[%s545_s4 + $0x58] sm:$0xff] %vm256_vm2, %v251_v47 }
  0xe1   :  { %258 = vst.msk [vmem:[%s545_s4 + $0x8] sm:$0xff] %vm256_vm2, %v241_v48  ;;  %v350_v52 = vpop.f32.mrb[4].mxu0  ;;  %266 = vst.msk [vmem:[%s545_s4 + $0x48] sm:$0xff] %vm256_vm2, %v249_v50  ;;  %v358_v56 = vpop.f32.mrb[4].mxu1 }
  0xe2   :  { %v170_v55 = vadd.f32 %v350_v52, %v444_v13  ;;  %v161_v57 = vpop.f32.mrb[5].mxu0  ;;  %v202_v60 = vadd.f32 %v358_v56, %v444_v13  ;;  %v193_v62 = vpop.f32.mrb[5].mxu1 }
  0xe3   :  { %v162_v61 = vadd.f32 %v444_v13, %v161_v57  ;;  %v351_v63 = vpop.f32.mrb[6].mxu0  ;;  %v194_v3 = vadd.f32 %v444_v13, %v193_v62  ;;  %v359_v5 = vpop.f32.mrb[6].mxu1 }
  0xe4   :  { %v246_v2 = vadd.f32 %v308_v51, %v170_v55  ;;  %v173_v4 = vadd.f32 %v351_v63, %v444_v13  ;;  %v164_v6 = vpop.f32.mrb[7].mxu0  ;;  %v254_v8 = vadd.f32 %v324_v53, %v202_v60  ;;  %v205_v10 = vadd.f32 %v359_v5, %v444_v13  ;;  %v196_v12 = vpop.f32.mrb[7].mxu1 }
  0xe5   :  { %v244_v9 = vadd.f32 %v304_v54, %v162_v61  ;;  %v165_v11 = vadd.f32 %v444_v13, %v164_v6  ;;  %v252_v14 = vadd.f32 %v320_v58, %v194_v3  ;;  %v197_v16 = vadd.f32 %v444_v13, %v196_v12 }
  0xe6   :  { %263 = vst.msk [vmem:[%s545_s4 + $0x30] sm:$0xff] %vm256_vm2, %v246_v2  ;;  %v247_v15 = vadd.f32 %v309_v59, %v173_v4  ;;  %271 = vst.msk [vmem:[%s545_s4 + $0x70] sm:$0xff] %vm256_vm2, %v254_v8  ;;  %v255_v17 = vadd.f32 %v325_v0, %v205_v10 }
  0xe7   :  { %261 = vst.msk [vmem:[%s545_s4 + $0x20] sm:$0xff] %vm256_vm2, %v244_v9  ;;  %v245_v18 = vadd.f32 %v305_v1, %v165_v11  ;;  %269 = vst.msk [vmem:[%s545_s4 + $0x60] sm:$0xff] %vm256_vm2, %v252_v14  ;;  %v253_v13 = vadd.f32 %v321_v7, %v197_v16 }
  0xe8   :  { %264 = vst.msk [vmem:[%s545_s4 + $0x38] sm:$0xff] %vm256_vm2, %v247_v15  ;;  %272 = vst.msk [vmem:[%s545_s4 + $0x78] sm:$0xff] %vm256_vm2, %v255_v17 }
  0xe9   :  { %262 = vst.msk [vmem:[%s545_s4 + $0x28] sm:$0xff] %vm256_vm2, %v245_v18  ;;  %270 = vst.msk [vmem:[%s545_s4 + $0x68] sm:$0xff] %vm256_vm2, %v253_v13 }

// kernel: _lambda_.16
= control target key start
LH: loop header
LB: loop body
LE: loop exit
PB: predicated region body
PF: predicated region fallthrough
CT: control target
= control target key end

     0   :  { %s1658_s21 = smov 0   ;;  %s1975_s0 = inlined_call_operand.vmem [shape: f32[2,64,32], index: 0, kind: input, shape index: {}]   ;;  %s1976_s1 = inlined_call_operand.vmem [shape: f32[1,32], index: 1, kind: input, shape index: {}]   ;;  %s1977_s2 = inlined_call_operand.vmem [shape: f32[1,32], index: 2, kind: input, shape index: {}]   ;;  %s1978_s3 = inlined_call_operand.vmem [shape: bf16[32,96], index: 3, kind: input, shape index: {}]   ;;  %s1979_s4 = inlined_call_operand.vmem [shape: bf16[32,32], index: 4, kind: input, shape index: {}]   ;;  %s1980_s5 = inlined_call_operand.vmem [shape: f32[1,32], index: 5, kind: input, shape index: {}]   ;;  %s1981_s6 = inlined_call_operand.vmem [shape: f32[2,64,32], index: 6, kind: output, shape index: {}]  }
   0x1 LB: > { %s1299_s22 = sadd.s32 4294967295, %s1615_s21   ;;  %p1303_p0 = scmp.ge.s32.totalorder %s1615_s21, 1  ;;  %s1615_s21 = sphi %s1658_s21, %s16_s21  }
   0x2   : > { %p212_p1 = scmp.lt.s32.totalorder %s1615_s21, 3 }
   0x4   : > { %p213_p2 = pnand %p1303_p0, %p212_p1 }
   0x5   : > { %p242_p3 = scmp.lt.s32.totalorder (!%p213_p2), %s1299_s22, 1  ;;  %vm263_vm0 = vcmask (!%p213_p2), 261120   ;;  %v1517_v56 = vld [vmem:[%s1978_s3] sm:$0xff] (!%p213_p2)   ;;  %v1518_v57 = vld [vmem:[%s1978_s3 + $0x8] sm:$0xff] (!%p213_p2)   ;;  %vm510_vm1 = vcmask (!%p213_p2), 130048   ;;  %s1617_s11 = smov (!%p213_p2), 96  }
   0x6   : > { %216 = sbr.rel (%p213_p2) target bundleno = 2478 (0x9ae), region = 44  ;;  %1387 = vmatprep.subr.bf16.mxu0 (!%p213_p2), %v1517_v56  ;;  %vm608_vm2 = vcmask (!%p213_p2), 523264   ;;  %s1618_s12 = smov (!%p213_p2), 64  }
   0x7   : > { %1388 = vmatpush3.bf16.msra.mxu0 (!%p213_p2), %v1517_v56  ;;  %s1619_s13 = smov (!%p213_p2), 80   ;;  %s1620_s14 = smov (!%p213_p2), 112  }
   0x8   : > { %1389 = vmatprep.subr.bf16.mxu0 (!%p213_p2), %v1518_v57  ;;  %s1621_s15 = smov (!%p213_p2), 48   ;;  %s1622_s20 = smov (!%p213_p2), 16  }
   0xb   : > { %1390 = vmatpush3.bf16.msra.mxu0 (!%p213_p2), %v1518_v57 }
   0xd   : > { %s1983_s22 = smov (!%p242_p3, %s1299_s22), 1 }
   0xe   : > { %s1341_s23 = sshll.u32 %s1983_s22, 6 }
   0xf   : > { %s1674_s26 = scalar_lea.vmem %s1975_s0, %s1341_s23  ;;  %s1946_s29 = scalar_lea.vmem %s1981_s6, %s1341_s23 }
  0x10   : > { %v253_v0 = vld [vmem:[%s1674_s26] sm:$0xff]  ;;  %v255_v1 = vld [vmem:[%s1674_s26 + $0x10] sm:$0xff]  ;;  %v254_v2 = vld [vmem:[%s1674_s26 + $0x8] sm:$0xff] }
  0x11   : > { %v264_v3 = vsel %vm263_vm0, %v253_v0, 0.0  ;;  %v270_v4 = vsel %vm263_vm0, %v255_v1, 0.0  ;;  %v256_v5 = vld [vmem:[%s1674_s26 + $0x18] sm:$0xff]  ;;  %v267_v6 = vsel %vm263_vm0, %v254_v2, 0.0  ;;  %v257_v8 = vld [vmem:[%s1674_s26 + $0x20] sm:$0xff]  ;;  %v258_v9 = vld [vmem:[%s1674_s26 + $0x28] sm:$0xff] }
  0x12   : > { %265 = vadd.xlane.f32.xlu0 %v264_v3  ;;  %271 = vadd.xlane.f32.xlu1 %v270_v4  ;;  %v273_v7 = vsel %vm263_vm0, %v256_v5, 0.0  ;;  %v276_v10 = vsel %vm263_vm0, %v257_v8, 0.0  ;;  %v279_v11 = vsel %vm263_vm0, %v258_v9, 0.0  ;;  %v259_v12 = vld [vmem:[%s1674_s26 + $0x30] sm:$0xff]  ;;  %v260_v13 = vld [vmem:[%s1674_s26 + $0x38] sm:$0xff] }
  0x13   : > { %v282_v14 = vsel %vm263_vm0, %v259_v12, 0.0  ;;  %v285_v15 = vsel %vm263_vm0, %v260_v13, 0.0 }
  0x16   : > { %268 = vadd.xlane.f32.xlu0 %v267_v6  ;;  %274 = vadd.xlane.f32.xlu1 %v273_v7 }
  0x1a   : > { %277 = vadd.xlane.f32.xlu0 %v276_v10  ;;  %280 = vadd.xlane.f32.xlu1 %v279_v11 }
  0x1e   : > { %283 = vadd.xlane.f32.xlu0 %v282_v14  ;;  %286 = vadd.xlane.f32.xlu1 %v285_v15 }
  0x9f   : > { %v266_v16 = vpop.xlane.xlu0 %265  ;;  %v272_v17 = vpop.xlane.xlu1 %271 }
  0xa0   : > { %v289_v18 = vmul.f32 0.03125, %v266_v16  ;;  %v291_v19 = vmul.f32 0.03125, %v272_v17 }
  0xa2   : > { %v1692_v20 = vsub.f32 %v253_v0, %v289_v18  ;;  %v1694_v21 = vsub.f32 %v255_v1, %v291_v19  ;;  %v1308_v19 = vld [vmem:[%s1976_s1] ss:$0 sm:$0xff] }
  0xa3   : > { %v269_v22 = vpop.xlane.xlu0 %268  ;;  %v275_v23 = vpop.xlane.xlu1 %274 }
  0xa4   : > { %v290_v24 = vmul.f32 0.03125, %v269_v22  ;;  %v292_v25 = vmul.f32 0.03125, %v275_v23  ;;  %v305_v26 = vmul.f32 %v1692_v20, %v1692_v20  ;;  %v307_v27 = vmul.f32 %v1694_v21, %v1694_v21 }
  0xa6   : > { %v1700_v28 = vsub.f32 %v254_v2, %v290_v24  ;;  %v1702_v29 = vsub.f32 %v256_v5, %v292_v25  ;;  %v313_v30 = vsel %vm263_vm0, %v305_v26, 0.0  ;;  %v319_v33 = vsel %vm263_vm0, %v307_v27, 0.0 }
  0xa7   : > { %314 = vadd.xlane.f32.xlu0 %v313_v30  ;;  %v278_v31 = vpop.xlane.xlu0 %277  ;;  %v281_v32 = vpop.xlane.xlu1 %280 }
  0xa8   : > { %v293_v34 = vmul.f32 0.03125, %v278_v31  ;;  %v294_v35 = vmul.f32 0.03125, %v281_v32  ;;  %v306_v36 = vmul.f32 %v1700_v28, %v1700_v28  ;;  %v308_v37 = vmul.f32 %v1702_v29, %v1702_v29 }
  0xaa   : > { %v1710_v38 = vsub.f32 %v257_v8, %v293_v34  ;;  %v1712_v39 = vsub.f32 %v258_v9, %v294_v35  ;;  %v316_v40 = vsel %vm263_vm0, %v306_v36, 0.0  ;;  %v322_v43 = vsel %vm263_vm0, %v308_v37, 0.0 }
  0xab   : > { %320 = vadd.xlane.f32.xlu0 %v319_v33  ;;  %317 = vadd.xlane.f32.xlu1 %v316_v40  ;;  %v284_v41 = vpop.xlane.xlu0 %283  ;;  %v287_v42 = vpop.xlane.xlu1 %286 }
  0xac   : > { %v295_v44 = vmul.f32 0.03125, %v284_v41  ;;  %v296_v45 = vmul.f32 0.03125, %v287_v42  ;;  %v309_v46 = vmul.f32 %v1710_v38, %v1710_v38  ;;  %v310_v47 = vmul.f32 %v1712_v39, %v1712_v39 }
  0xae   : > { %v1720_v48 = vsub.f32 %v259_v12, %v295_v44  ;;  %v1722_v49 = vsub.f32 %v260_v13, %v296_v45  ;;  %v325_v50 = vsel %vm263_vm0, %v309_v46, 0.0  ;;  %v328_v51 = vsel %vm263_vm0, %v310_v47, 0.0 }
  0xaf   : > { %323 = vadd.xlane.f32.xlu1 %v322_v43  ;;  %326 = vadd.xlane.f32.xlu0 %v325_v50 }
  0xb0   : > { %v311_v52 = vmul.f32 %v1720_v48, %v1720_v48  ;;  %v312_v53 = vmul.f32 %v1722_v49, %v1722_v49 }
  0xb2   : > { %v331_v54 = vsel %vm263_vm0, %v311_v52, 0.0  ;;  %v334_v55 = vsel %vm263_vm0, %v312_v53, 0.0 }
  0xb3   : > { %329 = vadd.xlane.f32.xlu1 %v328_v51  ;;  %332 = vadd.xlane.f32.xlu0 %v331_v54 }
  0xb7   : > { %335 = vadd.xlane.f32.xlu1 %v334_v55 }
 0x134   : > { %v315_v58 = vpop.xlane.xlu0 %314 }
 0x135   : > { %v337_v59 = vmul.f32 0.03125, %v315_v58 }
 0x137   : > { %v345_v60 = vadd.f32 1e-05, %v337_v59 }
 0x138   : > { %v318_v61 = vpop.xlane.xlu1 %317  ;;  %v321_v62 = vpop.xlane.xlu0 %320 }
 0x139   : > { %1521 = vrsqrt.f32 %v345_v60  ;;  %v338_v63 = vmul.f32 0.03125, %v318_v61  ;;  %v339_v0 = vmul.f32 0.03125, %v321_v62 }
 0x13b   : > { %v346_v1 = vadd.f32 1e-05, %v338_v63  ;;  %v347_v2 = vadd.f32 1e-05, %v339_v0 }
 0x13c   : > { %v324_v3 = vpop.xlane.xlu1 %323  ;;  %v327_v4 = vpop.xlane.xlu0 %326 }
 0x13d   : > { %1523 = vrsqrt.f32 %v346_v1  ;;  %v340_v5 = vmul.f32 0.03125, %v324_v3  ;;  %v341_v6 = vmul.f32 0.03125, %v327_v4 }
 0x13e   : > { %1525 = vrsqrt.f32 %v347_v2 }
 0x13f   : > { %v348_v7 = vadd.f32 1e-05, %v340_v5  ;;  %v349_v8 = vadd.f32 1e-05, %v341_v6 }
 0x140   : > { %v330_v9 = vpop.xlane.xlu1 %329  ;;  %v333_v10 = vpop.xlane.xlu0 %332 }
 0x141   : > { %1527 = vrsqrt.f32 %v348_v7  ;;  %v342_v11 = vmul.f32 0.03125, %v330_v9  ;;  %v343_v12 = vmul.f32 0.03125, %v333_v10 }
 0x142   : > { %1529 = vrsqrt.f32 %v349_v8 }
 0x143   : > { %v1522_v13 = vpop.eup %1521  ;;  %v350_v14 = vadd.f32 1e-05, %v342_v11  ;;  %v351_v15 = vadd.f32 1e-05, %v343_v12 }
 0x144   : > { %v336_v16 = vpop.xlane.xlu1 %335  ;;  %v361_v17 = vmul.f32 %v1522_v13, %v1692_v20  ;;  %v1309_v20 = vld [vmem:[%s1977_s2] ss:$0 sm:$0xff] }
 0x145   : > { %1531 = vrsqrt.f32 %v350_v14  ;;  %v344_v18 = vmul.f32 0.03125, %v336_v16 }
 0x146   : > { %1533 = vrsqrt.f32 %v351_v15  ;;  %v375_v26 = vmul.f32 %v1308_v19, %v361_v17 }
 0x147   : > { %v1524_v22 = vpop.eup %1523  ;;  %v352_v23 = vadd.f32 1e-05, %v344_v18 }
 0x148   : > { %v1526_v24 = vpop.eup %1525  ;;  %v362_v25 = vmul.f32 %v1524_v22, %v1700_v28  ;;  %v389_v34 = vadd.f32 %v1309_v20, %v375_v26 }
 0x149   : > { %v363_v27 = vmul.f32 %v1526_v24, %v1694_v21  ;;  %1535 = vrsqrt.f32 %v352_v23 }
 0x14a   : > { %v376_v30 = vmul.f32 %v1308_v19, %v362_v25 }
 0x14b   : > { %v1528_v31 = vpop.eup %1527  ;;  %v377_v36 = vmul.f32 %v1308_v19, %v363_v27 }
 0x14c   : > { %v1530_v32 = vpop.eup %1529  ;;  %v364_v33 = vmul.f32 %v1528_v31, %v1702_v29  ;;  %v390_v35 = vadd.f32 %v1309_v20, %v376_v30 }
 0x14d   : > { %v365_v37 = vmul.f32 %v1530_v32, %v1710_v38  ;;  %v391_v43 = vadd.f32 %v1309_v20, %v377_v36 }
 0x14e   : > { %v397_v40 = vpack.c.bf16 %v390_v35, %v389_v34  ;;  %v378_v28 = vmul.f32 %v1308_v19, %v364_v33 }
 0x14f   : > { %v1532_v41 = vpop.eup %1531  ;;  %v379_v45 = vmul.f32 %v1308_v19, %v365_v37 }
 0x150   : > { %v1534_v42 = vpop.eup %1533  ;;  %v366_v21 = vmul.f32 %v1532_v41, %v1712_v39  ;;  %1391 = vmatprep.mubr.msk.bf16.mxu0 %vm263_vm0, %v397_v40  ;;  %v392_v44 = vadd.f32 %v1309_v20, %v378_v28 }
 0x151   : > { %v367_v46 = vmul.f32 %v1534_v42, %v1720_v48  ;;  %v393_v38 = vadd.f32 %v1309_v20, %v379_v45 }
 0x152   : > { %v398_v47 = vpack.c.bf16 %v392_v44, %v391_v43  ;;  %v380_v29 = vmul.f32 %v1308_v19, %v366_v21 }
 0x153   : > { %v1536_v50 = vpop.eup %1535  ;;  %v381_v53 = vmul.f32 %v1308_v19, %v367_v46 }
 0x154   : > { %v368_v51 = vmul.f32 %v1536_v50, %v1722_v49  ;;  %1392 = vmatmul.mubr.msk.bf16.vlgmr.msra.gmra.mrb[0].mxu0 %vm263_vm0, %v398_v47  ;;  %v394_v52 = vadd.f32 %v1309_v20, %v380_v29 }
 0x155   : > { %v395_v39 = vadd.f32 %v1309_v20, %v381_v53 }
 0x156   : > { %v399_v54 = vpack.c.bf16 %v394_v52, %v393_v38  ;;  %v382_v55 = vmul.f32 %v1308_v19, %v368_v51 }
 0x158   : > { %1395 = vmatprep.mubr.msk.bf16.mxu0 %vm263_vm0, %v399_v54  ;;  %v396_v56 = vadd.f32 %v1309_v20, %v382_v55 }
 0x15a   : > { %v400_v57 = vpack.c.bf16 %v396_v56, %v395_v39 }
 0x15c   : > { %1396 = vmatmul.mubr.msk.bf16.gmra.mrb[4].mxu0 %vm263_vm0, %v400_v57 }
 0x227   : > { %v1393_v48 = vpop.f32.mrb[0].mxu0 }
 0x228   : > { %v463_v58 = vpop.f32.mrb[1].mxu0 }
 0x229   : > { %v1394_v59 = vpop.f32.mrb[2].mxu0 }
 0x22a   : > { %v1756_v60 = vpack.c.bf16 %v1394_v59, %v1393_v48  ;;  %v466_v49 = vpop.f32.mrb[3].mxu0 }
 0x22b   : > { %v1758_v61 = vpack.c.bf16 %v466_v49, %v463_v58 }
 0x22c   : > { %504 = vrot.lane.b32.xlu1 %v1756_v60, %s1617_s11 }
 0x22d   : > { %502 = vrot.lane.b32.xlu0 %v1758_v61, %s1617_s11  ;;  %1407 = vmatprep.mubr.msk.bf16.mxu1 %vm510_vm1, %v1758_v61 }
 0x22f   : > { %v1397_v62 = vpop.f32.mrb[4].mxu0 }
 0x230   : > { %v479_v63 = vpop.f32.mrb[5].mxu0 }
 0x231   : > { %v1398_v0 = vpop.f32.mrb[6].mxu0 }
 0x232   : > { %v1764_v1 = vpack.c.bf16 %v1398_v0, %v1397_v62  ;;  %v482_v2 = vpop.f32.mrb[7].mxu0 }
 0x233   : > { %v1766_v3 = vpack.c.bf16 %v482_v2, %v479_v63 }
 0x235   : > { %506 = vrot.lane.b32.xlu1 %v1766_v3, %s1617_s11 }
 0x239   : > { %508 = vrot.lane.b32.xlu1 %v1764_v1, %s1617_s11 }
 0x29e   : > { %v505_v6 = vpop.permute.xlu1 %504 }
 0x29f   : > { %v503_v4 = vpop.permute.xlu0 %502  ;;  %v527_v7 = vsel %vm510_vm1, %v505_v6, 0 }
 0x2a0   : > { %1475 = vmatprep.subr.msk.bf16.mxu1 %vm510_vm1, %v503_v4  ;;  %v524_v5 = vsel %vm510_vm1, %v503_v4, 0 }
 0x2a1   : > { %1400 = vmatpush3.bf16.xpose.msra.mxu1 %v524_v5 }
 0x2a2   : > { %1476 = vmatprep.subr.msk.bf16.mxu1 %vm510_vm1, %v505_v6 }
 0x2a7   : > { %v507_v8 = vpop.permute.xlu1 %506 }
 0x2a8   : > { %v530_v9 = vsel %vm510_vm1, %v507_v8, 0 }
 0x2a9   : > { %1402 = vmatpush3.bf16.xpose.msra.mxu1 %v527_v7 }
 0x2aa   : > { %1477 = vmatprep.subr.msk.bf16.mxu1 %vm510_vm1, %v507_v8 }
 0x2ab   : > { %v509_v10 = vpop.permute.xlu1 %508 }
 0x2ac   : > { %v533_v11 = vsel %vm510_vm1, %v509_v10, 0 }
 0x2b1   : > { %1404 = vmatpush3.bf16.xpose.msra.mxu1 %v530_v9 }
 0x2b2   : > { %1478 = vmatprep.subr.msk.bf16.mxu1 %vm510_vm1, %v509_v10 }
 0x2b9   : > { %1406 = vmatpush3.bf16.xpose.msra.mxu1 %v533_v11 }
 0x2c0   : > { %1408 = vmatmul.mubr.msk.bf16.vlgmr.msra.gmra.mrb[0].mxu1 %vm510_vm1, %v1756_v60 }
 0x2c1   : > { %1411 = vmatprep.mubr.msk.bf16.mxu1 %vm510_vm1, %v1766_v3 }
 0x2c8   : > { %1412 = vmatmul.mubr.msk.bf16.gmra.mrb[4].mxu1 %vm510_vm1, %v1764_v1 }
 0x393   : > { %v1409_v12 = vpop.f32.mrb[0].mxu1 }
 0x394   : > { %v602_v13 = vmul.f32 0.25, %v1409_v12  ;;  %v569_v14 = vpop.f32.mrb[1].mxu1 }
 0x395   : > { %v1410_v15 = vpop.f32.mrb[2].mxu1  ;;  %v600_v16 = vmul.f32 0.25, %v569_v14 }
 0x396   : > { %v572_v17 = vpop.f32.mrb[3].mxu1  ;;  %v615_v18 = vsel %vm608_vm2, %v602_v13, -inf  ;;  %v603_v23 = vmul.f32 0.25, %v1410_v15 }
 0x397   : > { %v601_v19 = vmul.f32 0.25, %v572_v17  ;;  %616 = vmax.xlane.f32.xlu0 %v615_v18  ;;  %v609_v24 = vsel %vm608_vm2, %v600_v16, -inf }
 0x398   : > { %v618_v31 = vsel %vm608_vm2, %v603_v23, -inf }
 0x399   : > { %v612_v22 = vsel %vm608_vm2, %v601_v19, -inf }
 0x39a   : > { %613 = vmax.xlane.f32.xlu1 %v612_v22 }
 0x39b   : > { %610 = vmax.xlane.f32.xlu0 %v609_v24  ;;  %v1413_v25 = vpop.f32.mrb[4].mxu1 }
 0x39c   : > { %v585_v26 = vpop.f32.mrb[5].mxu1  ;;  %v606_v20 = vmul.f32 0.25, %v1413_v25 }
 0x39d   : > { %v1414_v27 = vpop.f32.mrb[6].mxu1  ;;  %v604_v32 = vmul.f32 0.25, %v585_v26 }
 0x39e   : > { %v588_v30 = vpop.f32.mrb[7].mxu1  ;;  %v627_v33 = vsel %vm608_vm2, %v606_v20, -inf  ;;  %v1793_v35 = vmul.f32 0.25, %v1414_v27 }
 0x39f   : > { %619 = vmax.xlane.f32.xlu0 %v618_v31  ;;  %v621_v34 = vsel %vm608_vm2, %v604_v32, -inf  ;;  %v1795_v36 = vmul.f32 0.25, %v588_v30 }
 0x3a0   : > { %v630_v37 = vsel %vm608_vm2, %v1793_v35, -inf }
 0x3a1   : > { %v624_v40 = vsel %vm608_vm2, %v1795_v36, -inf }
 0x3a3   : > { %628 = vmax.xlane.f32.xlu0 %v627_v33 }
 0x3a7   : > { %622 = vmax.xlane.f32.xlu0 %v621_v34 }
 0x3ab   : > { %703 = vrot.lane.b32.xlu1 %v1756_v60, %s1618_s12 }
 0x3af   : > { %705 = vrot.lane.b32.xlu1 %v1766_v3, %s1618_s12 }
 0x3bd   : > { %701 = vrot.lane.b32.xlu0 %v1758_v61, %s1618_s12 }
 0x3d3   : > { %631 = vmax.xlane.f32.xlu1 %v630_v37 }
 0x3d7   : > { %625 = vmax.xlane.f32.xlu1 %v624_v40 }
 0x3e8   : > { %707 = vrot.lane.b32.xlu1 %v1764_v1, %s1618_s12 }
 0x424   : > { %v617_v28 = vpop.xlane.xlu0 %616 }
 0x425   : > { %v635_v41 = vsub.f32 %v602_v13, %v617_v28 }
 0x427   : > { %v645_v42 = vmul.f32 1.442695, %v635_v41  ;;  %v614_v21 = vpop.xlane.xlu1 %613 }
 0x428   : > { %v611_v43 = vpop.xlane.xlu0 %610  ;;  %v634_v45 = vsub.f32 %v601_v19, %v614_v21 }
 0x429   : > { %1537 = vpow2.f32 %v645_v42  ;;  %v633_v44 = vsub.f32 %v600_v16, %v611_v43 }
 0x42a   : > { %v643_v50 = vmul.f32 1.442695, %v634_v45 }
 0x42b   : > { %v641_v46 = vmul.f32 1.442695, %v633_v44  ;;  %v704_v58 = vpop.permute.xlu1 %703 }
 0x42c   : > { %v620_v47 = vpop.xlane.xlu0 %619 }
 0x42d   : > { %1539 = vpow2.f32 %v641_v46  ;;  %v636_v29 = vsub.f32 %v603_v23, %v620_v47 }
 0x42f   : > { %v647_v51 = vmul.f32 1.442695, %v636_v29  ;;  %v706_v2 = vpop.permute.xlu1 %705 }
 0x430   : > { %v629_v38 = vpop.xlane.xlu0 %628 }
 0x431   : > { %1541 = vpow2.f32 %v647_v51  ;;  %v639_v52 = vsub.f32 %v606_v20, %v629_v38 }
 0x432   : > { %1543 = vpow2.f32 %v643_v50 }
 0x433   : > { %v1802_v53 = vpop.eup %1537  ;;  %v653_v54 = vmul.f32 1.442695, %v639_v52 }
 0x434   : > { %v623_v55 = vpop.xlane.xlu0 %622  ;;  %v663_v39 = vsel %vm608_vm2, %v1802_v53, 0.0 }
 0x435   : > { %1545 = vpow2.f32 %v653_v54  ;;  %v637_v56 = vsub.f32 %v604_v32, %v623_v55  ;;  %664 = vadd.xlane.f32.xlu0 %v663_v39 }
 0x437   : > { %v1806_v57 = vpop.eup %1539  ;;  %v649_v48 = vmul.f32 1.442695, %v637_v56 }
 0x438   : > { %v702_v59 = vpop.permute.xlu0 %701  ;;  %v657_v49 = vsel %vm608_vm2, %v1806_v57, 0.0 }
 0x439   : > { %1547 = vpow2.f32 %v649_v48  ;;  %658 = vadd.xlane.f32.xlu0 %v657_v49  ;;  %1415 = vmatprep.subr.bf16.mxu0 %v702_v59 }
 0x43a   : > { %1416 = vmatpush3.bf16.msra.mxu0 %v702_v59 }
 0x43b   : > { %v1542_v62 = vpop.eup %1541  ;;  %1417 = vmatprep.subr.bf16.mxu0 %v704_v58 }
 0x43c   : > { %v666_v63 = vsel %vm608_vm2, %v1542_v62, 0.0  ;;  %v1544_v0 = vpop.eup %1543 }
 0x43d   : > { %667 = vadd.xlane.f32.xlu1 %v666_v63  ;;  %v660_v6 = vsel %vm608_vm2, %v1544_v0, 0.0 }
 0x43e   : > { %1418 = vmatpush3.bf16.msra.mxu0 %v704_v58 }
 0x43f   : > { %v1811_v4 = vpop.eup %1545  ;;  %1419 = vmatprep.subr.bf16.mxu0 %v706_v2 }
 0x440   : > { %v675_v5 = vsel %vm608_vm2, %v1811_v4, 0.0 }
 0x441   : > { %676 = vadd.xlane.f32.xlu0 %v675_v5  ;;  %661 = vadd.xlane.f32.xlu1 %v660_v6 }
 0x442   : > { %1420 = vmatpush3.bf16.msra.mxu0 %v706_v2 }
 0x443   : > { %v1816_v7 = vpop.eup %1547 }
 0x444   : > { %v669_v8 = vsel %vm608_vm2, %v1816_v7, 0.0 }
 0x445   : > { %670 = vadd.xlane.f32.xlu0 %v669_v8 }
 0x452   : > { %800 = vrot.lane.b32.xlu1 %v1756_v60, %s1619_s13 }
 0x456   : > { %802 = vrot.lane.b32.xlu1 %v1766_v3, %s1619_s13 }
 0x460   : > { %v632_v9 = vpop.xlane.xlu1 %631 }
 0x461   : > { %v640_v10 = vsub.f32 %v1793_v35, %v632_v9 }
 0x463   : > { %v655_v11 = vmul.f32 1.442695, %v640_v10 }
 0x464   : > { %v626_v12 = vpop.xlane.xlu1 %625 }
 0x465   : > { %1549 = vpow2.f32 %v655_v11  ;;  %v638_v13 = vsub.f32 %v1795_v36, %v626_v12 }
 0x467   : > { %v651_v14 = vmul.f32 1.442695, %v638_v13 }
 0x468   : > { %v708_v15 = vpop.permute.xlu1 %707 }
 0x469   : > { %1421 = vmatprep.subr.bf16.mxu0 %v708_v15  ;;  %1551 = vpow2.f32 %v651_v14 }
 0x46a   : > { %1422 = vmatpush3.bf16.msra.mxu0 %v708_v15 }
 0x46f   : > { %v1550_v16 = vpop.eup %1549 }
 0x470   : > { %v678_v17 = vsel %vm608_vm2, %v1550_v16, 0.0 }
 0x471   : > { %679 = vadd.xlane.f32.xlu0 %v678_v17 }
 0x473   : > { %v1552_v18 = vpop.eup %1551 }
 0x474   : > { %v672_v19 = vsel %vm608_vm2, %v1552_v18, 0.0 }
 0x47a   : > { %673 = vadd.xlane.f32.xlu1 %v672_v19 }
 0x487   : > { %798 = vrot.lane.b32.xlu0 %v1758_v61, %s1619_s13 }
 0x48b   : > { %790 = vrot.lane.b32.xlu0 %v1758_v61, %s1620_s14  ;;  %804 = vrot.lane.b32.xlu1 %v1764_v1, %s1619_s13 }
 0x48f   : > { %794 = vrot.lane.b32.xlu0 %v1766_v3, %s1620_s14  ;;  %792 = vrot.lane.b32.xlu1 %v1756_v60, %s1620_s14 }
 0x493   : > { %796 = vrot.lane.b32.xlu1 %v1764_v1, %s1620_s14 }
 0x4c2   : > { %v665_v22 = vpop.xlane.xlu0 %664 }
 0x4c6   : > { %v659_v24 = vpop.xlane.xlu0 %658 }
 0x4ca   : > { %v668_v23 = vpop.xlane.xlu1 %667 }
 0x4cb   : > { %1553 = vrcp.f32 %v668_v23 }
 0x4cc   : > { %1555 = vrcp.f32 %v659_v24 }
 0x4cd   : > { %1557 = vrcp.f32 %v665_v22 }
 0x4ce   : > { %v662_v25 = vpop.xlane.xlu1 %661  ;;  %v677_v37 = vpop.xlane.xlu0 %676 }
 0x4cf   : > { %1559 = vrcp.f32 %v662_v25 }
 0x4d2   : > { %v671_v40 = vpop.xlane.xlu0 %670  ;;  %v801_v28 = vpop.permute.xlu1 %800 }
 0x4d3   : > { %v822_v45 = vsel %vm510_vm1, %v801_v28, 0 }
 0x4d5   : > { %v1554_v26 = vpop.eup %1553 }
 0x4d6   : > { %v1556_v27 = vpop.eup %1555  ;;  %v692_v31 = vmul.f32 %v1554_v26, %v1542_v62  ;;  %v803_v21 = vpop.permute.xlu1 %802 }
 0x4d7   : > { %v1558_v20 = vpop.eup %1557  ;;  %v689_v32 = vmul.f32 %v1556_v27, %v1806_v57  ;;  %v825_v38 = vsel %vm510_vm1, %v803_v21, 0 }
 0x4d8   : > { %v691_v34 = vmul.f32 %v1558_v20, %v1802_v53 }
 0x4d9   : > { %v1560_v30 = vpop.eup %1559 }
 0x4da   : > { %v690_v33 = vmul.f32 %v1560_v30, %v1544_v0  ;;  %v698_v36 = vpack.c.bf16 %v692_v31, %v691_v34 }
 0x4dc   : > { %v697_v35 = vpack.c.bf16 %v690_v33, %v689_v32 }
 0x4de   : > { %1423 = vmatprep.mubr.msk.bf16.mxu0 %vm608_vm2, %v697_v35 }
 0x4df   : > { %1424 = vmatmul.mubr.msk.bf16.vlgmr.msra.gmra.mrb[8].mxu0 %vm608_vm2, %v698_v36 }
 0x4fe   : > { %v680_v41 = vpop.xlane.xlu0 %679 }
 0x4ff   : > { %1561 = vrcp.f32 %v680_v41 }
 0x500   : > { %1563 = vrcp.f32 %v671_v40 }
 0x501   : > { %1565 = vrcp.f32 %v677_v37 }
 0x502   : > { %v799_v42 = vpop.permute.xlu0 %798 }
 0x503   : > { %v819_v43 = vsel %vm510_vm1, %v799_v42, 0  ;;  %1479 = vmatprep.subr.msk.bf16.mxu0 %vm510_vm1, %v799_v42 }
 0x504   : > { %1432 = vmatpush3.bf16.xpose.msra.mxu0 %v819_v43 }
 0x505   : > { %1480 = vmatprep.subr.msk.bf16.mxu0 %vm510_vm1, %v801_v28 }
 0x506   : > { %v791_v57 = vpop.permute.xlu0 %790 }
 0x507   : > { %v674_v44 = vpop.xlane.xlu1 %673 }
 0x508   : > { %1567 = vrcp.f32 %v674_v44 }
 0x509   : > { %v1562_v46 = vpop.eup %1561 }
 0x50a   : > { %v1564_v47 = vpop.eup %1563  ;;  %v696_v51 = vmul.f32 %v1562_v46, %v1550_v16  ;;  %v795_v59 = vpop.permute.xlu0 %794 }
 0x50b   : > { %v1566_v29 = vpop.eup %1565  ;;  %v693_v52 = vmul.f32 %v1564_v47, %v1816_v7  ;;  %v805_v54 = vpop.permute.xlu1 %804 }
 0x50c   : > { %1434 = vmatpush3.bf16.xpose.msra.mxu0 %v822_v45  ;;  %v695_v55 = vmul.f32 %v1566_v29, %v1811_v4  ;;  %v828_v48 = vsel %vm510_vm1, %v805_v54, 0 }
 0x50d   : > { %1481 = vmatprep.subr.msk.bf16.mxu0 %vm510_vm1, %v803_v21 }
 0x50e   : > { %v700_v56 = vpack.c.bf16 %v696_v51, %v695_v55 }
 0x50f   : > { %v793_v58 = vpop.permute.xlu1 %792 }
 0x512   : > { %v1568_v50 = vpop.eup %1567 }
 0x513   : > { %v694_v53 = vmul.f32 %v1568_v50, %v1552_v18  ;;  %v797_v49 = vpop.permute.xlu1 %796 }
 0x514   : > { %1436 = vmatpush3.bf16.xpose.msra.mxu0 %v825_v38 }
 0x515   : > { %1482 = vmatprep.subr.msk.bf16.mxu0 %vm510_vm1, %v805_v54  ;;  %v699_v39 = vpack.c.bf16 %v694_v53, %v693_v52 }
 0x517   : > { %1427 = vmatprep.mubr.msk.bf16.mxu0 %vm608_vm2, %v699_v39 }
 0x518   : > { %1428 = vmatmul.mubr.msk.bf16.gmra.mrb[12].mxu0 %vm608_vm2, %v700_v56 }
 0x519   : > { %1439 = vmatprep.mubr.msk.bf16.mxu0 %vm510_vm1, %v791_v57 }
 0x51c   : > { %1438 = vmatpush3.bf16.xpose.msra.mxu0 %v828_v48 }
 0x523   : > { %1440 = vmatmul.mubr.msk.bf16.vlgmr.msra.gmra.mrb[16].mxu0 %vm510_vm1, %v793_v58 }
 0x524   : > { %1443 = vmatprep.mubr.msk.bf16.mxu0 %vm510_vm1, %v795_v59 }
 0x52b   : > { %1444 = vmatmul.mubr.msk.bf16.gmra.mrb[20].mxu0 %vm510_vm1, %v797_v49 }
 0x5b2   : > { %v1852_v62 = vpop.f32.mrb[8].mxu0 }
 0x5b3   : > { %v1854_v63 = vpop.f32.mrb[9].mxu0 }
 0x5b4   : > { %v1856_v0 = vpop.f32.mrb[10].mxu0 }
 0x5b5   : > { %v1858_v2 = vpop.f32.mrb[11].mxu0 }
 0x5eb   : > { %v1860_v4 = vpop.f32.mrb[12].mxu0 }
 0x5ec   : > { %v1862_v5 = vpop.f32.mrb[13].mxu0 }
 0x5ed   : > { %v1864_v6 = vpop.f32.mrb[14].mxu0 }
 0x5ee   : > { %v1866_v7 = vpop.f32.mrb[15].mxu0 }
 0x5f6   : > { %v1441_v8 = vpop.f32.mrb[16].mxu0 }
 0x5f7   : > { %v864_v9 = vpop.f32.mrb[17].mxu0  ;;  %v897_v13 = vmul.f32 0.25, %v1441_v8 }
 0x5f8   : > { %v895_v10 = vmul.f32 0.25, %v864_v9  ;;  %v1442_v11 = vpop.f32.mrb[18].mxu0 }
 0x5f9   : > { %v867_v12 = vpop.f32.mrb[19].mxu0  ;;  %v898_v17 = vmul.f32 0.25, %v1442_v11  ;;  %v909_v19 = vsel %vm608_vm2, %v897_v13, -inf }
 0x5fa   : > { %v896_v14 = vmul.f32 0.25, %v867_v12  ;;  %v903_v15 = vsel %vm608_vm2, %v895_v10, -inf }
 0x5fb   : > { %904 = vmax.xlane.f32.xlu0 %v903_v15  ;;  %v912_v27 = vsel %vm608_vm2, %v898_v17, -inf }
 0x5fc   : > { %v906_v16 = vsel %vm608_vm2, %v896_v14, -inf }
 0x5fd   : > { %907 = vmax.xlane.f32.xlu1 %v906_v16 }
 0x5fe   : > { %v1445_v18 = vpop.f32.mrb[20].mxu0 }
 0x5ff   : > { %910 = vmax.xlane.f32.xlu0 %v909_v19  ;;  %v880_v22 = vpop.f32.mrb[21].mxu0  ;;  %v901_v31 = vmul.f32 0.25, %v1445_v18 }
 0x600   : > { %v1446_v23 = vpop.f32.mrb[22].mxu0  ;;  %v899_v25 = vmul.f32 0.25, %v880_v22 }
 0x601   : > { %v883_v24 = vpop.f32.mrb[23].mxu0  ;;  %v902_v20 = vmul.f32 0.25, %v1446_v23  ;;  %v921_v34 = vsel %vm608_vm2, %v901_v31, -inf }
 0x602   : > { %v1871_v26 = vmul.f32 0.25, %v883_v24  ;;  %v915_v32 = vsel %vm608_vm2, %v899_v25, -inf }
 0x603   : > { %913 = vmax.xlane.f32.xlu0 %v912_v27  ;;  %v924_v33 = vsel %vm608_vm2, %v902_v20, -inf }
 0x604   : > { %v918_v30 = vsel %vm608_vm2, %v1871_v26, -inf }
 0x605   : > { %919 = vmax.xlane.f32.xlu1 %v918_v30 }
 0x607   : > { %916 = vmax.xlane.f32.xlu0 %v915_v32 }
 0x609   : > { %925 = vmax.xlane.f32.xlu1 %v924_v33 }
 0x60b   : > { %922 = vmax.xlane.f32.xlu0 %v921_v34 }
 0x688   : > { %v905_v35 = vpop.xlane.xlu0 %904 }
 0x689   : > { %v927_v36 = vsub.f32 %v895_v10, %v905_v35 }
 0x68a   : > { %v908_v37 = vpop.xlane.xlu1 %907 }
 0x68b   : > { %v935_v41 = vmul.f32 1.442695, %v927_v36  ;;  %v928_v42 = vsub.f32 %v896_v14, %v908_v37 }
 0x68c   : > { %v911_v40 = vpop.xlane.xlu0 %910 }
 0x68d   : > { %v929_v28 = vsub.f32 %v897_v13, %v911_v40  ;;  %v937_v45 = vmul.f32 1.442695, %v928_v42 }
 0x68f   : > { %v939_v21 = vmul.f32 1.442695, %v929_v28 }
 0x690   : > { %v914_v43 = vpop.xlane.xlu0 %913 }
 0x691   : > { %1569 = vpow2.f32 %v939_v21  ;;  %v930_v44 = vsub.f32 %v898_v17, %v914_v43 }
 0x692   : > { %1571 = vpow2.f32 %v935_v41  ;;  %v920_v10 = vpop.xlane.xlu1 %919 }
 0x693   : > { %v941_v46 = vmul.f32 1.442695, %v930_v44  ;;  %v932_v13 = vsub.f32 %v1871_v26, %v920_v10 }
 0x694   : > { %v917_v47 = vpop.xlane.xlu0 %916 }
 0x695   : > { %1573 = vpow2.f32 %v941_v46  ;;  %v931_v29 = vsub.f32 %v899_v25, %v917_v47  ;;  %v945_v15 = vmul.f32 1.442695, %v932_v13 }
 0x696   : > { %1575 = vpow2.f32 %v937_v45  ;;  %v926_v11 = vpop.xlane.xlu1 %925 }
 0x697   : > { %v943_v52 = vmul.f32 1.442695, %v931_v29  ;;  %v934_v12 = vsub.f32 %v902_v20, %v926_v11 }
 0x698   : > { %v923_v50 = vpop.xlane.xlu0 %922 }
 0x699   : > { %v933_v51 = vsub.f32 %v901_v31, %v923_v50  ;;  %v949_v14 = vmul.f32 1.442695, %v934_v12 }
 0x69b   : > { %v1879_v38 = vpop.eup %1569  ;;  %v947_v53 = vmul.f32 1.442695, %v933_v51 }
 0x69c   : > { %v957_v54 = vsel %vm608_vm2, %v1879_v38, 0.0  ;;  %v1572_v55 = vpop.eup %1571 }
 0x69d   : > { %1577 = vpow2.f32 %v947_v53  ;;  %958 = vadd.xlane.f32.xlu0 %v957_v54  ;;  %v951_v56 = vsel %vm608_vm2, %v1572_v55, 0.0 }
 0x69e   : > { %1579 = vpow2.f32 %v943_v52  ;;  %v1520_v52 = vld [vmem:[%s1979_s4 + $0x8] sm:$0xff]  }
 0x69f   : > { %v1883_v39 = vpop.eup %1573  ;;  %1581 = vpow2.f32 %v949_v14 }
 0x6a0   : > { %v960_v57 = vsel %vm608_vm2, %v1883_v39, 0.0  ;;  %v1576_v48 = vpop.eup %1575  ;;  %1583 = vpow2.f32 %v945_v15 }
 0x6a1   : > { %952 = vadd.xlane.f32.xlu0 %v951_v56  ;;  %961 = vadd.xlane.f32.xlu1 %v960_v57  ;;  %v954_v58 = vsel %vm608_vm2, %v1576_v48, 0.0 }
 0x6a5   : > { %955 = vadd.xlane.f32.xlu1 %v954_v58 }
 0x6a7   : > { %v1889_v59 = vpop.eup %1577 }
 0x6a8   : > { %v969_v49 = vsel %vm608_vm2, %v1889_v59, 0.0  ;;  %v1893_v8 = vpop.eup %1579 }
 0x6a9   : > { %970 = vadd.xlane.f32.xlu0 %v969_v49  ;;  %v963_v9 = vsel %vm608_vm2, %v1893_v8, 0.0  ;;  %v1582_v16 = vpop.eup %1581 }
 0x6aa   : > { %v972_v17 = vsel %vm608_vm2, %v1582_v16, 0.0  ;;  %v1584_v18 = vpop.eup %1583 }
 0x6ad   : > { %964 = vadd.xlane.f32.xlu0 %v963_v9 }
 0x6b6   : > { %997 = vrot.lane.b32.xlu1 %v1756_v60, %s1621_s15  ;;  %v966_v60 = vsel %vm608_vm2, %v1584_v18, 0.0 }
 0x6ba   : > { %999 = vrot.lane.b32.xlu1 %v1766_v3, %s1621_s15 }
 0x6c3   : > { %995 = vrot.lane.b32.xlu0 %v1758_v61, %s1621_s15 }
 0x6de   : > { %973 = vadd.xlane.f32.xlu1 %v972_v17 }
 0x6e2   : > { %967 = vadd.xlane.f32.xlu1 %v966_v60 }
 0x6f3   : > { %1001 = vrot.lane.b32.xlu1 %v1764_v1, %s1621_s15 }
 0x72a   : > { %v959_v3 = vpop.xlane.xlu0 %958 }
 0x72e   : > { %v953_v61 = vpop.xlane.xlu0 %952  ;;  %v962_v19 = vpop.xlane.xlu1 %961 }
 0x72f   : > { %1585 = vrcp.f32 %v953_v61 }
 0x732   : > { %v956_v22 = vpop.xlane.xlu1 %955 }
 0x733   : > { %1587 = vrcp.f32 %v956_v22 }
 0x734   : > { %1589 = vrcp.f32 %v962_v19 }
 0x735   : > { %1591 = vrcp.f32 %v959_v3 }
 0x736   : > { %v971_v23 = vpop.xlane.xlu0 %970  ;;  %v998_v27 = vpop.permute.xlu1 %997 }
 0x739   : > { %v1586_v25 = vpop.eup %1585 }
 0x73a   : > { %v965_v24 = vpop.xlane.xlu0 %964  ;;  %v983_v30 = vmul.f32 %v1586_v25, %v1572_v55  ;;  %v1000_v1 = vpop.permute.xlu1 %999 }
 0x73d   : > { %v1588_v26 = vpop.eup %1587 }
 0x73e   : > { %v996_v20 = vpop.permute.xlu0 %995  ;;  %v984_v31 = vmul.f32 %v1588_v26, %v1576_v48  ;;  %v1590_v34 = vpop.eup %1589 }
 0x73f   : > { %1447 = vmatprep.subr.bf16.mxu1 %v996_v20  ;;  %v1592_v36 = vpop.eup %1591  ;;  %v986_v37 = vmul.f32 %v1590_v34, %v1883_v39 }
 0x740   : > { %1448 = vmatpush3.bf16.msra.mxu1 %v996_v20  ;;  %v991_v32 = vpack.c.bf16 %v984_v31, %v983_v30  ;;  %v985_v28 = vmul.f32 %v1592_v36, %v1879_v38  ;;  %v1519_v38 = vld [vmem:[%s1979_s4] sm:$0xff]  }
 0x741   : > { %1449 = vmatprep.subr.bf16.mxu1 %v998_v27 }
 0x742   : > { %1455 = vmatprep.mubr.msk.bf16.mxu1 %vm608_vm2, %v991_v32  ;;  %v992_v41 = vpack.c.bf16 %v986_v37, %v985_v28  ;;  %v1601_v32 = vld [vmem:[%s1674_s26 + $0x10] sm:$0xff] }
 0x744   : > { %1450 = vmatpush3.bf16.msra.mxu1 %v998_v27 }
 0x745   : > { %1451 = vmatprep.subr.bf16.mxu1 %v1000_v1 }
 0x748   : > { %1452 = vmatpush3.bf16.msra.mxu1 %v1000_v1 }
 0x76b   : > { %v974_v33 = vpop.xlane.xlu1 %973 }
 0x76c   : > { %1593 = vrcp.f32 %v974_v33 }
 0x76d   : > { %1595 = vrcp.f32 %v965_v24 }
 0x76e   : > { %1597 = vrcp.f32 %v971_v23 }
 0x76f   : > { %v968_v35 = vpop.xlane.xlu1 %967 }
 0x770   : > { %1599 = vrcp.f32 %v968_v35  ;;  %v1602_v35 = vld [vmem:[%s1674_s26] sm:$0xff] }
 0x773   : > { %v1002_v40 = vpop.permute.xlu1 %1001 }
 0x774   : > { %1453 = vmatprep.subr.bf16.mxu1 %v1002_v40 }
 0x775   : > { %1454 = vmatpush3.bf16.msra.mxu1 %v1002_v40  ;;  %v1603_v40 = vld [vmem:[%s1674_s26 + $0x18] sm:$0xff] }
 0x776   : > { %v1594_v42 = vpop.eup %1593  ;;  %1463 = vmatprep.subr.bf16.mxu1 %v1519_v38 }
 0x777   : > { %v1596_v21 = vpop.eup %1595  ;;  %v990_v45 = vmul.f32 %v1594_v42, %v1582_v16 }
 0x778   : > { %1456 = vmatmul.mubr.msk.bf16.vlgmr.msra.gmra.mrb[8].mxu1 %vm608_vm2, %v992_v41  ;;  %v1598_v43 = vpop.eup %1597  ;;  %v987_v46 = vmul.f32 %v1596_v21, %v1893_v8  ;;  %v1604_v41 = vld [vmem:[%s1674_s26 + $0x8] sm:$0xff] }
 0x779   : > { %v989_v29 = vmul.f32 %v1598_v43, %v1889_v59  ;;  %1464 = vmatpush3.bf16.msra.mxu1 %v1519_v38  ;;  %v1606_v38 = vld [vmem:[%s1674_s26 + $0x20] sm:$0xff] }
 0x77a   : > { %v1600_v44 = vpop.eup %1599  ;;  %1465 = vmatprep.subr.bf16.mxu1 %v1520_v52 }
 0x77b   : > { %v988_v47 = vmul.f32 %v1600_v44, %v1584_v18  ;;  %v994_v51 = vpack.c.bf16 %v990_v45, %v989_v29 }
 0x77d   : > { %v993_v50 = vpack.c.bf16 %v988_v47, %v987_v46  ;;  %1466 = vmatpush3.bf16.msra.mxu1 %v1520_v52  ;;  %v1605_v47 = vld [vmem:[%s1674_s26 + $0x30] sm:$0xff] }
 0x77f   : > { %1459 = vmatprep.mubr.msk.bf16.mxu1 %vm608_vm2, %v993_v50 }
 0x780   : > { %1460 = vmatmul.mubr.msk.bf16.gmra.mrb[12].mxu1 %vm608_vm2, %v994_v51 }
 0x84b   : > { %v1457_v53 = vpop.f32.mrb[8].mxu1 }
 0x84c   : > { %v1053_v54 = vpop.f32.mrb[9].mxu1 }
 0x84d   : > { %v1458_v55 = vpop.f32.mrb[10].mxu1 }
 0x84e   : > { %v1502_v39 = vpack.i.bf16 %v1458_v55, %v1457_v53  ;;  %v1056_v56 = vpop.f32.mrb[11].mxu1 }
 0x84f   : > { %v1497_v57 = vpack.i.bf16 %v1056_v56, %v1053_v54  ;;  %v1607_v54 = vld [vmem:[%s1674_s26 + $0x38] sm:$0xff] }
 0x850   : > { %1503 = vrot.lane.b32.xlu1 %v1502_v39, %s1622_s20  ;;  %v1608_v39 = vld [vmem:[%s1674_s26 + $0x28] sm:$0xff] }
 0x851   : > { %1498 = vrot.lane.b32.xlu0 %v1497_v57, %s1622_s20 }
 0x853   : > { %v1461_v48 = vpop.f32.mrb[12].mxu1 }
 0x854   : > { %v1069_v58 = vpop.f32.mrb[13].mxu1 }
 0x855   : > { %v1462_v59 = vpop.f32.mrb[14].mxu1 }
 0x856   : > { %v1512_v49 = vpack.i.bf16 %v1462_v59, %v1461_v48  ;;  %v1072_v8 = vpop.f32.mrb[15].mxu1 }
 0x857   : > { %v1507_v9 = vpack.i.bf16 %v1072_v8, %v1069_v58 }
 0x858   : > { %1513 = vrot.lane.b32.xlu1 %v1512_v49, %s1622_s20 }
 0x859   : > { %1508 = vrot.lane.b32.xlu0 %v1507_v9, %s1622_s20 }
 0x8c2   : > { %v1504_v10 = vpop.permute.xlu1 %1503 }
 0x8c3   : > { %v1506_v11 = vunpack.i.h.bf16 %v1504_v10  ;;  %v1505_v12 = vunpack.i.l.bf16 %v1504_v10  ;;  %v1499_v13 = vpop.permute.xlu0 %1498 }
 0x8c4   : > { %v1501_v14 = vunpack.i.h.bf16 %v1499_v13  ;;  %v1500_v15 = vunpack.i.l.bf16 %v1499_v13 }
 0x8c5   : > { %v1119_v16 = vsel %vm510_vm1, %v1856_v0, %v1506_v11  ;;  %v1118_v17 = vsel %vm510_vm1, %v1852_v62, %v1505_v12 }
 0x8c6   : > { %v1125_v18 = vpack.c.bf16 %v1119_v16, %v1118_v17  ;;  %v1117_v60 = vsel %vm510_vm1, %v1858_v2, %v1501_v14  ;;  %v1116_v3 = vsel %vm510_vm1, %v1854_v63, %v1500_v15 }
 0x8c7   : > { %v1124_v61 = vpack.c.bf16 %v1117_v60, %v1116_v3 }
 0x8c9   : > { %1467 = vmatprep.mubr.msk.bf16.mxu1 %vm263_vm0, %v1124_v61 }
 0x8ca   : > { %1468 = vmatmul.mubr.msk.bf16.vlgmr.msra.gmra.mrb[16].mxu1 %vm263_vm0, %v1125_v18  ;;  %v1514_v19 = vpop.permute.xlu1 %1513 }
 0x8cb   : > { %v1516_v22 = vunpack.i.h.bf16 %v1514_v19  ;;  %v1515_v23 = vunpack.i.l.bf16 %v1514_v19  ;;  %v1509_v0 = vpop.permute.xlu0 %1508 }
 0x8cc   : > { %v1511_v24 = vunpack.i.h.bf16 %v1509_v0  ;;  %v1510_v25 = vunpack.i.l.bf16 %v1509_v0 }
 0x8cd   : > { %v1123_v62 = vsel %vm510_vm1, %v1864_v6, %v1516_v22  ;;  %v1122_v2 = vsel %vm510_vm1, %v1860_v4, %v1515_v23  ;;  %v1332_v6 = vld [vmem:[%s1980_s5] ss:$0 sm:$0xff] }
 0x8ce   : > { %v1127_v63 = vpack.c.bf16 %v1123_v62, %v1122_v2  ;;  %v1121_v26 = vsel %vm510_vm1, %v1866_v7, %v1511_v24  ;;  %v1120_v27 = vsel %vm510_vm1, %v1862_v5, %v1510_v25 }
 0x8cf   : > { %v1126_v20 = vpack.c.bf16 %v1121_v26, %v1120_v27 }
 0x8d1   : > { %1471 = vmatprep.mubr.msk.bf16.mxu1 %vm263_vm0, %v1126_v20 }
 0x8d2   : > { %1472 = vmatmul.mubr.msk.bf16.gmra.mrb[20].mxu1 %vm263_vm0, %v1127_v63 }
 0x99d   : > { %v1469_v30 = vpop.f32.mrb[16].mxu1 }
 0x99e   : > { %v1206_v4 = vadd.f32 %v1469_v30, %v1332_v6  ;;  %v1197_v31 = vpop.f32.mrb[17].mxu1 }
 0x99f   : > { %v1198_v5 = vadd.f32 %v1332_v6, %v1197_v31  ;;  %v1470_v7 = vpop.f32.mrb[18].mxu1 }
 0x9a0   : > { %v1230_v1 = vadd.f32 %v1601_v32, %v1206_v4  ;;  %v1209_v33 = vadd.f32 %v1470_v7, %v1332_v6  ;;  %v1200_v34 = vpop.f32.mrb[19].mxu1 }
 0x9a1   : > { %v1228_v36 = vadd.f32 %v1602_v35, %v1198_v5  ;;  %v1201_v37 = vadd.f32 %v1332_v6, %v1200_v34 }
 0x9a2   : > { %1238 = vst.msk [vmem:[%s1946_s29 + $0x10] sm:$0xff] %vm263_vm0, %v1230_v1  ;;  %v1231_v28 = vadd.f32 %v1603_v40, %v1209_v33 }
 0x9a3   : > { %1236 = vst.msk [vmem:[%s1946_s29] sm:$0xff] %vm263_vm0, %v1228_v36  ;;  %v1229_v42 = vadd.f32 %v1604_v41, %v1201_v37 }
 0x9a4   : > { %1239 = vst.msk [vmem:[%s1946_s29 + $0x18] sm:$0xff] %vm263_vm0, %v1231_v28 }
 0x9a5   : > { %1237 = vst.msk [vmem:[%s1946_s29 + $0x8] sm:$0xff] %vm263_vm0, %v1229_v42  ;;  %v1473_v21 = vpop.f32.mrb[20].mxu1 }
 0x9a6   : > { %v1222_v43 = vadd.f32 %v1473_v21, %v1332_v6  ;;  %v1213_v44 = vpop.f32.mrb[21].mxu1 }
 0x9a7   : > { %v1214_v45 = vadd.f32 %v1332_v6, %v1213_v44  ;;  %v1474_v46 = vpop.f32.mrb[22].mxu1 }
 0x9a8   : > { %v1234_v29 = vadd.f32 %v1605_v47, %v1222_v43  ;;  %v1225_v50 = vadd.f32 %v1474_v46, %v1332_v6  ;;  %v1216_v51 = vpop.f32.mrb[23].mxu1 }
 0x9a9   : > { %v1232_v52 = vadd.f32 %v1606_v38, %v1214_v45  ;;  %v1217_v53 = vadd.f32 %v1332_v6, %v1216_v51 }
 0x9aa   : > { %1242 = vst.msk [vmem:[%s1946_s29 + $0x30] sm:$0xff] %vm263_vm0, %v1234_v29  ;;  %v1235_v55 = vadd.f32 %v1607_v54, %v1225_v50 }
 0x9ab   : > { %1240 = vst.msk [vmem:[%s1946_s29 + $0x20] sm:$0xff] %vm263_vm0, %v1232_v52  ;;  %v1233_v56 = vadd.f32 %v1608_v39, %v1217_v53 }
 0x9ac   : > { %1243 = vst.msk [vmem:[%s1946_s29 + $0x38] sm:$0xff] %vm263_vm0, %v1235_v55 }
 0x9ad   : > { %1241 = vst.msk [vmem:[%s1946_s29 + $0x28] sm:$0xff] %vm263_vm0, %v1233_v56 }
 0x9ae PF: > { %s16_s21 = sadd.s32 1, %s1615_s21  }
 0x9af   : > { %p13_p4 = scmp.ge.s32.totalorder %s16_s21, 4  }
 0x9b1   :  { %15 = sbr.rel (!%p13_p4) target bundleno = 1 (0x1), region = 74 }

// kernel: _lambda_.18
= control target key start
LH: loop header
LB: loop body
LE: loop exit
PB: predicated region body
PF: predicated region fallthrough
CT: control target
= control target key end

     0   :  { %vm96_vm0 = vcmask 261120   ;;  %vm246_vm1 = vcmask 523264   ;;  %s1055_s1 = inlined_call_operand.vmem [shape: bf16[64,32], index: 1, kind: input, shape index: {}]   ;;  %s1056_s0 = inlined_call_operand.vmem [shape: bf16[128,32], index: 0, kind: input, shape index: {}]   ;;  %s1057_s2 = inlined_call_operand.vmem [shape: f32[128,32], index: 2, kind: output, shape index: {}]  }
   0x1   :  { %v680_v0 = vld [vmem:[%s1055_s1] sm:$0xff]   ;;  %v681_v1 = vld [vmem:[%s1055_s1 + $0x8] sm:$0xff]   ;;  %v682_v4 = vld [vmem:[%s1055_s1 + $0x10] sm:$0xff]  }
   0x2   :  { %676 = vmatprep.subr.msk.bf16.mxu0 %vm96_vm0, %v680_v0  ;;  %v122_v2 = vsel %vm96_vm0, %v680_v0, 0  ;;  %652 = vmatprep.subr.bf16.mxu1 %v680_v0  ;;  %v684_v3 = vld [vmem:[%s1056_s0] sm:$0xff]   ;;  %v125_v5 = vsel %vm96_vm0, %v681_v1, 0  ;;  %v683_v6 = vld [vmem:[%s1055_s1 + $0x18] sm:$0xff]   ;;  %v128_v7 = vsel %vm96_vm0, %v682_v4, 0  ;;  %v685_v9 = vld [vmem:[%s1056_s0 + $0x8] sm:$0xff]  }
   0x3   :  { %629 = vmatpush3.bf16.xpose.msra.mxu0 %v122_v2  ;;  %653 = vmatpush3.bf16.msra.mxu1 %v680_v0  ;;  %v131_v8 = vsel %vm96_vm0, %v683_v6, 0  ;;  %v686_v10 = vld [vmem:[%s1056_s0 + $0x10] sm:$0xff]   ;;  %v687_v11 = vld [vmem:[%s1056_s0 + $0x18] sm:$0xff]   ;;  %v688_v12 = vld [vmem:[%s1056_s0 + $0x20] sm:$0xff]  }
   0x4   :  { %677 = vmatprep.subr.msk.bf16.mxu0 %vm96_vm0, %v681_v1  ;;  %654 = vmatprep.subr.bf16.mxu1 %v681_v1  ;;  %v689_v13 = vld [vmem:[%s1056_s0 + $0x28] sm:$0xff]   ;;  %v690_v14 = vld [vmem:[%s1056_s0 + $0x30] sm:$0xff]   ;;  %v691_v15 = vld [vmem:[%s1056_s0 + $0x38] sm:$0xff]  }
   0x5   :  { %636 = vmatprep.mubr.msk.bf16.mxu0 %vm96_vm0, %v684_v3 }
   0x7   :  { %655 = vmatpush3.bf16.msra.mxu1 %v681_v1 }
   0x8   :  { %656 = vmatprep.subr.bf16.mxu1 %v682_v4 }
   0xb   :  { %631 = vmatpush3.bf16.xpose.msra.mxu0 %v125_v5  ;;  %657 = vmatpush3.bf16.msra.mxu1 %v682_v4 }
   0xc   :  { %678 = vmatprep.subr.msk.bf16.mxu0 %vm96_vm0, %v682_v4  ;;  %658 = vmatprep.subr.bf16.mxu1 %v683_v6 }
   0xf   :  { %659 = vmatpush3.bf16.msra.mxu1 %v683_v6 }
  0x13   :  { %633 = vmatpush3.bf16.xpose.msra.mxu0 %v128_v7 }
  0x14   :  { %679 = vmatprep.subr.msk.bf16.mxu0 %vm96_vm0, %v683_v6 }
  0x1b   :  { %635 = vmatpush3.bf16.xpose.msra.mxu0 %v131_v8 }
  0x22   :  { %637 = vmatmul.mubr.msk.bf16.vlgmr.msra.gmra.mrb[0].mxu0 %vm96_vm0, %v685_v9 }
  0x23   :  { %640 = vmatprep.mubr.msk.bf16.mxu0 %vm96_vm0, %v686_v10 }
  0x2a   :  { %641 = vmatmul.mubr.msk.bf16.gmra.mrb[4].mxu0 %vm96_vm0, %v687_v11 }
  0x2b   :  { %644 = vmatprep.mubr.msk.bf16.mxu0 %vm96_vm0, %v688_v12 }
  0x32   :  { %645 = vmatmul.mubr.msk.bf16.gmra.mrb[8].mxu0 %vm96_vm0, %v689_v13 }
  0x33   :  { %648 = vmatprep.mubr.msk.bf16.mxu0 %vm96_vm0, %v690_v14 }
  0x3a   :  { %649 = vmatmul.mubr.msk.bf16.gmra.mrb[12].mxu0 %vm96_vm0, %v691_v15 }
  0xf5   :  { %v638_v16 = vpop.f32.mrb[0].mxu0 }
  0xf6   :  { %v823_v17 = vmul.f32 0.17677669, %v638_v16  ;;  %v167_v18 = vpop.f32.mrb[1].mxu0 }
  0xf7   :  { %v825_v19 = vmul.f32 0.17677669, %v167_v18  ;;  %v639_v20 = vpop.f32.mrb[2].mxu0 }
  0xf8   :  { %v827_v21 = vmul.f32 0.17677669, %v639_v20  ;;  %v170_v22 = vpop.f32.mrb[3].mxu0  ;;  %v253_v23 = vsel %vm246_vm1, %v823_v17, -inf }
  0xf9   :  { %v831_v24 = vmul.f32 0.17677669, %v170_v22  ;;  %254 = vmax.xlane.f32.xlu1 %v253_v23  ;;  %v247_v25 = vsel %vm246_vm1, %v825_v19, -inf }
  0xfa   :  { %248 = vmax.xlane.f32.xlu0 %v247_v25  ;;  %v256_v26 = vsel %vm246_vm1, %v827_v21, -inf }
  0xfb   :  { %v250_v28 = vsel %vm246_vm1, %v831_v24, -inf }
  0xfd   :  { %257 = vmax.xlane.f32.xlu1 %v256_v26  ;;  %v642_v27 = vpop.f32.mrb[4].mxu0 }
  0xfe   :  { %251 = vmax.xlane.f32.xlu0 %v250_v28  ;;  %v183_v29 = vpop.f32.mrb[5].mxu0  ;;  %v841_v33 = vmul.f32 0.17677669, %v642_v27 }
  0xff   :  { %v839_v30 = vmul.f32 0.17677669, %v183_v29  ;;  %v643_v31 = vpop.f32.mrb[6].mxu0 }
 0x100   :  { %v186_v32 = vpop.f32.mrb[7].mxu0  ;;  %v847_v36 = vmul.f32 0.17677669, %v643_v31  ;;  %v265_v39 = vsel %vm246_vm1, %v841_v33, -inf }
 0x101   :  { %v843_v34 = vmul.f32 0.17677669, %v186_v32  ;;  %v259_v35 = vsel %vm246_vm1, %v839_v30, -inf }
 0x102   :  { %260 = vmax.xlane.f32.xlu0 %v259_v35  ;;  %v268_v43 = vsel %vm246_vm1, %v847_v36, -inf }
 0x103   :  { %v262_v37 = vsel %vm246_vm1, %v843_v34, -inf }
 0x104   :  { %263 = vmax.xlane.f32.xlu1 %v262_v37 }
 0x105   :  { %v646_v38 = vpop.f32.mrb[8].mxu0 }
 0x106   :  { %266 = vmax.xlane.f32.xlu0 %v265_v39  ;;  %v199_v40 = vpop.f32.mrb[9].mxu0  ;;  %v857_v45 = vmul.f32 0.17677669, %v646_v38 }
 0x107   :  { %v853_v41 = vmul.f32 0.17677669, %v199_v40  ;;  %v647_v42 = vpop.f32.mrb[10].mxu0 }
 0x108   :  { %269 = vmax.xlane.f32.xlu1 %v268_v43  ;;  %v202_v44 = vpop.f32.mrb[11].mxu0  ;;  %v863_v48 = vmul.f32 0.17677669, %v647_v42  ;;  %v277_v51 = vsel %vm246_vm1, %v857_v45, -inf }
 0x109   :  { %v859_v46 = vmul.f32 0.17677669, %v202_v44  ;;  %v271_v47 = vsel %vm246_vm1, %v853_v41, -inf }
 0x10a   :  { %272 = vmax.xlane.f32.xlu0 %v271_v47  ;;  %v280_v55 = vsel %vm246_vm1, %v863_v48, -inf }
 0x10b   :  { %v274_v49 = vsel %vm246_vm1, %v859_v46, -inf }
 0x10c   :  { %275 = vmax.xlane.f32.xlu1 %v274_v49 }
 0x10d   :  { %v650_v50 = vpop.f32.mrb[12].mxu0 }
 0x10e   :  { %278 = vmax.xlane.f32.xlu0 %v277_v51  ;;  %v215_v52 = vpop.f32.mrb[13].mxu0  ;;  %v873_v57 = vmul.f32 0.17677669, %v650_v50 }
 0x10f   :  { %v869_v53 = vmul.f32 0.17677669, %v215_v52  ;;  %v651_v54 = vpop.f32.mrb[14].mxu0 }
 0x110   :  { %281 = vmax.xlane.f32.xlu1 %v280_v55  ;;  %v218_v56 = vpop.f32.mrb[15].mxu0  ;;  %v879_v60 = vmul.f32 0.17677669, %v651_v54  ;;  %v289_v62 = vsel %vm246_vm1, %v873_v57, -inf }
 0x111   :  { %v875_v58 = vmul.f32 0.17677669, %v218_v56  ;;  %v283_v59 = vsel %vm246_vm1, %v869_v53, -inf }
 0x112   :  { %284 = vmax.xlane.f32.xlu0 %v283_v59  ;;  %v292_v63 = vsel %vm246_vm1, %v879_v60, -inf }
 0x113   :  { %v286_v61 = vsel %vm246_vm1, %v875_v58, -inf }
 0x114   :  { %287 = vmax.xlane.f32.xlu1 %v286_v61 }
 0x116   :  { %290 = vmax.xlane.f32.xlu0 %v289_v62 }
 0x118   :  { %293 = vmax.xlane.f32.xlu1 %v292_v63 }
 0x186   :  { %v255_v0 = vpop.xlane.xlu1 %254 }
 0x187   :  { %v297_v1 = vsub.f32 %v823_v17, %v255_v0  ;;  %v249_v2 = vpop.xlane.xlu0 %248 }
 0x188   :  { %v295_v3 = vsub.f32 %v825_v19, %v249_v2 }
 0x189   :  { %v315_v4 = vmul.f32 1.442695, %v297_v1 }
 0x18a   :  { %v311_v5 = vmul.f32 1.442695, %v295_v3  ;;  %v258_v6 = vpop.xlane.xlu1 %257 }
 0x18b   :  { %v298_v7 = vsub.f32 %v827_v21, %v258_v6  ;;  %v252_v8 = vpop.xlane.xlu0 %251 }
 0x18c   :  { %692 = vpow2.f32 %v311_v5  ;;  %v296_v9 = vsub.f32 %v831_v24, %v252_v8 }
 0x18d   :  { %694 = vpow2.f32 %v315_v4  ;;  %v317_v10 = vmul.f32 1.442695, %v298_v7 }
 0x18e   :  { %v313_v11 = vmul.f32 1.442695, %v296_v9 }
 0x18f   :  { %v261_v12 = vpop.xlane.xlu0 %260 }
 0x190   :  { %696 = vpow2.f32 %v313_v11  ;;  %v299_v13 = vsub.f32 %v839_v30, %v261_v12 }
 0x191   :  { %v264_v14 = vpop.xlane.xlu1 %263  ;;  %698 = vpow2.f32 %v317_v10 }
 0x192   :  { %v319_v15 = vmul.f32 1.442695, %v299_v13  ;;  %v300_v16 = vsub.f32 %v843_v34, %v264_v14 }
 0x193   :  { %v267_v17 = vpop.xlane.xlu0 %266 }
 0x194   :  { %700 = vpow2.f32 %v319_v15  ;;  %v321_v18 = vmul.f32 1.442695, %v300_v16  ;;  %v301_v19 = vsub.f32 %v841_v33, %v267_v17 }
 0x195   :  { %v270_v20 = vpop.xlane.xlu1 %269 }
 0x196   :  { %v894_v21 = vpop.eup %692  ;;  %702 = vpow2.f32 %v321_v18  ;;  %v323_v22 = vmul.f32 1.442695, %v301_v19  ;;  %v302_v23 = vsub.f32 %v847_v36, %v270_v20 }
 0x197   :  { %v273_v24 = vpop.xlane.xlu0 %272  ;;  %v343_v25 = vsel %vm246_vm1, %v894_v21, 0.0  ;;  %v899_v26 = vpop.eup %694 }
 0x198   :  { %704 = vpow2.f32 %v323_v22  ;;  %v325_v27 = vmul.f32 1.442695, %v302_v23  ;;  %v303_v28 = vsub.f32 %v853_v41, %v273_v24  ;;  %344 = vadd.xlane.f32.xlu0 %v343_v25  ;;  %v349_v34 = vsel %vm246_vm1, %v899_v26, 0.0 }
 0x199   :  { %v276_v29 = vpop.xlane.xlu1 %275 }
 0x19a   :  { %v902_v30 = vpop.eup %696  ;;  %706 = vpow2.f32 %v325_v27  ;;  %v327_v31 = vmul.f32 1.442695, %v303_v28  ;;  %v304_v32 = vsub.f32 %v859_v46, %v276_v29 }
 0x19b   :  { %v279_v33 = vpop.xlane.xlu0 %278  ;;  %v346_v35 = vsel %vm246_vm1, %v902_v30, 0.0  ;;  %v909_v36 = vpop.eup %698 }
 0x19c   :  { %708 = vpow2.f32 %v327_v31  ;;  %v329_v37 = vmul.f32 1.442695, %v304_v32  ;;  %v305_v38 = vsub.f32 %v857_v45, %v279_v33  ;;  %350 = vadd.xlane.f32.xlu0 %v349_v34  ;;  %347 = vadd.xlane.f32.xlu1 %v346_v35  ;;  %v352_v46 = vsel %vm246_vm1, %v909_v36, 0.0 }
 0x19d   :  { %v282_v39 = vpop.xlane.xlu1 %281 }
 0x19e   :  { %v912_v40 = vpop.eup %700  ;;  %710 = vpow2.f32 %v329_v37  ;;  %v331_v41 = vmul.f32 1.442695, %v305_v38  ;;  %v306_v42 = vsub.f32 %v863_v48, %v282_v39 }
 0x19f   :  { %v285_v43 = vpop.xlane.xlu0 %284  ;;  %v355_v44 = vsel %vm246_vm1, %v912_v40, 0.0 }
 0x1a0   :  { %v919_v47 = vpop.eup %702  ;;  %712 = vpow2.f32 %v331_v41  ;;  %v333_v45 = vmul.f32 1.442695, %v306_v42  ;;  %v307_v49 = vsub.f32 %v869_v53, %v285_v43  ;;  %356 = vadd.xlane.f32.xlu0 %v355_v44  ;;  %353 = vadd.xlane.f32.xlu1 %v352_v46 }
 0x1a1   :  { %v288_v50 = vpop.xlane.xlu1 %287  ;;  %v358_v56 = vsel %vm246_vm1, %v919_v47, 0.0 }
 0x1a2   :  { %v922_v51 = vpop.eup %704  ;;  %714 = vpow2.f32 %v333_v45  ;;  %v335_v48 = vmul.f32 1.442695, %v307_v49  ;;  %v308_v52 = vsub.f32 %v875_v58, %v288_v50 }
 0x1a3   :  { %v291_v54 = vpop.xlane.xlu0 %290  ;;  %v361_v55 = vsel %vm246_vm1, %v922_v51, 0.0 }
 0x1a4   :  { %v929_v59 = vpop.eup %706  ;;  %716 = vpow2.f32 %v335_v48  ;;  %v337_v53 = vmul.f32 1.442695, %v308_v52  ;;  %v309_v61 = vsub.f32 %v873_v57, %v291_v54  ;;  %362 = vadd.xlane.f32.xlu0 %v361_v55  ;;  %359 = vadd.xlane.f32.xlu1 %v358_v56 }
 0x1a5   :  { %v294_v62 = vpop.xlane.xlu1 %293  ;;  %v364_v2 = vsel %vm246_vm1, %v929_v59, 0.0 }
 0x1a6   :  { %v932_v63 = vpop.eup %708  ;;  %718 = vpow2.f32 %v337_v53  ;;  %v339_v58 = vmul.f32 1.442695, %v309_v61  ;;  %v310_v0 = vsub.f32 %v879_v60, %v294_v62 }
 0x1a7   :  { %v367_v1 = vsel %vm246_vm1, %v932_v63, 0.0 }
 0x1a8   :  { %v939_v3 = vpop.eup %710  ;;  %720 = vpow2.f32 %v339_v58  ;;  %v341_v4 = vmul.f32 1.442695, %v310_v0  ;;  %368 = vadd.xlane.f32.xlu0 %v367_v1  ;;  %365 = vadd.xlane.f32.xlu1 %v364_v2 }
 0x1a9   :  { %v370_v60 = vsel %vm246_vm1, %v939_v3, 0.0 }
 0x1aa   :  { %v941_v57 = vpop.eup %712  ;;  %722 = vpow2.f32 %v341_v4 }
 0x1ab   :  { %v373_v5 = vsel %vm246_vm1, %v941_v57, 0.0 }
 0x1ac   :  { %v947_v6 = vpop.eup %714  ;;  %374 = vadd.xlane.f32.xlu0 %v373_v5  ;;  %371 = vadd.xlane.f32.xlu1 %v370_v60 }
 0x1ad   :  { %v376_v9 = vsel %vm246_vm1, %v947_v6, 0.0 }
 0x1ae   :  { %v949_v7 = vpop.eup %716 }
 0x1af   :  { %v379_v8 = vsel %vm246_vm1, %v949_v7, 0.0 }
 0x1b0   :  { %v955_v10 = vpop.eup %718  ;;  %380 = vadd.xlane.f32.xlu0 %v379_v8  ;;  %377 = vadd.xlane.f32.xlu1 %v376_v9 }
 0x1b1   :  { %v382_v13 = vsel %vm246_vm1, %v955_v10, 0.0 }
 0x1b2   :  { %v957_v11 = vpop.eup %720 }
 0x1b3   :  { %v385_v12 = vsel %vm246_vm1, %v957_v11, 0.0 }
 0x1b4   :  { %v963_v14 = vpop.eup %722  ;;  %386 = vadd.xlane.f32.xlu0 %v385_v12  ;;  %383 = vadd.xlane.f32.xlu1 %v382_v13 }
 0x1b5   :  { %v388_v15 = vsel %vm246_vm1, %v963_v14, 0.0 }
 0x1b8   :  { %389 = vadd.xlane.f32.xlu1 %v388_v15 }
 0x225   :  { %v345_v16 = vpop.xlane.xlu0 %344 }
 0x226   :  { %724 = vrcp.f32 %v345_v16 }
 0x229   :  { %v351_v17 = vpop.xlane.xlu0 %350  ;;  %v348_v18 = vpop.xlane.xlu1 %347 }
 0x22a   :  { %726 = vrcp.f32 %v348_v18 }
 0x22b   :  { %728 = vrcp.f32 %v351_v17 }
 0x22d   :  { %v357_v19 = vpop.xlane.xlu0 %356  ;;  %v354_v20 = vpop.xlane.xlu1 %353 }
 0x22e   :  { %730 = vrcp.f32 %v354_v20 }
 0x22f   :  { %732 = vrcp.f32 %v357_v19 }
 0x230   :  { %v725_v24 = vpop.eup %724 }
 0x231   :  { %v363_v22 = vpop.xlane.xlu0 %362  ;;  %v360_v23 = vpop.xlane.xlu1 %359  ;;  %v407_v29 = vmul.f32 %v725_v24, %v894_v21 }
 0x232   :  { %734 = vrcp.f32 %v360_v23 }
 0x233   :  { %736 = vrcp.f32 %v363_v22 }
 0x234   :  { %v727_v25 = vpop.eup %726 }
 0x235   :  { %v369_v27 = vpop.xlane.xlu0 %368  ;;  %v366_v28 = vpop.xlane.xlu1 %365  ;;  %v408_v31 = vmul.f32 %v727_v25, %v902_v30 }
 0x236   :  { %v729_v32 = vpop.eup %728  ;;  %738 = vrcp.f32 %v366_v28 }
 0x237   :  { %v423_v33 = vpack.c.bf16 %v408_v31, %v407_v29  ;;  %740 = vrcp.f32 %v369_v27  ;;  %v409_v38 = vmul.f32 %v729_v32, %v899_v26 }
 0x238   :  { %v731_v34 = vpop.eup %730 }
 0x239   :  { %v375_v35 = vpop.xlane.xlu0 %374  ;;  %v372_v37 = vpop.xlane.xlu1 %371  ;;  %660 = vmatprep.mubr.msk.bf16.mxu1 %vm246_vm1, %v423_v33  ;;  %v410_v39 = vmul.f32 %v731_v34, %v909_v36 }
 0x23a   :  { %v733_v41 = vpop.eup %732  ;;  %742 = vrcp.f32 %v372_v37 }
 0x23b   :  { %v424_v42 = vpack.c.bf16 %v410_v39, %v409_v38  ;;  %744 = vrcp.f32 %v375_v35  ;;  %v411_v44 = vmul.f32 %v733_v41, %v912_v40 }
 0x23c   :  { %v735_v43 = vpop.eup %734 }
 0x23d   :  { %v381_v21 = vpop.xlane.xlu0 %380  ;;  %v378_v30 = vpop.xlane.xlu1 %377  ;;  %661 = vmatmul.mubr.msk.bf16.vlgmr.msra.gmra.mrb[0].mxu1 %vm246_vm1, %v424_v42  ;;  %v412_v46 = vmul.f32 %v735_v43, %v919_v47 }
 0x23e   :  { %v737_v45 = vpop.eup %736  ;;  %746 = vrcp.f32 %v378_v30 }
 0x23f   :  { %v425_v49 = vpack.c.bf16 %v412_v46, %v411_v44  ;;  %748 = vrcp.f32 %v381_v21  ;;  %v413_v48 = vmul.f32 %v737_v45, %v922_v51 }
 0x240   :  { %v739_v50 = vpop.eup %738 }
 0x241   :  { %v387_v26 = vpop.xlane.xlu0 %386  ;;  %v384_v36 = vpop.xlane.xlu1 %383  ;;  %664 = vmatprep.mubr.msk.bf16.mxu1 %vm246_vm1, %v425_v49  ;;  %v414_v52 = vmul.f32 %v739_v50, %v929_v59 }
 0x242   :  { %v741_v54 = vpop.eup %740  ;;  %750 = vrcp.f32 %v384_v36 }
 0x243   :  { %752 = vrcp.f32 %v387_v26  ;;  %v426_v55 = vpack.c.bf16 %v414_v52, %v413_v48  ;;  %v415_v47 = vmul.f32 %v741_v54, %v932_v63 }
 0x244   :  { %v743_v40 = vpop.eup %742 }
 0x245   :  { %v390_v56 = vpop.xlane.xlu1 %389  ;;  %665 = vmatmul.mubr.msk.bf16.gmra.mrb[4].mxu1 %vm246_vm1, %v426_v55  ;;  %v416_v53 = vmul.f32 %v743_v40, %v939_v3  ;;  %v745_v61 = vpop.eup %744 }
 0x246   :  { %754 = vrcp.f32 %v390_v56  ;;  %v417_v51 = vmul.f32 %v745_v61, %v941_v57 }
 0x247   :  { %v427_v62 = vpack.c.bf16 %v416_v53, %v415_v47 }
 0x248   :  { %v747_v58 = vpop.eup %746 }
 0x249   :  { %668 = vmatprep.mubr.msk.bf16.mxu1 %vm246_vm1, %v427_v62  ;;  %v418_v59 = vmul.f32 %v747_v58, %v947_v6  ;;  %v749_v0 = vpop.eup %748 }
 0x24a   :  { %v419_v5 = vmul.f32 %v749_v0, %v949_v7 }
 0x24b   :  { %v428_v1 = vpack.c.bf16 %v418_v59, %v417_v51 }
 0x24c   :  { %v751_v2 = vpop.eup %750 }
 0x24d   :  { %v753_v4 = vpop.eup %752  ;;  %669 = vmatmul.mubr.msk.bf16.gmra.mrb[8].mxu1 %vm246_vm1, %v428_v1  ;;  %v420_v63 = vmul.f32 %v751_v2, %v955_v10 }
 0x24e   :  { %v421_v8 = vmul.f32 %v753_v4, %v957_v11 }
 0x24f   :  { %v429_v60 = vpack.c.bf16 %v420_v63, %v419_v5 }
 0x250   :  { %v755_v3 = vpop.eup %754 }
 0x251   :  { %v422_v9 = vmul.f32 %v755_v3, %v963_v14  ;;  %672 = vmatprep.mubr.msk.bf16.mxu1 %vm246_vm1, %v429_v60 }
 0x253   :  { %v430_v57 = vpack.c.bf16 %v422_v9, %v421_v8 }
 0x255   :  { %673 = vmatmul.mubr.msk.bf16.gmra.mrb[12].mxu1 %vm246_vm1, %v430_v57 }
 0x310   :  { %v662_v6 = vpop.f32.mrb[0].mxu1 }
 0x311   :  { %558 = vst.msk [vmem:[%s1057_s2 + $0x10] sm:$0xff] %vm96_vm0, %v662_v6  ;;  %v493_v7 = vpop.f32.mrb[1].mxu1 }
 0x312   :  { %556 = vst.msk [vmem:[%s1057_s2] sm:$0xff] %vm96_vm0, %v493_v7  ;;  %v663_v10 = vpop.f32.mrb[2].mxu1 }
 0x313   :  { %559 = vst.msk [vmem:[%s1057_s2 + $0x18] sm:$0xff] %vm96_vm0, %v663_v10  ;;  %v496_v11 = vpop.f32.mrb[3].mxu1 }
 0x314   :  { %557 = vst.msk [vmem:[%s1057_s2 + $0x8] sm:$0xff] %vm96_vm0, %v496_v11 }
 0x318   :  { %v666_v12 = vpop.f32.mrb[4].mxu1 }
 0x319   :  { %562 = vst.msk [vmem:[%s1057_s2 + $0x30] sm:$0xff] %vm96_vm0, %v666_v12  ;;  %v509_v13 = vpop.f32.mrb[5].mxu1 }
 0x31a   :  { %560 = vst.msk [vmem:[%s1057_s2 + $0x20] sm:$0xff] %vm96_vm0, %v509_v13  ;;  %v667_v14 = vpop.f32.mrb[6].mxu1 }
 0x31b   :  { %563 = vst.msk [vmem:[%s1057_s2 + $0x38] sm:$0xff] %vm96_vm0, %v667_v14  ;;  %v512_v15 = vpop.f32.mrb[7].mxu1 }
 0x31c   :  { %561 = vst.msk [vmem:[%s1057_s2 + $0x28] sm:$0xff] %vm96_vm0, %v512_v15 }
 0x320   :  { %v670_v16 = vpop.f32.mrb[8].mxu1 }
 0x321   :  { %566 = vst.msk [vmem:[%s1057_s2 + $0x50] sm:$0xff] %vm96_vm0, %v670_v16  ;;  %v525_v17 = vpop.f32.mrb[9].mxu1 }
 0x322   :  { %564 = vst.msk [vmem:[%s1057_s2 + $0x40] sm:$0xff] %vm96_vm0, %v525_v17  ;;  %v671_v18 = vpop.f32.mrb[10].mxu1 }
 0x323   :  { %567 = vst.msk [vmem:[%s1057_s2 + $0x58] sm:$0xff] %vm96_vm0, %v671_v18  ;;  %v528_v19 = vpop.f32.mrb[11].mxu1 }
 0x324   :  { %565 = vst.msk [vmem:[%s1057_s2 + $0x48] sm:$0xff] %vm96_vm0, %v528_v19 }
 0x328   :  { %v674_v20 = vpop.f32.mrb[12].mxu1 }
 0x329   :  { %570 = vst.msk [vmem:[%s1057_s2 + $0x70] sm:$0xff] %vm96_vm0, %v674_v20  ;;  %v541_v22 = vpop.f32.mrb[13].mxu1 }
 0x32a   :  { %568 = vst.msk [vmem:[%s1057_s2 + $0x60] sm:$0xff] %vm96_vm0, %v541_v22  ;;  %v675_v23 = vpop.f32.mrb[14].mxu1 }
 0x32b   :  { %571 = vst.msk [vmem:[%s1057_s2 + $0x78] sm:$0xff] %vm96_vm0, %v675_v23  ;;  %v544_v24 = vpop.f32.mrb[15].mxu1 }
 0x32c   :  { %569 = vst.msk [vmem:[%s1057_s2 + $0x68] sm:$0xff] %vm96_vm0, %v544_v24 }

// kernel: _lambda_.17
= control target key start
LH: loop header
LB: loop body
LE: loop exit
PB: predicated region body
PF: predicated region fallthrough
CT: control target
= control target key end

     0   :  { %vm45_vm0 = vcmask 261120   ;;  %vm930_vm13 = vcmask 523264   ;;  %s2137_s0 = inlined_call_operand.vmem [shape: f32[128,32], index: 0, kind: input, shape index: {}]   ;;  %s2138_s3 = inlined_call_operand.vmem [shape: bf16[32,64], index: 3, kind: input, shape index: {}]   ;;  %s2139_s1 = inlined_call_operand.vmem [shape: f32[1,32], index: 1, kind: input, shape index: {}]   ;;  %s2140_s2 = inlined_call_operand.vmem [shape: f32[1,32], index: 2, kind: input, shape index: {}]   ;;  %s2141_s5 = inlined_call_operand.vmem [shape: bf16[64,32], index: 5, kind: input, shape index: {}]   ;;  %s2142_s4 = inlined_call_operand.vmem [shape: f32[1,64], index: 4, kind: input, shape index: {}]   ;;  %s2143_s6 = inlined_call_operand.vmem [shape: f32[1,32], index: 6, kind: input, shape index: {}]   ;;  %s2144_s7 = inlined_call_operand.vmem [shape: f32[128,32], index: 7, kind: output, shape index: {}]  }
   0x1   :  { %v27_v0 = vld [vmem:[%s2137_s0] sm:$0xff]  ;;  %v29_v1 = vld [vmem:[%s2137_s0 + $0x10] sm:$0xff]  ;;  %v28_v2 = vld [vmem:[%s2137_s0 + $0x8] sm:$0xff] }
   0x2   :  { %v46_v3 = vsel %vm45_vm0, %v27_v0, 0.0  ;;  %v52_v4 = vsel %vm45_vm0, %v29_v1, 0.0  ;;  %v30_v5 = vld [vmem:[%s2137_s0 + $0x18] sm:$0xff]  ;;  %v49_v6 = vsel %vm45_vm0, %v28_v2, 0.0  ;;  %v31_v8 = vld [vmem:[%s2137_s0 + $0x20] sm:$0xff]  ;;  %v32_v9 = vld [vmem:[%s2137_s0 + $0x28] sm:$0xff] }
   0x3   :  { %47 = vadd.xlane.f32.xlu0 %v46_v3  ;;  %53 = vadd.xlane.f32.xlu1 %v52_v4  ;;  %v55_v7 = vsel %vm45_vm0, %v30_v5, 0.0  ;;  %v58_v10 = vsel %vm45_vm0, %v31_v8, 0.0  ;;  %v61_v11 = vsel %vm45_vm0, %v32_v9, 0.0  ;;  %v1365_v12 = vld [vmem:[%s2137_s0 + $0x30] sm:$0xff]  ;;  %v1370_v13 = vld [vmem:[%s2137_s0 + $0x38] sm:$0xff]  ;;  %v1379_v16 = vld [vmem:[%s2137_s0 + $0x40] sm:$0xff] }
   0x4   :  { %v64_v14 = vsel %vm45_vm0, %v1365_v12, 0.0  ;;  %v67_v15 = vsel %vm45_vm0, %v1370_v13, 0.0  ;;  %v1384_v17 = vld [vmem:[%s2137_s0 + $0x48] sm:$0xff]  ;;  %v70_v18 = vsel %vm45_vm0, %v1379_v16, 0.0  ;;  %v1393_v20 = vld [vmem:[%s2137_s0 + $0x50] sm:$0xff]  ;;  %v1398_v21 = vld [vmem:[%s2137_s0 + $0x58] sm:$0xff] }
   0x5   :  { %v73_v19 = vsel %vm45_vm0, %v1384_v17, 0.0  ;;  %v76_v22 = vsel %vm45_vm0, %v1393_v20, 0.0  ;;  %v79_v23 = vsel %vm45_vm0, %v1398_v21, 0.0  ;;  %v1407_v24 = vld [vmem:[%s2137_s0 + $0x60] sm:$0xff]  ;;  %v1412_v25 = vld [vmem:[%s2137_s0 + $0x68] sm:$0xff]  ;;  %v1421_v28 = vld [vmem:[%s2137_s0 + $0x70] sm:$0xff] }
   0x6   :  { %v82_v26 = vsel %vm45_vm0, %v1407_v24, 0.0  ;;  %v85_v27 = vsel %vm45_vm0, %v1412_v25, 0.0  ;;  %v1426_v29 = vld [vmem:[%s2137_s0 + $0x78] sm:$0xff]  ;;  %v88_v30 = vsel %vm45_vm0, %v1421_v28, 0.0 }
   0x7   :  { %50 = vadd.xlane.f32.xlu0 %v49_v6  ;;  %56 = vadd.xlane.f32.xlu1 %v55_v7  ;;  %v91_v31 = vsel %vm45_vm0, %v1426_v29, 0.0 }
   0xb   :  { %59 = vadd.xlane.f32.xlu0 %v58_v10  ;;  %62 = vadd.xlane.f32.xlu1 %v61_v11 }
   0xf   :  { %65 = vadd.xlane.f32.xlu0 %v64_v14  ;;  %68 = vadd.xlane.f32.xlu1 %v67_v15 }
  0x13   :  { %71 = vadd.xlane.f32.xlu0 %v70_v18  ;;  %74 = vadd.xlane.f32.xlu1 %v73_v19 }
  0x17   :  { %77 = vadd.xlane.f32.xlu0 %v76_v22  ;;  %80 = vadd.xlane.f32.xlu1 %v79_v23 }
  0x1b   :  { %83 = vadd.xlane.f32.xlu0 %v82_v26  ;;  %86 = vadd.xlane.f32.xlu1 %v85_v27 }
  0x1f   :  { %89 = vadd.xlane.f32.xlu0 %v88_v30  ;;  %92 = vadd.xlane.f32.xlu1 %v91_v31 }
  0x90   :  { %v48_v32 = vpop.xlane.xlu0 %47  ;;  %v54_v33 = vpop.xlane.xlu1 %53 }
  0x91   :  { %v95_v34 = vmul.f32 0.03125, %v48_v32  ;;  %v97_v35 = vmul.f32 0.03125, %v54_v33 }
  0x93   :  { %v1432_v36 = vsub.f32 %v27_v0, %v95_v34  ;;  %v1434_v37 = vsub.f32 %v29_v1, %v97_v35 }
  0x94   :  { %v51_v38 = vpop.xlane.xlu0 %50  ;;  %v57_v39 = vpop.xlane.xlu1 %56 }
  0x95   :  { %v96_v40 = vmul.f32 0.03125, %v51_v38  ;;  %v98_v41 = vmul.f32 0.03125, %v57_v39  ;;  %v127_v42 = vmul.f32 %v1432_v36, %v1432_v36  ;;  %v129_v43 = vmul.f32 %v1434_v37, %v1434_v37 }
  0x97   :  { %v1440_v44 = vsub.f32 %v28_v2, %v96_v40  ;;  %v1442_v45 = vsub.f32 %v30_v5, %v98_v41  ;;  %v143_v46 = vsel %vm45_vm0, %v127_v42, 0.0  ;;  %v149_v49 = vsel %vm45_vm0, %v129_v43, 0.0 }
  0x98   :  { %144 = vadd.xlane.f32.xlu0 %v143_v46  ;;  %v60_v47 = vpop.xlane.xlu0 %59  ;;  %v63_v48 = vpop.xlane.xlu1 %62 }
  0x99   :  { %v99_v50 = vmul.f32 0.03125, %v60_v47  ;;  %v100_v51 = vmul.f32 0.03125, %v63_v48  ;;  %v128_v52 = vmul.f32 %v1440_v44, %v1440_v44  ;;  %v130_v53 = vmul.f32 %v1442_v45, %v1442_v45 }
  0x9b   :  { %v1450_v54 = vsub.f32 %v31_v8, %v99_v50  ;;  %v1452_v55 = vsub.f32 %v32_v9, %v100_v51  ;;  %v146_v56 = vsel %vm45_vm0, %v128_v52, 0.0  ;;  %v152_v59 = vsel %vm45_vm0, %v130_v53, 0.0  ;;  %v1181_v53 = vld [vmem:[%s2138_s3 + $0x8] sm:$0xff]  }
  0x9c   :  { %150 = vadd.xlane.f32.xlu0 %v149_v49  ;;  %147 = vadd.xlane.f32.xlu1 %v146_v56  ;;  %v66_v57 = vpop.xlane.xlu0 %65  ;;  %v69_v58 = vpop.xlane.xlu1 %68 }
  0x9d   :  { %v101_v60 = vmul.f32 0.03125, %v66_v57  ;;  %v102_v61 = vmul.f32 0.03125, %v69_v58  ;;  %v131_v62 = vmul.f32 %v1450_v54, %v1450_v54  ;;  %v132_v63 = vmul.f32 %v1452_v55, %v1452_v55 }
  0x9f   :  { %v1461_v0 = vsub.f32 %v1365_v12, %v101_v60  ;;  %v1464_v1 = vsub.f32 %v1370_v13, %v102_v61  ;;  %v155_v2 = vsel %vm45_vm0, %v131_v62, 0.0  ;;  %v158_v5 = vsel %vm45_vm0, %v132_v63, 0.0 }
  0xa0   :  { %153 = vadd.xlane.f32.xlu1 %v152_v59  ;;  %156 = vadd.xlane.f32.xlu0 %v155_v2  ;;  %v72_v3 = vpop.xlane.xlu0 %71  ;;  %v75_v4 = vpop.xlane.xlu1 %74 }
  0xa1   :  { %v103_v6 = vmul.f32 0.03125, %v72_v3  ;;  %v104_v7 = vmul.f32 0.03125, %v75_v4  ;;  %v133_v8 = vmul.f32 %v1461_v0, %v1461_v0  ;;  %v134_v9 = vmul.f32 %v1464_v1, %v1464_v1 }
  0xa3   :  { %v1473_v10 = vsub.f32 %v1379_v16, %v103_v6  ;;  %v1476_v11 = vsub.f32 %v1384_v17, %v104_v7  ;;  %v161_v12 = vsel %vm45_vm0, %v133_v8, 0.0  ;;  %v164_v15 = vsel %vm45_vm0, %v134_v9, 0.0 }
  0xa4   :  { %159 = vadd.xlane.f32.xlu1 %v158_v5  ;;  %162 = vadd.xlane.f32.xlu0 %v161_v12  ;;  %v78_v13 = vpop.xlane.xlu0 %77  ;;  %v81_v14 = vpop.xlane.xlu1 %80 }
  0xa5   :  { %v105_v18 = vmul.f32 0.03125, %v78_v13  ;;  %v106_v19 = vmul.f32 0.03125, %v81_v14  ;;  %v135_v22 = vmul.f32 %v1473_v10, %v1473_v10  ;;  %v136_v16 = vmul.f32 %v1476_v11, %v1476_v11 }
  0xa7   :  { %v1485_v23 = vsub.f32 %v1393_v20, %v105_v18  ;;  %v1488_v17 = vsub.f32 %v1398_v21, %v106_v19  ;;  %v167_v26 = vsel %vm45_vm0, %v135_v22, 0.0  ;;  %v170_v31 = vsel %vm45_vm0, %v136_v16, 0.0 }
  0xa8   :  { %165 = vadd.xlane.f32.xlu1 %v164_v15  ;;  %168 = vadd.xlane.f32.xlu0 %v167_v26  ;;  %v84_v27 = vpop.xlane.xlu0 %83  ;;  %v87_v30 = vpop.xlane.xlu1 %86 }
  0xa9   :  { %v107_v32 = vmul.f32 0.03125, %v84_v27  ;;  %v108_v33 = vmul.f32 0.03125, %v87_v30  ;;  %v137_v34 = vmul.f32 %v1485_v23, %v1485_v23  ;;  %v138_v20 = vmul.f32 %v1488_v17, %v1488_v17 }
  0xab   :  { %v1497_v35 = vsub.f32 %v1407_v24, %v107_v32  ;;  %v1500_v21 = vsub.f32 %v1412_v25, %v108_v33  ;;  %v173_v38 = vsel %vm45_vm0, %v137_v34, 0.0  ;;  %v176_v41 = vsel %vm45_vm0, %v138_v20, 0.0 }
  0xac   :  { %171 = vadd.xlane.f32.xlu1 %v170_v31  ;;  %174 = vadd.xlane.f32.xlu0 %v173_v38  ;;  %v90_v39 = vpop.xlane.xlu0 %89  ;;  %v93_v40 = vpop.xlane.xlu1 %92  ;;  %v1532_v31 = vld [vmem:[%s2139_s1] ss:$0 sm:$0xff] }
  0xad   :  { %v109_v42 = vmul.f32 0.03125, %v90_v39  ;;  %v110_v43 = vmul.f32 0.03125, %v93_v40  ;;  %v139_v46 = vmul.f32 %v1497_v35, %v1497_v35  ;;  %v140_v24 = vmul.f32 %v1500_v21, %v1500_v21 }
  0xaf   :  { %v1509_v47 = vsub.f32 %v1421_v28, %v109_v42  ;;  %v1512_v25 = vsub.f32 %v1426_v29, %v110_v43  ;;  %v179_v48 = vsel %vm45_vm0, %v139_v46, 0.0  ;;  %v182_v49 = vsel %vm45_vm0, %v140_v24, 0.0  ;;  %v1180_v29 = vld [vmem:[%s2138_s3] sm:$0xff]  }
  0xb0   :  { %177 = vadd.xlane.f32.xlu1 %v176_v41  ;;  %180 = vadd.xlane.f32.xlu0 %v179_v48  ;;  %v1540_v46 = vld [vmem:[%s2140_s2] ss:$0 sm:$0xff] }
  0xb1   :  { %v141_v50 = vmul.f32 %v1509_v47, %v1509_v47  ;;  %v142_v51 = vmul.f32 %v1512_v25, %v1512_v25  ;;  %1136 = vmatprep.subr.bf16.mxu0 %v1180_v29 }
  0xb2   :  { %1137 = vmatpush3.bf16.msra.mxu0 %v1180_v29 }
  0xb3   :  { %v185_v52 = vsel %vm45_vm0, %v141_v50, 0.0  ;;  %v188_v28 = vsel %vm45_vm0, %v142_v51, 0.0  ;;  %1138 = vmatprep.subr.bf16.mxu0 %v1181_v53 }
  0xb4   :  { %183 = vadd.xlane.f32.xlu1 %v182_v49  ;;  %186 = vadd.xlane.f32.xlu0 %v185_v52 }
  0xb6   :  { %1139 = vmatpush3.bf16.msra.mxu0 %v1181_v53 }
  0xb8   :  { %189 = vadd.xlane.f32.xlu1 %v188_v28 }
 0x125   :  { %v145_v56 = vpop.xlane.xlu0 %144 }
 0x126   :  { %v191_v57 = vmul.f32 0.03125, %v145_v56 }
 0x128   :  { %v207_v58 = vadd.f32 1e-05, %v191_v57 }
 0x129   :  { %v148_v59 = vpop.xlane.xlu1 %147  ;;  %v151_v60 = vpop.xlane.xlu0 %150 }
 0x12a   :  { %1186 = vrsqrt.f32 %v207_v58  ;;  %v192_v61 = vmul.f32 0.03125, %v148_v59  ;;  %v193_v62 = vmul.f32 0.03125, %v151_v60 }
 0x12c   :  { %v208_v63 = vadd.f32 1e-05, %v192_v61  ;;  %v209_v2 = vadd.f32 1e-05, %v193_v62 }
 0x12d   :  { %v154_v3 = vpop.xlane.xlu1 %153  ;;  %v157_v4 = vpop.xlane.xlu0 %156 }
 0x12e   :  { %1188 = vrsqrt.f32 %v208_v63  ;;  %v194_v5 = vmul.f32 0.03125, %v154_v3  ;;  %v195_v6 = vmul.f32 0.03125, %v157_v4 }
 0x12f   :  { %1190 = vrsqrt.f32 %v209_v2 }
 0x130   :  { %v210_v7 = vadd.f32 1e-05, %v194_v5  ;;  %v211_v8 = vadd.f32 1e-05, %v195_v6 }
 0x131   :  { %v160_v9 = vpop.xlane.xlu1 %159  ;;  %v163_v12 = vpop.xlane.xlu0 %162 }
 0x132   :  { %1192 = vrsqrt.f32 %v210_v7  ;;  %v196_v13 = vmul.f32 0.03125, %v160_v9  ;;  %v197_v14 = vmul.f32 0.03125, %v163_v12 }
 0x133   :  { %1194 = vrsqrt.f32 %v211_v8 }
 0x134   :  { %v1187_v15 = vpop.eup %1186  ;;  %v212_v18 = vadd.f32 1e-05, %v196_v13  ;;  %v213_v19 = vadd.f32 1e-05, %v197_v14 }
 0x135   :  { %v166_v22 = vpop.xlane.xlu1 %165  ;;  %v169_v16 = vpop.xlane.xlu0 %168  ;;  %v239_v26 = vmul.f32 %v1187_v15, %v1432_v36 }
 0x136   :  { %1196 = vrsqrt.f32 %v212_v18  ;;  %v198_v27 = vmul.f32 0.03125, %v166_v22  ;;  %v199_v30 = vmul.f32 0.03125, %v169_v16 }
 0x137   :  { %1198 = vrsqrt.f32 %v213_v19  ;;  %v261_v41 = vmul.f32 %v1532_v31, %v239_v26 }
 0x138   :  { %v1189_v32 = vpop.eup %1188  ;;  %v214_v33 = vadd.f32 1e-05, %v198_v27  ;;  %v215_v34 = vadd.f32 1e-05, %v199_v30 }
 0x139   :  { %v1191_v20 = vpop.eup %1190  ;;  %v172_v38 = vpop.xlane.xlu1 %171  ;;  %v240_v40 = vmul.f32 %v1189_v32, %v1440_v44 }
 0x13a   :  { %v175_v39 = vpop.xlane.xlu0 %174  ;;  %v241_v36 = vmul.f32 %v1191_v20, %v1434_v37  ;;  %1200 = vrsqrt.f32 %v214_v33  ;;  %v200_v42 = vmul.f32 0.03125, %v172_v38  ;;  %v283_v37 = vadd.f32 %v1540_v46, %v261_v41 }
 0x13b   :  { %v201_v43 = vmul.f32 0.03125, %v175_v39  ;;  %1202 = vrsqrt.f32 %v215_v34  ;;  %v262_v24 = vmul.f32 %v1532_v31, %v240_v40 }
 0x13c   :  { %v1193_v48 = vpop.eup %1192  ;;  %v216_v49 = vadd.f32 1e-05, %v200_v42  ;;  %v263_v53 = vmul.f32 %v1532_v31, %v241_v36 }
 0x13d   :  { %v217_v50 = vadd.f32 1e-05, %v201_v43  ;;  %v1195_v51 = vpop.eup %1194  ;;  %v242_v44 = vmul.f32 %v1193_v48, %v1442_v45  ;;  %v178_v52 = vpop.xlane.xlu1 %177  ;;  %v284_v29 = vadd.f32 %v1540_v46, %v262_v24 }
 0x13e   :  { %v181_v28 = vpop.xlane.xlu0 %180  ;;  %v243_v56 = vmul.f32 %v1195_v51, %v1450_v54  ;;  %1204 = vrsqrt.f32 %v216_v49  ;;  %v202_v57 = vmul.f32 0.03125, %v178_v52  ;;  %v285_v5 = vadd.f32 %v1540_v46, %v263_v53 }
 0x13f   :  { %v203_v58 = vmul.f32 0.03125, %v181_v28  ;;  %1206 = vrsqrt.f32 %v217_v50  ;;  %v299_v59 = vpack.c.bf16 %v284_v29, %v283_v37  ;;  %v264_v60 = vmul.f32 %v1532_v31, %v242_v44 }
 0x140   :  { %v1197_v61 = vpop.eup %1196  ;;  %v218_v62 = vadd.f32 1e-05, %v202_v57  ;;  %v265_v6 = vmul.f32 %v1532_v31, %v243_v56 }
 0x141   :  { %v219_v45 = vadd.f32 1e-05, %v203_v58  ;;  %v1199_v63 = vpop.eup %1198  ;;  %v244_v2 = vmul.f32 %v1197_v61, %v1452_v55  ;;  %v184_v3 = vpop.xlane.xlu1 %183  ;;  %1140 = vmatprep.mubr.msk.bf16.mxu0 %vm45_vm0, %v299_v59  ;;  %v286_v54 = vadd.f32 %v1540_v46, %v264_v60 }
 0x142   :  { %v187_v4 = vpop.xlane.xlu0 %186  ;;  %v245_v7 = vmul.f32 %v1199_v63, %v1461_v0  ;;  %1208 = vrsqrt.f32 %v218_v62  ;;  %v204_v8 = vmul.f32 0.03125, %v184_v3  ;;  %v287_v16 = vadd.f32 %v1540_v46, %v265_v6  ;;  %v1183_v3 = vld [vmem:[%s2141_s5 + $0x8] sm:$0xff]  }
 0x143   :  { %v205_v9 = vmul.f32 0.03125, %v187_v4  ;;  %1210 = vrsqrt.f32 %v219_v45  ;;  %v300_v12 = vpack.c.bf16 %v286_v54, %v285_v5  ;;  %v266_v13 = vmul.f32 %v1532_v31, %v244_v2  ;;  %v1609_v4 = vld [vmem:[%s2142_s4] ss:$0 sm:$0xff] }
 0x144   :  { %v1201_v55 = vpop.eup %1200  ;;  %v220_v14 = vadd.f32 1e-05, %v204_v8  ;;  %v267_v26 = vmul.f32 %v1532_v31, %v245_v7 }
 0x145   :  { %v221_v15 = vadd.f32 1e-05, %v205_v9  ;;  %v1203_v18 = vpop.eup %1202  ;;  %v246_v19 = vmul.f32 %v1201_v55, %v1464_v1  ;;  %v190_v22 = vpop.xlane.xlu1 %189  ;;  %1141 = vmatmul.mubr.msk.bf16.vlgmr.msra.gmra.mrb[0].mxu0 %vm45_vm0, %v300_v12  ;;  %v288_v0 = vadd.f32 %v1540_v46, %v266_v13 }
 0x146   :  { %v247_v27 = vmul.f32 %v1203_v18, %v1473_v10  ;;  %1212 = vrsqrt.f32 %v220_v14  ;;  %v206_v30 = vmul.f32 0.03125, %v190_v22  ;;  %v289_v39 = vadd.f32 %v1540_v46, %v267_v26 }
 0x147   :  { %1214 = vrsqrt.f32 %v221_v15  ;;  %v301_v32 = vpack.c.bf16 %v288_v0, %v287_v16  ;;  %v268_v33 = vmul.f32 %v1532_v31, %v246_v19 }
 0x148   :  { %v1205_v34 = vpop.eup %1204  ;;  %v222_v20 = vadd.f32 1e-05, %v206_v30  ;;  %v269_v41 = vmul.f32 %v1532_v31, %v247_v27 }
 0x149   :  { %v1207_v1 = vpop.eup %1206  ;;  %v248_v38 = vmul.f32 %v1205_v34, %v1476_v11  ;;  %1144 = vmatprep.mubr.msk.bf16.mxu0 %vm45_vm0, %v301_v32  ;;  %v290_v40 = vadd.f32 %v1540_v46, %v268_v33 }
 0x14a   :  { %v249_v10 = vmul.f32 %v1207_v1, %v1485_v23  ;;  %1216 = vrsqrt.f32 %v222_v20  ;;  %v291_v11 = vadd.f32 %v1540_v46, %v269_v41 }
 0x14b   :  { %v302_v36 = vpack.c.bf16 %v290_v40, %v289_v39  ;;  %v270_v42 = vmul.f32 %v1532_v31, %v248_v38 }
 0x14c   :  { %v1209_v43 = vpop.eup %1208  ;;  %v271_v50 = vmul.f32 %v1532_v31, %v249_v10 }
 0x14d   :  { %v1211_v24 = vpop.eup %1210  ;;  %v250_v48 = vmul.f32 %v1209_v43, %v1488_v17  ;;  %1145 = vmatmul.mubr.msk.bf16.gmra.mrb[4].mxu0 %vm45_vm0, %v302_v36  ;;  %v292_v49 = vadd.f32 %v1540_v46, %v270_v42 }
 0x14e   :  { %v251_v51 = vmul.f32 %v1211_v24, %v1497_v35  ;;  %v293_v17 = vadd.f32 %v1540_v46, %v271_v50 }
 0x14f   :  { %v303_v44 = vpack.c.bf16 %v292_v49, %v291_v11  ;;  %v272_v23 = vmul.f32 %v1532_v31, %v250_v48 }
 0x150   :  { %v1213_v52 = vpop.eup %1212  ;;  %v273_v53 = vmul.f32 %v1532_v31, %v251_v51 }
 0x151   :  { %v1215_v28 = vpop.eup %1214  ;;  %v252_v37 = vmul.f32 %v1213_v52, %v1500_v21  ;;  %1148 = vmatprep.mubr.msk.bf16.mxu0 %vm45_vm0, %v303_v44  ;;  %v294_v29 = vadd.f32 %v1540_v46, %v272_v23 }
 0x152   :  { %v253_v56 = vmul.f32 %v1215_v28, %v1509_v47  ;;  %v295_v21 = vadd.f32 %v1540_v46, %v273_v53 }
 0x153   :  { %v304_v57 = vpack.c.bf16 %v294_v29, %v293_v17  ;;  %v274_v35 = vmul.f32 %v1532_v31, %v252_v37 }
 0x154   :  { %v1217_v58 = vpop.eup %1216  ;;  %v275_v61 = vmul.f32 %v1532_v31, %v253_v56 }
 0x155   :  { %v254_v59 = vmul.f32 %v1217_v58, %v1512_v25  ;;  %1149 = vmatmul.mubr.msk.bf16.gmra.mrb[8].mxu0 %vm45_vm0, %v304_v57  ;;  %v296_v60 = vadd.f32 %v1540_v46, %v274_v35  ;;  %v1182_v25 = vld [vmem:[%s2141_s5] sm:$0xff]  }
 0x156   :  { %v297_v47 = vadd.f32 %v1540_v46, %v275_v61  ;;  %1156 = vmatprep.subr.bf16.mxu1 %v1182_v25 }
 0x157   :  { %v305_v62 = vpack.c.bf16 %v296_v60, %v295_v21  ;;  %v276_v45 = vmul.f32 %v1532_v31, %v254_v59  ;;  %1157 = vmatpush3.bf16.msra.mxu1 %v1182_v25  ;;  %v1184_v31 = vld [vmem:[%s2141_s5 + $0x10] sm:$0xff]  }
 0x158   :  { %1158 = vmatprep.subr.bf16.mxu1 %v1183_v3 }
 0x159   :  { %1152 = vmatprep.mubr.msk.bf16.mxu0 %vm45_vm0, %v305_v62  ;;  %v298_v63 = vadd.f32 %v1540_v46, %v276_v45  ;;  %v1185_v46 = vld [vmem:[%s2141_s5 + $0x18] sm:$0xff]  }
 0x15b   :  { %v306_v2 = vpack.c.bf16 %v298_v63, %v297_v47  ;;  %1159 = vmatpush3.bf16.msra.mxu1 %v1183_v3 }
 0x15c   :  { %1160 = vmatprep.subr.bf16.mxu1 %v1184_v31 }
 0x15d   :  { %1153 = vmatmul.mubr.msk.bf16.gmra.mrb[12].mxu0 %vm45_vm0, %v306_v2 }
 0x15f   :  { %1161 = vmatpush3.bf16.msra.mxu1 %v1184_v31 }
 0x160   :  { %1162 = vmatprep.subr.bf16.mxu1 %v1185_v46 }
 0x163   :  { %1163 = vmatpush3.bf16.msra.mxu1 %v1185_v46 }
 0x218   :  { %v1142_v5 = vpop.f32.mrb[0].mxu0 }
 0x219   :  { %v397_v54 = vadd.f32 %v1142_v5, %v1609_v4  ;;  %v388_v6 = vpop.f32.mrb[1].mxu0 }
 0x21a   :  { %v1613_v7 = vadd.f32 %v1609_v4, %v388_v6  ;;  %v1143_v8 = vpop.f32.mrb[2].mxu0 }
 0x21b   :  { %v1615_v9 = vmul.f32 0.70710677, %v397_v54  ;;  %v400_v12 = vadd.f32 %v1143_v8, %v1609_v4  ;;  %v391_v13 = vpop.f32.mrb[3].mxu0  ;;  %v1639_v41 = vmul.f32 0.5, %v397_v54 }
 0x21c   :  { %v1622_v15 = vadd.f32 %v1609_v4, %v391_v13  ;;  %v1625_v18 = vmul.f32 0.70710677, %v1613_v7 }
 0x21d   :  { %v485_v55 = vand.u32 2147483647, %v1615_v9  ;;  %v1619_v14 = vmul.f32 0.70710677, %v400_v12  ;;  %v1641_v36 = vmul.f32 0.5, %v400_v12  ;;  %vm805_vm1 = vcmp.ge.f32.partialorder %v1615_v9, 0.0 }
 0x21e   :  { %v1629_v26 = vmul.f32 0.70710677, %v1622_v15  ;;  %v483_v30 = vand.u32 2147483647, %v1625_v18  ;;  %vm803_vm11 = vcmp.ge.f32.partialorder %v1625_v18, 0.0 }
 0x21f   :  { %v501_v19 = vmul.f32 0.3275911, %v485_v55  ;;  %v486_v22 = vand.u32 2147483647, %v1619_v14  ;;  %v709_v33 = vsub.f32 0.0, %v485_v55  ;;  %vm806_vm2 = vcmp.ge.f32.partialorder %v1619_v14, 0.0 }
 0x220   :  { %v1146_v27 = vpop.f32.mrb[4].mxu0  ;;  %v1633_v38 = vand.u32 2147483647, %v1629_v26  ;;  %v499_v10 = vmul.f32 0.3275911, %v483_v30  ;;  %v707_v11 = vsub.f32 0.0, %v483_v30 }
 0x221   :  { %v517_v16 = vadd.f32 1.0, %v501_v19  ;;  %v502_v0 = vmul.f32 0.3275911, %v486_v22  ;;  %v404_v32 = vpop.f32.mrb[5].mxu0  ;;  %v413_v39 = vadd.f32 %v1146_v27, %v1609_v4  ;;  %v725_v43 = vmul.f32 %v709_v33, %v485_v55 }
 0x222   :  { %v1147_v20 = vpop.f32.mrb[6].mxu0  ;;  %v1637_v40 = vadd.f32 %v1609_v4, %v404_v32  ;;  %v710_v44 = vsub.f32 0.0, %v486_v22  ;;  %v500_v23 = vmul.f32 0.3275911, %v1633_v38  ;;  %v515_v37 = vadd.f32 1.0, %v499_v10 }
 0x223   :  { %1218 = vrcp.f32 %v517_v16  ;;  %v518_v34 = vadd.f32 1.0, %v502_v0  ;;  %v407_v1 = vpop.f32.mrb[7].mxu0  ;;  %v1644_v42 = vadd.f32 %v1147_v20, %v1609_v4  ;;  %v1646_v24 = vmul.f32 0.70710677, %v413_v39 }
 0x224   :  { %v1649_v48 = vadd.f32 %v1609_v4, %v407_v1  ;;  %v1652_v49 = vmul.f32 0.70710677, %v1637_v40  ;;  %v743_v56 = vmul.f32 1.442695, %v725_v43  ;;  %v1666_v58 = vmul.f32 %v707_v11, %v483_v30 }
 0x225   :  { %1220 = vrcp.f32 %v518_v34  ;;  %v1655_v50 = vmul.f32 0.70710677, %v1644_v42  ;;  %v489_v52 = vand.u32 2147483647, %v1646_v24  ;;  %v726_v3 = vmul.f32 %v710_v44, %v486_v22 }
 0x226   :  { %v487_v17 = vand.u32 2147483647, %v1652_v49  ;;  %v1664_v35 = vmul.f32 0.70710677, %v1649_v48  ;;  %1222 = vrcp.f32 %v515_v37  ;;  %v1675_v8 = vadd.f32 1.0, %v500_v23 }
 0x227   :  { %v490_v29 = vand.u32 2147483647, %v1655_v50  ;;  %v505_v57 = vmul.f32 0.3275911, %v489_v52  ;;  %v713_v59 = vsub.f32 0.0, %v489_v52  ;;  %v1688_v34 = vmul.f32 0.5, %v413_v39 }
 0x228   :  { %v1150_v51 = vpop.f32.mrb[8].mxu0  ;;  %v503_v21 = vmul.f32 0.3275911, %v487_v17  ;;  %v711_v47 = vsub.f32 0.0, %v487_v17  ;;  %v488_v63 = vand.u32 2147483647, %v1664_v35 }
 0x229   :  { %v420_v28 = vpop.f32.mrb[9].mxu0  ;;  %v506_v60 = vmul.f32 0.3275911, %v490_v29  ;;  %v521_v45 = vadd.f32 1.0, %v505_v57  ;;  %v714_v5 = vsub.f32 0.0, %v490_v29  ;;  %v729_v12 = vmul.f32 %v713_v59, %v489_v52 }
 0x22a   :  { %v1661_v53 = vpop.f32.mrb[10].mxu0  ;;  %v519_v31 = vadd.f32 1.0, %v503_v21  ;;  %v504_v54 = vmul.f32 0.3275911, %v488_v63  ;;  %v727_v19 = vmul.f32 %v711_v47, %v487_v17  ;;  %v712_v0 = vsub.f32 0.0, %v488_v63 }
 0x22b   :  { %v1672_v2 = vpop.f32.mrb[11].mxu0  ;;  %1224 = vrcp.f32 %v521_v45  ;;  %v522_v46 = vadd.f32 1.0, %v506_v60  ;;  %v1682_v27 = vadd.f32 %v1150_v51, %v1609_v4  ;;  %v745_v33 = vmul.f32 1.442695, %v726_v3 }
 0x22c   :  { %1226 = vrcp.f32 %v519_v31  ;;  %v520_v16 = vadd.f32 1.0, %v504_v54  ;;  %v730_v1 = vmul.f32 %v714_v5, %v490_v29  ;;  %v1696_v43 = vadd.f32 %v1609_v4, %v420_v28 }
 0x22d   :  { %v1668_v61 = vpop.eup %1218  ;;  %1228 = vrcp.f32 %v522_v46  ;;  %v1693_v10 = vmul.f32 0.70710677, %v1682_v27  ;;  %v751_v23 = vmul.f32 1.442695, %v729_v12  ;;  %v747_v52 = vmul.f32 1.442695, %v727_v19 }
 0x22e   :  { %v565_v25 = vmul.f32 1.0614054, %v1668_v61  ;;  %1230 = vpow2.f32 %v743_v56  ;;  %v728_v39 = vmul.f32 %v712_v0, %v488_v63  ;;  %v1704_v57 = vmul.f32 0.5, %v1637_v40 }
 0x22f   :  { %v1679_v55 = vpop.eup %1220  ;;  %1232 = vrcp.f32 %v520_v16  ;;  %v493_v37 = vand.u32 2147483647, %v1693_v10  ;;  %v1707_v28 = vmul.f32 0.70710677, %v1696_v43  ;;  %v753_v59 = vmul.f32 1.442695, %v730_v1 }
 0x230   :  { %v581_v6 = vadd.f32 -1.4531521, %v565_v25  ;;  %v1677_v13 = vpop.f32.mrb[12].mxu0  ;;  %v566_v32 = vmul.f32 1.0614054, %v1679_v55  ;;  %1234 = vpow2.f32 %v745_v33  ;;  %v1709_v60 = vpop.eup %1222  ;;  %v1717_v40 = vmul.f32 0.5, %v1644_v42 }
 0x231   :  { %v1684_v22 = vpop.f32.mrb[13].mxu0  ;;  %v509_v56 = vmul.f32 0.3275911, %v493_v37  ;;  %v717_v21 = vsub.f32 0.0, %v493_v37  ;;  %1236 = vpow2.f32 %v751_v23  ;;  %v1712_v63 = vand.u32 2147483647, %v1707_v28 }
 0x232   :  { %v597_v30 = vmul.f32 %v1668_v61, %v581_v6  ;;  %v1690_v20 = vpop.f32.mrb[14].mxu0  ;;  %v582_v44 = vadd.f32 -1.4531521, %v566_v32  ;;  %1238 = vpow2.f32 %v747_v52  ;;  %v749_v3 = vmul.f32 1.442695, %v728_v39 }
 0x233   :  { %v1698_v11 = vpop.f32.mrb[15].mxu0  ;;  %v525_v31 = vadd.f32 1.0, %v509_v56  ;;  %v507_v12 = vmul.f32 0.3275911, %v1712_v63  ;;  %v733_v16 = vmul.f32 %v717_v21, %v493_v37  ;;  %v1728_v42 = vadd.f32 %v1661_v53, %v1609_v4 }
 0x234   :  { %v613_v51 = vadd.f32 1.4214138, %v597_v30  ;;  %v598_v29 = vmul.f32 %v1679_v55, %v582_v44  ;;  %vm809_vm3 = vcmp.ge.f32.partialorder %v1646_v24, 0.0  ;;  %vm807_vm4 = vcmp.ge.f32.partialorder %v1652_v49, 0.0 }
 0x235   :  { %v1714_v25 = vpop.eup %1224  ;;  %1240 = vrcp.f32 %v525_v31  ;;  %v523_v44 = vadd.f32 1.0, %v507_v12  ;;  %vm810_vm5 = vcmp.ge.f32.partialorder %v1655_v50, 0.0  ;;  %vm808_vm6 = vcmp.ge.f32.partialorder %v1664_v35, 0.0 }
 0x236   :  { %v629_v17 = vmul.f32 %v1668_v61, %v613_v51  ;;  %v614_v47 = vadd.f32 1.4214138, %v598_v29  ;;  %v1719_v46 = vpop.eup %1226  ;;  %v569_v6 = vmul.f32 1.0614054, %v1714_v25  ;;  %1242 = vpow2.f32 %v753_v59 }
 0x237   :  { %v567_v19 = vmul.f32 1.0614054, %v1719_v46  ;;  %v1730_v33 = vpop.eup %1228  ;;  %v1734_v51 = vmul.f32 0.5, %v1649_v48  ;;  %1244 = vpow2.f32 %v749_v3  ;;  %v759_v59 = vmul.f32 1.442695, %v733_v16 }
 0x238   :  { %v645_v45 = vadd.f32 -0.28449672, %v629_v17  ;;  %v630_v54 = vmul.f32 %v1679_v55, %v614_v47  ;;  %v585_v32 = vadd.f32 -1.4531521, %v569_v6  ;;  %v1231_v23 = vpop.eup %1230  ;;  %v570_v37 = vmul.f32 1.0614054, %v1730_v33 }
 0x239   :  { %v583_v1 = vadd.f32 -1.4531521, %v567_v19  ;;  %v1740_v17 = vpop.eup %1232  ;;  %1246 = vrcp.f32 %v523_v44  ;;  %v1744_v48 = vmul.f32 0.70710677, %v1728_v42  ;;  %v715_v44 = vsub.f32 0.0, %v1712_v63 }
 0x23a   :  { %v661_v5 = vmul.f32 %v1668_v61, %v645_v45  ;;  %v646_v30 = vadd.f32 -0.28449672, %v630_v54  ;;  %v601_v39 = vmul.f32 %v1714_v25, %v585_v32  ;;  %v586_v47 = vadd.f32 -1.4531521, %v570_v37 }
 0x23b   :  { %v599_v29 = vmul.f32 %v1719_v46, %v583_v1  ;;  %v568_v31 = vmul.f32 1.0614054, %v1740_v17  ;;  %v1753_v54 = vadd.f32 %v1609_v4, %v1672_v2  ;;  %1248 = vpow2.f32 %v759_v59 }
 0x23c   :  { %v677_v0 = vadd.f32 0.2548296, %v661_v5  ;;  %v662_v53 = vmul.f32 %v1679_v55, %v646_v30  ;;  %v617_v45 = vadd.f32 1.4214138, %v601_v39  ;;  %v1749_v5 = vand.u32 2147483647, %v1744_v48 }
 0x23d   :  { %v615_v3 = vadd.f32 1.4214138, %v599_v29  ;;  %v584_v1 = vadd.f32 -1.4531521, %v568_v31  ;;  %vm813_vm7 = vcmp.ge.f32.partialorder %v1693_v10, 0.0  ;;  %vm814_vm8 = vcmp.ge.f32.partialorder %v1744_v48, 0.0 }
 0x23e   :  { %v693_v52 = vmul.f32 %v1668_v61, %v677_v0  ;;  %v678_v21 = vadd.f32 0.2548296, %v662_v53  ;;  %v1235_v61 = vpop.eup %1234  ;;  %v633_v16 = vmul.f32 %v1714_v25, %v617_v45  ;;  %v602_v0 = vmul.f32 %v1730_v33, %v586_v47 }
 0x23f   :  { %v1237_v6 = vpop.eup %1236  ;;  %v631_v32 = vmul.f32 %v1719_v46, %v615_v3  ;;  %vm811_vm9 = vcmp.ge.f32.partialorder %v1707_v28, 0.0  ;;  %vm804_vm12 = vcmp.ge.f32.partialorder %v1629_v26, 0.0 }
 0x240   :  { %v773_v56 = vmul.f32 %v1231_v23, %v693_v52  ;;  %v694_v19 = vmul.f32 %v1679_v55, %v678_v21  ;;  %v1239_v30 = vpop.eup %1238  ;;  %v510_v23 = vmul.f32 0.3275911, %v1749_v5  ;;  %v649_v2 = vadd.f32 -0.28449672, %v633_v16 }
 0x241   :  { %v618_v39 = vadd.f32 1.4214138, %v602_v0  ;;  %v1761_v37 = vpop.eup %1240  ;;  %v647_v29 = vadd.f32 -0.28449672, %v631_v32  ;;  %v600_v55 = vmul.f32 %v1740_v17, %v584_v1 }
 0x242   :  { %v789_v12 = vsub.f32 1.0, %v773_v56  ;;  %v774_v53 = vmul.f32 %v1235_v61, %v694_v19  ;;  %v526_v56 = vadd.f32 1.0, %v510_v23  ;;  %v1243_v21 = vpop.eup %1242  ;;  %v665_v3 = vmul.f32 %v1714_v25, %v649_v2 }
 0x243   :  { %v634_v31 = vmul.f32 %v1730_v33, %v618_v39  ;;  %v1245_v62 = vpop.eup %1244  ;;  %v663_v19 = vmul.f32 %v1719_v46, %v647_v29  ;;  %v616_v16 = vadd.f32 1.4214138, %v600_v55  ;;  %v573_v0 = vmul.f32 1.0614054, %v1761_v37 }
 0x244   :  { %v821_v52 = vsub.f32 0.0, %v789_v12  ;;  %v790_v47 = vsub.f32 1.0, %v774_v53  ;;  %v681_v1 = vadd.f32 0.2548296, %v665_v3  ;;  %1250 = vrcp.f32 %v526_v56  ;;  %v1770_v23 = vpop.eup %1246 }
 0x245   :  { %v650_v59 = vadd.f32 -0.28449672, %v634_v31  ;;  %v679_v9 = vadd.f32 0.2548296, %v663_v19  ;;  %v718_v53 = vsub.f32 0.0, %v1749_v5 }
 0x246   :  { %v837_v45 = vsel %vm805_vm1, %v789_v12, %v821_v52  ;;  %v822_v32 = vsub.f32 0.0, %v790_v47  ;;  %v632_v12 = vmul.f32 %v1740_v17, %v616_v16  ;;  %v589_v52 = vadd.f32 -1.4531521, %v573_v0 }
 0x247   :  { %v853_v61 = vadd.f32 1.0, %v837_v45  ;;  %v697_v39 = vmul.f32 %v1714_v25, %v681_v1  ;;  %v666_v29 = vmul.f32 %v1730_v33, %v650_v59  ;;  %v571_v55 = vmul.f32 1.0614054, %v1770_v23 }
 0x248   :  { %v838_v2 = vsel %vm806_vm2, %v790_v47, %v822_v32  ;;  %v695_v45 = vmul.f32 %v1719_v46, %v679_v9  ;;  %v648_v3 = vadd.f32 -0.28449672, %v632_v12  ;;  %v605_v31 = vmul.f32 %v1761_v37, %v589_v52 }
 0x249   :  { %v854_v56 = vadd.f32 1.0, %v838_v2  ;;  %v1783_v19 = vmul.f32 %v853_v61, %v1639_v41  ;;  %v777_v16 = vmul.f32 %v1237_v6, %v697_v39  ;;  %v682_v14 = vadd.f32 0.2548296, %v666_v29  ;;  %v1249_v61 = vpop.eup %1248 }
 0x24a   :  { %v587_v47 = vadd.f32 -1.4531521, %v571_v55  ;;  %v775_v0 = vmul.f32 %v1239_v30, %v695_v45  ;;  %v664_v32 = vmul.f32 %v1740_v17, %v648_v3  ;;  %v621_v46 = vadd.f32 1.4214138, %v605_v31 }
 0x24b   :  { %v1787_v25 = vmul.f32 %v854_v56, %v1641_v36  ;;  %v793_v1 = vsub.f32 1.0, %v777_v16  ;;  %v698_v59 = vmul.f32 %v1730_v33, %v682_v14  ;;  %v731_v6 = vmul.f32 %v715_v44, %v1712_v63 }
 0x24c   :  { %v603_v41 = vmul.f32 %v1770_v23, %v587_v47  ;;  %v791_v12 = vsub.f32 1.0, %v775_v0  ;;  %v680_v36 = vadd.f32 0.2548296, %v664_v32  ;;  %v637_v30 = vmul.f32 %v1761_v37, %v621_v46 }
 0x24d   :  { %v884_v9 = vpack.c.bf16 %v1787_v25, %v1783_v19  ;;  %v825_v52 = vsub.f32 0.0, %v793_v1  ;;  %v778_v2 = vmul.f32 %v1243_v21, %v698_v59  ;;  %v734_v56 = vmul.f32 %v718_v53, %v1749_v5 }
 0x24e   :  { %v619_v39 = vadd.f32 1.4214138, %v603_v41  ;;  %v823_v29 = vsub.f32 0.0, %v791_v12  ;;  %v696_v33 = vmul.f32 %v1740_v17, %v680_v36  ;;  %v653_v55 = vadd.f32 -0.28449672, %v637_v30  ;;  %v1800_v63 = vpop.eup %1250 }
 0x24f   :  { %v841_v44 = vsel %vm809_vm3, %v793_v1, %v825_v52  ;;  %v794_v45 = vsub.f32 1.0, %v778_v2  ;;  %v1806_v31 = vmul.f32 0.70710677, %v1753_v54  ;;  %v755_v14 = vmul.f32 1.442695, %v731_v6 }
 0x250   :  { %v635_v3 = vmul.f32 %v1770_v23, %v619_v39  ;;  %v776_v21 = vmul.f32 %v1245_v62, %v696_v33  ;;  %v669_v16 = vmul.f32 %v1761_v37, %v653_v55  ;;  %v1811_v17 = vadd.f32 %v1677_v13, %v1609_v4 }
 0x251   :  { %v857_v5 = vadd.f32 1.0, %v841_v44  ;;  %v826_v53 = vsub.f32 0.0, %v794_v45  ;;  %v574_v24 = vmul.f32 1.0614054, %v1800_v63  ;;  %v839_v0 = vsel %vm807_vm4, %v791_v12, %v823_v29 }
 0x252   :  { %v651_v47 = vadd.f32 -0.28449672, %v635_v3  ;;  %v792_v32 = vsub.f32 1.0, %v776_v21  ;;  %v685_v46 = vadd.f32 0.2548296, %v669_v16  ;;  %v1821_v13 = vadd.f32 %v1609_v4, %v1684_v22 }
 0x253   :  { %v492_v1 = vand.u32 2147483647, %v1806_v31  ;;  %v842_v62 = vsel %vm810_vm5, %v794_v45, %v826_v53  ;;  %v590_v59 = vadd.f32 -1.4531521, %v574_v24  ;;  %v761_v41 = vmul.f32 1.442695, %v734_v56 }
 0x254   :  { %v858_v6 = vadd.f32 1.0, %v842_v62  ;;  %v824_v36 = vsub.f32 0.0, %v792_v32  ;;  %v701_v30 = vmul.f32 %v1761_v37, %v685_v46  ;;  %v1825_v49 = vmul.f32 %v857_v5, %v1688_v34 }
 0x255   :  { %v508_v52 = vmul.f32 0.3275911, %v492_v1  ;;  %v855_v12 = vadd.f32 1.0, %v839_v0  ;;  %1252 = vpow2.f32 %v755_v14  ;;  %v606_v2 = vmul.f32 %v1800_v63, %v590_v59 }
 0x256   :  { %v1829_v50 = vmul.f32 %v858_v6, %v1717_v40  ;;  %v840_v39 = vsel %vm808_vm6, %v792_v32, %v824_v36  ;;  %v667_v22 = vmul.f32 %v1770_v23, %v651_v47  ;;  %v781_v55 = vmul.f32 %v1249_v61, %v701_v30 }
 0x257   :  { %v524_v29 = vadd.f32 1.0, %v508_v52  ;;  %v856_v33 = vadd.f32 1.0, %v840_v39  ;;  %v622_v37 = vadd.f32 1.4214138, %v606_v2  ;;  %1254 = vpow2.f32 %v761_v41 }
 0x258   :  { %v739_v34 = vmul.f32 1.442695, %v1666_v58  ;;  %v886_v56 = vpack.c.bf16 %v1829_v50, %v1825_v49  ;;  %v2145_v40 = vsub.f32 0.0, %v1633_v38  ;;  %v1841_v35 = vmul.f32 %v855_v12, %v1704_v57 }
 0x259   :  { %1256 = vrcp.f32 %v524_v29  ;;  %v1844_v45 = vmul.f32 %v856_v33, %v1734_v51  ;;  %v638_v61 = vmul.f32 %v1800_v63, %v622_v37  ;;  %v683_v3 = vadd.f32 0.2548296, %v667_v22 }
 0x25a   :  { %v724_v44 = vmul.f32 %v2145_v40, %v1633_v38  ;;  %v1848_v21 = vmul.f32 0.70710677, %v1811_v17  ;;  %v1851_v58 = vmul.f32 0.70710677, %v1821_v13  ;;  %1258 = vrcp.f32 %v1675_v8 }
 0x25b   :  { %v885_v38 = vpack.c.bf16 %v1844_v45, %v1841_v35  ;;  %v797_v16 = vsub.f32 1.0, %v781_v55  ;;  %v654_v57 = vadd.f32 -0.28449672, %v638_v61  ;;  %v716_v14 = vsub.f32 0.0, %v492_v1 }
 0x25c   :  { %v497_v51 = vand.u32 2147483647, %v1848_v21  ;;  %v1858_v5 = vand.u32 2147483647, %v1851_v58  ;;  %v741_v53 = vmul.f32 1.442695, %v724_v44  ;;  %v699_v24 = vmul.f32 %v1770_v23, %v683_v3 }
 0x25d   :  { %v670_v47 = vmul.f32 %v1800_v63, %v654_v57  ;;  %v829_v46 = vsub.f32 0.0, %v797_v16  ;;  %v1865_v59 = vadd.f32 %v1690_v20, %v1609_v4  ;;  %1260 = vpow2.f32 %v739_v34 }
 0x25e   :  { %v513_v0 = vmul.f32 0.3275911, %v497_v51  ;;  %v511_v32 = vmul.f32 0.3275911, %v1858_v5  ;;  %v732_v41 = vmul.f32 %v716_v14, %v492_v1  ;;  %1262 = vpow2.f32 %v741_v53 }
 0x25f   :  { %v1253_v8 = vpop.eup %1252  ;;  %v686_v62 = vadd.f32 0.2548296, %v670_v47  ;;  %v461_v52 = vmul.f32 0.5, %v1682_v27  ;;  %v1870_v12 = vmul.f32 0.70710677, %v1865_v59  ;;  %v1879_v20 = vadd.f32 %v1609_v4, %v1698_v11 }
 0x260   :  { %v529_v6 = vadd.f32 1.0, %v513_v0  ;;  %v527_v36 = vadd.f32 1.0, %v511_v32  ;;  %v1875_v39 = vmul.f32 %v1253_v8, %v699_v24  ;;  %v845_v1 = vsel %vm813_vm7, %v797_v16, %v829_v46 }
 0x261   :  { %v1255_v30 = vpop.eup %1254  ;;  %v702_v23 = vmul.f32 %v1800_v63, %v686_v62  ;;  %v1883_v63 = vmul.f32 0.5, %v1696_v43  ;;  %v462_v29 = vmul.f32 0.5, %v1728_v42  ;;  %v757_v33 = vmul.f32 1.442695, %v732_v41 }
 0x262   :  { %1264 = vrcp.f32 %v529_v6  ;;  %v498_v10 = vand.u32 2147483647, %v1870_v12  ;;  %v1891_v11 = vmul.f32 0.70710677, %v1879_v20  ;;  %v861_v34 = vadd.f32 1.0, %v845_v1 }
 0x263   :  { %v1872_v2 = vpop.eup %1256  ;;  %v782_v22 = vmul.f32 %v1255_v30, %v702_v23  ;;  %1266 = vrcp.f32 %v527_v36  ;;  %v795_v40 = vsub.f32 1.0, %v1875_v39  ;;  %v563_v43 = vmul.f32 1.0614054, %v1709_v60 }
 0x264   :  { %v572_v27 = vmul.f32 1.0614054, %v1872_v2  ;;  %v1887_v55 = vpop.eup %1258  ;;  %v514_v44 = vmul.f32 0.3275911, %v498_v10  ;;  %v721_v3 = vsub.f32 0.0, %v497_v51  ;;  %v719_v57 = vsub.f32 0.0, %v1858_v5 }
 0x265   :  { %v798_v37 = vsub.f32 1.0, %v782_v22  ;;  %v1897_v16 = vand.u32 2147483647, %v1891_v11  ;;  %v564_v14 = vmul.f32 1.0614054, %v1887_v55  ;;  %1268 = vpow2.f32 %v757_v33 }
 0x266   :  { %v588_v4 = vadd.f32 -1.4531521, %v572_v27  ;;  %v530_v48 = vadd.f32 1.0, %v514_v44  ;;  %v579_v53 = vadd.f32 -1.4531521, %v563_v43  ;;  %v827_v8 = vsub.f32 0.0, %v795_v40 }
 0x267   :  { %v830_v61 = vsub.f32 0.0, %v798_v37  ;;  %v512_v0 = vmul.f32 0.3275911, %v1897_v16  ;;  %v1902_v32 = vpop.eup %1260  ;;  %v580_v62 = vadd.f32 -1.4531521, %v564_v14  ;;  %v737_v36 = vmul.f32 %v721_v3, %v497_v51 }
 0x268   :  { %v604_v42 = vmul.f32 %v1872_v2, %v588_v4  ;;  %1270 = vrcp.f32 %v530_v48  ;;  %v1904_v41 = vpop.eup %1262  ;;  %v595_v23 = vmul.f32 %v1709_v60, %v579_v53  ;;  %v1910_v1 = vmul.f32 %v861_v34, %v461_v52 }
 0x269   :  { %v846_v47 = vsel %vm814_vm8, %v798_v37, %v830_v61  ;;  %v528_v30 = vadd.f32 1.0, %v512_v0  ;;  %v735_v27 = vmul.f32 %v719_v57, %v1858_v5  ;;  %v596_v33 = vmul.f32 %v1887_v55, %v580_v62 }
 0x26a   :  { %v620_v24 = vadd.f32 1.4214138, %v604_v42  ;;  %v862_v46 = vadd.f32 1.0, %v846_v47  ;;  %v722_v43 = vsub.f32 0.0, %v498_v10  ;;  %v611_v52 = vadd.f32 1.4214138, %v595_v23 }
 0x26b   :  { %1272 = vrcp.f32 %v528_v30  ;;  %v612_v34 = vadd.f32 1.4214138, %v596_v33  ;;  %v767_v42 = vmul.f32 1.442695, %v737_v36  ;;  %v763_v57 = vmul.f32 1.442695, %v735_v27 }
 0x26c   :  { %v636_v6 = vmul.f32 %v1872_v2, %v620_v24  ;;  %v1908_v39 = vpop.eup %1264  ;;  %v1912_v22 = vmul.f32 %v862_v46, %v462_v29  ;;  %v627_v48 = vmul.f32 %v1709_v60, %v611_v52  ;;  %v460_v53 = vmul.f32 0.5, %v1753_v54 }
 0x26d   :  { %v1916_v37 = vpop.eup %1266  ;;  %v577_v44 = vmul.f32 1.0614054, %v1908_v39  ;;  %v628_v14 = vmul.f32 %v1887_v55, %v612_v34  ;;  %v738_v0 = vmul.f32 %v722_v43, %v498_v10  ;;  %v843_v46 = vsel %vm811_vm9, %v795_v40, %v827_v8 }
 0x26e   :  { %v652_v4 = vadd.f32 -0.28449672, %v636_v6  ;;  %v888_v51 = vpack.c.bf16 %v1912_v22, %v1910_v1  ;;  %v575_v61 = vmul.f32 1.0614054, %v1916_v37  ;;  %vm812_vm10 = vcmp.ge.f32.partialorder %v1806_v31, 0.0  ;;  %v1282_v1 = vld [vmem:[%s2137_s0 + $0x10] sm:$0xff] }
 0x26f   :  { %v593_v29 = vadd.f32 -1.4531521, %v577_v44  ;;  %v643_v62 = vadd.f32 -0.28449672, %v627_v48  ;;  %v644_v6 = vadd.f32 -0.28449672, %v628_v14  ;;  %v1269_v36 = vpop.eup %1268  ;;  %1274 = vpow2.f32 %v767_v42 }
 0x270   :  { %v668_v5 = vmul.f32 %v1872_v2, %v652_v4  ;;  %v591_v3 = vadd.f32 -1.4531521, %v575_v61  ;;  %v720_v27 = vsub.f32 0.0, %v1897_v16  ;;  %1276 = vpow2.f32 %v763_v57 }
 0x271   :  { %v609_v24 = vmul.f32 %v1908_v39, %v593_v29  ;;  %v659_v10 = vmul.f32 %v1709_v60, %v643_v62  ;;  %v660_v40 = vmul.f32 %v1887_v55, %v644_v6  ;;  %v769_v43 = vmul.f32 1.442695, %v738_v0 }
 0x272   :  { %v684_v47 = vadd.f32 0.2548296, %v668_v5  ;;  %v607_v28 = vmul.f32 %v1916_v37, %v591_v3  ;;  %v1932_v33 = vpop.eup %1270  ;;  %v859_v61 = vadd.f32 1.0, %v843_v46  ;;  %v736_v57 = vmul.f32 %v720_v27, %v1897_v16 }
 0x273   :  { %v625_v23 = vadd.f32 1.4214138, %v609_v24  ;;  %v578_v44 = vmul.f32 1.0614054, %v1932_v33  ;;  %v675_v52 = vadd.f32 0.2548296, %v659_v10  ;;  %1278 = vpow2.f32 %v769_v43 }
 0x274   :  { %v700_v30 = vmul.f32 %v1872_v2, %v684_v47  ;;  %v623_v54 = vadd.f32 1.4214138, %v607_v28  ;;  %v676_v34 = vadd.f32 0.2548296, %v660_v40  ;;  %v765_v27 = vmul.f32 1.442695, %v736_v57 }
 0x275   :  { %v641_v4 = vmul.f32 %v1908_v39, %v625_v23  ;;  %v1939_v5 = vpop.eup %1272  ;;  %v594_v3 = vadd.f32 -1.4531521, %v578_v44  ;;  %v691_v47 = vmul.f32 %v1709_v60, %v675_v52  ;;  %vm817_vm14 = vcmp.ge.f32.partialorder %v1848_v21, 0.0 }
 0x276   :  { %v780_v8 = vmul.f32 %v1269_v36, %v700_v30  ;;  %v639_v2 = vmul.f32 %v1916_v37, %v623_v54  ;;  %v576_v14 = vmul.f32 1.0614054, %v1939_v5  ;;  %v692_v24 = vmul.f32 %v1887_v55, %v676_v34 }
 0x277   :  { %v657_v42 = vadd.f32 -0.28449672, %v641_v4  ;;  %v610_v28 = vmul.f32 %v1932_v33, %v594_v3  ;;  %v771_v16 = vmul.f32 %v1902_v32, %v691_v47  ;;  %v1956_v4 = vmul.f32 %v859_v61, %v1883_v63 }
 0x278   :  { %v796_v29 = vsub.f32 1.0, %v780_v8  ;;  %v655_v48 = vadd.f32 -0.28449672, %v639_v2  ;;  %v592_v6 = vadd.f32 -1.4531521, %v576_v14  ;;  %v772_v36 = vmul.f32 %v1904_v41, %v692_v24 }
 0x279   :  { %v673_v46 = vmul.f32 %v1908_v39, %v657_v42  ;;  %v626_v60 = vadd.f32 1.4214138, %v610_v28  ;;  %v787_v40 = vsub.f32 1.0, %v771_v16  ;;  %v1275_v8 = vpop.eup %1274  ;;  %1280 = vpow2.f32 %v765_v27 }
 0x27a   :  { %v828_v0 = vsub.f32 0.0, %v796_v29  ;;  %v671_v62 = vmul.f32 %v1916_v37, %v655_v48  ;;  %v608_v10 = vmul.f32 %v1939_v5, %v592_v6  ;;  %v788_v41 = vsub.f32 1.0, %v772_v36  ;;  %v1277_v43 = vpop.eup %1276 }
 0x27b   :  { %v689_v23 = vadd.f32 0.2548296, %v673_v46  ;;  %v642_v32 = vmul.f32 %v1932_v33, %v626_v60  ;;  %v819_v34 = vsub.f32 0.0, %v787_v40  ;;  %v451_v47 = vmul.f32 0.5, %v1613_v7 }
 0x27c   :  { %v844_v30 = vsel %vm812_vm10, %v796_v29, %v828_v0  ;;  %v687_v54 = vadd.f32 0.2548296, %v671_v62  ;;  %v624_v52 = vadd.f32 1.4214138, %v608_v10  ;;  %v820_v3 = vsub.f32 0.0, %v788_v41 }
 0x27d   :  { %v860_v55 = vadd.f32 1.0, %v844_v30  ;;  %v705_v44 = vmul.f32 %v1908_v39, %v689_v23  ;;  %v658_v42 = vadd.f32 -0.28449672, %v642_v32  ;;  %v835_v57 = vsel %vm803_vm11, %v787_v40, %v819_v34  ;;  %v1279_v28 = vpop.eup %1278 }
 0x27e   :  { %v703_v2 = vmul.f32 %v1916_v37, %v687_v54  ;;  %v640_v39 = vmul.f32 %v1939_v5, %v624_v52  ;;  %v836_v37 = vsel %vm804_vm12, %v788_v41, %v820_v3  ;;  %v851_v14 = vadd.f32 1.0, %v835_v57  ;;  %v1283_v52 = vld [vmem:[%s2137_s0] sm:$0xff] }
 0x27f   :  { %v1960_v31 = vmul.f32 %v860_v55, %v460_v53  ;;  %v785_v29 = vmul.f32 %v1275_v8, %v705_v44  ;;  %v674_v53 = vmul.f32 %v1932_v33, %v658_v42  ;;  %v452_v24 = vmul.f32 0.5, %v1622_v15  ;;  %v1284_v42 = vld [vmem:[%s2137_s0 + $0x18] sm:$0xff] }
 0x280   :  { %v783_v61 = vmul.f32 %v1277_v43, %v703_v2  ;;  %v656_v0 = vadd.f32 -0.28449672, %v640_v39  ;;  %v852_v46 = vadd.f32 1.0, %v836_v37  ;;  %v867_v18 = vmul.f32 %v851_v14, %v451_v47  ;;  %v1286_v14 = vld [vmem:[%s2137_s0 + $0x30] sm:$0xff] }
 0x281   :  { %v887_v63 = vpack.c.bf16 %v1960_v31, %v1956_v4  ;;  %v801_v48 = vsub.f32 1.0, %v785_v29  ;;  %v690_v62 = vadd.f32 0.2548296, %v674_v53  ;;  %vm815_vm15 = vcmp.ge.f32.partialorder %v1851_v58, 0.0 }
 0x282   :  { %v799_v6 = vsub.f32 1.0, %v783_v61  ;;  %v672_v16 = vmul.f32 %v1939_v5, %v656_v0  ;;  %v868_v36 = vmul.f32 %v852_v46, %v452_v24  ;;  %vm818_vm1 = vcmp.ge.f32.partialorder %v1870_v12, 0.0  ;;  %v1287_v46 = vld [vmem:[%s2137_s0 + $0x20] sm:$0xff] }
 0x283   :  { %v833_v30 = vsub.f32 0.0, %v801_v48  ;;  %v706_v23 = vmul.f32 %v1932_v33, %v690_v62  ;;  %v1281_v55 = vpop.eup %1280  ;;  %v465_v44 = vmul.f32 0.5, %v1811_v17  ;;  %v466_v19 = vmul.f32 0.5, %v1865_v59 }
 0x284   :  { %v688_v26 = vadd.f32 0.2548296, %v672_v16  ;;  %v883_v60 = vpack.c.bf16 %v868_v36, %v867_v18  ;;  %v831_v7 = vsub.f32 0.0, %v799_v6  ;;  %vm816_vm2 = vcmp.ge.f32.partialorder %v1891_v11, 0.0  ;;  %v1289_v18 = vld [vmem:[%s2137_s0 + $0x28] sm:$0xff] }
 0x285   :  { %v786_v27 = vmul.f32 %v1279_v28, %v706_v23  ;;  %v849_v54 = vsel %vm817_vm14, %v801_v48, %v833_v30  ;;  %v463_v58 = vmul.f32 0.5, %v1821_v13  ;;  %v464_v41 = vmul.f32 0.5, %v1879_v20  ;;  %v2007_v13 = vld [vmem:[%s2143_s6] ss:$0 sm:$0xff] }
 0x286   :  { %v704_v15 = vmul.f32 %v1939_v5, %v688_v26  ;;  %1164 = vmatprep.mubr.msk.bf16.mxu1 %vm930_vm13, %v883_v60  ;;  %v865_v5 = vadd.f32 1.0, %v849_v54  ;;  %v847_v40 = vsel %vm815_vm15, %v799_v6, %v831_v7  ;;  %v1288_v6 = vld [vmem:[%s2137_s0 + $0x38] sm:$0xff]  ;;  %v1290_v7 = vld [vmem:[%s2137_s0 + $0x50] sm:$0xff] }
 0x287   :  { %v802_v10 = vsub.f32 1.0, %v786_v27  ;;  %1165 = vmatmul.mubr.msk.bf16.vlgmr.msra.gmra.mrb[0].mxu1 %vm930_vm13, %v884_v9  ;;  %v863_v32 = vadd.f32 1.0, %v847_v40 }
 0x288   :  { %v784_v33 = vmul.f32 %v1281_v55, %v704_v15  ;;  %1168 = vmatprep.mubr.msk.bf16.mxu1 %vm930_vm13, %v885_v38  ;;  %v881_v35 = vmul.f32 %v865_v5, %v465_v44  ;;  %v1292_v5 = vld [vmem:[%s2137_s0 + $0x58] sm:$0xff] }
 0x289   :  { %v834_v21 = vsub.f32 0.0, %v802_v10  ;;  %v879_v59 = vmul.f32 %v863_v32, %v463_v58 }
 0x28a   :  { %v800_v8 = vsub.f32 1.0, %v784_v33 }
 0x28b   :  { %v850_v4 = vsel %vm818_vm1, %v802_v10, %v834_v21  ;;  %v1291_v10 = vld [vmem:[%s2137_s0 + $0x40] sm:$0xff] }
 0x28c   :  { %v866_v25 = vadd.f32 1.0, %v850_v4  ;;  %v832_v9 = vsub.f32 0.0, %v800_v8 }
 0x28e   :  { %v882_v45 = vmul.f32 %v866_v25, %v466_v19  ;;  %v848_v38 = vsel %vm816_vm2, %v800_v8, %v832_v9  ;;  %v1293_v8 = vld [vmem:[%s2137_s0 + $0x48] sm:$0xff] }
 0x28f   :  { %v864_v43 = vadd.f32 1.0, %v848_v38  ;;  %1169 = vmatmul.mubr.msk.bf16.gmra.mrb[4].mxu1 %vm930_vm13, %v886_v56 }
 0x290   :  { %v890_v17 = vpack.c.bf16 %v882_v45, %v881_v35  ;;  %1172 = vmatprep.mubr.msk.bf16.mxu1 %vm930_vm13, %v887_v63  ;;  %v1285_v63 = vld [vmem:[%s2137_s0 + $0x8] sm:$0xff]  ;;  %v1294_v35 = vld [vmem:[%s2137_s0 + $0x70] sm:$0xff] }
 0x291   :  { %v880_v12 = vmul.f32 %v864_v43, %v464_v41  ;;  %v1295_v41 = vld [vmem:[%s2137_s0 + $0x60] sm:$0xff] }
 0x293   :  { %v889_v31 = vpack.c.bf16 %v880_v12, %v879_v59  ;;  %v1296_v59 = vld [vmem:[%s2137_s0 + $0x78] sm:$0xff] }
 0x297   :  { %1173 = vmatmul.mubr.msk.bf16.gmra.mrb[8].mxu1 %vm930_vm13, %v888_v51 }
 0x298   :  { %1176 = vmatprep.mubr.msk.bf16.mxu1 %vm930_vm13, %v889_v31  ;;  %v1297_v31 = vld [vmem:[%s2137_s0 + $0x68] sm:$0xff] }
 0x29f   :  { %1177 = vmatmul.mubr.msk.bf16.gmra.mrb[12].mxu1 %vm930_vm13, %v890_v17 }
 0x35a   :  { %v1166_v49 = vpop.f32.mrb[0].mxu1 }
 0x35b   :  { %v998_v50 = vadd.f32 %v1166_v49, %v2007_v13  ;;  %v989_v56 = vpop.f32.mrb[1].mxu1 }
 0x35c   :  { %v990_v20 = vadd.f32 %v2007_v13, %v989_v56  ;;  %v1167_v11 = vpop.f32.mrb[2].mxu1 }
 0x35d   :  { %v1054_v22 = vadd.f32 %v1282_v1, %v998_v50  ;;  %v1001_v51 = vadd.f32 %v1167_v11, %v2007_v13  ;;  %v992_v2 = vpop.f32.mrb[3].mxu1 }
 0x35e   :  { %v1052_v34 = vadd.f32 %v1283_v52, %v990_v20  ;;  %v993_v29 = vadd.f32 %v2007_v13, %v992_v2 }
 0x35f   :  { %1070 = vst.msk [vmem:[%s2144_s7 + $0x10] sm:$0xff] %vm45_vm0, %v1054_v22  ;;  %v1055_v3 = vadd.f32 %v1284_v42, %v1001_v51 }
 0x360   :  { %1068 = vst.msk [vmem:[%s2144_s7] sm:$0xff] %vm45_vm0, %v1052_v34  ;;  %v1053_v61 = vadd.f32 %v1285_v63, %v993_v29 }
 0x361   :  { %1071 = vst.msk [vmem:[%s2144_s7 + $0x18] sm:$0xff] %vm45_vm0, %v1055_v3 }
 0x362   :  { %1069 = vst.msk [vmem:[%s2144_s7 + $0x8] sm:$0xff] %vm45_vm0, %v1053_v61  ;;  %v1170_v39 = vpop.f32.mrb[4].mxu1 }
 0x363   :  { %v1014_v57 = vadd.f32 %v1170_v39, %v2007_v13  ;;  %v1005_v48 = vpop.f32.mrb[5].mxu1 }
 0x364   :  { %v1006_v53 = vadd.f32 %v2007_v13, %v1005_v48  ;;  %v1171_v37 = vpop.f32.mrb[6].mxu1 }
 0x365   :  { %v1058_v47 = vadd.f32 %v1286_v14, %v1014_v57  ;;  %v1017_v24 = vadd.f32 %v1171_v37, %v2007_v13  ;;  %v1008_v0 = vpop.f32.mrb[7].mxu1 }
 0x366   :  { %v1056_v28 = vadd.f32 %v1287_v46, %v1006_v53  ;;  %v1009_v62 = vadd.f32 %v2007_v13, %v1008_v0 }
 0x367   :  { %1074 = vst.msk [vmem:[%s2144_s7 + $0x30] sm:$0xff] %vm45_vm0, %v1058_v47  ;;  %v1059_v16 = vadd.f32 %v1288_v6, %v1017_v24 }
 0x368   :  { %1072 = vst.msk [vmem:[%s2144_s7 + $0x20] sm:$0xff] %vm45_vm0, %v1056_v28  ;;  %v1057_v36 = vadd.f32 %v1289_v18, %v1009_v62 }
 0x369   :  { %1075 = vst.msk [vmem:[%s2144_s7 + $0x38] sm:$0xff] %vm45_vm0, %v1059_v16 }
 0x36a   :  { %1073 = vst.msk [vmem:[%s2144_s7 + $0x28] sm:$0xff] %vm45_vm0, %v1057_v36  ;;  %v1174_v30 = vpop.f32.mrb[8].mxu1 }
 0x36b   :  { %v1030_v23 = vadd.f32 %v1174_v30, %v2007_v13  ;;  %v1021_v26 = vpop.f32.mrb[9].mxu1 }
 0x36c   :  { %v1022_v60 = vadd.f32 %v2007_v13, %v1021_v26  ;;  %v1175_v27 = vpop.f32.mrb[10].mxu1 }
 0x36d   :  { %v1062_v15 = vadd.f32 %v1290_v7, %v1030_v23  ;;  %v1033_v55 = vadd.f32 %v1175_v27, %v2007_v13  ;;  %v1024_v54 = vpop.f32.mrb[11].mxu1 }
 0x36e   :  { %v1060_v33 = vadd.f32 %v1291_v10, %v1022_v60  ;;  %v1025_v21 = vadd.f32 %v2007_v13, %v1024_v54 }
 0x36f   :  { %1078 = vst.msk [vmem:[%s2144_s7 + $0x50] sm:$0xff] %vm45_vm0, %v1062_v15  ;;  %v1063_v40 = vadd.f32 %v1292_v5, %v1033_v55 }
 0x370   :  { %1076 = vst.msk [vmem:[%s2144_s7 + $0x40] sm:$0xff] %vm45_vm0, %v1060_v33  ;;  %v1061_v4 = vadd.f32 %v1293_v8, %v1025_v21 }
 0x371   :  { %1079 = vst.msk [vmem:[%s2144_s7 + $0x58] sm:$0xff] %vm45_vm0, %v1063_v40 }
 0x372   :  { %1077 = vst.msk [vmem:[%s2144_s7 + $0x48] sm:$0xff] %vm45_vm0, %v1061_v4  ;;  %v1178_v44 = vpop.f32.mrb[12].mxu1 }
 0x373   :  { %v1046_v19 = vadd.f32 %v1178_v44, %v2007_v13  ;;  %v1037_v25 = vpop.f32.mrb[13].mxu1 }
 0x374   :  { %v1038_v9 = vadd.f32 %v2007_v13, %v1037_v25  ;;  %v1179_v32 = vpop.f32.mrb[14].mxu1 }
 0x375   :  { %v1066_v45 = vadd.f32 %v1294_v35, %v1046_v19  ;;  %v1049_v38 = vadd.f32 %v1179_v32, %v2007_v13  ;;  %v1040_v58 = vpop.f32.mrb[15].mxu1 }
 0x376   :  { %v1064_v43 = vadd.f32 %v1295_v41, %v1038_v9  ;;  %v1041_v17 = vadd.f32 %v2007_v13, %v1040_v58 }
 0x377   :  { %1082 = vst.msk [vmem:[%s2144_s7 + $0x70] sm:$0xff] %vm45_vm0, %v1066_v45  ;;  %v1067_v12 = vadd.f32 %v1296_v59, %v1049_v38 }
 0x378   :  { %1080 = vst.msk [vmem:[%s2144_s7 + $0x60] sm:$0xff] %vm45_vm0, %v1064_v43  ;;  %v1065_v13 = vadd.f32 %v1297_v31, %v1041_v17 }
 0x379   :  { %1083 = vst.msk [vmem:[%s2144_s7 + $0x78] sm:$0xff] %vm45_vm0, %v1067_v12 }
 0x37a   :  { %1081 = vst.msk [vmem:[%s2144_s7 + $0x68] sm:$0xff] %vm45_vm0, %v1065_v13 }

// kernel: neg.10
= control target key start
LH: loop header
LB: loop body
LE: loop exit
PB: predicated region body
PF: predicated region fallthrough
CT: control target
= control target key end

     0   :  { %s72_s0 = inlined_call_operand.vmem [shape: f32[2,32,16], index: 0, kind: input, shape index: {}]   ;;  %s73_s1 = inlined_call_operand.vmem [shape: f32[2,32,16], index: 1, kind: output, shape index: {}]  }
   0x1   :  { %v2_v0 = vld [vmem:[%s72_s0] sm:$0xff]  ;;  %v32_v1 = vld [vmem:[%s72_s0 + $0x10] sm:$0xff]  ;;  %v34_v2 = vld [vmem:[%s72_s0 + $0x8] sm:$0xff] }
   0x2   :  { %v5_v3 = vxor.u32 2147483648, %v2_v0  ;;  %v12_v4 = vxor.u32 2147483648, %v32_v1  ;;  %v20_v5 = vxor.u32 2147483648, %v34_v2  ;;  %v36_v6 = vld [vmem:[%s72_s0 + $0x18] sm:$0xff] }
   0x3   :  { %v28_v7 = vxor.u32 2147483648, %v36_v6 }
   0x4   :  { %7 = vst [vmem:[%s73_s1] sm:$0xff] %v5_v3  ;;  %33 = vst [vmem:[%s73_s1 + $0x10] sm:$0xff] %v12_v4 }
   0x5   :  { %35 = vst [vmem:[%s73_s1 + $0x8] sm:$0xff] %v20_v5  ;;  %37 = vst [vmem:[%s73_s1 + $0x18] sm:$0xff] %v28_v7 }

// kernel: _lambda_.19
= control target key start
LH: loop header
LB: loop body
LE: loop exit
PB: predicated region body
PF: predicated region fallthrough
CT: control target
= control target key end

     0   :  { %s691_s12 = smov 0   ;;  %s787_s0 = inlined_call_operand.vmem [shape: bf16[256,35], index: 0, kind: input, shape index: {}]   ;;  %s788_s1 = inlined_call_operand.vmem [shape: bf16[35,32], index: 1, kind: input, shape index: {}]   ;;  %s789_s2 = inlined_call_operand.vmem [shape: f32[1,32], index: 2, kind: input, shape index: {}]   ;;  %s790_s3 = inlined_call_operand.vmem [shape: bf16[256,32], index: 3, kind: output, shape index: {}]  }
   0x1 LB: > { %s540_s13 = sadd.s32 4294967295, %s668_s12   ;;  %p544_p0 = scmp.ge.s32.totalorder %s668_s12, 1  ;;  %s668_s12 = sphi %s691_s12, %s13_s12  }
   0x2   : > { %p138_p1 = scmp.lt.s32.totalorder %s668_s12, 3 }
   0x4   : > { %p139_p2 = pnand %p544_p0, %p138_p1 }
   0x5   : > { %v651_v0 = vld [vmem:[%s788_s1] sm:$0xff] (!%p139_p2)   ;;  %vm283_vm0 = vcmask (!%p139_p2), 1040384   ;;  %v652_v1 = vld [vmem:[%s788_s1 + $0x8] sm:$0xff] (!%p139_p2)   ;;  %vm284_vm1 = vcmask (!%p139_p2), 1041408   ;;  %v670_v3 = vmov (!%p139_p2), 65535   ;;  %s545_s20 = sshll.u32 (!%p139_p2), %s540_s13, 4 }
   0x6   : > { %142 = sbr.rel (%p139_p2) target bundleno = 249 (0xf9), region = 32  ;;  %614 = vmatprep.subr.bf16.mxu0 (!%p139_p2), %v651_v0  ;;  %636 = vmatprep.subr.bf16.mxu1 (!%p139_p2), %v651_v0  ;;  %v653_v2 = vld [vmem:[%s788_s1 + $0x10] ss:$0 sps:$4 sm:$0x33] (!%p139_p2)   ;;  %v285_v4 = vsel (!%p139_p2), %vm283_vm0, 4294967295, %v670_v3  ;;  %p163_p3 = scmp.lt.s32.totalorder (!%p139_p2), %s545_s20, 31 }
   0x7   : > { %615 = vmatpush3.bf16.msra.mxu0 (!%p139_p2), %v651_v0  ;;  %639 = vmatpush3.bf16.msra.mxu1 (!%p139_p2), %v651_v0  ;;  %v286_v5 = vsel (!%p139_p2), %vm284_vm1, %v285_v4, 0  ;;  %vm258_vm2 = vcmask (!%p139_p2), 285696   ;;  %v727_v15 = vld [vmem:[%s789_s2] ss:$0 sm:$0xff] (!%p139_p2)  ;;  %vm467_vm3 = vcmask (!%p139_p2), 257024  }
   0x8   : > { %616 = vmatprep.subr.bf16.mxu0 (!%p139_p2), %v652_v1  ;;  %637 = vmatprep.subr.bf16.mxu1 (!%p139_p2), %v652_v1  ;;  %v288_v6 = vand.u32 (!%p139_p2), %v653_v2, %v286_v5 }
   0xb   : > { %617 = vmatpush3.bf16.msra.mxu0 (!%p139_p2), %v652_v1  ;;  %640 = vmatpush3.bf16.msra.mxu1 (!%p139_p2), %v652_v1 }
   0xc   : > { %618 = vmatprep.subr.bf16.mxu0 (!%p139_p2), %v288_v6  ;;  %638 = vmatprep.subr.bf16.mxu1 (!%p139_p2), %v288_v6 }
   0xd   : > { %s792_s20 = smov (!%p163_p3, %s545_s20), 31 }
   0xe   : > { %s546_s21 = sshll.u32 %s792_s20, 2 }
   0xf   : > { %s166_s24 = scalar_lea.vmem %s787_s0, %s546_s21  ;;  %619 = vmatpush3.bf16.msra.mxu0 %v288_v6  ;;  %641 = vmatpush3.bf16.msra.mxu1 %v288_v6  ;;  %s739_s29 = scalar_lea.vmem %s790_s3, %s546_s21 }
  0x10   : > { %v654_v7 = vld [vmem:[%s166_s24] sm:$0xff]   ;;  %v656_v9 = vld [vmem:[%s166_s24 + $0x8] sm:$0xff]   ;;  %v658_v11 = vld [vmem:[%s166_s24 + $0x10] sm:$0xff]  }
  0x11   : > { %v655_v8 = vld [vmem:[%s166_s24 + $0x20] sm:$0xff]   ;;  %620 = vmatprep.mubr.msk.bf16.mxu0 %vm258_vm2, %v654_v7  ;;  %v657_v10 = vld [vmem:[%s166_s24 + $0x28] sm:$0xff]   ;;  %v659_v12 = vld [vmem:[%s166_s24 + $0x30] sm:$0xff]  }
  0x12   : > { %628 = vmatprep.mubr.msk.bf16.mxu1 %vm258_vm2, %v655_v8  ;;  %621 = vmatmul.mubr.msk.bf16.vlgmr.msra.gmra.mrb[0].mxu0 %vm258_vm2, %v656_v9  ;;  %v660_v13 = vld [vmem:[%s166_s24 + $0x18] sm:$0xff]  }
  0x13   : > { %629 = vmatmul.mubr.msk.bf16.vlgmr.msra.gmra.mrb[0].mxu1 %vm258_vm2, %v657_v10  ;;  %624 = vmatprep.mubr.msk.bf16.mxu0 %vm258_vm2, %v658_v11  ;;  %v661_v14 = vld [vmem:[%s166_s24 + $0x38] sm:$0xff]  }
  0x14   : > { %632 = vmatprep.mubr.msk.bf16.mxu1 %vm258_vm2, %v659_v12 }
  0x1a   : > { %625 = vmatmul.mubr.msk.bf16.gmra.mrb[4].mxu0 %vm258_vm2, %v660_v13 }
  0x1b   : > { %633 = vmatmul.mubr.msk.bf16.gmra.mrb[4].mxu1 %vm258_vm2, %v661_v14 }
  0xe5   : > { %v622_v16 = vpop.f32.mrb[0].mxu0 }
  0xe6   : > { %v333_v17 = vadd.f32 %v622_v16, %v727_v15  ;;  %v630_v18 = vpop.f32.mrb[0].mxu1  ;;  %v324_v19 = vpop.f32.mrb[1].mxu0 }
  0xe7   : > { %v365_v20 = vadd.f32 %v630_v18, %v727_v15  ;;  %v325_v21 = vadd.f32 %v727_v15, %v324_v19  ;;  %v356_v22 = vpop.f32.mrb[1].mxu1  ;;  %v623_v23 = vpop.f32.mrb[2].mxu0 }
  0xe8   : > { %v389_v24 = vmax.f32 %v333_v17, 0.0  ;;  %v357_v25 = vadd.f32 %v727_v15, %v356_v22  ;;  %v336_v26 = vadd.f32 %v623_v23, %v727_v15  ;;  %v631_v27 = vpop.f32.mrb[2].mxu1  ;;  %v327_v28 = vpop.f32.mrb[3].mxu0 }
  0xe9   : > { %v397_v29 = vmax.f32 %v365_v20, 0.0  ;;  %v387_v30 = vmax.f32 %v325_v21, 0.0  ;;  %v368_v31 = vadd.f32 %v631_v27, %v727_v15  ;;  %v328_v32 = vadd.f32 %v727_v15, %v327_v28  ;;  %v359_v33 = vpop.f32.mrb[3].mxu1 }
  0xea   : > { %v589_v34 = vpack.c.bf16 %v389_v24, %v389_v24  ;;  %v395_v35 = vmax.f32 %v357_v25, 0.0  ;;  %v390_v36 = vmax.f32 %v336_v26, 0.0  ;;  %v360_v37 = vadd.f32 %v727_v15, %v359_v33 }
  0xeb   : > { %v597_v38 = vpack.c.bf16 %v397_v29, %v397_v29  ;;  %v587_v39 = vpack.c.bf16 %v387_v30, %v387_v30  ;;  %v398_v40 = vmax.f32 %v368_v31, 0.0  ;;  %v388_v41 = vmax.f32 %v328_v32, 0.0 }
  0xec   : > { %470 = vst.msk [vmem:[%s739_s29 + $0x8] sm:$0xf] %vm467_vm3, %v589_v34  ;;  %v595_v42 = vpack.c.bf16 %v395_v35, %v395_v35  ;;  %v590_v43 = vpack.c.bf16 %v390_v36, %v390_v36  ;;  %v396_v44 = vmax.f32 %v360_v37, 0.0 }
  0xed   : > { %478 = vst.msk [vmem:[%s739_s29 + $0x28] sm:$0xf] %vm467_vm3, %v597_v38  ;;  %468 = vst.msk [vmem:[%s739_s29] sm:$0xf] %vm467_vm3, %v587_v39  ;;  %v598_v45 = vpack.c.bf16 %v398_v40, %v398_v40  ;;  %v588_v46 = vpack.c.bf16 %v388_v41, %v388_v41  ;;  %v626_v47 = vpop.f32.mrb[4].mxu0 }
  0xee   : > { %476 = vst.msk [vmem:[%s739_s29 + $0x20] sm:$0xf] %vm467_vm3, %v595_v42  ;;  %471 = vst.msk [vmem:[%s739_s29 + $0xc] sm:$0xf] %vm467_vm3, %v590_v43  ;;  %v596_v48 = vpack.c.bf16 %v396_v44, %v396_v44  ;;  %v349_v49 = vadd.f32 %v626_v47, %v727_v15  ;;  %v634_v50 = vpop.f32.mrb[4].mxu1  ;;  %v340_v51 = vpop.f32.mrb[5].mxu0 }
  0xef   : > { %479 = vst.msk [vmem:[%s739_s29 + $0x2c] sm:$0xf] %vm467_vm3, %v598_v45  ;;  %469 = vst.msk [vmem:[%s739_s29 + $0x4] sm:$0xf] %vm467_vm3, %v588_v46  ;;  %v381_v52 = vadd.f32 %v634_v50, %v727_v15  ;;  %v341_v53 = vadd.f32 %v727_v15, %v340_v51  ;;  %v372_v54 = vpop.f32.mrb[5].mxu1  ;;  %v627_v55 = vpop.f32.mrb[6].mxu0 }
  0xf0   : > { %477 = vst.msk [vmem:[%s739_s29 + $0x24] sm:$0xf] %vm467_vm3, %v596_v48  ;;  %v393_v56 = vmax.f32 %v349_v49, 0.0  ;;  %v373_v57 = vadd.f32 %v727_v15, %v372_v54  ;;  %v352_v58 = vadd.f32 %v627_v55, %v727_v15  ;;  %v635_v59 = vpop.f32.mrb[6].mxu1  ;;  %v343_v60 = vpop.f32.mrb[7].mxu0 }
  0xf1   : > { %v401_v61 = vmax.f32 %v381_v52, 0.0  ;;  %v391_v62 = vmax.f32 %v341_v53, 0.0  ;;  %v384_v63 = vadd.f32 %v635_v59, %v727_v15  ;;  %v344_v0 = vadd.f32 %v727_v15, %v343_v60  ;;  %v375_v1 = vpop.f32.mrb[7].mxu1 }
  0xf2   : > { %v593_v2 = vpack.c.bf16 %v393_v56, %v393_v56  ;;  %v399_v3 = vmax.f32 %v373_v57, 0.0  ;;  %v394_v4 = vmax.f32 %v352_v58, 0.0  ;;  %v376_v5 = vadd.f32 %v727_v15, %v375_v1 }
  0xf3   : > { %v601_v6 = vpack.c.bf16 %v401_v61, %v401_v61  ;;  %v591_v7 = vpack.c.bf16 %v391_v62, %v391_v62  ;;  %v402_v8 = vmax.f32 %v384_v63, 0.0  ;;  %v392_v9 = vmax.f32 %v344_v0, 0.0 }
  0xf4   : > { %474 = vst.msk [vmem:[%s739_s29 + $0x18] sm:$0xf] %vm467_vm3, %v593_v2  ;;  %v599_v10 = vpack.c.bf16 %v399_v3, %v399_v3  ;;  %v594_v11 = vpack.c.bf16 %v394_v4, %v394_v4  ;;  %v400_v12 = vmax.f32 %v376_v5, 0.0 }
  0xf5   : > { %482 = vst.msk [vmem:[%s739_s29 + $0x38] sm:$0xf] %vm467_vm3, %v601_v6  ;;  %472 = vst.msk [vmem:[%s739_s29 + $0x10] sm:$0xf] %vm467_vm3, %v591_v7  ;;  %v602_v13 = vpack.c.bf16 %v402_v8, %v402_v8  ;;  %v592_v14 = vpack.c.bf16 %v392_v9, %v392_v9 }
  0xf6   : > { %480 = vst.msk [vmem:[%s739_s29 + $0x30] sm:$0xf] %vm467_vm3, %v599_v10  ;;  %475 = vst.msk [vmem:[%s739_s29 + $0x1c] sm:$0xf] %vm467_vm3, %v594_v11  ;;  %v600_v15 = vpack.c.bf16 %v400_v12, %v400_v12 }
  0xf7   : > { %483 = vst.msk [vmem:[%s739_s29 + $0x3c] sm:$0xf] %vm467_vm3, %v602_v13  ;;  %473 = vst.msk [vmem:[%s739_s29 + $0x14] sm:$0xf] %vm467_vm3, %v592_v14 }
  0xf8   : > { %481 = vst.msk [vmem:[%s739_s29 + $0x34] sm:$0xf] %vm467_vm3, %v600_v15 }
  0xf9 PF: > { %s13_s12 = sadd.s32 1, %s668_s12  }
  0xfa   : > { %p10_p4 = scmp.ge.s32.totalorder %s13_s12, 4  }
  0xfc   :  { %12 = sbr.rel (!%p10_p4) target bundleno = 1 (0x1), region = 62 }

// kernel: _lambda_.21
= control target key start
LH: loop header
LB: loop body
LE: loop exit
PB: predicated region body
PF: predicated region fallthrough
CT: control target
= control target key end

     0   :  { %vm13_vm0 = vcmask 261120   ;;  %vm17_vm1 = vcmask 258048   ;;  %vm124_vm2 = vcmask 20480   ;;  %vm122_vm3 = vcmask 23552   ;;  %s397_s0 = inlined_call_operand.vmem [shape: f32[2,13,32], index: 0, kind: input, shape index: {}]   ;;  %s398_s1 = inlined_call_operand.vmem [shape: f32[2,32,3], index: 1, kind: input, shape index: {}]   ;;  %s399_s2 = inlined_call_operand.vmem [shape: f32[2,13,3], index: 2, kind: output, shape index: {}]  }
   0x1   :  { %v11_v0 = vld [vmem:[%s397_s0] sm:$0xff]  ;;  %v12_v1 = vld [vmem:[%s397_s0 + $0x8] sm:$0x1f]  ;;  %v246_v2 = vld [vmem:[%s397_s0 + $0x10] sm:$0xff] }
   0x2   :  { %v14_v3 = vsel %vm13_vm0, %v11_v0, -inf  ;;  %v18_v4 = vsel %vm17_vm1, %v12_v1, -inf  ;;  %v247_v5 = vld [vmem:[%s397_s0 + $0x18] sm:$0x1f]  ;;  %v129_v6 = vsel %vm13_vm0, %v246_v2, -inf  ;;  %v37_v28 = vld [vmem:[%s398_s1] sm:$0xff] }
   0x3   :  { %15 = vmax.xlane.f32.xlu0 %v14_v3  ;;  %19 = vmax.xlane.f32.xlu1 %v18_v4  ;;  %v132_v7 = vsel %vm17_vm1, %v247_v5, -inf  ;;  %v38_v29 = vld [vmem:[%s398_s1 + $0x8] sm:$0xff]  ;;  %v39_v31 = vld [vmem:[%s398_s1 + $0x10] sm:$0xff]  ;;  %v40_v32 = vld [vmem:[%s398_s1 + $0x18] sm:$0xff] }
   0x4   :  { %v290_v30 = vpack.c.bf16 %v38_v29, %v37_v28  ;;  %v294_v33 = vpack.c.bf16 %v40_v32, %v39_v31  ;;  %v248_v34 = vld [vmem:[%s398_s1 + $0x20] sm:$0xff]  ;;  %v249_v35 = vld [vmem:[%s398_s1 + $0x28] sm:$0xff]  ;;  %v250_v37 = vld [vmem:[%s398_s1 + $0x30] sm:$0xff] }
   0x5   :  { %v298_v36 = vpack.c.bf16 %v249_v35, %v248_v34  ;;  %v251_v38 = vld [vmem:[%s398_s1 + $0x38] sm:$0xff] }
   0x6   :  { %291 = vmatprep.subr.bf16.mxu0 %v290_v30  ;;  %v302_v39 = vpack.c.bf16 %v251_v38, %v250_v37 }
   0x7   :  { %130 = vmax.xlane.f32.xlu0 %v129_v6  ;;  %133 = vmax.xlane.f32.xlu1 %v132_v7 }
   0x8   :  { %293 = vmatpush3.bf16.msra.mxu0 %v290_v30  ;;  %299 = vmatprep.subr.bf16.mxu1 %v298_v36 }
   0x9   :  { %295 = vmatprep.subr.bf16.mxu0 %v294_v33  ;;  %301 = vmatpush3.bf16.msra.mxu1 %v298_v36 }
   0xa   :  { %303 = vmatprep.subr.bf16.mxu1 %v302_v39 }
   0xc   :  { %297 = vmatpush3.bf16.msra.mxu0 %v294_v33 }
   0xd   :  { %305 = vmatpush3.bf16.msra.mxu1 %v302_v39 }
  0x90   :  { %v16_v8 = vpop.xlane.xlu0 %15  ;;  %v20_v9 = vpop.xlane.xlu1 %19 }
  0x91   :  { %v21_v10 = vsub.f32 %v11_v0, %v16_v8  ;;  %v22_v11 = vsub.f32 %v12_v1, %v20_v9 }
  0x93   :  { %v23_v12 = vmul.f32 1.442695, %v21_v10  ;;  %v25_v13 = vmul.f32 1.442695, %v22_v11 }
  0x94   :  { %v131_v14 = vpop.xlane.xlu0 %130  ;;  %v134_v15 = vpop.xlane.xlu1 %133 }
  0x95   :  { %306 = vpow2.f32 %v23_v12  ;;  %v135_v16 = vsub.f32 %v246_v2, %v131_v14  ;;  %v136_v17 = vsub.f32 %v247_v5, %v134_v15 }
  0x96   :  { %308 = vpow2.f32 %v25_v13 }
  0x97   :  { %v137_v18 = vmul.f32 1.442695, %v135_v16  ;;  %v139_v19 = vmul.f32 1.442695, %v136_v17 }
  0x99   :  { %310 = vpow2.f32 %v137_v18 }
  0x9a   :  { %312 = vpow2.f32 %v139_v19 }
  0x9f   :  { %v307_v20 = vpop.eup %306 }
  0xa0   :  { %v309_v21 = vpop.eup %308  ;;  %v27_v22 = vsel %vm13_vm0, %v307_v20, 0.0 }
  0xa1   :  { %28 = vadd.xlane.f32.xlu0 %v27_v22  ;;  %v30_v23 = vsel %vm17_vm1, %v309_v21, 0.0 }
  0xa3   :  { %v311_v24 = vpop.eup %310 }
  0xa4   :  { %v313_v25 = vpop.eup %312  ;;  %v141_v26 = vsel %vm13_vm0, %v311_v24, 0.0 }
  0xa5   :  { %31 = vadd.xlane.f32.xlu0 %v30_v23  ;;  %142 = vadd.xlane.f32.xlu1 %v141_v26  ;;  %v144_v27 = vsel %vm17_vm1, %v313_v25, 0.0 }
  0xa9   :  { %145 = vadd.xlane.f32.xlu1 %v144_v27 }
 0x12e   :  { %v29_v40 = vpop.xlane.xlu0 %28 }
 0x12f   :  { %314 = vrcp.f32 %v29_v40 }
 0x132   :  { %v143_v41 = vpop.xlane.xlu1 %142  ;;  %v32_v42 = vpop.xlane.xlu0 %31 }
 0x133   :  { %316 = vrcp.f32 %v143_v41 }
 0x134   :  { %318 = vrcp.f32 %v32_v42 }
 0x136   :  { %v146_v43 = vpop.xlane.xlu1 %145 }
 0x137   :  { %320 = vrcp.f32 %v146_v43 }
 0x139   :  { %v315_v44 = vpop.eup %314 }
 0x13a   :  { %v34_v45 = vmul.f32 %v315_v44, %v307_v20 }
 0x13c   :  { %276 = vmatprep.mubr.msk.f32.mxu0 %vm13_vm0, %v34_v45 }
 0x13d   :  { %v317_v46 = vpop.eup %316 }
 0x13e   :  { %v319_v47 = vpop.eup %318  ;;  %v148_v48 = vmul.f32 %v317_v46, %v311_v24 }
 0x13f   :  { %v36_v49 = vmul.f32 %v319_v47, %v309_v21 }
 0x140   :  { %287 = vmatprep.mubr.msk.f32.mxu1 %vm13_vm0, %v148_v48 }
 0x141   :  { %v321_v50 = vpop.eup %320  ;;  %277 = vmatmul.mubr.msk.f32.vlgmr.msra.gmra.mrb[0].mxu0 %vm13_vm0, %v36_v49 }
 0x142   :  { %v150_v51 = vmul.f32 %v321_v50, %v313_v25 }
 0x144   :  { %288 = vmatmul.mubr.msk.f32.vlgmr.msra.gmra.mrb[0].mxu1 %vm13_vm0, %v150_v51 }
 0x214   :  { %v278_v52 = vpop.f32.mrb[0].mxu0 }
 0x215   :  { %125 = vst.msk [vmem:[%s399_s2 + $0x8] sm:$0x1f] %vm124_vm2, %v278_v52  ;;  %v113_v53 = vpop.f32.mrb[1].mxu0 }
 0x216   :  { %123 = vst.msk [vmem:[%s399_s2] sm:$0xff] %vm122_vm3, %v113_v53 }
 0x217   :  { %v289_v54 = vpop.f32.mrb[0].mxu1 }
 0x218   :  { %255 = vst.msk [vmem:[%s399_s2 + $0x18] sm:$0x1f] %vm124_vm2, %v289_v54  ;;  %v228_v55 = vpop.f32.mrb[1].mxu1 }
 0x219   :  { %254 = vst.msk [vmem:[%s399_s2 + $0x10] sm:$0xff] %vm122_vm3, %v228_v55 }

// kernel: _lambda_.20
= control target key start
LH: loop header
LB: loop body
LE: loop exit
PB: predicated region body
PF: predicated region fallthrough
CT: control target
= control target key end

     0   :  { %vm45_vm0 = vcmask 261120   ;;  %vm518_vm6 = vcmask 130048   ;;  %vm596_vm10 = vcmask 105472   ;;  %s1025_s0 = inlined_call_operand.vmem [shape: bf16[64,32], index: 0, kind: input, shape index: {}]   ;;  %s1026_s3 = inlined_call_operand.vmem [shape: bf16[32,16], index: 3, kind: input, shape index: {}]   ;;  %s1027_s1 = inlined_call_operand.vmem [shape: f32[1,32], index: 1, kind: input, shape index: {}]   ;;  %s1028_s2 = inlined_call_operand.vmem [shape: f32[1,32], index: 2, kind: input, shape index: {}]   ;;  %s1029_s5 = inlined_call_operand.vmem [shape: bf16[16,13], index: 5, kind: input, shape index: {}]   ;;  %s1030_s4 = inlined_call_operand.vmem [shape: f32[1,16], index: 4, kind: input, shape index: {}]   ;;  %s1031_s6 = inlined_call_operand.vmem [shape: f32[1,13], index: 6, kind: input, shape index: {}]   ;;  %s1032_s7 = inlined_call_operand.vmem [shape: f32[64,13], index: 7, kind: output, shape index: {}]  }
   0x1   :  { %v625_v0 = vld [vmem:[%s1025_s0] sm:$0xff]   ;;  %v640_v1 = vld [vmem:[%s1025_s0 + $0x8] sm:$0xff]   ;;  %v641_v6 = vld [vmem:[%s1025_s0 + $0x10] sm:$0xff]  }
   0x2   :  { %v626_v2 = vunpack.c.l.bf16 %v625_v0  ;;  %v630_v3 = vunpack.c.l.bf16 %v640_v1  ;;  %v627_v4 = vunpack.c.h.bf16 %v625_v0  ;;  %v631_v5 = vunpack.c.h.bf16 %v640_v1  ;;  %v642_v13 = vld [vmem:[%s1025_s0 + $0x18] sm:$0xff]   ;;  %v676_v60 = vld [vmem:[%s1026_s3] sm:$0xff]   ;;  %v677_v61 = vld [vmem:[%s1026_s3 + $0x8] sm:$0xff]  }
   0x3   :  { %v634_v11 = vunpack.c.l.bf16 %v641_v6  ;;  %v635_v12 = vunpack.c.h.bf16 %v641_v6  ;;  %v638_v16 = vunpack.c.l.bf16 %v642_v13  ;;  %v639_v17 = vunpack.c.h.bf16 %v642_v13  ;;  %654 = vmatprep.subr.bf16.mxu0 %v676_v60 }
   0x4   :  { %v46_v7 = vsel %vm45_vm0, %v626_v2, 0.0  ;;  %v52_v8 = vsel %vm45_vm0, %v630_v3, 0.0  ;;  %v49_v9 = vsel %vm45_vm0, %v627_v4, 0.0  ;;  %v55_v10 = vsel %vm45_vm0, %v631_v5, 0.0  ;;  %655 = vmatpush3.bf16.msra.mxu0 %v676_v60 }
   0x5   :  { %47 = vadd.xlane.f32.xlu0 %v46_v7  ;;  %53 = vadd.xlane.f32.xlu1 %v52_v8  ;;  %v58_v14 = vsel %vm45_vm0, %v634_v11, 0.0  ;;  %v61_v15 = vsel %vm45_vm0, %v635_v12, 0.0  ;;  %v64_v18 = vsel %vm45_vm0, %v638_v16, 0.0  ;;  %v67_v19 = vsel %vm45_vm0, %v639_v17, 0.0 }
   0x6   :  { %656 = vmatprep.subr.bf16.mxu0 %v677_v61 }
   0x8   :  { %657 = vmatpush3.bf16.msra.mxu0 %v677_v61 }
   0x9   :  { %50 = vadd.xlane.f32.xlu0 %v49_v9  ;;  %56 = vadd.xlane.f32.xlu1 %v55_v10 }
   0xd   :  { %59 = vadd.xlane.f32.xlu0 %v58_v14  ;;  %62 = vadd.xlane.f32.xlu1 %v61_v15 }
  0x11   :  { %65 = vadd.xlane.f32.xlu0 %v64_v18  ;;  %68 = vadd.xlane.f32.xlu1 %v67_v19 }
  0x92   :  { %v48_v20 = vpop.xlane.xlu0 %47  ;;  %v54_v21 = vpop.xlane.xlu1 %53 }
  0x93   :  { %v71_v22 = vmul.f32 0.03125, %v48_v20  ;;  %v73_v23 = vmul.f32 0.03125, %v54_v21 }
  0x95   :  { %v787_v24 = vsub.f32 %v626_v2, %v71_v22  ;;  %v789_v25 = vsub.f32 %v630_v3, %v73_v23  ;;  %v609_v23 = vld [vmem:[%s1027_s1] ss:$0 sm:$0xff] }
  0x96   :  { %v51_v26 = vpop.xlane.xlu0 %50  ;;  %v57_v27 = vpop.xlane.xlu1 %56 }
  0x97   :  { %v72_v28 = vmul.f32 0.03125, %v51_v26  ;;  %v74_v29 = vmul.f32 0.03125, %v57_v27  ;;  %v87_v30 = vmul.f32 %v787_v24, %v787_v24  ;;  %v89_v31 = vmul.f32 %v789_v25, %v789_v25 }
  0x99   :  { %v795_v32 = vsub.f32 %v627_v4, %v72_v28  ;;  %v797_v33 = vsub.f32 %v631_v5, %v74_v29  ;;  %v95_v34 = vsel %vm45_vm0, %v87_v30, 0.0  ;;  %v101_v37 = vsel %vm45_vm0, %v89_v31, 0.0 }
  0x9a   :  { %96 = vadd.xlane.f32.xlu0 %v95_v34  ;;  %v60_v35 = vpop.xlane.xlu0 %59  ;;  %v63_v36 = vpop.xlane.xlu1 %62 }
  0x9b   :  { %v75_v38 = vmul.f32 0.03125, %v60_v35  ;;  %v76_v39 = vmul.f32 0.03125, %v63_v36  ;;  %v88_v40 = vmul.f32 %v795_v32, %v795_v32  ;;  %v90_v41 = vmul.f32 %v797_v33, %v797_v33 }
  0x9d   :  { %v805_v42 = vsub.f32 %v634_v11, %v75_v38  ;;  %v807_v43 = vsub.f32 %v635_v12, %v76_v39  ;;  %v98_v44 = vsel %vm45_vm0, %v88_v40, 0.0  ;;  %v104_v47 = vsel %vm45_vm0, %v90_v41, 0.0 }
  0x9e   :  { %102 = vadd.xlane.f32.xlu0 %v101_v37  ;;  %99 = vadd.xlane.f32.xlu1 %v98_v44  ;;  %v66_v45 = vpop.xlane.xlu0 %65  ;;  %v69_v46 = vpop.xlane.xlu1 %68 }
  0x9f   :  { %v77_v48 = vmul.f32 0.03125, %v66_v45  ;;  %v78_v49 = vmul.f32 0.03125, %v69_v46  ;;  %v91_v50 = vmul.f32 %v805_v42, %v805_v42  ;;  %v92_v51 = vmul.f32 %v807_v43, %v807_v43 }
  0xa1   :  { %v815_v52 = vsub.f32 %v638_v16, %v77_v48  ;;  %v817_v53 = vsub.f32 %v639_v17, %v78_v49  ;;  %v107_v54 = vsel %vm45_vm0, %v91_v50, 0.0  ;;  %v110_v55 = vsel %vm45_vm0, %v92_v51, 0.0 }
  0xa2   :  { %105 = vadd.xlane.f32.xlu1 %v104_v47  ;;  %108 = vadd.xlane.f32.xlu0 %v107_v54 }
  0xa3   :  { %v93_v56 = vmul.f32 %v815_v52, %v815_v52  ;;  %v94_v57 = vmul.f32 %v817_v53, %v817_v53 }
  0xa5   :  { %v113_v58 = vsel %vm45_vm0, %v93_v56, 0.0  ;;  %v116_v59 = vsel %vm45_vm0, %v94_v57, 0.0 }
  0xa6   :  { %111 = vadd.xlane.f32.xlu1 %v110_v55  ;;  %114 = vadd.xlane.f32.xlu0 %v113_v58 }
  0xaa   :  { %117 = vadd.xlane.f32.xlu1 %v116_v59 }
 0x127   :  { %v97_v62 = vpop.xlane.xlu0 %96 }
 0x128   :  { %v119_v63 = vmul.f32 0.03125, %v97_v62 }
 0x12a   :  { %v127_v0 = vadd.f32 1e-05, %v119_v63 }
 0x12b   :  { %v100_v1 = vpop.xlane.xlu1 %99  ;;  %v103_v2 = vpop.xlane.xlu0 %102 }
 0x12c   :  { %679 = vrsqrt.f32 %v127_v0  ;;  %v120_v3 = vmul.f32 0.03125, %v100_v1  ;;  %v121_v4 = vmul.f32 0.03125, %v103_v2 }
 0x12e   :  { %v128_v5 = vadd.f32 1e-05, %v120_v3  ;;  %v129_v6 = vadd.f32 1e-05, %v121_v4 }
 0x12f   :  { %v106_v7 = vpop.xlane.xlu1 %105  ;;  %v109_v8 = vpop.xlane.xlu0 %108 }
 0x130   :  { %681 = vrsqrt.f32 %v128_v5  ;;  %v122_v9 = vmul.f32 0.03125, %v106_v7  ;;  %v123_v10 = vmul.f32 0.03125, %v109_v8 }
 0x131   :  { %683 = vrsqrt.f32 %v129_v6 }
 0x132   :  { %v130_v11 = vadd.f32 1e-05, %v122_v9  ;;  %v131_v12 = vadd.f32 1e-05, %v123_v10 }
 0x133   :  { %v112_v13 = vpop.xlane.xlu1 %111  ;;  %v115_v14 = vpop.xlane.xlu0 %114 }
 0x134   :  { %685 = vrsqrt.f32 %v130_v11  ;;  %v124_v15 = vmul.f32 0.03125, %v112_v13  ;;  %v125_v16 = vmul.f32 0.03125, %v115_v14 }
 0x135   :  { %687 = vrsqrt.f32 %v131_v12 }
 0x136   :  { %v680_v17 = vpop.eup %679  ;;  %v132_v18 = vadd.f32 1e-05, %v124_v15  ;;  %v133_v19 = vadd.f32 1e-05, %v125_v16 }
 0x137   :  { %v118_v20 = vpop.xlane.xlu1 %117  ;;  %v143_v21 = vmul.f32 %v680_v17, %v787_v24  ;;  %v610_v24 = vld [vmem:[%s1028_s2] ss:$0 sm:$0xff] }
 0x138   :  { %689 = vrsqrt.f32 %v132_v18  ;;  %v126_v22 = vmul.f32 0.03125, %v118_v20 }
 0x139   :  { %691 = vrsqrt.f32 %v133_v19  ;;  %v157_v30 = vmul.f32 %v609_v23, %v143_v21 }
 0x13a   :  { %v682_v26 = vpop.eup %681  ;;  %v134_v27 = vadd.f32 1e-05, %v126_v22 }
 0x13b   :  { %v684_v28 = vpop.eup %683  ;;  %v144_v29 = vmul.f32 %v682_v26, %v795_v32  ;;  %v171_v38 = vadd.f32 %v610_v24, %v157_v30 }
 0x13c   :  { %v145_v31 = vmul.f32 %v684_v28, %v789_v25  ;;  %693 = vrsqrt.f32 %v134_v27 }
 0x13d   :  { %v158_v34 = vmul.f32 %v609_v23, %v144_v29 }
 0x13e   :  { %v686_v35 = vpop.eup %685  ;;  %v159_v40 = vmul.f32 %v609_v23, %v145_v31 }
 0x13f   :  { %v688_v36 = vpop.eup %687  ;;  %v146_v37 = vmul.f32 %v686_v35, %v797_v33  ;;  %v172_v39 = vadd.f32 %v610_v24, %v158_v34 }
 0x140   :  { %v147_v41 = vmul.f32 %v688_v36, %v805_v42  ;;  %v173_v47 = vadd.f32 %v610_v24, %v159_v40 }
 0x141   :  { %v179_v44 = vpack.c.bf16 %v172_v39, %v171_v38  ;;  %v160_v32 = vmul.f32 %v609_v23, %v146_v37 }
 0x142   :  { %v690_v45 = vpop.eup %689  ;;  %v161_v49 = vmul.f32 %v609_v23, %v147_v41 }
 0x143   :  { %v692_v46 = vpop.eup %691  ;;  %v148_v25 = vmul.f32 %v690_v45, %v807_v43  ;;  %658 = vmatprep.mubr.msk.bf16.mxu0 %vm45_vm0, %v179_v44  ;;  %v174_v48 = vadd.f32 %v610_v24, %v160_v32 }
 0x144   :  { %v149_v50 = vmul.f32 %v692_v46, %v815_v52  ;;  %v175_v42 = vadd.f32 %v610_v24, %v161_v49  ;;  %v678_v52 = vld [vmem:[%s1029_s5] sm:$0xff]  }
 0x145   :  { %v180_v51 = vpack.c.bf16 %v174_v48, %v173_v47  ;;  %v162_v33 = vmul.f32 %v609_v23, %v148_v25  ;;  %666 = vmatprep.subr.bf16.mxu1 %v678_v52 }
 0x146   :  { %v694_v54 = vpop.eup %693  ;;  %v163_v57 = vmul.f32 %v609_v23, %v149_v50  ;;  %667 = vmatpush3.bf16.msra.mxu1 %v678_v52 }
 0x147   :  { %v150_v55 = vmul.f32 %v694_v54, %v817_v53  ;;  %659 = vmatmul.mubr.msk.bf16.vlgmr.msra.gmra.mrb[0].mxu0 %vm45_vm0, %v180_v51  ;;  %v176_v56 = vadd.f32 %v610_v24, %v162_v33  ;;  %v611_v53 = vld [vmem:[%s1030_s4] ss:$0 sm:$0xff] }
 0x148   :  { %v177_v43 = vadd.f32 %v610_v24, %v163_v57 }
 0x149   :  { %v181_v58 = vpack.c.bf16 %v176_v56, %v175_v42  ;;  %v164_v59 = vmul.f32 %v609_v23, %v150_v55 }
 0x14b   :  { %662 = vmatprep.mubr.msk.bf16.mxu0 %vm45_vm0, %v181_v58  ;;  %v178_v60 = vadd.f32 %v610_v24, %v164_v59 }
 0x14d   :  { %v182_v61 = vpack.c.bf16 %v178_v60, %v177_v43 }
 0x14f   :  { %663 = vmatmul.mubr.msk.bf16.gmra.mrb[4].mxu0 %vm45_vm0, %v182_v61 }
 0x21a   :  { %v660_v62 = vpop.f32.mrb[0].mxu0 }
 0x21b   :  { %v261_v63 = vadd.f32 %v660_v62, %v611_v53  ;;  %v252_v0 = vpop.f32.mrb[1].mxu0 }
 0x21c   :  { %v253_v1 = vadd.f32 %v611_v53, %v252_v0  ;;  %v661_v2 = vpop.f32.mrb[2].mxu0 }
 0x21d   :  { %v857_v3 = vmul.f32 0.70710677, %v261_v63  ;;  %v859_v4 = vadd.f32 %v661_v2, %v611_v53  ;;  %v255_v5 = vpop.f32.mrb[3].mxu0  ;;  %v898_v46 = vmul.f32 0.5, %v261_v63 }
 0x21e   :  { %v861_v6 = vmul.f32 0.70710677, %v253_v1  ;;  %v863_v7 = vadd.f32 %v611_v53, %v255_v5  ;;  %v902_v50 = vmul.f32 0.5, %v253_v1 }
 0x21f   :  { %v301_v8 = vand.u32 2147483647, %v857_v3  ;;  %v867_v9 = vmul.f32 0.70710677, %v859_v4  ;;  %vm461_vm1 = vcmp.ge.f32.partialorder %v857_v3, 0.0 }
 0x220   :  { %v299_v10 = vand.u32 2147483647, %v861_v6  ;;  %v871_v11 = vmul.f32 0.70710677, %v863_v7  ;;  %vm459_vm2 = vcmp.ge.f32.partialorder %v861_v6, 0.0  ;;  %v284_v6 = vmul.f32 0.5, %v863_v7 }
 0x221   :  { %v309_v12 = vmul.f32 0.3275911, %v301_v8  ;;  %v302_v13 = vand.u32 2147483647, %v867_v9  ;;  %v413_v30 = vsub.f32 0.0, %v301_v8  ;;  %vm462_vm3 = vcmp.ge.f32.partialorder %v867_v9, 0.0 }
 0x222   :  { %v307_v14 = vmul.f32 0.3275911, %v299_v10  ;;  %v300_v15 = vand.u32 2147483647, %v871_v11  ;;  %v664_v18 = vpop.f32.mrb[4].mxu0  ;;  %v411_v37 = vsub.f32 0.0, %v299_v10 }
 0x223   :  { %v317_v16 = vadd.f32 1.0, %v309_v12  ;;  %v310_v17 = vmul.f32 0.3275911, %v302_v13  ;;  %v268_v21 = vpop.f32.mrb[5].mxu0  ;;  %v875_v28 = vadd.f32 %v664_v18, %v611_v53  ;;  %v421_v39 = vmul.f32 %v413_v30, %v301_v8 }
 0x224   :  { %v315_v19 = vadd.f32 1.0, %v307_v14  ;;  %v308_v20 = vmul.f32 0.3275911, %v300_v15  ;;  %v665_v23 = vpop.f32.mrb[6].mxu0  ;;  %v877_v29 = vadd.f32 %v611_v53, %v268_v21  ;;  %v414_v40 = vsub.f32 0.0, %v302_v13 }
 0x225   :  { %695 = vrcp.f32 %v317_v16  ;;  %v318_v22 = vadd.f32 1.0, %v310_v17  ;;  %v271_v26 = vpop.f32.mrb[7].mxu0  ;;  %v879_v31 = vadd.f32 %v665_v23, %v611_v53  ;;  %v882_v24 = vmul.f32 0.70710677, %v875_v28 }
 0x226   :  { %697 = vrcp.f32 %v315_v19  ;;  %v316_v27 = vadd.f32 1.0, %v308_v20  ;;  %v884_v34 = vadd.f32 %v611_v53, %v271_v26  ;;  %v887_v35 = vmul.f32 0.70710677, %v877_v29 }
 0x227   :  { %699 = vrcp.f32 %v318_v22  ;;  %v890_v36 = vmul.f32 0.70710677, %v879_v31  ;;  %v305_v38 = vand.u32 2147483647, %v882_v24  ;;  %v412_v25 = vsub.f32 0.0, %v300_v15 }
 0x228   :  { %701 = vrcp.f32 %v316_v27  ;;  %v303_v41 = vand.u32 2147483647, %v887_v35  ;;  %v896_v45 = vmul.f32 0.70710677, %v884_v34  ;;  %v419_v51 = vmul.f32 %v411_v37, %v299_v10 }
 0x229   :  { %v306_v44 = vand.u32 2147483647, %v890_v36  ;;  %v313_v32 = vmul.f32 0.3275911, %v305_v38  ;;  %v431_v56 = vmul.f32 1.442695, %v421_v39  ;;  %v422_v57 = vmul.f32 %v414_v40, %v302_v13 }
 0x22a   :  { %v311_v47 = vmul.f32 0.3275911, %v303_v41  ;;  %v304_v54 = vand.u32 2147483647, %v896_v45  ;;  %v417_v59 = vsub.f32 0.0, %v305_v38  ;;  %v420_v52 = vmul.f32 %v412_v25, %v300_v15 }
 0x22b   :  { %v314_v48 = vmul.f32 0.3275911, %v306_v44  ;;  %v321_v33 = vadd.f32 1.0, %v313_v32  ;;  %v415_v53 = vsub.f32 0.0, %v303_v41  ;;  %v427_v63 = vmul.f32 1.442695, %v419_v51 }
 0x22c   :  { %v319_v58 = vadd.f32 1.0, %v311_v47  ;;  %v312_v60 = vmul.f32 0.3275911, %v304_v54  ;;  %v418_v0 = vsub.f32 0.0, %v306_v44  ;;  %v416_v10 = vsub.f32 0.0, %v304_v54 }
 0x22d   :  { %703 = vrcp.f32 %v321_v33  ;;  %v322_v43 = vadd.f32 1.0, %v314_v48  ;;  %v433_v13 = vmul.f32 1.442695, %v422_v57  ;;  %v425_v14 = vmul.f32 %v417_v59, %v305_v38 }
 0x22e   :  { %705 = vrcp.f32 %v319_v58  ;;  %v320_v1 = vadd.f32 1.0, %v312_v60  ;;  %v429_v18 = vmul.f32 1.442695, %v420_v52  ;;  %v423_v19 = vmul.f32 %v415_v53, %v303_v41 }
 0x22f   :  { %v900_v49 = vpop.eup %695  ;;  %707 = vpow2.f32 %v431_v56  ;;  %v426_v20 = vmul.f32 %v418_v0, %v306_v44  ;;  %v919_v26 = vmul.f32 0.5, %v859_v4  ;;  %v424_v30 = vmul.f32 %v416_v10, %v304_v54 }
 0x230   :  { %v905_v55 = vpop.eup %697  ;;  %v341_v42 = vmul.f32 1.0614054, %v900_v49  ;;  %709 = vrcp.f32 %v322_v43  ;;  %v439_v37 = vmul.f32 1.442695, %v425_v14  ;;  %v435_v44 = vmul.f32 1.442695, %v423_v19 }
 0x231   :  { %v908_v62 = vpop.eup %699  ;;  %v339_v2 = vmul.f32 1.0614054, %v905_v55  ;;  %711 = vrcp.f32 %v320_v1  ;;  %v441_v25 = vmul.f32 1.442695, %v426_v20  ;;  %vm460_vm4 = vcmp.ge.f32.partialorder %v871_v11, 0.0 }
 0x232   :  { %v349_v61 = vadd.f32 -1.4531521, %v341_v42  ;;  %v342_v8 = vmul.f32 1.0614054, %v908_v62  ;;  %v913_v12 = vpop.eup %701  ;;  %713 = vpow2.f32 %v427_v63  ;;  %v437_v42 = vmul.f32 1.442695, %v424_v30 }
 0x233   :  { %v347_v15 = vadd.f32 -1.4531521, %v339_v2  ;;  %v340_v21 = vmul.f32 1.0614054, %v913_v12  ;;  %715 = vpow2.f32 %v433_v13  ;;  %vm465_vm5 = vcmp.ge.f32.partialorder %v882_v24, 0.0 }
 0x234   :  { %v357_v5 = vmul.f32 %v900_v49, %v349_v61  ;;  %v350_v17 = vadd.f32 -1.4531521, %v342_v8  ;;  %717 = vpow2.f32 %v429_v18  ;;  %vm463_vm7 = vcmp.ge.f32.partialorder %v887_v35, 0.0 }
 0x235   :  { %v355_v22 = vmul.f32 %v905_v55, %v347_v15  ;;  %v348_v38 = vadd.f32 -1.4531521, %v340_v21  ;;  %719 = vpow2.f32 %v439_v37  ;;  %vm466_vm8 = vcmp.ge.f32.partialorder %v890_v36, 0.0 }
 0x236   :  { %v365_v16 = vadd.f32 1.4214138, %v357_v5  ;;  %v358_v27 = vmul.f32 %v908_v62, %v350_v17  ;;  %721 = vpow2.f32 %v435_v44  ;;  %vm464_vm9 = vcmp.ge.f32.partialorder %v896_v45, 0.0 }
 0x237   :  { %v363_v39 = vadd.f32 1.4214138, %v355_v22  ;;  %v922_v32 = vpop.eup %703  ;;  %v356_v47 = vmul.f32 %v913_v12, %v348_v38  ;;  %723 = vpow2.f32 %v441_v25  ;;  %v288_v36 = vmul.f32 0.5, %v884_v34 }
 0x238   :  { %v373_v23 = vmul.f32 %v900_v49, %v365_v16  ;;  %v366_v41 = vadd.f32 1.4214138, %v358_v27  ;;  %v926_v48 = vpop.eup %705  ;;  %v345_v54 = vmul.f32 1.0614054, %v922_v32  ;;  %725 = vpow2.f32 %v437_v42 }
 0x239   :  { %v371_v4 = vmul.f32 %v905_v55, %v363_v39  ;;  %v343_v56 = vmul.f32 1.0614054, %v926_v48  ;;  %v364_v57 = vadd.f32 1.4214138, %v356_v47  ;;  %v708_v59 = vpop.eup %707 }
 0x23a   :  { %v381_v40 = vadd.f32 -0.28449672, %v373_v23  ;;  %v374_v33 = vmul.f32 %v908_v62, %v366_v41  ;;  %v353_v61 = vadd.f32 -1.4531521, %v345_v54  ;;  %v932_v52 = vpop.eup %709 }
 0x23b   :  { %v379_v58 = vadd.f32 -0.28449672, %v371_v4  ;;  %v351_v53 = vadd.f32 -1.4531521, %v343_v56  ;;  %v372_v63 = vmul.f32 %v913_v12, %v364_v57  ;;  %v346_v8 = vmul.f32 1.0614054, %v932_v52  ;;  %v941_v10 = vpop.eup %711 }
 0x23c   :  { %v389_v51 = vmul.f32 %v900_v49, %v381_v40  ;;  %v382_v60 = vadd.f32 -0.28449672, %v374_v33  ;;  %v361_v5 = vmul.f32 %v922_v32, %v353_v61  ;;  %v714_v20 = vpop.eup %713  ;;  %v344_v21 = vmul.f32 1.0614054, %v941_v10 }
 0x23d   :  { %v387_v0 = vmul.f32 %v905_v55, %v379_v58  ;;  %v359_v13 = vmul.f32 %v926_v48, %v351_v53  ;;  %v380_v14 = vadd.f32 -0.28449672, %v372_v63  ;;  %v354_v19 = vadd.f32 -1.4531521, %v346_v8  ;;  %v716_v27 = vpop.eup %715 }
 0x23e   :  { %v397_v43 = vadd.f32 0.2548296, %v389_v51  ;;  %v390_v2 = vmul.f32 %v908_v62, %v382_v60  ;;  %v369_v18 = vadd.f32 1.4214138, %v361_v5  ;;  %v718_v40 = vpop.eup %717  ;;  %v352_v44 = vadd.f32 -1.4531521, %v344_v21 }
 0x23f   :  { %v395_v15 = vadd.f32 0.2548296, %v387_v0  ;;  %v388_v22 = vmul.f32 %v913_v12, %v380_v14  ;;  %v362_v39 = vmul.f32 %v932_v52, %v354_v19  ;;  %v720_v42 = vpop.eup %719 }
 0x240   :  { %v405_v1 = vmul.f32 %v900_v49, %v397_v43  ;;  %v398_v17 = vadd.f32 0.2548296, %v390_v2  ;;  %v367_v49 = vadd.f32 1.4214138, %v359_v13  ;;  %v377_v38 = vmul.f32 %v922_v32, %v369_v18  ;;  %v722_v58 = vpop.eup %721 }
 0x241   :  { %v403_v23 = vmul.f32 %v905_v55, %v395_v15  ;;  %v396_v25 = vadd.f32 0.2548296, %v388_v22  ;;  %v370_v54 = vadd.f32 1.4214138, %v362_v39  ;;  %v360_v56 = vmul.f32 %v941_v10, %v352_v44  ;;  %v724_v53 = vpop.eup %723 }
 0x242   :  { %v445_v16 = vmul.f32 %v708_v59, %v405_v1  ;;  %v406_v37 = vmul.f32 %v908_v62, %v398_v17  ;;  %v375_v41 = vmul.f32 %v926_v48, %v367_v49  ;;  %v385_v33 = vadd.f32 -0.28449672, %v377_v38  ;;  %v726_v14 = vpop.eup %725 }
 0x243   :  { %v443_v47 = vmul.f32 %v714_v20, %v403_v23  ;;  %v404_v62 = vmul.f32 %v913_v12, %v396_v25  ;;  %v378_v61 = vmul.f32 %v932_v52, %v370_v54  ;;  %v368_v1 = vadd.f32 1.4214138, %v360_v56 }
 0x244   :  { %v453_v30 = vsub.f32 1.0, %v445_v16  ;;  %v446_v51 = vmul.f32 %v716_v27, %v406_v37  ;;  %v383_v55 = vadd.f32 -0.28449672, %v375_v41  ;;  %v393_v60 = vmul.f32 %v922_v32, %v385_v33 }
 0x245   :  { %v451_v57 = vsub.f32 1.0, %v443_v47  ;;  %v444_v2 = vmul.f32 %v718_v40, %v404_v62  ;;  %v386_v13 = vadd.f32 -0.28449672, %v378_v61  ;;  %v376_v15 = vmul.f32 %v941_v10, %v368_v1 }
 0x246   :  { %v469_v4 = vsub.f32 0.0, %v453_v30  ;;  %v454_v43 = vsub.f32 1.0, %v446_v51  ;;  %v391_v0 = vmul.f32 %v926_v48, %v383_v55  ;;  %v401_v8 = vadd.f32 0.2548296, %v393_v60 }
 0x247   :  { %v467_v12 = vsub.f32 0.0, %v451_v57  ;;  %v452_v16 = vsub.f32 1.0, %v444_v2  ;;  %v394_v19 = vmul.f32 %v932_v52, %v386_v13  ;;  %v384_v22 = vadd.f32 -0.28449672, %v376_v15 }
 0x248   :  { %v477_v59 = vsel %vm461_vm1, %v453_v30, %v469_v4  ;;  %v470_v5 = vsub.f32 0.0, %v454_v43  ;;  %v399_v3 = vadd.f32 0.2548296, %v391_v0  ;;  %v409_v18 = vmul.f32 %v922_v32, %v401_v8 }
 0x249   :  { %v485_v63 = vadd.f32 1.0, %v477_v59  ;;  %v475_v20 = vsel %vm459_vm2, %v451_v57, %v467_v12  ;;  %v468_v23 = vsub.f32 0.0, %v452_v16  ;;  %v402_v37 = vadd.f32 0.2548296, %v394_v19 }
 0x24a   :  { %v478_v17 = vsel %vm462_vm3, %v454_v43, %v470_v5  ;;  %v407_v21 = vmul.f32 %v926_v48, %v399_v3  ;;  %v449_v30 = vmul.f32 %v720_v42, %v409_v18  ;;  %v483_v38 = vadd.f32 1.0, %v475_v20 }
 0x24b   :  { %v486_v49 = vadd.f32 1.0, %v478_v17  ;;  %v493_v27 = vmul.f32 %v485_v63, %v898_v46  ;;  %v392_v32 = vmul.f32 %v941_v10, %v384_v22  ;;  %v476_v40 = vsel %vm460_vm4, %v452_v16, %v468_v23 }
 0x24c   :  { %v447_v39 = vmul.f32 %v722_v58, %v407_v21  ;;  %v457_v41 = vsub.f32 1.0, %v449_v30  ;;  %v410_v48 = vmul.f32 %v932_v52, %v402_v37  ;;  %v484_v44 = vadd.f32 1.0, %v476_v40 }
 0x24d   :  { %v494_v9 = vmul.f32 %v486_v49, %v919_v26  ;;  %v400_v46 = vadd.f32 0.2548296, %v392_v32  ;;  %v491_v33 = vmul.f32 %v483_v38, %v902_v50  ;;  %v290_v58 = vmul.f32 0.5, %v879_v31 }
 0x24e   :  { %v455_v47 = vsub.f32 1.0, %v447_v39  ;;  %v473_v4 = vsub.f32 0.0, %v457_v41  ;;  %v450_v51 = vmul.f32 %v724_v53, %v410_v48  ;;  %v492_v26 = vmul.f32 %v484_v44, %v284_v6 }
 0x24f   :  { %v500_v25 = vpack.c.bf16 %v494_v9, %v493_v27  ;;  %v408_v11 = vmul.f32 %v941_v10, %v400_v46  ;;  %v289_v10 = vmul.f32 0.5, %v875_v28  ;;  %v287_v63 = vmul.f32 0.5, %v877_v29  ;;  %v618_v28 = vld [vmem:[%s1031_s6] ss:$0 sm:$0xff] }
 0x250   :  { %v471_v54 = vsub.f32 0.0, %v455_v47  ;;  %v481_v42 = vsel %vm465_vm5, %v457_v41, %v473_v4  ;;  %v458_v7 = vsub.f32 1.0, %v450_v51  ;;  %v499_v55 = vpack.c.bf16 %v492_v26, %v491_v33 }
 0x251   :  { %v448_v56 = vmul.f32 %v726_v14, %v408_v11  ;;  %v489_v62 = vadd.f32 1.0, %v481_v42 }
 0x252   :  { %v474_v52 = vsub.f32 0.0, %v458_v7  ;;  %668 = vmatprep.mubr.msk.bf16.mxu1 %vm518_vm6, %v499_v55  ;;  %v479_v57 = vsel %vm463_vm7, %v455_v47, %v471_v54 }
 0x253   :  { %v456_v50 = vsub.f32 1.0, %v448_v56  ;;  %669 = vmatmul.mubr.msk.bf16.vlgmr.msra.gmra.mrb[0].mxu1 %vm518_vm6, %v500_v25  ;;  %v487_v60 = vadd.f32 1.0, %v479_v57  ;;  %v497_v35 = vmul.f32 %v489_v62, %v289_v10 }
 0x254   :  { %v482_v24 = vsel %vm466_vm8, %v458_v7, %v474_v52 }
 0x255   :  { %v490_v59 = vadd.f32 1.0, %v482_v24  ;;  %v472_v43 = vsub.f32 0.0, %v456_v50  ;;  %v495_v2 = vmul.f32 %v487_v60, %v287_v63 }
 0x257   :  { %v498_v61 = vmul.f32 %v490_v59, %v290_v58  ;;  %v480_v53 = vsel %vm464_vm9, %v456_v50, %v472_v43 }
 0x258   :  { %v488_v0 = vadd.f32 1.0, %v480_v53 }
 0x259   :  { %v502_v1 = vpack.c.bf16 %v498_v61, %v497_v35 }
 0x25a   :  { %v496_v5 = vmul.f32 %v488_v0, %v288_v36 }
 0x25c   :  { %v501_v8 = vpack.c.bf16 %v496_v5, %v495_v2 }
 0x25e   :  { %672 = vmatprep.mubr.msk.bf16.mxu1 %vm518_vm6, %v501_v8 }
 0x25f   :  { %673 = vmatmul.mubr.msk.bf16.gmra.mrb[4].mxu1 %vm518_vm6, %v502_v1 }
 0x326   :  { %v670_v31 = vpop.f32.mrb[0].mxu1 }
 0x327   :  { %v574_v45 = vadd.f32 %v670_v31, %v618_v28  ;;  %v565_v13 = vpop.f32.mrb[1].mxu1 }
 0x328   :  { %v566_v29 = vadd.f32 %v618_v28, %v565_v13  ;;  %v671_v12 = vpop.f32.mrb[2].mxu1 }
 0x329   :  { %599 = vst.msk [vmem:[%s1032_s7 + $0x10] sm:$0xff] %vm596_vm10, %v574_v45  ;;  %v577_v34 = vadd.f32 %v671_v12, %v618_v28  ;;  %v568_v14 = vpop.f32.mrb[3].mxu1 }
 0x32a   :  { %597 = vst.msk [vmem:[%s1032_s7] sm:$0xff] %vm596_vm10, %v566_v29  ;;  %v569_v3 = vadd.f32 %v618_v28, %v568_v14 }
 0x32b   :  { %600 = vst.msk [vmem:[%s1032_s7 + $0x18] sm:$0xff] %vm596_vm10, %v577_v34 }
 0x32c   :  { %598 = vst.msk [vmem:[%s1032_s7 + $0x8] sm:$0xff] %vm596_vm10, %v569_v3 }
 0x332   :  { %v674_v15 = vpop.f32.mrb[4].mxu1 }
 0x333   :  { %v590_v16 = vadd.f32 %v674_v15, %v618_v28  ;;  %v581_v17 = vpop.f32.mrb[5].mxu1 }
 0x334   :  { %v582_v18 = vadd.f32 %v618_v28, %v581_v17  ;;  %v675_v19 = vpop.f32.mrb[6].mxu1 }
 0x335   :  { %603 = vst.msk [vmem:[%s1032_s7 + $0x30] sm:$0xff] %vm596_vm10, %v590_v16  ;;  %v593_v20 = vadd.f32 %v675_v19, %v618_v28  ;;  %v584_v49 = vpop.f32.mrb[7].mxu1 }
 0x336   :  { %601 = vst.msk [vmem:[%s1032_s7 + $0x20] sm:$0xff] %vm596_vm10, %v582_v18  ;;  %v585_v21 = vadd.f32 %v618_v28, %v584_v49 }
 0x337   :  { %604 = vst.msk [vmem:[%s1032_s7 + $0x38] sm:$0xff] %vm596_vm10, %v593_v20 }
 0x338   :  { %602 = vst.msk [vmem:[%s1032_s7 + $0x28] sm:$0xff] %vm596_vm10, %v585_v21 }

</bundles_post_ra>
